<compile_context>
chip_gen: v7x
topology: tpu7x:2x2x1
jax: 0.10.0
libtpu: 0.0.40
codegen_flags: <defaults>
</compile_context>

<pallas_src>
import jax
import jax.numpy as jnp
from jax.experimental import pallas as pl
from jax.experimental.pallas import tpu as pltpu


DIM_IN = 65
DIM_IN_PAD = 128            # lane-aligned K for the first matmul
ENC_DIMS = [2048, 1024, 512, 256, 128]
HEAD_DIMS = [64, 32]
BN_EPS = 1e-5
NORM_EPS = 1e-12


def _lin_bn_relu(h, w_ref, b_ref, g_ref, beta_ref):
    # Linear on the MXU: bf16 x bf16 -> f32 accumulate.
    z = jnp.dot(h.astype(jnp.bfloat16), w_ref[...],
                preferred_element_type=jnp.float32) + b_ref[...]
    # BatchNorm1d in training mode, folded into one scale/shift FMA:
    #   mu  = mean(z),  var = E[z^2] - mu^2   (biased variance, single pass)
    mu = jnp.mean(z, axis=0, keepdims=True)
    var = jnp.maximum(jnp.mean(z * z, axis=0, keepdims=True) - mu * mu, 0.0)
    scale = g_ref[...] * jax.lax.rsqrt(var + BN_EPS)
    shift = beta_ref[...] - mu * scale
    # one FMA + ReLU
    return jnp.maximum(z * scale + shift, 0.0)


def supcon_kernel(x_ref,
                  w1, b1, g1, be1,
                  w2, b2, g2, be2,
                  w3, b3, g3, be3,
                  w4, b4, g4, be4,
                  w5, b5, g5, be5,
                  wh1, bh1, wh2, bh2,
                  o_ref):
    h = x_ref[...].astype(jnp.float32)

    # ----- encoder: 5 x (Linear -> BN1d -> ReLU) -----
    h = _lin_bn_relu(h, w1, b1, g1, be1)
    h = _lin_bn_relu(h, w2, b2, g2, be2)
    h = _lin_bn_relu(h, w3, b3, g3, be3)
    h = _lin_bn_relu(h, w4, b4, g4, be4)
    h = _lin_bn_relu(h, w5, b5, g5, be5)

    # ----- F.normalize(out): L2-normalize along dim=1 (rsqrt form) -----
    # 1/max(||h||, eps) == rsqrt(max(sum(h^2), eps^2))  (sqrt is monotone)
    sumsq = jnp.sum(h * h, axis=1, keepdims=True)
    h = h * jax.lax.rsqrt(jnp.maximum(sumsq, NORM_EPS * NORM_EPS))

    # ----- head: Linear(128,64) -> ReLU -> Linear(64,32) -----
    h = jnp.dot(h.astype(jnp.bfloat16), wh1[...],
                preferred_element_type=jnp.float32) + bh1[...]
    h = jnp.maximum(h, 0.0)
    h = jnp.dot(h.astype(jnp.bfloat16), wh2[...],
                preferred_element_type=jnp.float32) + bh2[...]

    o_ref[...] = h.astype(o_ref.dtype)


def init_params(key):
    """Deterministic PyTorch-style Linear init; BN gamma=1, beta=0.

    Weights are returned transposed (in, out) and cast to bf16; biases and
    BN affine params stay f32 (tiny, added after the f32 accumulation).
    The first weight is zero-padded along the input dim 65 -> 128.
    """
    params = []

    def linear(key, fan_in, fan_out, pad_in_to=None):
        k_w, k_b = jax.random.split(key)
        bound = 1.0 / jnp.sqrt(float(fan_in))
        w = jax.random.uniform(k_w, (fan_in, fan_out), jnp.float32, -bound, bound)
        if pad_in_to is not None and pad_in_to > fan_in:
            w = jnp.pad(w, ((0, pad_in_to - fan_in), (0, 0)))
        b = jax.random.uniform(k_b, (1, fan_out), jnp.float32, -bound, bound)
        return w.astype(jnp.bfloat16), b

    dims = [DIM_IN] + ENC_DIMS
    keys = jax.random.split(key, 8)
    for i in range(5):
        pad_to = DIM_IN_PAD if i == 0 else None
        w, b = linear(keys[i], dims[i], dims[i + 1], pad_in_to=pad_to)
        gamma = jnp.ones((1, dims[i + 1]), jnp.float32)
        beta = jnp.zeros((1, dims[i + 1]), jnp.float32)
        params += [w, b, gamma, beta]

    wh1, bh1 = linear(keys[5], ENC_DIMS[-1], HEAD_DIMS[0])
    wh2, bh2 = linear(keys[6], HEAD_DIMS[0], HEAD_DIMS[1])
    params += [wh1, bh1, wh2, bh2]
    return params


@jax.jit
def model_supcon(x, *params):
    batch = x.shape[0]
    # Zero-pad features 65 -> 128: makes the x load and the first matmul's
    # K dim lane-dense; zeros contribute nothing since W1 rows are zero-padded.
    x_pad = jnp.pad(x, ((0, 0), (0, DIM_IN_PAD - x.shape[1])))
    n_inputs = 1 + len(params)
    # TODO(synk): for batch >> a few hundred rows, add a batch grid with
    # VMEM-resident weights and a two-pass BN reduction (per-tile stats would
    # diverge from PyTorch batch statistics if tiled naively).
    return pl.pallas_call(
        supcon_kernel,
        out_shape=jax.ShapeDtypeStruct((batch, HEAD_DIMS[1]), jnp.float32),
        # No grid: every operand is loaded as one full block resident in VMEM.
        # Footprint: ~5.7 MiB bf16 weights + small activations -> 48 MiB limit
        # is safe on v5e/v6e (128 MiB) and v7x (64 MiB physical per TC).
        in_specs=[pl.BlockSpec(memory_space=pltpu.MemorySpace.VMEM)] * n_inputs,
        out_specs=pl.BlockSpec(memory_space=pltpu.MemorySpace.VMEM),
        compiler_params=pltpu.CompilerParams(vmem_limit_bytes=48 << 20),
    )(x_pad, *params)


if __name__ == "__main__":
    key = jax.random.PRNGKey(0)
    k_x, k_p = jax.random.split(key)

    batch = 8
    x = jax.random.normal(k_x, (batch, DIM_IN), jnp.float32)
    params = init_params(k_p)

    out = model_supcon(x, *params)
    jax.block_until_ready(out)

    assert out.shape == (batch, HEAD_DIMS[1]), out.shape
    assert bool(jnp.all(jnp.isfinite(out)))
    print("KERNEL_OK")
</pallas_src>

<mosaic_0001>
module attributes {stable_mosaic.version = 11 : i64} {
  func.func @supcon_kernel(%arg0: memref<8x128xf32, #tpu.memory_space<vmem>>, %arg1: memref<128x2048xbf16, #tpu.memory_space<vmem>>, %arg2: memref<1x2048xf32, #tpu.memory_space<vmem>>, %arg3: memref<1x2048xf32, #tpu.memory_space<vmem>>, %arg4: memref<1x2048xf32, #tpu.memory_space<vmem>>, %arg5: memref<2048x1024xbf16, #tpu.memory_space<vmem>>, %arg6: memref<1x1024xf32, #tpu.memory_space<vmem>>, %arg7: memref<1x1024xf32, #tpu.memory_space<vmem>>, %arg8: memref<1x1024xf32, #tpu.memory_space<vmem>>, %arg9: memref<1024x512xbf16, #tpu.memory_space<vmem>>, %arg10: memref<1x512xf32, #tpu.memory_space<vmem>>, %arg11: memref<1x512xf32, #tpu.memory_space<vmem>>, %arg12: memref<1x512xf32, #tpu.memory_space<vmem>>, %arg13: memref<512x256xbf16, #tpu.memory_space<vmem>>, %arg14: memref<1x256xf32, #tpu.memory_space<vmem>>, %arg15: memref<1x256xf32, #tpu.memory_space<vmem>>, %arg16: memref<1x256xf32, #tpu.memory_space<vmem>>, %arg17: memref<256x128xbf16, #tpu.memory_space<vmem>>, %arg18: memref<1x128xf32, #tpu.memory_space<vmem>>, %arg19: memref<1x128xf32, #tpu.memory_space<vmem>>, %arg20: memref<1x128xf32, #tpu.memory_space<vmem>>, %arg21: memref<128x64xbf16, #tpu.memory_space<vmem>>, %arg22: memref<1x64xf32, #tpu.memory_space<vmem>>, %arg23: memref<64x32xbf16, #tpu.memory_space<vmem>>, %arg24: memref<1x32xf32, #tpu.memory_space<vmem>>, %arg25: memref<8x32xf32, #tpu.memory_space<vmem>>) attributes {dimension_semantics = [], scalar_prefetch = 0 : i64, scratch_operands = 0 : i64, tpu.core_type = #tpu.core_type<tc>} {
    %c0 = arith.constant 0 : index
    %c0_0 = arith.constant 0 : index
    %0 = vector.load %arg0[%c0, %c0_0] : memref<8x128xf32, #tpu.memory_space<vmem>>, vector<8x128xf32>
    %1 = arith.truncf %0 : vector<8x128xf32> to vector<8x128xbf16>
    %c0_1 = arith.constant 0 : index
    %c0_2 = arith.constant 0 : index
    %2 = vector.load %arg1[%c0_1, %c0_2] : memref<128x2048xbf16, #tpu.memory_space<vmem>>, vector<128x2048xbf16>
    %cst = arith.constant dense<0.000000e+00> : vector<8x2048xf32>
    %3 = tpu.matmul %1, %2, %cst {dimension_numbers = #tpu.dot_dimension_numbers<[1], [0], [0], [1], [0, 0, 1, 1], [], []>} : vector<8x128xbf16>, vector<128x2048xbf16>, vector<8x2048xf32> -> vector<8x2048xf32>
    %c0_3 = arith.constant 0 : index
    %c0_4 = arith.constant 0 : index
    %4 = vector.load %arg2[%c0_3, %c0_4] : memref<1x2048xf32, #tpu.memory_space<vmem>>, vector<1x2048xf32>
    %5 = vector.broadcast %4 : vector<1x2048xf32> to vector<8x2048xf32>
    %6 = arith.addf %3, %5 : vector<8x2048xf32>
    %cst_5 = arith.constant dense<0.000000e+00> : vector<2048xf32>
    %7 = vector.multi_reduction <add>, %6, %cst_5 [0] : vector<8x2048xf32> to vector<2048xf32>
    %8 = vector.shape_cast %7 : vector<2048xf32> to vector<1x2048xf32>
    %cst_6 = arith.constant 8.000000e+00 : f32
    %9 = vector.broadcast %cst_6 : f32 to vector<1x2048xf32>
    %10 = arith.divf %8, %9 : vector<1x2048xf32>
    %11 = arith.mulf %6, %6 : vector<8x2048xf32>
    %cst_7 = arith.constant dense<0.000000e+00> : vector<2048xf32>
    %12 = vector.multi_reduction <add>, %11, %cst_7 [0] : vector<8x2048xf32> to vector<2048xf32>
    %13 = vector.shape_cast %12 : vector<2048xf32> to vector<1x2048xf32>
    %cst_8 = arith.constant 8.000000e+00 : f32
    %14 = vector.broadcast %cst_8 : f32 to vector<1x2048xf32>
    %15 = arith.divf %13, %14 : vector<1x2048xf32>
    %16 = arith.mulf %10, %10 : vector<1x2048xf32>
    %17 = arith.subf %15, %16 : vector<1x2048xf32>
    %cst_9 = arith.constant 0.000000e+00 : f32
    %18 = vector.broadcast %cst_9 : f32 to vector<1x2048xf32>
    %19 = arith.maximumf %17, %18 : vector<1x2048xf32>
    %c0_10 = arith.constant 0 : index
    %c0_11 = arith.constant 0 : index
    %20 = vector.load %arg3[%c0_10, %c0_11] : memref<1x2048xf32, #tpu.memory_space<vmem>>, vector<1x2048xf32>
    %cst_12 = arith.constant 9.99999974E-6 : f32
    %21 = vector.broadcast %cst_12 : f32 to vector<1x2048xf32>
    %22 = arith.addf %19, %21 : vector<1x2048xf32>
    %23 = math.rsqrt %22 : vector<1x2048xf32>
    %24 = arith.mulf %20, %23 : vector<1x2048xf32>
    %c0_13 = arith.constant 0 : index
    %c0_14 = arith.constant 0 : index
    %25 = vector.load %arg4[%c0_13, %c0_14] : memref<1x2048xf32, #tpu.memory_space<vmem>>, vector<1x2048xf32>
    %26 = arith.mulf %10, %24 : vector<1x2048xf32>
    %27 = arith.subf %25, %26 : vector<1x2048xf32>
    %28 = vector.broadcast %24 : vector<1x2048xf32> to vector<8x2048xf32>
    %29 = arith.mulf %6, %28 : vector<8x2048xf32>
    %30 = vector.broadcast %27 : vector<1x2048xf32> to vector<8x2048xf32>
    %31 = arith.addf %29, %30 : vector<8x2048xf32>
    %cst_15 = arith.constant 0.000000e+00 : f32
    %32 = vector.broadcast %cst_15 : f32 to vector<8x2048xf32>
    %33 = arith.maximumf %31, %32 : vector<8x2048xf32>
    %34 = arith.truncf %33 : vector<8x2048xf32> to vector<8x2048xbf16>
    %c0_16 = arith.constant 0 : index
    %c0_17 = arith.constant 0 : index
    %35 = vector.load %arg5[%c0_16, %c0_17] : memref<2048x1024xbf16, #tpu.memory_space<vmem>>, vector<2048x1024xbf16>
    %cst_18 = arith.constant dense<0.000000e+00> : vector<8x1024xf32>
    %36 = tpu.matmul %34, %35, %cst_18 {dimension_numbers = #tpu.dot_dimension_numbers<[1], [0], [0], [1], [0, 0, 1, 1], [], []>} : vector<8x2048xbf16>, vector<2048x1024xbf16>, vector<8x1024xf32> -> vector<8x1024xf32>
    %c0_19 = arith.constant 0 : index
    %c0_20 = arith.constant 0 : index
    %37 = vector.load %arg6[%c0_19, %c0_20] : memref<1x1024xf32, #tpu.memory_space<vmem>>, vector<1x1024xf32>
    %38 = vector.broadcast %37 : vector<1x1024xf32> to vector<8x1024xf32>
    %39 = arith.addf %36, %38 : vector<8x1024xf32>
    %cst_21 = arith.constant dense<0.000000e+00> : vector<1024xf32>
    %40 = vector.multi_reduction <add>, %39, %cst_21 [0] : vector<8x1024xf32> to vector<1024xf32>
    %41 = vector.shape_cast %40 : vector<1024xf32> to vector<1x1024xf32>
    %cst_22 = arith.constant 8.000000e+00 : f32
    %42 = vector.broadcast %cst_22 : f32 to vector<1x1024xf32>
    %43 = arith.divf %41, %42 : vector<1x1024xf32>
    %44 = arith.mulf %39, %39 : vector<8x1024xf32>
    %cst_23 = arith.constant dense<0.000000e+00> : vector<1024xf32>
    %45 = vector.multi_reduction <add>, %44, %cst_23 [0] : vector<8x1024xf32> to vector<1024xf32>
    %46 = vector.shape_cast %45 : vector<1024xf32> to vector<1x1024xf32>
    %cst_24 = arith.constant 8.000000e+00 : f32
    %47 = vector.broadcast %cst_24 : f32 to vector<1x1024xf32>
    %48 = arith.divf %46, %47 : vector<1x1024xf32>
    %49 = arith.mulf %43, %43 : vector<1x1024xf32>
    %50 = arith.subf %48, %49 : vector<1x1024xf32>
    %cst_25 = arith.constant 0.000000e+00 : f32
    %51 = vector.broadcast %cst_25 : f32 to vector<1x1024xf32>
    %52 = arith.maximumf %50, %51 : vector<1x1024xf32>
    %c0_26 = arith.constant 0 : index
    %c0_27 = arith.constant 0 : index
    %53 = vector.load %arg7[%c0_26, %c0_27] : memref<1x1024xf32, #tpu.memory_space<vmem>>, vector<1x1024xf32>
    %cst_28 = arith.constant 9.99999974E-6 : f32
    %54 = vector.broadcast %cst_28 : f32 to vector<1x1024xf32>
    %55 = arith.addf %52, %54 : vector<1x1024xf32>
    %56 = math.rsqrt %55 : vector<1x1024xf32>
    %57 = arith.mulf %53, %56 : vector<1x1024xf32>
    %c0_29 = arith.constant 0 : index
    %c0_30 = arith.constant 0 : index
    %58 = vector.load %arg8[%c0_29, %c0_30] : memref<1x1024xf32, #tpu.memory_space<vmem>>, vector<1x1024xf32>
    %59 = arith.mulf %43, %57 : vector<1x1024xf32>
    %60 = arith.subf %58, %59 : vector<1x1024xf32>
    %61 = vector.broadcast %57 : vector<1x1024xf32> to vector<8x1024xf32>
    %62 = arith.mulf %39, %61 : vector<8x1024xf32>
    %63 = vector.broadcast %60 : vector<1x1024xf32> to vector<8x1024xf32>
    %64 = arith.addf %62, %63 : vector<8x1024xf32>
    %cst_31 = arith.constant 0.000000e+00 : f32
    %65 = vector.broadcast %cst_31 : f32 to vector<8x1024xf32>
    %66 = arith.maximumf %64, %65 : vector<8x1024xf32>
    %67 = arith.truncf %66 : vector<8x1024xf32> to vector<8x1024xbf16>
    %c0_32 = arith.constant 0 : index
    %c0_33 = arith.constant 0 : index
    %68 = vector.load %arg9[%c0_32, %c0_33] : memref<1024x512xbf16, #tpu.memory_space<vmem>>, vector<1024x512xbf16>
    %cst_34 = arith.constant dense<0.000000e+00> : vector<8x512xf32>
    %69 = tpu.matmul %67, %68, %cst_34 {dimension_numbers = #tpu.dot_dimension_numbers<[1], [0], [0], [1], [0, 0, 1, 1], [], []>} : vector<8x1024xbf16>, vector<1024x512xbf16>, vector<8x512xf32> -> vector<8x512xf32>
    %c0_35 = arith.constant 0 : index
    %c0_36 = arith.constant 0 : index
    %70 = vector.load %arg10[%c0_35, %c0_36] : memref<1x512xf32, #tpu.memory_space<vmem>>, vector<1x512xf32>
    %71 = vector.broadcast %70 : vector<1x512xf32> to vector<8x512xf32>
    %72 = arith.addf %69, %71 : vector<8x512xf32>
    %cst_37 = arith.constant dense<0.000000e+00> : vector<512xf32>
    %73 = vector.multi_reduction <add>, %72, %cst_37 [0] : vector<8x512xf32> to vector<512xf32>
    %74 = vector.shape_cast %73 : vector<512xf32> to vector<1x512xf32>
    %cst_38 = arith.constant 8.000000e+00 : f32
    %75 = vector.broadcast %cst_38 : f32 to vector<1x512xf32>
    %76 = arith.divf %74, %75 : vector<1x512xf32>
    %77 = arith.mulf %72, %72 : vector<8x512xf32>
    %cst_39 = arith.constant dense<0.000000e+00> : vector<512xf32>
    %78 = vector.multi_reduction <add>, %77, %cst_39 [0] : vector<8x512xf32> to vector<512xf32>
    %79 = vector.shape_cast %78 : vector<512xf32> to vector<1x512xf32>
    %cst_40 = arith.constant 8.000000e+00 : f32
    %80 = vector.broadcast %cst_40 : f32 to vector<1x512xf32>
    %81 = arith.divf %79, %80 : vector<1x512xf32>
    %82 = arith.mulf %76, %76 : vector<1x512xf32>
    %83 = arith.subf %81, %82 : vector<1x512xf32>
    %cst_41 = arith.constant 0.000000e+00 : f32
    %84 = vector.broadcast %cst_41 : f32 to vector<1x512xf32>
    %85 = arith.maximumf %83, %84 : vector<1x512xf32>
    %c0_42 = arith.constant 0 : index
    %c0_43 = arith.constant 0 : index
    %86 = vector.load %arg11[%c0_42, %c0_43] : memref<1x512xf32, #tpu.memory_space<vmem>>, vector<1x512xf32>
    %cst_44 = arith.constant 9.99999974E-6 : f32
    %87 = vector.broadcast %cst_44 : f32 to vector<1x512xf32>
    %88 = arith.addf %85, %87 : vector<1x512xf32>
    %89 = math.rsqrt %88 : vector<1x512xf32>
    %90 = arith.mulf %86, %89 : vector<1x512xf32>
    %c0_45 = arith.constant 0 : index
    %c0_46 = arith.constant 0 : index
    %91 = vector.load %arg12[%c0_45, %c0_46] : memref<1x512xf32, #tpu.memory_space<vmem>>, vector<1x512xf32>
    %92 = arith.mulf %76, %90 : vector<1x512xf32>
    %93 = arith.subf %91, %92 : vector<1x512xf32>
    %94 = vector.broadcast %90 : vector<1x512xf32> to vector<8x512xf32>
    %95 = arith.mulf %72, %94 : vector<8x512xf32>
    %96 = vector.broadcast %93 : vector<1x512xf32> to vector<8x512xf32>
    %97 = arith.addf %95, %96 : vector<8x512xf32>
    %cst_47 = arith.constant 0.000000e+00 : f32
    %98 = vector.broadcast %cst_47 : f32 to vector<8x512xf32>
    %99 = arith.maximumf %97, %98 : vector<8x512xf32>
    %100 = arith.truncf %99 : vector<8x512xf32> to vector<8x512xbf16>
    %c0_48 = arith.constant 0 : index
    %c0_49 = arith.constant 0 : index
    %101 = vector.load %arg13[%c0_48, %c0_49] : memref<512x256xbf16, #tpu.memory_space<vmem>>, vector<512x256xbf16>
    %cst_50 = arith.constant dense<0.000000e+00> : vector<8x256xf32>
    %102 = tpu.matmul %100, %101, %cst_50 {dimension_numbers = #tpu.dot_dimension_numbers<[1], [0], [0], [1], [0, 0, 1, 1], [], []>} : vector<8x512xbf16>, vector<512x256xbf16>, vector<8x256xf32> -> vector<8x256xf32>
    %c0_51 = arith.constant 0 : index
    %c0_52 = arith.constant 0 : index
    %103 = vector.load %arg14[%c0_51, %c0_52] : memref<1x256xf32, #tpu.memory_space<vmem>>, vector<1x256xf32>
    %104 = vector.broadcast %103 : vector<1x256xf32> to vector<8x256xf32>
    %105 = arith.addf %102, %104 : vector<8x256xf32>
    %cst_53 = arith.constant dense<0.000000e+00> : vector<256xf32>
    %106 = vector.multi_reduction <add>, %105, %cst_53 [0] : vector<8x256xf32> to vector<256xf32>
    %107 = vector.shape_cast %106 : vector<256xf32> to vector<1x256xf32>
    %cst_54 = arith.constant 8.000000e+00 : f32
    %108 = vector.broadcast %cst_54 : f32 to vector<1x256xf32>
    %109 = arith.divf %107, %108 : vector<1x256xf32>
    %110 = arith.mulf %105, %105 : vector<8x256xf32>
    %cst_55 = arith.constant dense<0.000000e+00> : vector<256xf32>
    %111 = vector.multi_reduction <add>, %110, %cst_55 [0] : vector<8x256xf32> to vector<256xf32>
    %112 = vector.shape_cast %111 : vector<256xf32> to vector<1x256xf32>
    %cst_56 = arith.constant 8.000000e+00 : f32
    %113 = vector.broadcast %cst_56 : f32 to vector<1x256xf32>
    %114 = arith.divf %112, %113 : vector<1x256xf32>
    %115 = arith.mulf %109, %109 : vector<1x256xf32>
    %116 = arith.subf %114, %115 : vector<1x256xf32>
    %cst_57 = arith.constant 0.000000e+00 : f32
    %117 = vector.broadcast %cst_57 : f32 to vector<1x256xf32>
    %118 = arith.maximumf %116, %117 : vector<1x256xf32>
    %c0_58 = arith.constant 0 : index
    %c0_59 = arith.constant 0 : index
    %119 = vector.load %arg15[%c0_58, %c0_59] : memref<1x256xf32, #tpu.memory_space<vmem>>, vector<1x256xf32>
    %cst_60 = arith.constant 9.99999974E-6 : f32
    %120 = vector.broadcast %cst_60 : f32 to vector<1x256xf32>
    %121 = arith.addf %118, %120 : vector<1x256xf32>
    %122 = math.rsqrt %121 : vector<1x256xf32>
    %123 = arith.mulf %119, %122 : vector<1x256xf32>
    %c0_61 = arith.constant 0 : index
    %c0_62 = arith.constant 0 : index
    %124 = vector.load %arg16[%c0_61, %c0_62] : memref<1x256xf32, #tpu.memory_space<vmem>>, vector<1x256xf32>
    %125 = arith.mulf %109, %123 : vector<1x256xf32>
    %126 = arith.subf %124, %125 : vector<1x256xf32>
    %127 = vector.broadcast %123 : vector<1x256xf32> to vector<8x256xf32>
    %128 = arith.mulf %105, %127 : vector<8x256xf32>
    %129 = vector.broadcast %126 : vector<1x256xf32> to vector<8x256xf32>
    %130 = arith.addf %128, %129 : vector<8x256xf32>
    %cst_63 = arith.constant 0.000000e+00 : f32
    %131 = vector.broadcast %cst_63 : f32 to vector<8x256xf32>
    %132 = arith.maximumf %130, %131 : vector<8x256xf32>
    %133 = arith.truncf %132 : vector<8x256xf32> to vector<8x256xbf16>
    %c0_64 = arith.constant 0 : index
    %c0_65 = arith.constant 0 : index
    %134 = vector.load %arg17[%c0_64, %c0_65] : memref<256x128xbf16, #tpu.memory_space<vmem>>, vector<256x128xbf16>
    %cst_66 = arith.constant dense<0.000000e+00> : vector<8x128xf32>
    %135 = tpu.matmul %133, %134, %cst_66 {dimension_numbers = #tpu.dot_dimension_numbers<[1], [0], [0], [1], [0, 0, 1, 1], [], []>} : vector<8x256xbf16>, vector<256x128xbf16>, vector<8x128xf32> -> vector<8x128xf32>
    %c0_67 = arith.constant 0 : index
    %c0_68 = arith.constant 0 : index
    %136 = vector.load %arg18[%c0_67, %c0_68] : memref<1x128xf32, #tpu.memory_space<vmem>>, vector<1x128xf32>
    %137 = vector.broadcast %136 : vector<1x128xf32> to vector<8x128xf32>
    %138 = arith.addf %135, %137 : vector<8x128xf32>
    %cst_69 = arith.constant dense<0.000000e+00> : vector<128xf32>
    %139 = vector.multi_reduction <add>, %138, %cst_69 [0] : vector<8x128xf32> to vector<128xf32>
    %140 = vector.shape_cast %139 : vector<128xf32> to vector<1x128xf32>
    %cst_70 = arith.constant 8.000000e+00 : f32
    %141 = vector.broadcast %cst_70 : f32 to vector<1x128xf32>
    %142 = arith.divf %140, %141 : vector<1x128xf32>
    %143 = arith.mulf %138, %138 : vector<8x128xf32>
    %cst_71 = arith.constant dense<0.000000e+00> : vector<128xf32>
    %144 = vector.multi_reduction <add>, %143, %cst_71 [0] : vector<8x128xf32> to vector<128xf32>
    %145 = vector.shape_cast %144 : vector<128xf32> to vector<1x128xf32>
    %cst_72 = arith.constant 8.000000e+00 : f32
    %146 = vector.broadcast %cst_72 : f32 to vector<1x128xf32>
    %147 = arith.divf %145, %146 : vector<1x128xf32>
    %148 = arith.mulf %142, %142 : vector<1x128xf32>
    %149 = arith.subf %147, %148 : vector<1x128xf32>
    %cst_73 = arith.constant 0.000000e+00 : f32
    %150 = vector.broadcast %cst_73 : f32 to vector<1x128xf32>
    %151 = arith.maximumf %149, %150 : vector<1x128xf32>
    %c0_74 = arith.constant 0 : index
    %c0_75 = arith.constant 0 : index
    %152 = vector.load %arg19[%c0_74, %c0_75] : memref<1x128xf32, #tpu.memory_space<vmem>>, vector<1x128xf32>
    %cst_76 = arith.constant 9.99999974E-6 : f32
    %153 = vector.broadcast %cst_76 : f32 to vector<1x128xf32>
    %154 = arith.addf %151, %153 : vector<1x128xf32>
    %155 = math.rsqrt %154 : vector<1x128xf32>
    %156 = arith.mulf %152, %155 : vector<1x128xf32>
    %c0_77 = arith.constant 0 : index
    %c0_78 = arith.constant 0 : index
    %157 = vector.load %arg20[%c0_77, %c0_78] : memref<1x128xf32, #tpu.memory_space<vmem>>, vector<1x128xf32>
    %158 = arith.mulf %142, %156 : vector<1x128xf32>
    %159 = arith.subf %157, %158 : vector<1x128xf32>
    %160 = vector.broadcast %156 : vector<1x128xf32> to vector<8x128xf32>
    %161 = arith.mulf %138, %160 : vector<8x128xf32>
    %162 = vector.broadcast %159 : vector<1x128xf32> to vector<8x128xf32>
    %163 = arith.addf %161, %162 : vector<8x128xf32>
    %cst_79 = arith.constant 0.000000e+00 : f32
    %164 = vector.broadcast %cst_79 : f32 to vector<8x128xf32>
    %165 = arith.maximumf %163, %164 : vector<8x128xf32>
    %166 = arith.mulf %165, %165 : vector<8x128xf32>
    %cst_80 = arith.constant dense<0.000000e+00> : vector<8xf32>
    %167 = vector.multi_reduction <add>, %166, %cst_80 [1] : vector<8x128xf32> to vector<8xf32>
    %168 = vector.shape_cast %167 : vector<8xf32> to vector<8x1xf32>
    %cst_81 = arith.constant 1.000000e-24 : f32
    %169 = vector.broadcast %cst_81 : f32 to vector<8x1xf32>
    %170 = arith.maximumf %168, %169 : vector<8x1xf32>
    %171 = math.rsqrt %170 : vector<8x1xf32>
    %172 = vector.broadcast %171 : vector<8x1xf32> to vector<8x128xf32>
    %173 = arith.mulf %165, %172 : vector<8x128xf32>
    %174 = arith.truncf %173 : vector<8x128xf32> to vector<8x128xbf16>
    %c0_82 = arith.constant 0 : index
    %c0_83 = arith.constant 0 : index
    %175 = vector.load %arg21[%c0_82, %c0_83] : memref<128x64xbf16, #tpu.memory_space<vmem>>, vector<128x64xbf16>
    %cst_84 = arith.constant dense<0.000000e+00> : vector<8x64xf32>
    %176 = tpu.matmul %174, %175, %cst_84 {dimension_numbers = #tpu.dot_dimension_numbers<[1], [0], [0], [1], [0, 0, 1, 1], [], []>} : vector<8x128xbf16>, vector<128x64xbf16>, vector<8x64xf32> -> vector<8x64xf32>
    %c0_85 = arith.constant 0 : index
    %c0_86 = arith.constant 0 : index
    %177 = vector.load %arg22[%c0_85, %c0_86] : memref<1x64xf32, #tpu.memory_space<vmem>>, vector<1x64xf32>
    %178 = vector.broadcast %177 : vector<1x64xf32> to vector<8x64xf32>
    %179 = arith.addf %176, %178 : vector<8x64xf32>
    %cst_87 = arith.constant 0.000000e+00 : f32
    %180 = vector.broadcast %cst_87 : f32 to vector<8x64xf32>
    %181 = arith.maximumf %179, %180 : vector<8x64xf32>
    %182 = arith.truncf %181 : vector<8x64xf32> to vector<8x64xbf16>
    %c0_88 = arith.constant 0 : index
    %c0_89 = arith.constant 0 : index
    %183 = vector.load %arg23[%c0_88, %c0_89] : memref<64x32xbf16, #tpu.memory_space<vmem>>, vector<64x32xbf16>
    %cst_90 = arith.constant dense<0.000000e+00> : vector<8x32xf32>
    %184 = tpu.matmul %182, %183, %cst_90 {dimension_numbers = #tpu.dot_dimension_numbers<[1], [0], [0], [1], [0, 0, 1, 1], [], []>} : vector<8x64xbf16>, vector<64x32xbf16>, vector<8x32xf32> -> vector<8x32xf32>
    %c0_91 = arith.constant 0 : index
    %c0_92 = arith.constant 0 : index
    %185 = vector.load %arg24[%c0_91, %c0_92] : memref<1x32xf32, #tpu.memory_space<vmem>>, vector<1x32xf32>
    %186 = vector.broadcast %185 : vector<1x32xf32> to vector<8x32xf32>
    %187 = arith.addf %184, %186 : vector<8x32xf32>
    %c0_93 = arith.constant 0 : index
    %c0_94 = arith.constant 0 : index
    %188 = vector.load %arg25[%c0_93, %c0_94] : memref<8x32xf32, #tpu.memory_space<vmem>>, vector<8x32xf32>
    tpu.vector_store %arg25[%c0_93, %c0_94], %187 {strides = array<i32>} : memref<8x32xf32, #tpu.memory_space<vmem>>, vector<8x32xf32>,
    return
  }
}

</mosaic_0001>

<bundles_post_ra>
// kernel: model_supcon.1
= control target key start
LH: loop header
LB: loop body
LE: loop exit
PB: predicated region body
PF: predicated region fallthrough
CT: control target
= control target key end

     0   :  { %s17638_s0 = inlined_call_operand.vmem [shape: f32[8,128], index: 0, kind: input, shape index: {}]   ;;  %s17639_s1 = inlined_call_operand.hbm [shape: bf16[128,2048], index: 1, kind: input, shape index: {}]   ;;  %s17640_s2 = inlined_call_operand.hbm [shape: f32[1,2048], index: 2, kind: input, shape index: {}]   ;;  %s17641_s3 = inlined_call_operand.hbm [shape: f32[1,2048], index: 3, kind: input, shape index: {}]   ;;  %s17642_s4 = inlined_call_operand.hbm [shape: f32[1,2048], index: 4, kind: input, shape index: {}]   ;;  %s17643_s5 = inlined_call_operand.hbm [shape: bf16[2048,1024], index: 5, kind: input, shape index: {}]   ;;  %s17644_s6 = inlined_call_operand.hbm [shape: f32[1,1024], index: 6, kind: input, shape index: {}]   ;;  %s17645_s7 = inlined_call_operand.hbm [shape: f32[1,1024], index: 7, kind: input, shape index: {}]   ;;  %s17646_s8 = inlined_call_operand.hbm [shape: f32[1,1024], index: 8, kind: input, shape index: {}]   ;;  %s17647_s9 = inlined_call_operand.hbm [shape: bf16[1024,512], index: 9, kind: input, shape index: {}]   ;;  %s17648_s10 = inlined_call_operand.hbm [shape: f32[1,512], index: 10, kind: input, shape index: {}]   ;;  %s17649_s11 = inlined_call_operand.hbm [shape: f32[1,512], index: 11, kind: input, shape index: {}]   ;;  %s17650_s12 = inlined_call_operand.hbm [shape: f32[1,512], index: 12, kind: input, shape index: {}]   ;;  %s17651_s13 = inlined_call_operand.hbm [shape: bf16[512,256], index: 13, kind: input, shape index: {}]   ;;  %s17652_s14 = inlined_call_operand.hbm [shape: f32[1,256], index: 14, kind: input, shape index: {}]   ;;  %s17653_s15 = inlined_call_operand.hbm [shape: f32[1,256], index: 15, kind: input, shape index: {}]   ;;  %s17654_s16 = inlined_call_operand.hbm [shape: f32[1,256], index: 16, kind: input, shape index: {}]   ;;  %s17655_s17 = inlined_call_operand.hbm [shape: bf16[256,128], index: 17, kind: input, shape index: {}]   ;;  %s17656_s18 = inlined_call_operand.hbm [shape: f32[1,128], index: 18, kind: input, shape index: {}]   ;;  %s17657_s19 = inlined_call_operand.hbm [shape: f32[1,128], index: 19, kind: input, shape index: {}]   ;;  %s17658_s20 = inlined_call_operand.hbm [shape: f32[1,128], index: 20, kind: input, shape index: {}]   ;;  %s17659_s21 = inlined_call_operand.vmem [shape: bf16[128,64], index: 21, kind: input, shape index: {}]   ;;  %s17660_s22 = inlined_call_operand.hbm [shape: f32[1,64], index: 22, kind: input, shape index: {}]   ;;  %s17661_s23 = inlined_call_operand.vmem [shape: bf16[64,32], index: 23, kind: input, shape index: {}]   ;;  %s17662_s24 = inlined_call_operand.hbm [shape: f32[1,32], index: 24, kind: input, shape index: {}]   ;;  %s17663_s25 = inlined_call_operand.hbm [shape: f32[8,32], index: 25, kind: output, shape index: {}]  }
   0x1   :  { %17688 = sst [smem:[#allocation64_spill]] %s17638_s0 }
   0x2   :  { %17689 = sst [smem:[#allocation65_spill]] %s17639_s1 }
   0x3   :  { %17690 = sst [smem:[#allocation66_spill]] %s17640_s2 }
   0x4   :  { %17691 = sst [smem:[#allocation67_spill]] %s17641_s3 }
   0x5   :  { %17692 = sst [smem:[#allocation68_spill]] %s17642_s4 }
   0x6   :  { %17693 = sst [smem:[#allocation69_spill]] %s17643_s5 }
   0x7   :  { %17694 = sst [smem:[#allocation70_spill]] %s17644_s6 }
   0x8   :  { %17695 = sst [smem:[#allocation71_spill]] %s17645_s7 }
   0x9   :  { %17696 = sst [smem:[#allocation72_spill]] %s17646_s8 }
   0xa   :  { %17697 = sst [smem:[#allocation73_spill]] %s17647_s9 }
   0xb   :  { %17698 = sst [smem:[#allocation74_spill]] %s17663_s25 }
   0xc   :  { %30 = vsyncpa [#allocation3], 0 }
   0xd   :  { %31 = vsyncpa [#allocation6], 0 }
   0xe   :  { %32 = vsyncpa [#allocation9], 0 }
   0xf   :  { %33 = vsyncpa [#allocation12], 0 }
  0x10   :  { %34 = vsyncpa [#allocation15], 0 }
  0x11   :  { %35 = vsyncpa [#allocation18], 0 }
  0x12   :  { %36 = vsyncpa [#allocation21], 0 }
  0x13   :  { %37 = vsyncpa [#allocation24], 0 }
  0x14   :  { %38 = vsyncpa [#allocation27], 0 }
  0x15   :  { %39 = vsyncpa [#allocation30], 0 }
  0x16   :  { %40 = vsyncpa [#allocation33], 0 }
  0x17   :  { %41 = vsyncpa [#allocation36], 0 }
  0x18   :  { %42 = vsyncpa [#allocation4], 0  ;;  %s16226_s29 = smov [#allocation5]   ;;  %s16227_s6 = smov [#allocation8]  }
  0x19   :  { %s63_s2 = sshll.u32 %s16226_s29, 4  ;;  %s83_s30 = sshll.u32 %s16227_s6, 4  ;;  %s64_s2 = int_to_ptr.vmem [resolvable:$true] %s63_s2  ;;  %s84_s30 = int_to_ptr.vmem [resolvable:$true] %s83_s30 }
  0x1a   :  { %s17699_s26 = sld [smem:[#allocation66_spill]] }
  0x20   :  { %s15694_s1 = scalar_lea.hbm %s17699_s26, 256 }
  0x21   :  { %p15695_p0 = scmp.ne.s32.totalorder %s17699_s26, %s15694_s1  ;;  %p15698_p1 = scmp.lt.u32.totalorder %s15694_s1, %s17699_s26 }
  0x23   :  { %p15700_p2 = pnand %p15698_p1, %p15695_p0 }
  0x25   :  { %15703 = shalt.err (!%p15700_p2)
}
  0x26   :  { %s15704_s9 = scalar_lea.vmem %s64_s2, 256  ;;  %p15709_p4 = scmp.lt.s32.totalorder %s64_s2, %s64_s2 }
  0x27   :  { %p15705_p3 = scmp.ne.s32.totalorder %s64_s2, %s15704_s9  ;;  %p15710_p5 = scmp.lt.s32.totalorder %s15704_s9, %s15704_s9 }
  0x29   :  { %p15711_p6 = por %p15710_p5, %p15709_p4 }
  0x2b   :  { %p15712_p7 = pnand %p15711_p6, %p15705_p3 }
  0x2d   :  { %15715 = shalt.err (!%p15712_p7)
}
  0x2e   :  { %66 = dma.hbm_to_vmem [thread:$0]  %s17699_s26, 256, %s64_s2, [#allocation6]  }
  0x2f   :  { %s17700_s7 = sld [smem:[#allocation68_spill]] }
  0x35   :  { %s15716_s3 = scalar_lea.hbm %s17700_s7, 256 }
  0x36   :  { %p15717_p8 = scmp.ne.s32.totalorder %s17700_s7, %s15716_s3  ;;  %p15720_p9 = scmp.lt.u32.totalorder %s15716_s3, %s17700_s7 }
  0x38   :  { %p15722_p10 = pnand %p15720_p9, %p15717_p8 }
  0x3a   :  { %15725 = shalt.err (!%p15722_p10)
}
  0x3b   :  { %s15726_s28 = scalar_lea.vmem %s84_s30, 256  ;;  %p15731_p12 = scmp.lt.s32.totalorder %s84_s30, %s84_s30 }
  0x3c   :  { %p15727_p11 = scmp.ne.s32.totalorder %s84_s30, %s15726_s28  ;;  %p15732_p13 = scmp.lt.s32.totalorder %s15726_s28, %s15726_s28 }
  0x3e   :  { %p15733_p0 = por %p15732_p13, %p15731_p12 }
  0x40   :  { %p15734_p1 = pnand %p15733_p0, %p15727_p11 }
  0x42   :  { %15737 = shalt.err (!%p15734_p1)
}
  0x43   :  { %86 = dma.hbm_to_vmem [thread:$0]  %s17700_s7, 256, %s84_s30, [#allocation9]  }
  0x44   :  { %s16228_s9 = smov [#allocation11]   ;;  %s16229_s0 = smov [#allocation14]  }
  0x45   :  { %s105_s5 = sshll.u32 %s16228_s9, 4  ;;  %s125_s29 = sshll.u32 %s16229_s0, 4  ;;  %s106_s5 = int_to_ptr.vmem [resolvable:$true] %s105_s5  ;;  %s126_s29 = int_to_ptr.vmem [resolvable:$true] %s125_s29 }
  0x46   :  { %s17701_s8 = sld [smem:[#allocation70_spill]] }
  0x4c   :  { %s15738_s27 = scalar_lea.hbm %s17701_s8, 128 }
  0x4d   :  { %p15739_p2 = scmp.ne.s32.totalorder %s17701_s8, %s15738_s27  ;;  %p15742_p3 = scmp.lt.u32.totalorder %s15738_s27, %s17701_s8 }
  0x4f   :  { %p15744_p4 = pnand %p15742_p3, %p15739_p2 }
  0x51   :  { %15747 = shalt.err (!%p15744_p4)
}
  0x52   :  { %s15748_s30 = scalar_lea.vmem %s106_s5, 128  ;;  %p15753_p6 = scmp.lt.s32.totalorder %s106_s5, %s106_s5 }
  0x53   :  { %p15749_p5 = scmp.ne.s32.totalorder %s106_s5, %s15748_s30  ;;  %p15754_p7 = scmp.lt.s32.totalorder %s15748_s30, %s15748_s30 }
  0x55   :  { %p15755_p8 = por %p15754_p7, %p15753_p6 }
  0x57   :  { %p15756_p9 = pnand %p15755_p8, %p15749_p5 }
  0x59   :  { %15759 = shalt.err (!%p15756_p9)
}
  0x5a   :  { %108 = dma.hbm_to_vmem [thread:$0]  %s17701_s8, 128, %s106_s5, [#allocation12]  }
  0x5b   :  { %s17702_s0 = sld [smem:[#allocation72_spill]] }
  0x61   :  { %s15760_s6 = scalar_lea.hbm %s17702_s0, 128 }
  0x62   :  { %p15761_p10 = scmp.ne.s32.totalorder %s17702_s0, %s15760_s6  ;;  %p15764_p11 = scmp.lt.u32.totalorder %s15760_s6, %s17702_s0 }
  0x64   :  { %p15766_p12 = pnand %p15764_p11, %p15761_p10 }
  0x66   :  { %15769 = shalt.err (!%p15766_p12)
}
  0x67   :  { %s15770_s4 = scalar_lea.vmem %s126_s29, 128  ;;  %p15775_p0 = scmp.lt.s32.totalorder %s126_s29, %s126_s29 }
  0x68   :  { %p15771_p13 = scmp.ne.s32.totalorder %s126_s29, %s15770_s4  ;;  %p15776_p1 = scmp.lt.s32.totalorder %s15770_s4, %s15770_s4 }
  0x6a   :  { %p15777_p2 = por %p15776_p1, %p15775_p0 }
  0x6c   :  { %p15778_p3 = pnand %p15777_p2, %p15771_p13 }
  0x6e   :  { %15781 = shalt.err (!%p15778_p3)
}
  0x6f   :  { %128 = dma.hbm_to_vmem [thread:$0]  %s17702_s0, 128, %s126_s29, [#allocation15]  }
  0x70   :  { %s16230_s28 = smov [#allocation17]   ;;  %s16231_s7 = smov [#allocation20]  }
  0x71   :  { %s147_s30 = sshll.u32 %s16230_s28, 4  ;;  %s167_s2 = sshll.u32 %s16231_s7, 4  ;;  %s148_s30 = int_to_ptr.vmem [resolvable:$true] %s147_s30  ;;  %s168_s2 = int_to_ptr.vmem [resolvable:$true] %s167_s2 }
  0x72   :  { %s15782_s6 = scalar_lea.hbm %s17648_s10, 64 }
  0x73   :  { %p15783_p4 = scmp.ne.s32.totalorder %s17648_s10, %s15782_s6  ;;  %p15786_p5 = scmp.lt.u32.totalorder %s15782_s6, %s17648_s10 }
  0x75   :  { %p15788_p6 = pnand %p15786_p5, %p15783_p4 }
  0x77   :  { %15791 = shalt.err (!%p15788_p6)
}
  0x78   :  { %s15792_s29 = scalar_lea.vmem %s148_s30, 64  ;;  %p15797_p8 = scmp.lt.s32.totalorder %s148_s30, %s148_s30 }
  0x79   :  { %p15793_p7 = scmp.ne.s32.totalorder %s148_s30, %s15792_s29  ;;  %p15798_p9 = scmp.lt.s32.totalorder %s15792_s29, %s15792_s29 }
  0x7b   :  { %p15799_p10 = por %p15798_p9, %p15797_p8 }
  0x7d   :  { %p15800_p11 = pnand %p15799_p10, %p15793_p7 }
  0x7f   :  { %15803 = shalt.err (!%p15800_p11)
}
  0x80   :  { %150 = dma.hbm_to_vmem [thread:$0]  %s17648_s10, 64, %s148_s30, [#allocation18]  }
  0x81   :  { %s15804_s28 = scalar_lea.hbm %s17650_s12, 64 }
  0x82   :  { %p15805_p12 = scmp.ne.s32.totalorder %s17650_s12, %s15804_s28  ;;  %p15808_p13 = scmp.lt.u32.totalorder %s15804_s28, %s17650_s12 }
  0x84   :  { %p15810_p0 = pnand %p15808_p13, %p15805_p12 }
  0x86   :  { %15813 = shalt.err (!%p15810_p0)
}
  0x87   :  { %s15814_s3 = scalar_lea.vmem %s168_s2, 64  ;;  %p15819_p2 = scmp.lt.s32.totalorder %s168_s2, %s168_s2 }
  0x88   :  { %p15815_p1 = scmp.ne.s32.totalorder %s168_s2, %s15814_s3  ;;  %p15820_p3 = scmp.lt.s32.totalorder %s15814_s3, %s15814_s3 }
  0x8a   :  { %p15821_p4 = por %p15820_p3, %p15819_p2 }
  0x8c   :  { %p15822_p5 = pnand %p15821_p4, %p15815_p1 }
  0x8e   :  { %15825 = shalt.err (!%p15822_p5)
}
  0x8f   :  { %170 = dma.hbm_to_vmem [thread:$0]  %s17650_s12, 64, %s168_s2, [#allocation21]  }
  0x90   :  { %s16232_s25 = smov [#allocation23]   ;;  %s16233_s1 = smov [#allocation26]  }
  0x91   :  { %s189_s27 = sshll.u32 %s16232_s25, 4  ;;  %s209_s29 = sshll.u32 %s16233_s1, 4  ;;  %s190_s27 = int_to_ptr.vmem [resolvable:$true] %s189_s27  ;;  %s210_s29 = int_to_ptr.vmem [resolvable:$true] %s209_s29 }
  0x92   :  { %s15826_s5 = scalar_lea.hbm %s17652_s14, 32 }
  0x93   :  { %p15827_p6 = scmp.ne.s32.totalorder %s17652_s14, %s15826_s5  ;;  %p15830_p7 = scmp.lt.u32.totalorder %s15826_s5, %s17652_s14 }
  0x95   :  { %p15832_p8 = pnand %p15830_p7, %p15827_p6 }
  0x97   :  { %15835 = shalt.err (!%p15832_p8)
}
  0x98   :  { %s15836_s12 = scalar_lea.vmem %s190_s27, 32  ;;  %p15841_p10 = scmp.lt.s32.totalorder %s190_s27, %s190_s27 }
  0x99   :  { %p15837_p9 = scmp.ne.s32.totalorder %s190_s27, %s15836_s12  ;;  %p15842_p11 = scmp.lt.s32.totalorder %s15836_s12, %s15836_s12 }
  0x9b   :  { %p15843_p12 = por %p15842_p11, %p15841_p10 }
  0x9d   :  { %p15844_p13 = pnand %p15843_p12, %p15837_p9 }
  0x9f   :  { %15847 = shalt.err (!%p15844_p13)
}
  0xa0   :  { %192 = dma.hbm_to_vmem [thread:$0]  %s17652_s14, 32, %s190_s27, [#allocation24]  }
  0xa1   :  { %s15848_s10 = scalar_lea.hbm %s17654_s16, 32 }
  0xa2   :  { %p15849_p0 = scmp.ne.s32.totalorder %s17654_s16, %s15848_s10  ;;  %p15852_p1 = scmp.lt.u32.totalorder %s15848_s10, %s17654_s16 }
  0xa4   :  { %p15854_p2 = pnand %p15852_p1, %p15849_p0 }
  0xa6   :  { %15857 = shalt.err (!%p15854_p2)
}
  0xa7   :  { %s15858_s4 = scalar_lea.vmem %s210_s29, 32  ;;  %p15863_p4 = scmp.lt.s32.totalorder %s210_s29, %s210_s29 }
  0xa8   :  { %p15859_p3 = scmp.ne.s32.totalorder %s210_s29, %s15858_s4  ;;  %p15864_p5 = scmp.lt.s32.totalorder %s15858_s4, %s15858_s4 }
  0xaa   :  { %p15865_p6 = por %p15864_p5, %p15863_p4 }
  0xac   :  { %p15866_p7 = pnand %p15865_p6, %p15859_p3 }
  0xae   :  { %15869 = shalt.err (!%p15866_p7)
}
  0xaf   :  { %212 = dma.hbm_to_vmem [thread:$0]  %s17654_s16, 32, %s210_s29, [#allocation27]  }
  0xb0   :  { %s16234_s5 = smov [#allocation29]   ;;  %s16235_s28 = smov [#allocation32]  }
  0xb1   :  { %s231_s8 = sshll.u32 %s16234_s5, 4  ;;  %s251_s7 = sshll.u32 %s16235_s28, 4  ;;  %s232_s8 = int_to_ptr.vmem [resolvable:$true] %s231_s8  ;;  %s252_s7 = int_to_ptr.vmem [resolvable:$true] %s251_s7 }
  0xb2   :  { %s15870_s2 = scalar_lea.hbm %s17656_s18, 16 }
  0xb3   :  { %p15871_p8 = scmp.ne.s32.totalorder %s17656_s18, %s15870_s2  ;;  %p15874_p9 = scmp.lt.u32.totalorder %s15870_s2, %s17656_s18 }
  0xb5   :  { %p15876_p10 = pnand %p15874_p9, %p15871_p8 }
  0xb7   :  { %15879 = shalt.err (!%p15876_p10)
}
  0xb8   :  { %s15880_s16 = scalar_lea.vmem %s232_s8, 16  ;;  %s15884_s29 = scalar_lea.vmem %s232_s8, 32 }
  0xb9   :  { %p15881_p11 = scmp.ne.s32.totalorder %s232_s8, %s15880_s16  ;;  %p15885_p12 = scmp.lt.s32.totalorder %s232_s8, %s232_s8 }
  0xba   :  { %p15886_p13 = scmp.lt.s32.totalorder %s15884_s29, %s15880_s16 }
  0xbc   :  { %p15887_p0 = por %p15886_p13, %p15885_p12 }
  0xbe   :  { %p15888_p1 = pnand %p15887_p0, %p15881_p11 }
  0xc0   :  { %15891 = shalt.err (!%p15888_p1)
}
  0xc1   :  { %234 = dma.hbm_to_vmem [thread:$0]  %s17656_s18, 16, %s232_s8, [#allocation30]  }
  0xc2   :  { %s15892_s4 = scalar_lea.hbm %s17658_s20, 16 }
  0xc3   :  { %p15893_p2 = scmp.ne.s32.totalorder %s17658_s20, %s15892_s4  ;;  %p15896_p3 = scmp.lt.u32.totalorder %s15892_s4, %s17658_s20 }
  0xc5   :  { %p15898_p4 = pnand %p15896_p3, %p15893_p2 }
  0xc7   :  { %15901 = shalt.err (!%p15898_p4)
}
  0xc8   :  { %s15902_s26 = scalar_lea.vmem %s252_s7, 16  ;;  %s15906_s12 = scalar_lea.vmem %s252_s7, 32 }
  0xc9   :  { %p15903_p5 = scmp.ne.s32.totalorder %s252_s7, %s15902_s26  ;;  %p15907_p6 = scmp.lt.s32.totalorder %s252_s7, %s252_s7 }
  0xca   :  { %p15908_p7 = scmp.lt.s32.totalorder %s15906_s12, %s15902_s26 }
  0xcc   :  { %p15909_p8 = por %p15908_p7, %p15907_p6 }
  0xce   :  { %p15910_p9 = pnand %p15909_p8, %p15903_p5 }
  0xd0   :  { %15913 = shalt.err (!%p15910_p9)
}
  0xd1   :  { %254 = dma.hbm_to_vmem [thread:$0]  %s17658_s20, 16, %s252_s7, [#allocation33]  }
  0xd2   :  { %s16236_s2 = smov [#allocation2]   ;;  %s17703_s10 = sld [smem:[#allocation65_spill]] }
  0xd3   :  { %s50_s9 = sshll.u32 %s16236_s2, 4  ;;  %s51_s9 = int_to_ptr.vmem [resolvable:$true] %s50_s9 }
  0xd8   :  { %s15914_s16 = scalar_lea.hbm %s17703_s10, 16384 }
  0xd9   :  { %p15915_p10 = scmp.ne.s32.totalorder %s17703_s10, %s15914_s16  ;;  %p15918_p11 = scmp.lt.u32.totalorder %s15914_s16, %s17703_s10 }
  0xdb   :  { %p15920_p12 = pnand %p15918_p11, %p15915_p10 }
  0xdd   :  { %15923 = shalt.err (!%p15920_p12)
}
  0xde   :  { %s15924_s0 = scalar_lea.vmem %s51_s9, 16384  ;;  %p15929_p0 = scmp.lt.s32.totalorder %s51_s9, %s51_s9 }
  0xdf   :  { %p15925_p13 = scmp.ne.s32.totalorder %s51_s9, %s15924_s0  ;;  %p15930_p1 = scmp.lt.s32.totalorder %s15924_s0, %s15924_s0 }
  0xe1   :  { %p15931_p2 = por %p15930_p1, %p15929_p0 }
  0xe3   :  { %p15932_p3 = pnand %p15931_p2, %p15925_p13 }
  0xe5   :  { %15935 = shalt.err (!%p15932_p3)
}
  0xe6   :  { %s16237_s20 = smov 1024   ;;  %s16238_s7 = smov 64  }
  0xe7   :  { %56 = dma.hbm_to_vmem [thread:$0]  %s17703_s10, 16384, %s51_s9, [#allocation3], %s16237_s20, %s16237_s20, %s16238_s7  }
  0xe8   :  { %s16239_s27 = smov [#allocation7]   ;;  %s16240_s28 = smov [#allocation10]  }
  0xe9   :  { %s73_s5 = sshll.u32 %s16239_s27, 4  ;;  %s92_s26 = sshll.u32 %s16240_s28, 4  ;;  %s74_s5 = int_to_ptr.vmem [resolvable:$true] %s73_s5  ;;  %s93_s26 = int_to_ptr.vmem [resolvable:$true] %s92_s26 }
  0xea   :  { %s17704_s8 = sld [smem:[#allocation67_spill]] }
  0xf0   :  { %s15936_s2 = scalar_lea.hbm %s17704_s8, 256 }
  0xf1   :  { %p15937_p4 = scmp.ne.s32.totalorder %s17704_s8, %s15936_s2  ;;  %p15940_p5 = scmp.lt.u32.totalorder %s15936_s2, %s17704_s8 }
  0xf3   :  { %p15942_p6 = pnand %p15940_p5, %p15937_p4 }
  0xf5   :  { %15945 = shalt.err (!%p15942_p6)
}
  0xf6   :  { %s15946_s9 = scalar_lea.vmem %s74_s5, 256  ;;  %p15951_p8 = scmp.lt.s32.totalorder %s74_s5, %s74_s5 }
  0xf7   :  { %p15947_p7 = scmp.ne.s32.totalorder %s74_s5, %s15946_s9  ;;  %p15952_p9 = scmp.lt.s32.totalorder %s15946_s9, %s15946_s9 }
  0xf9   :  { %p15953_p10 = por %p15952_p9, %p15951_p8 }
  0xfb   :  { %p15954_p11 = pnand %p15953_p10, %p15947_p7 }
  0xfd   :  { %15957 = shalt.err (!%p15954_p11)
}
  0xfe   :  { %76 = dma.hbm_to_vmem [thread:$0]  %s17704_s8, 256, %s74_s5, [#allocation6]  }
  0xff   :  { %s17705_s0 = sld [smem:[#allocation69_spill]] }
 0x105   :  { %s15958_s20 = scalar_lea.hbm %s17705_s0, 131072 }
 0x106   :  { %p15959_p12 = scmp.ne.s32.totalorder %s17705_s0, %s15958_s20  ;;  %p15962_p13 = scmp.lt.u32.totalorder %s15958_s20, %s17705_s0 }
 0x108   :  { %p15964_p0 = pnand %p15962_p13, %p15959_p12 }
 0x10a   :  { %15967 = shalt.err (!%p15964_p0)
}
 0x10b   :  { %s15968_s12 = scalar_lea.vmem %s93_s26, 131072  ;;  %p15973_p2 = scmp.lt.s32.totalorder %s93_s26, %s93_s26 }
 0x10c   :  { %p15969_p1 = scmp.ne.s32.totalorder %s93_s26, %s15968_s12  ;;  %p15974_p3 = scmp.lt.s32.totalorder %s15968_s12, %s15968_s12 }
 0x10e   :  { %p15975_p4 = por %p15974_p3, %p15973_p2 }
 0x110   :  { %p15976_p5 = pnand %p15975_p4, %p15969_p1 }
 0x112   :  { %15979 = shalt.err (!%p15976_p5)
}
 0x113   :  { %s16241_s5 = smov 512   ;;  %s16242_s18 = smov 32  }
 0x114   :  { %98 = dma.hbm_to_vmem [thread:$0]  %s17705_s0, 131072, %s93_s26, [#allocation9], %s16241_s5, %s16241_s5, %s16242_s18  }
 0x115   :  { %s16243_s6 = smov [#allocation13]   ;;  %s16244_s16 = smov [#allocation16]  }
 0x116   :  { %s115_s3 = sshll.u32 %s16243_s6, 4  ;;  %s134_s29 = sshll.u32 %s16244_s16, 4  ;;  %s116_s3 = int_to_ptr.vmem [resolvable:$true] %s115_s3  ;;  %s135_s29 = int_to_ptr.vmem [resolvable:$true] %s134_s29 }
 0x117   :  { %s17706_s30 = sld [smem:[#allocation71_spill]] }
 0x11d   :  { %s15980_s25 = scalar_lea.hbm %s17706_s30, 128 }
 0x11e   :  { %p15981_p6 = scmp.ne.s32.totalorder %s17706_s30, %s15980_s25  ;;  %p15984_p7 = scmp.lt.u32.totalorder %s15980_s25, %s17706_s30 }
 0x120   :  { %p15986_p8 = pnand %p15984_p7, %p15981_p6 }
 0x122   :  { %15989 = shalt.err (!%p15986_p8)
}
 0x123   :  { %s15990_s26 = scalar_lea.vmem %s116_s3, 128  ;;  %p15995_p10 = scmp.lt.s32.totalorder %s116_s3, %s116_s3 }
 0x124   :  { %p15991_p9 = scmp.ne.s32.totalorder %s116_s3, %s15990_s26  ;;  %p15996_p11 = scmp.lt.s32.totalorder %s15990_s26, %s15990_s26 }
 0x126   :  { %p15997_p12 = por %p15996_p11, %p15995_p10 }
 0x128   :  { %p15998_p13 = pnand %p15997_p12, %p15991_p9 }
 0x12a   :  { %16001 = shalt.err (!%p15998_p13)
}
 0x12b   :  { %118 = dma.hbm_to_vmem [thread:$0]  %s17706_s30, 128, %s116_s3, [#allocation12]  }
 0x12c   :  { %s17707_s5 = sld [smem:[#allocation73_spill]] }
 0x132   :  { %s16002_s18 = scalar_lea.hbm %s17707_s5, 32768 }
 0x133   :  { %p16003_p0 = scmp.ne.s32.totalorder %s17707_s5, %s16002_s18  ;;  %p16006_p1 = scmp.lt.u32.totalorder %s16002_s18, %s17707_s5 }
 0x135   :  { %p16008_p2 = pnand %p16006_p1, %p16003_p0 }
 0x137   :  { %16011 = shalt.err (!%p16008_p2)
}
 0x138   :  { %s16012_s9 = scalar_lea.vmem %s135_s29, 32768  ;;  %p16017_p4 = scmp.lt.s32.totalorder %s135_s29, %s135_s29 }
 0x139   :  { %p16013_p3 = scmp.ne.s32.totalorder %s135_s29, %s16012_s9  ;;  %p16018_p5 = scmp.lt.s32.totalorder %s16012_s9, %s16012_s9 }
 0x13b   :  { %p16019_p6 = por %p16018_p5, %p16017_p4 }
 0x13d   :  { %p16020_p7 = pnand %p16019_p6, %p16013_p3 }
 0x13f   :  { %16023 = shalt.err (!%p16020_p7)
}
 0x140   :  { %s16245_s3 = smov 256   ;;  %s16246_s10 = smov 16  }
 0x141   :  { %140 = dma.hbm_to_vmem [thread:$0]  %s17707_s5, 32768, %s135_s29, [#allocation15], %s16245_s3, %s16245_s3, %s16246_s10  }
 0x142   :  { %s16247_s1 = smov [#allocation19]   ;;  %s16248_s4 = smov [#allocation22]  }
 0x143   :  { %s157_s20 = sshll.u32 %s16247_s1, 4  ;;  %s176_s14 = sshll.u32 %s16248_s4, 4  ;;  %s158_s20 = int_to_ptr.vmem [resolvable:$true] %s157_s20  ;;  %s177_s14 = int_to_ptr.vmem [resolvable:$true] %s176_s14 }
 0x144   :  { %s16024_s27 = scalar_lea.hbm %s17649_s11, 64 }
 0x145   :  { %p16025_p8 = scmp.ne.s32.totalorder %s17649_s11, %s16024_s27  ;;  %p16028_p9 = scmp.lt.u32.totalorder %s16024_s27, %s17649_s11 }
 0x147   :  { %p16030_p10 = pnand %p16028_p9, %p16025_p8 }
 0x149   :  { %16033 = shalt.err (!%p16030_p10)
}
 0x14a   :  { %s16034_s29 = scalar_lea.vmem %s158_s20, 64  ;;  %p16039_p12 = scmp.lt.s32.totalorder %s158_s20, %s158_s20 }
 0x14b   :  { %p16035_p11 = scmp.ne.s32.totalorder %s158_s20, %s16034_s29  ;;  %p16040_p13 = scmp.lt.s32.totalorder %s16034_s29, %s16034_s29 }
 0x14d   :  { %p16041_p0 = por %p16040_p13, %p16039_p12 }
 0x14f   :  { %p16042_p1 = pnand %p16041_p0, %p16035_p11 }
 0x151   :  { %16045 = shalt.err (!%p16042_p1)
}
 0x152   :  { %160 = dma.hbm_to_vmem [thread:$0]  %s17649_s11, 64, %s158_s20, [#allocation18]  }
 0x153   :  { %s16046_s9 = scalar_lea.hbm %s17651_s13, 8192 }
 0x154   :  { %p16047_p2 = scmp.ne.s32.totalorder %s17651_s13, %s16046_s9  ;;  %p16050_p3 = scmp.lt.u32.totalorder %s16046_s9, %s17651_s13 }
 0x156   :  { %p16052_p4 = pnand %p16050_p3, %p16047_p2 }
 0x158   :  { %16055 = shalt.err (!%p16052_p4)
}
 0x159   :  { %s16056_s1 = scalar_lea.vmem %s177_s14, 8192  ;;  %p16061_p6 = scmp.lt.s32.totalorder %s177_s14, %s177_s14 }
 0x15a   :  { %p16057_p5 = scmp.ne.s32.totalorder %s177_s14, %s16056_s1  ;;  %p16062_p7 = scmp.lt.s32.totalorder %s16056_s1, %s16056_s1 }
 0x15c   :  { %p16063_p8 = por %p16062_p7, %p16061_p6 }
 0x15e   :  { %p16064_p9 = pnand %p16063_p8, %p16057_p5 }
 0x160   :  { %16067 = shalt.err (!%p16064_p9)
}
 0x161   :  { %s16249_s11 = smov 128   ;;  %s16250_s20 = smov 8  }
 0x162   :  { %182 = dma.hbm_to_vmem [thread:$0]  %s17651_s13, 8192, %s177_s14, [#allocation21], %s16249_s11, %s16249_s11, %s16250_s20  }
 0x163   :  { %s16251_s0 = smov [#allocation25]   ;;  %s16252_s28 = smov [#allocation28]  }
 0x164   :  { %s199_s27 = sshll.u32 %s16251_s0, 4  ;;  %s218_s12 = sshll.u32 %s16252_s28, 4  ;;  %s200_s27 = int_to_ptr.vmem [resolvable:$true] %s199_s27  ;;  %s219_s12 = int_to_ptr.vmem [resolvable:$true] %s218_s12 }
 0x165   :  { %s16068_s29 = scalar_lea.hbm %s17653_s15, 32 }
 0x166   :  { %p16069_p10 = scmp.ne.s32.totalorder %s17653_s15, %s16068_s29  ;;  %p16072_p11 = scmp.lt.u32.totalorder %s16068_s29, %s17653_s15 }
 0x168   :  { %p16074_p12 = pnand %p16072_p11, %p16069_p10 }
 0x16a   :  { %16077 = shalt.err (!%p16074_p12)
}
 0x16b   :  { %s16078_s13 = scalar_lea.vmem %s200_s27, 32  ;;  %p16083_p0 = scmp.lt.s32.totalorder %s200_s27, %s200_s27 }
 0x16c   :  { %p16079_p13 = scmp.ne.s32.totalorder %s200_s27, %s16078_s13  ;;  %p16084_p1 = scmp.lt.s32.totalorder %s16078_s13, %s16078_s13 }
 0x16e   :  { %p16085_p2 = por %p16084_p1, %p16083_p0 }
 0x170   :  { %p16086_p3 = pnand %p16085_p2, %p16079_p13 }
 0x172   :  { %16089 = shalt.err (!%p16086_p3)
}
 0x173   :  { %202 = dma.hbm_to_vmem [thread:$0]  %s17653_s15, 32, %s200_s27, [#allocation24]  }
 0x174   :  { %s16090_s30 = scalar_lea.hbm %s17655_s17, 2048 }
 0x175   :  { %p16091_p4 = scmp.ne.s32.totalorder %s17655_s17, %s16090_s30  ;;  %p16094_p5 = scmp.lt.u32.totalorder %s16090_s30, %s17655_s17 }
 0x177   :  { %p16096_p6 = pnand %p16094_p5, %p16091_p4 }
 0x179   :  { %16099 = shalt.err (!%p16096_p6)
}
 0x17a   :  { %s16100_s4 = scalar_lea.vmem %s219_s12, 2048  ;;  %p16105_p8 = scmp.lt.s32.totalorder %s219_s12, %s219_s12 }
 0x17b   :  { %p16101_p7 = scmp.ne.s32.totalorder %s219_s12, %s16100_s4  ;;  %p16106_p9 = scmp.lt.s32.totalorder %s16100_s4, %s16100_s4 }
 0x17d   :  { %p16107_p10 = por %p16106_p9, %p16105_p8 }
 0x17f   :  { %p16108_p11 = pnand %p16107_p10, %p16101_p7 }
 0x181   :  { %16111 = shalt.err (!%p16108_p11)
}
 0x182   :  { %s16253_s15 = smov 4   ;;  %s16254_s27 = smov [#allocation31]  }
 0x183   :  { %224 = dma.hbm_to_vmem [thread:$0]  %s17655_s17, 2048, %s219_s12, [#allocation27], %s16238_s7, %s16238_s7, %s16253_s15  }
 0x184   :  { %s241_s28 = sshll.u32 %s16254_s27, 4  ;;  %s16255_s18 = smov [#allocation34]   ;;  %s242_s28 = int_to_ptr.vmem [resolvable:$true] %s241_s28 }
 0x185   :  { %s263_s8 = sshll.u32 %s16255_s18, 4  ;;  %s16112_s2 = scalar_lea.hbm %s17657_s19, 16  ;;  %s264_s8 = int_to_ptr.vmem [resolvable:$true] %s263_s8 }
 0x186   :  { %p16113_p12 = scmp.ne.s32.totalorder %s17657_s19, %s16112_s2  ;;  %p16116_p13 = scmp.lt.u32.totalorder %s16112_s2, %s17657_s19 }
 0x188   :  { %p16118_p0 = pnand %p16116_p13, %p16113_p12 }
 0x18a   :  { %16121 = shalt.err (!%p16118_p0)
}
 0x18b   :  { %s16122_s17 = scalar_lea.vmem %s242_s28, 16  ;;  %s16126_s7 = scalar_lea.vmem %s242_s28, 32 }
 0x18c   :  { %p16123_p1 = scmp.ne.s32.totalorder %s242_s28, %s16122_s17  ;;  %p16127_p2 = scmp.lt.s32.totalorder %s242_s28, %s242_s28 }
 0x18d   :  { %p16128_p3 = scmp.lt.s32.totalorder %s16126_s7, %s16122_s17 }
 0x18f   :  { %p16129_p4 = por %p16128_p3, %p16127_p2 }
 0x191   :  { %p16130_p5 = pnand %p16129_p4, %p16123_p1 }
 0x193   :  { %16133 = shalt.err (!%p16130_p5)
}
 0x194   :  { %244 = dma.hbm_to_vmem [thread:$0]  %s17657_s19, 16, %s242_s28, [#allocation30]  }
 0x195   :  { %s16134_s30 = scalar_lea.hbm %s17660_s22, 16 }
 0x196   :  { %p16135_p6 = scmp.ne.s32.totalorder %s17660_s22, %s16134_s30  ;;  %p16138_p7 = scmp.lt.u32.totalorder %s16134_s30, %s17660_s22 }
 0x198   :  { %p16140_p8 = pnand %p16138_p7, %p16135_p6 }
 0x19a   :  { %16143 = shalt.err (!%p16140_p8)
}
 0x19b   :  { %s16144_s4 = scalar_lea.vmem %s264_s8, 16  ;;  %s16148_s15 = scalar_lea.vmem %s264_s8, 32 }
 0x19c   :  { %p16145_p9 = scmp.ne.s32.totalorder %s264_s8, %s16144_s4  ;;  %p16149_p10 = scmp.lt.s32.totalorder %s264_s8, %s264_s8 }
 0x19d   :  { %p16150_p11 = scmp.lt.s32.totalorder %s16148_s15, %s16144_s4 }
 0x19f   :  { %p16151_p12 = por %p16150_p11, %p16149_p10 }
 0x1a1   :  { %p16152_p13 = pnand %p16151_p12, %p16145_p9 }
 0x1a3   :  { %16155 = shalt.err (!%p16152_p13)
}
 0x1a4   :  { %266 = dma.hbm_to_vmem [thread:$0]  %s17660_s22, 16, %s264_s8, [#allocation33]  }
 0x1a5   :  { %s16256_s0 = smov [#allocation35]   ;;  %s16156_s29 = scalar_lea.hbm %s17662_s24, 16 }
 0x1a6   :  { %s275_s27 = sshll.u32 %s16256_s0, 4  ;;  %p16157_p0 = scmp.ne.s32.totalorder %s17662_s24, %s16156_s29  ;;  %s276_s27 = int_to_ptr.vmem [resolvable:$true] %s275_s27 }
 0x1a7   :  { %p16160_p1 = scmp.lt.u32.totalorder %s16156_s29, %s17662_s24 }
 0x1a9   :  { %p16162_p2 = pnand %p16160_p1, %p16157_p0 }
 0x1ab   :  { %16165 = shalt.err (!%p16162_p2)
}
 0x1ac   :  { %s16166_s13 = scalar_lea.vmem %s276_s27, 16  ;;  %s16170_s22 = scalar_lea.vmem %s276_s27, 32 }
 0x1ad   :  { %p16167_p3 = scmp.ne.s32.totalorder %s276_s27, %s16166_s13  ;;  %p16171_p4 = scmp.lt.s32.totalorder %s276_s27, %s276_s27 }
 0x1ae   :  { %p16172_p5 = scmp.lt.s32.totalorder %s16170_s22, %s16166_s13 }
 0x1b0   :  { %p16173_p6 = por %p16172_p5, %p16171_p4 }
 0x1b2   :  { %p16174_p7 = pnand %p16173_p6, %p16167_p3 }
 0x1b4   :  { %16177 = shalt.err (!%p16174_p7)
}
 0x1b5   :  { %278 = dma.hbm_to_vmem [thread:$0]  %s17662_s24, 16, %s276_s27, [#allocation36]  }
 0x1b6   :  { %16200 = dma.done.wait [#allocation3], 16384  }
 0x1b7   :  { %16201 = vsyncadd [#allocation3], 4294950912 }
 0x1b8   :  { %16202 = dma.done.wait [#allocation6], 512  }
 0x1b9   :  { %16203 = vsyncadd [#allocation6], 4294966784 }
 0x1ba   :  { %16204 = dma.done.wait [#allocation9], 131328  }
 0x1bb   :  { %16205 = vsyncadd [#allocation9], 4294835968 }
 0x1bc   :  { %16206 = dma.done.wait [#allocation12], 256  }
 0x1bd   :  { %16207 = vsyncadd [#allocation12], 4294967040 }
 0x1be   :  { %16208 = dma.done.wait [#allocation15], 32896  }
 0x1bf   :  { %16209 = vsyncadd [#allocation15], 4294934400 }
 0x1c0   :  { %16210 = dma.done.wait [#allocation18], 128  }
 0x1c1   :  { %16211 = vsyncadd [#allocation18], 4294967168 }
 0x1c2   :  { %16212 = dma.done.wait [#allocation21], 8256  }
 0x1c3   :  { %16213 = vsyncadd [#allocation21], 4294959040 }
 0x1c4   :  { %16214 = dma.done.wait [#allocation24], 64  }
 0x1c5   :  { %16215 = vsyncadd [#allocation24], 4294967232 }
 0x1c6   :  { %16216 = dma.done.wait [#allocation27], 2080  }
 0x1c7   :  { %16217 = vsyncadd [#allocation27], 4294965216 }
 0x1c8   :  { %16218 = dma.done.wait [#allocation30], 32  }
 0x1c9   :  { %16219 = vsyncadd [#allocation30], 4294967264 }
 0x1ca   :  { %16220 = dma.done.wait [#allocation33], 32  }
 0x1cb   :  { %16221 = vsyncadd [#allocation33], 4294967264 }
 0x1cc   :  { %16222 = dma.done.wait [#allocation36], 16  }
 0x1cd   :  { %16223 = vsyncadd [#allocation36], 4294967280  ;;  %v16257_v0 = vmov 0   ;;  %v348_v1 = vld [vmem:[#allocation2] sm:$0xff]  ;;  %v350_v18 = vld [vmem:[#allocation2 + $0x10] sm:$0xff]  ;;  %s17708_s7 = sld [smem:[#allocation64_spill]] }
 0x1ce   :  { %1232 = vmatprep.mubr.bf16.mxu1 %v16257_v0  ;;  %1314 = vmatprep.mubr.bf16.mxu0 %v16257_v0  ;;  %v356_v2 = vld [vmem:[#allocation2 + $0x40] sm:$0xff]  ;;  %v358_v19 = vld [vmem:[#allocation2 + $0x50] sm:$0xff]  ;;  %v349_v53 = vld [vmem:[#allocation2 + $0x8] sm:$0xff]  ;;  %vm16260_vm0 = vmmov 0   ;;  %vm13287_vm1 = vcmask 523264   ;;  %s16261_s22 = smov [#allocation37]  }
 0x1cf   :  { %v364_v3 = vld [vmem:[#allocation2 + $0x80] sm:$0xff]  ;;  %v13360_v4 = vcombine.high %v348_v1, %v356_v2  ;;  %v13359_v5 = vcombine.low %v348_v1, %v356_v2  ;;  %v13364_v20 = vcombine.high %v350_v18, %v358_v19  ;;  %v13363_v21 = vcombine.low %v350_v18, %v358_v19  ;;  %v366_v22 = vld [vmem:[#allocation2 + $0x90] sm:$0xff]  ;;  %v357_v54 = vld [vmem:[#allocation2 + $0x48] sm:$0xff]  ;;  %s13339_s8 = sshll.u32 %s16261_s22, 4  ;;  %s13340_s8 = int_to_ptr.vmem [resolvable:$true] %s13339_s8 }
 0x1d0   :  { %v372_v6 = vld [vmem:[#allocation2 + $0xc0] sm:$0xff]  ;;  %v374_v24 = vld [vmem:[#allocation2 + $0xd0] sm:$0xff]  ;;  %v13362_v61 = vcombine.high %v349_v53, %v357_v54  ;;  %v365_v62 = vld [vmem:[#allocation2 + $0x88] sm:$0xff]  ;;  %vm13331_vm2 = vcmask 261120   ;;  %p16183_p9 = scmp.lt.s32.totalorder %s13340_s8, %s13340_s8 }
 0x1d1   :  { %v13376_v7 = vcombine.high %v364_v3, %v372_v6  ;;  %v380_v8 = vld [vmem:[#allocation2 + $0x100] sm:$0xff]  ;;  %1200 = vmatprep.subr.bf16.mxu1 %v13360_v4  ;;  %v13375_v10 = vcombine.low %v364_v3, %v372_v6  ;;  %1282 = vmatprep.subr.bf16.mxu0 %v13364_v20  ;;  %v13380_v26 = vcombine.high %v366_v22, %v374_v24  ;;  %v382_v27 = vld [vmem:[#allocation2 + $0x110] sm:$0xff]  ;;  %v373_v63 = vld [vmem:[#allocation2 + $0xc8] sm:$0xff] }
 0x1d2   :  { %v388_v9 = vld [vmem:[#allocation2 + $0x140] sm:$0xff]  ;;  %1201 = vmatpush1.bf16.msra.mxu1 %v13359_v5  ;;  %v390_v28 = vld [vmem:[#allocation2 + $0x150] sm:$0xff]  ;;  %1283 = vmatpush1.bf16.msra.mxu0 %v13363_v21  ;;  %v13379_v31 = vcombine.low %v366_v22, %v374_v24  ;;  %v13361_v4 = vcombine.low %v349_v53, %v357_v54  ;;  %v413_v24 = vld [vmem:[#allocation2 + $0x208] sm:$0xff] }
 0x1d3   :  { %1202 = vmatprep.subr.bf16.mxu1 %v13376_v7  ;;  %v13392_v11 = vcombine.high %v380_v8, %v388_v9  ;;  %v396_v12 = vld [vmem:[#allocation2 + $0x180] sm:$0xff]  ;;  %v13391_v14 = vcombine.low %v380_v8, %v388_v9  ;;  %1284 = vmatprep.subr.bf16.mxu0 %v13380_v26  ;;  %v13396_v32 = vcombine.high %v382_v27, %v390_v28  ;;  %v398_v34 = vld [vmem:[#allocation2 + $0x190] sm:$0xff]  ;;  %v346_v58 = vld [vmem:[%s17708_s7] sm:$0xff] }
 0x1d4   :  { %v404_v13 = vld [vmem:[#allocation2 + $0x1c0] sm:$0xff]  ;;  %v406_v35 = vld [vmem:[#allocation2 + $0x1d0] sm:$0xff]  ;;  %v13395_v39 = vcombine.low %v382_v27, %v390_v28  ;;  %v16664_v2 = vpack.c.bf16 %v346_v58, %v346_v58  ;;  %v13378_v7 = vcombine.high %v365_v62, %v373_v63  ;;  %v381_v8 = vld [vmem:[#allocation2 + $0x108] sm:$0xff] }
 0x1d5   :  { %v13408_v15 = vcombine.high %v396_v12, %v404_v13  ;;  %v412_v16 = vld [vmem:[#allocation2 + $0x200] sm:$0xff]  ;;  %v13407_v23 = vcombine.low %v396_v12, %v404_v13  ;;  %v13412_v40 = vcombine.high %v398_v34, %v406_v35  ;;  %v414_v42 = vld [vmem:[#allocation2 + $0x210] sm:$0xff]  ;;  %v13411_v47 = vcombine.low %v398_v34, %v406_v35  ;;  %v389_v9 = vld [vmem:[#allocation2 + $0x148] sm:$0xff] }
 0x1d6   :  { %1203 = vmatpush1.bf16.msra.mxu1 %v13375_v10  ;;  %v420_v17 = vld [vmem:[#allocation2 + $0x240] sm:$0xff]  ;;  %1285 = vmatpush1.bf16.msra.mxu0 %v13379_v31  ;;  %v422_v43 = vld [vmem:[#allocation2 + $0x250] sm:$0xff]  ;;  %v13377_v12 = vcombine.low %v365_v62, %v373_v63  ;;  %v13393_v20 = vcombine.low %v381_v8, %v389_v9  ;;  %v429_v31 = vld [vmem:[#allocation2 + $0x288] sm:$0xff] }
 0x1d7   :  { %1204 = vmatprep.subr.bf16.mxu1 %v13392_v11  ;;  %v13424_v25 = vcombine.high %v412_v16, %v420_v17  ;;  %v428_v29 = vld [vmem:[#allocation2 + $0x280] sm:$0xff]  ;;  %v13423_v33 = vcombine.low %v412_v16, %v420_v17  ;;  %1286 = vmatprep.subr.bf16.mxu0 %v13396_v32  ;;  %v13428_v48 = vcombine.high %v414_v42, %v422_v43  ;;  %v430_v50 = vld [vmem:[#allocation2 + $0x290] sm:$0xff]  ;;  %v397_v16 = vld [vmem:[#allocation2 + $0x188] sm:$0xff] }
 0x1d8   :  { %v436_v30 = vld [vmem:[#allocation2 + $0x2c0] sm:$0xff]  ;;  %v438_v51 = vld [vmem:[#allocation2 + $0x2d0] sm:$0xff]  ;;  %v13427_v55 = vcombine.low %v414_v42, %v422_v43  ;;  %v405_v17 = vld [vmem:[#allocation2 + $0x1c8] sm:$0xff] }
 0x1d9   :  { %v13440_v36 = vcombine.high %v428_v29, %v436_v30  ;;  %v444_v37 = vld [vmem:[#allocation2 + $0x300] sm:$0xff]  ;;  %v13439_v41 = vcombine.low %v428_v29, %v436_v30  ;;  %v13444_v56 = vcombine.high %v430_v50, %v438_v51  ;;  %v446_v59 = vld [vmem:[#allocation2 + $0x310] sm:$0xff]  ;;  %v13443_v1 = vcombine.low %v430_v50, %v438_v51  ;;  %v437_v32 = vld [vmem:[#allocation2 + $0x2c8] sm:$0xff] }
 0x1da   :  { %1205 = vmatpush1.bf16.msra.mxu1 %v13391_v14  ;;  %v452_v38 = vld [vmem:[#allocation2 + $0x340] sm:$0xff]  ;;  %1287 = vmatpush1.bf16.msra.mxu0 %v13395_v39  ;;  %v454_v60 = vld [vmem:[#allocation2 + $0x350] sm:$0xff]  ;;  %v13409_v30 = vcombine.low %v397_v16, %v405_v17  ;;  %v445_v39 = vld [vmem:[#allocation2 + $0x308] sm:$0xff] }
 0x1db   :  { %1206 = vmatprep.subr.bf16.mxu1 %v13408_v15  ;;  %v13456_v44 = vcombine.high %v444_v37, %v452_v38  ;;  %v460_v45 = vld [vmem:[#allocation2 + $0x380] sm:$0xff]  ;;  %1288 = vmatprep.subr.bf16.mxu0 %v13412_v40  ;;  %v13455_v49 = vcombine.low %v444_v37, %v452_v38  ;;  %v13460_v3 = vcombine.high %v446_v59, %v454_v60  ;;  %v462_v5 = vld [vmem:[#allocation2 + $0x390] sm:$0xff]  ;;  %v453_v40 = vld [vmem:[#allocation2 + $0x348] sm:$0xff] }
 0x1dc   :  { %v468_v46 = vld [vmem:[#allocation2 + $0x3c0] sm:$0xff]  ;;  %v470_v6 = vld [vmem:[#allocation2 + $0x3d0] sm:$0xff]  ;;  %v13459_v10 = vcombine.low %v446_v59, %v454_v60  ;;  %v13394_v15 = vcombine.high %v381_v8, %v389_v9  ;;  %v13457_v54 = vcombine.low %v445_v39, %v453_v40  ;;  %v367_v63 = vld [vmem:[#allocation2 + $0x98] sm:$0xff] }
 0x1dd   :  { %v13472_v52 = vcombine.high %v460_v45, %v468_v46  ;;  %v13471_v57 = vcombine.low %v460_v45, %v468_v46  ;;  %v13476_v11 = vcombine.high %v462_v5, %v470_v6  ;;  %v352_v13 = vld [vmem:[#allocation2 + $0x20] sm:$0xff]  ;;  %v13475_v18 = vcombine.low %v462_v5, %v470_v6  ;;  %v383_v9 = vld [vmem:[#allocation2 + $0x118] sm:$0xff] }
 0x1de   :  { %1207 = vmatpush1.bf16.msra.mxu1 %v13407_v23  ;;  %1289 = vmatpush1.bf16.msra.mxu0 %v13411_v47  ;;  %v360_v14 = vld [vmem:[#allocation2 + $0x60] sm:$0xff]  ;;  %v13410_v23 = vcombine.high %v397_v16, %v405_v17  ;;  %v13441_v46 = vcombine.low %v429_v31, %v437_v32  ;;  %v461_v47 = vld [vmem:[#allocation2 + $0x388] sm:$0xff]  ;;  %v399_v17 = vld [vmem:[#allocation2 + $0x198] sm:$0xff] }
 0x1df   :  { %1208 = vmatprep.subr.bf16.mxu1 %v13424_v25  ;;  %1290 = vmatprep.subr.bf16.mxu0 %v13428_v48  ;;  %v13368_v19 = vcombine.high %v352_v13, %v360_v14  ;;  %v368_v21 = vld [vmem:[#allocation2 + $0xa0] sm:$0xff]  ;;  %v421_v25 = vld [vmem:[#allocation2 + $0x248] sm:$0xff]  ;;  %v13367_v26 = vcombine.low %v352_v13, %v360_v14  ;;  %v354_v13 = vld [vmem:[#allocation2 + $0x30] sm:$0xff] }
 0x1e0   :  { %v376_v22 = vld [vmem:[#allocation2 + $0xe0] sm:$0xff]  ;;  %v13425_v38 = vcombine.low %v413_v24, %v421_v25  ;;  %v469_v48 = vld [vmem:[#allocation2 + $0x3c8] sm:$0xff]  ;;  %v362_v14 = vld [vmem:[#allocation2 + $0x70] sm:$0xff] }
 0x1e1   :  { %v384_v27 = vld [vmem:[#allocation2 + $0x120] sm:$0xff]  ;;  %v13384_v28 = vcombine.high %v368_v21, %v376_v22  ;;  %v13383_v34 = vcombine.low %v368_v21, %v376_v22  ;;  %v13473_v62 = vcombine.low %v461_v47, %v469_v48  ;;  %v370_v21 = vld [vmem:[#allocation2 + $0xb0] sm:$0xff] }
 0x1e2   :  { %1209 = vmatpush1.bf16.msra.mxu1 %v13423_v33  ;;  %1291 = vmatpush1.bf16.msra.mxu0 %v13427_v55  ;;  %v392_v29 = vld [vmem:[#allocation2 + $0x160] sm:$0xff]  ;;  %v13426_v33 = vcombine.high %v413_v24, %v421_v25  ;;  %v351_v55 = vld [vmem:[#allocation2 + $0x18] sm:$0xff]  ;;  %v378_v22 = vld [vmem:[#allocation2 + $0xf0] sm:$0xff] }
 0x1e3   :  { %1210 = vmatprep.subr.bf16.mxu1 %v13440_v36  ;;  %1292 = vmatprep.subr.bf16.mxu0 %v13444_v56  ;;  %v400_v35 = vld [vmem:[#allocation2 + $0x1a0] sm:$0xff]  ;;  %v13400_v37 = vcombine.high %v384_v27, %v392_v29  ;;  %v13399_v42 = vcombine.low %v384_v27, %v392_v29  ;;  %v359_v56 = vld [vmem:[#allocation2 + $0x58] sm:$0xff]  ;;  %v386_v29 = vld [vmem:[#allocation2 + $0x130] sm:$0xff] }
 0x1e4   :  { %v408_v36 = vld [vmem:[#allocation2 + $0x1e0] sm:$0xff]  ;;  %v13365_v8 = vcombine.low %v351_v55, %v359_v56  ;;  %v415_v25 = vld [vmem:[#allocation2 + $0x218] sm:$0xff] }
 0x1e5   :  { %v416_v43 = vld [vmem:[#allocation2 + $0x220] sm:$0xff]  ;;  %v13416_v45 = vcombine.high %v400_v35, %v408_v36  ;;  %v13415_v50 = vcombine.low %v400_v35, %v408_v36  ;;  %v13387_v36 = vcombine.low %v370_v21, %v378_v22 }
 0x1e6   :  { %1211 = vmatpush1.bf16.msra.mxu1 %v13439_v41  ;;  %1293 = vmatpush1.bf16.msra.mxu0 %v13443_v1  ;;  %v13442_v41 = vcombine.high %v429_v31, %v437_v32  ;;  %v432_v51 = vld [vmem:[#allocation2 + $0x2a0] sm:$0xff]  ;;  %v375_v1 = vld [vmem:[#allocation2 + $0xd8] sm:$0xff]  ;;  %v13388_v31 = vcombine.high %v370_v21, %v378_v22  ;;  %v417_v22 = vld [vmem:[#allocation2 + $0x228] sm:$0xff] }
 0x1e7   :  { %1212 = vmatprep.subr.bf16.mxu1 %v13456_v44  ;;  %1294 = vmatprep.subr.bf16.mxu0 %v13460_v3  ;;  %v424_v44 = vld [vmem:[#allocation2 + $0x260] sm:$0xff]  ;;  %v13366_v3 = vcombine.high %v351_v55, %v359_v56  ;;  %v13381_v16 = vcombine.low %v367_v63, %v375_v1 }
 0x1e8   :  { %v13432_v53 = vcombine.high %v416_v43, %v424_v44  ;;  %v13431_v58 = vcombine.low %v416_v43, %v424_v44  ;;  %v448_v59 = vld [vmem:[#allocation2 + $0x320] sm:$0xff] }
 0x1e9   :  { %v456_v60 = vld [vmem:[#allocation2 + $0x360] sm:$0xff] }
 0x1ea   :  { %1213 = vmatpush1.bf16.msra.mxu1 %v13455_v49  ;;  %1295 = vmatpush1.bf16.msra.mxu0 %v13459_v10  ;;  %v13458_v49 = vcombine.high %v445_v39, %v453_v40  ;;  %v464_v5 = vld [vmem:[#allocation2 + $0x3a0] sm:$0xff]  ;;  %v391_v10 = vld [vmem:[#allocation2 + $0x158] sm:$0xff] }
 0x1eb   :  { %1214 = vmatprep.subr.bf16.mxu1 %v13472_v52  ;;  %1296 = vmatprep.subr.bf16.mxu0 %v13476_v11  ;;  %v440_v52 = vld [vmem:[#allocation2 + $0x2e0] sm:$0xff]  ;;  %v13382_v11 = vcombine.high %v367_v63, %v375_v1  ;;  %v13397_v24 = vcombine.low %v383_v9, %v391_v10 }
 0x1ec   :  { %v472_v6 = vld [vmem:[#allocation2 + $0x3e0] sm:$0xff] }
 0x1ee   :  { %1215 = vmatpush1.bf16.msra.mxu1 %v13471_v57  ;;  %1297 = vmatpush1.bf16.msra.mxu0 %v13475_v18  ;;  %v13474_v57 = vcombine.high %v461_v47, %v469_v48  ;;  %v407_v18 = vld [vmem:[#allocation2 + $0x1d8] sm:$0xff] }
 0x1ef   :  { %1241 = vmatprep.subr.bf16.mxu1 %v13362_v61  ;;  %1364 = vmatprep.subr.bf16.mxu0 %v13368_v19  ;;  %v13448_v61 = vcombine.high %v432_v51, %v440_v52  ;;  %v13398_v19 = vcombine.high %v383_v9, %v391_v10  ;;  %v13414_v27 = vcombine.high %v399_v17, %v407_v18 }
 0x1f0   :  { %v13413_v32 = vcombine.low %v399_v17, %v407_v18  ;;  %v401_v17 = vld [vmem:[#allocation2 + $0x1a8] sm:$0xff] }
 0x1f1   :  { %1233 = vmatmul.mubr.bf16.vlgmr.msra.gmra.mrb[0].mxu1 %v16664_v2  ;;  %1315 = vmatmul.mubr.bf16.vlgmr.msra.gmra.mrb[0].mxu0 %v16664_v2  ;;  %v409_v18 = vld [vmem:[#allocation2 + $0x1e8] sm:$0xff] }
 0x1f2   :  { %1242 = vmatpush1.bf16.msra.mxu1 %v13361_v4  ;;  %1273 = vmatprep.mubr.bf16.mxu1 %v16257_v0  ;;  %v13447_v4 = vcombine.low %v432_v51, %v440_v52 }
 0x1f3   :  { %1243 = vmatprep.subr.bf16.mxu1 %v13378_v7  ;;  %1365 = vmatpush1.bf16.msra.mxu0 %v13367_v26  ;;  %v13464_v7 = vcombine.high %v448_v59, %v456_v60  ;;  %v423_v26 = vld [vmem:[#allocation2 + $0x258] sm:$0xff] }
 0x1f4   :  { %1396 = vmatprep.mubr.bf16.mxu0 %v16257_v0  ;;  %1366 = vmatprep.subr.bf16.mxu0 %v13384_v28  ;;  %v13371_v28 = vcombine.low %v354_v13, %v362_v14  ;;  %v13430_v35 = vcombine.high %v415_v25, %v423_v26  ;;  %v13429_v40 = vcombine.low %v415_v25, %v423_v26  ;;  %v433_v26 = vld [vmem:[#allocation2 + $0x2a8] sm:$0xff] }
 0x1f5   :  { %v13417_v25 = vcombine.low %v401_v17, %v409_v18 }
 0x1f6   :  { %1244 = vmatpush1.bf16.msra.mxu1 %v13377_v12  ;;  %v13463_v12 = vcombine.low %v448_v59, %v456_v60 }
 0x1f7   :  { %1245 = vmatprep.subr.bf16.mxu1 %v13394_v15  ;;  %1367 = vmatpush1.bf16.msra.mxu0 %v13383_v34  ;;  %v13480_v15 = vcombine.high %v464_v5, %v472_v6  ;;  %v439_v34 = vld [vmem:[#allocation2 + $0x2d8] sm:$0xff] }
 0x1f8   :  { %1368 = vmatprep.subr.bf16.mxu0 %v13400_v37  ;;  %v402_v37 = vld [vmem:[#allocation2 + $0x1b0] sm:$0xff] }
 0x1fa   :  { %1246 = vmatpush1.bf16.msra.mxu1 %v13393_v20  ;;  %v13479_v20 = vcombine.low %v464_v5, %v472_v6 }
 0x1fb   :  { %1247 = vmatprep.subr.bf16.mxu1 %v13410_v23  ;;  %1369 = vmatpush1.bf16.msra.mxu0 %v13399_v42  ;;  %v13372_v23 = vcombine.high %v354_v13, %v362_v14  ;;  %v455_v42 = vld [vmem:[#allocation2 + $0x358] sm:$0xff] }
 0x1fc   :  { %1370 = vmatprep.subr.bf16.mxu0 %v13416_v45  ;;  %v418_v45 = vld [vmem:[#allocation2 + $0x230] sm:$0xff] }
 0x1fe   :  { %1248 = vmatpush1.bf16.msra.mxu1 %v13409_v30  ;;  %v394_v30 = vld [vmem:[#allocation2 + $0x170] sm:$0xff] }
 0x1ff   :  { %1249 = vmatprep.subr.bf16.mxu1 %v13426_v33  ;;  %1371 = vmatpush1.bf16.msra.mxu0 %v13415_v50  ;;  %v431_v33 = vld [vmem:[#allocation2 + $0x298] sm:$0xff]  ;;  %v13404_v39 = vcombine.high %v386_v29, %v394_v30  ;;  %v13403_v44 = vcombine.low %v386_v29, %v394_v30  ;;  %v449_v30 = vld [vmem:[#allocation2 + $0x328] sm:$0xff] }
 0x200   :  { %1372 = vmatprep.subr.bf16.mxu0 %v13432_v53  ;;  %v13446_v43 = vcombine.high %v431_v33, %v439_v34  ;;  %v13445_v48 = vcombine.low %v431_v33, %v439_v34  ;;  %v471_v50 = vld [vmem:[#allocation2 + $0x3d8] sm:$0xff]  ;;  %v434_v53 = vld [vmem:[#allocation2 + $0x2b0] sm:$0xff]  ;;  %v465_v34 = vld [vmem:[#allocation2 + $0x3a8] sm:$0xff] }
 0x202   :  { %1250 = vmatpush1.bf16.msra.mxu1 %v13425_v38  ;;  %v410_v38 = vld [vmem:[#allocation2 + $0x1f0] sm:$0xff] }
 0x203   :  { %1251 = vmatprep.subr.bf16.mxu1 %v13442_v41  ;;  %1373 = vmatpush1.bf16.msra.mxu0 %v13431_v58  ;;  %v447_v41 = vld [vmem:[#allocation2 + $0x318] sm:$0xff]  ;;  %v13420_v47 = vcombine.high %v402_v37, %v410_v38  ;;  %v13419_v52 = vcombine.low %v402_v37, %v410_v38  ;;  %v361_v58 = vld [vmem:[#allocation2 + $0x68] sm:$0xff] }
 0x204   :  { %1374 = vmatprep.subr.bf16.mxu0 %v13448_v61  ;;  %v13462_v51 = vcombine.high %v447_v41, %v455_v42  ;;  %v13461_v56 = vcombine.low %v447_v41, %v455_v42  ;;  %v450_v61 = vld [vmem:[#allocation2 + $0x330] sm:$0xff]  ;;  %v355_v38 = vld [vmem:[#allocation2 + $0x38] sm:$0xff] }
 0x205   :  { %v371_v42 = vld [vmem:[#allocation2 + $0xb8] sm:$0xff] }
 0x206   :  { %1252 = vmatpush1.bf16.msra.mxu1 %v13441_v46  ;;  %v426_v46 = vld [vmem:[#allocation2 + $0x270] sm:$0xff] }
 0x207   :  { %1253 = vmatprep.subr.bf16.mxu1 %v13458_v49  ;;  %1375 = vmatpush1.bf16.msra.mxu0 %v13447_v4  ;;  %v463_v49 = vld [vmem:[#allocation2 + $0x398] sm:$0xff]  ;;  %v13436_v55 = vcombine.high %v418_v45, %v426_v46  ;;  %v13435_v60 = vcombine.low %v418_v45, %v426_v46  ;;  %v377_v4 = vld [vmem:[#allocation2 + $0xe8] sm:$0xff] }
 0x208   :  { %1376 = vmatprep.subr.bf16.mxu0 %v13464_v7  ;;  %v13478_v59 = vcombine.high %v463_v49, %v471_v50  ;;  %v13477_v1 = vcombine.low %v463_v49, %v471_v50  ;;  %v466_v7 = vld [vmem:[#allocation2 + $0x3b0] sm:$0xff]  ;;  %v387_v46 = vld [vmem:[#allocation2 + $0x138] sm:$0xff] }
 0x209   :  { %v403_v50 = vld [vmem:[#allocation2 + $0x1b8] sm:$0xff] }
 0x20a   :  { %1254 = vmatpush1.bf16.msra.mxu1 %v13457_v54  ;;  %v442_v54 = vld [vmem:[#allocation2 + $0x2f0] sm:$0xff] }
 0x20b   :  { %1255 = vmatprep.subr.bf16.mxu1 %v13474_v57  ;;  %1377 = vmatpush1.bf16.msra.mxu0 %v13463_v12  ;;  %v353_v57 = vld [vmem:[#allocation2 + $0x28] sm:$0xff]  ;;  %v13452_v63 = vcombine.high %v434_v53, %v442_v54  ;;  %v13451_v6 = vcombine.low %v434_v53, %v442_v54  ;;  %v419_v54 = vld [vmem:[#allocation2 + $0x238] sm:$0xff] }
 0x20c   :  { %1378 = vmatprep.subr.bf16.mxu0 %v13480_v15  ;;  %v13370_v5 = vcombine.high %v353_v57, %v361_v58  ;;  %v13369_v10 = vcombine.low %v353_v57, %v361_v58  ;;  %v393_v12 = vld [vmem:[#allocation2 + $0x168] sm:$0xff]  ;;  %v435_v58 = vld [vmem:[#allocation2 + $0x2b8] sm:$0xff] }
 0x20e   :  { %1256 = vmatpush1.bf16.msra.mxu1 %v13473_v62  ;;  %v458_v62 = vld [vmem:[#allocation2 + $0x370] sm:$0xff] }
 0x20f   :  { %1323 = vmatprep.subr.bf16.mxu1 %v13366_v3  ;;  %1379 = vmatpush1.bf16.msra.mxu0 %v13479_v20  ;;  %v369_v3 = vld [vmem:[#allocation2 + $0xa8] sm:$0xff]  ;;  %v13468_v9 = vcombine.high %v450_v61, %v458_v62  ;;  %v13467_v14 = vcombine.low %v450_v61, %v458_v62  ;;  %v451_v62 = vld [vmem:[#allocation2 + $0x338] sm:$0xff] }
 0x210   :  { %1446 = vmatprep.subr.bf16.mxu0 %v13372_v23  ;;  %v13386_v13 = vcombine.high %v369_v3, %v377_v4  ;;  %v425_v23 = vld [vmem:[#allocation2 + $0x268] sm:$0xff] }
 0x211   :  { %1274 = vmatmul.mubr.bf16.vlgmr.msra.gmra.mrb[4].mxu1 %v16664_v2  ;;  %v13433_v29 = vcombine.low %v417_v22, %v425_v23 }
 0x212   :  { %1324 = vmatpush1.bf16.msra.mxu1 %v13365_v8  ;;  %1355 = vmatprep.mubr.bf16.mxu1 %v16257_v0  ;;  %v474_v8 = vld [vmem:[#allocation2 + $0x3f0] sm:$0xff] }
 0x213   :  { %1325 = vmatprep.subr.bf16.mxu1 %v13382_v11  ;;  %1397 = vmatmul.mubr.bf16.vlgmr.msra.gmra.mrb[4].mxu0 %v16664_v2  ;;  %v385_v11 = vld [vmem:[#allocation2 + $0x128] sm:$0xff]  ;;  %v13484_v15 = vcombine.high %v466_v7, %v474_v8  ;;  %v13483_v20 = vcombine.low %v466_v7, %v474_v8 }
 0x214   :  { %1447 = vmatpush1.bf16.msra.mxu0 %v13371_v28  ;;  %1478 = vmatprep.mubr.bf16.mxu0 %v16257_v0  ;;  %v13401_v21 = vcombine.low %v385_v11, %v393_v12  ;;  %v13434_v28 = vcombine.high %v417_v22, %v425_v23 }
 0x215   :  { %1448 = vmatprep.subr.bf16.mxu0 %v13388_v31  ;;  %v457_v31 = vld [vmem:[#allocation2 + $0x368] sm:$0xff] }
 0x216   :  { %1326 = vmatpush1.bf16.msra.mxu1 %v13381_v16  ;;  %v13385_v16 = vcombine.low %v369_v3, %v377_v4  ;;  %v13465_v37 = vcombine.low %v449_v30, %v457_v31  ;;  %v467_v3 = vld [vmem:[#allocation2 + $0x3b8] sm:$0xff] }
 0x217   :  { %1327 = vmatprep.subr.bf16.mxu1 %v13398_v19  ;;  %v13402_v19 = vcombine.high %v385_v11, %v393_v12  ;;  %v475_v4 = vld [vmem:[#allocation2 + $0x3f8] sm:$0xff] }
 0x218   :  { %1449 = vmatpush1.bf16.msra.mxu0 %v13387_v36  ;;  %v13466_v36 = vcombine.high %v449_v30, %v457_v31  ;;  %v13486_v7 = vcombine.high %v467_v3, %v475_v4  ;;  %v13485_v8 = vcombine.low %v467_v3, %v475_v4  ;;  %v2334_v11 = vld [vmem:[#allocation10 + $0x8] sm:$0xff] }
 0x219   :  { %1450 = vmatprep.subr.bf16.mxu0 %v13404_v39  ;;  %v363_v39 = vld [vmem:[#allocation2 + $0x78] sm:$0xff] }
 0x21a   :  { %1328 = vmatpush1.bf16.msra.mxu1 %v13397_v24  ;;  %v13418_v24 = vcombine.high %v401_v17, %v409_v18  ;;  %v13373_v45 = vcombine.low %v355_v38, %v363_v39  ;;  %v2341_v17 = vld [vmem:[#allocation10 + $0x40] sm:$0xff]  ;;  %v2390_v3 = vld [vmem:[#allocation10 + $0x1c8] sm:$0xff] }
 0x21b   :  { %1329 = vmatprep.subr.bf16.mxu1 %v13414_v27  ;;  %v441_v27 = vld [vmem:[#allocation2 + $0x2e8] sm:$0xff]  ;;  %v2345_v18 = vld [vmem:[#allocation10 + $0x60] sm:$0xff] }
 0x21c   :  { %1451 = vmatpush1.bf16.msra.mxu0 %v13403_v44  ;;  %v13449_v33 = vcombine.low %v433_v26, %v441_v27  ;;  %v13374_v44 = vcombine.high %v355_v38, %v363_v39  ;;  %v13495_v22 = vcombine.low %v2341_v17, %v2345_v18 }
 0x21d   :  { %1452 = vmatprep.subr.bf16.mxu0 %v13420_v47  ;;  %v395_v47 = vld [vmem:[#allocation2 + $0x178] sm:$0xff] }
 0x21e   :  { %1330 = vmatpush1.bf16.msra.mxu1 %v13413_v32  ;;  %v13450_v32 = vcombine.high %v433_v26, %v441_v27  ;;  %v13405_v53 = vcombine.low %v387_v46, %v395_v47  ;;  %v2350_v26 = vld [vmem:[#allocation10 + $0x88] sm:$0xff] }
 0x21f   :  { %1331 = vmatprep.subr.bf16.mxu1 %v13430_v35  ;;  %v473_v35 = vld [vmem:[#allocation2 + $0x3e8] sm:$0xff] }
 0x220   :  { %1453 = vmatpush1.bf16.msra.mxu0 %v13419_v52  ;;  %v13481_v41 = vcombine.low %v465_v34, %v473_v35  ;;  %v13406_v52 = vcombine.high %v387_v46, %v395_v47 }
 0x221   :  { %1454 = vmatprep.subr.bf16.mxu0 %v13436_v55  ;;  %v427_v55 = vld [vmem:[#allocation2 + $0x278] sm:$0xff] }
 0x222   :  { %1332 = vmatpush1.bf16.msra.mxu1 %v13429_v40  ;;  %v13482_v40 = vcombine.high %v465_v34, %v473_v35  ;;  %v13437_v61 = vcombine.low %v419_v54, %v427_v55  ;;  %v2358_v34 = vld [vmem:[#allocation10 + $0xc8] sm:$0xff] }
 0x223   :  { %1333 = vmatprep.subr.bf16.mxu1 %v13446_v43  ;;  %v379_v43 = vld [vmem:[#allocation2 + $0xf8] sm:$0xff] }
 0x224   :  { %1455 = vmatpush1.bf16.msra.mxu0 %v13435_v60  ;;  %v13389_v49 = vcombine.low %v371_v42, %v379_v43  ;;  %v13438_v60 = vcombine.high %v419_v54, %v427_v55 }
 0x225   :  { %1456 = vmatprep.subr.bf16.mxu0 %v13452_v63  ;;  %v459_v63 = vld [vmem:[#allocation2 + $0x378] sm:$0xff] }
 0x226   :  { %1334 = vmatpush1.bf16.msra.mxu1 %v13445_v48  ;;  %v13390_v48 = vcombine.high %v371_v42, %v379_v43  ;;  %v2366_v42 = vld [vmem:[#allocation10 + $0x108] sm:$0xff] }
 0x227   :  { %1335 = vmatprep.subr.bf16.mxu1 %v13462_v51  ;;  %v411_v51 = vld [vmem:[#allocation2 + $0x1f8] sm:$0xff] }
 0x228   :  { %1457 = vmatpush1.bf16.msra.mxu0 %v13451_v6  ;;  %v13421_v57 = vcombine.low %v403_v50, %v411_v51  ;;  %v13469_v6 = vcombine.low %v451_v62, %v459_v63 }
 0x229   :  { %1458 = vmatprep.subr.bf16.mxu0 %v13468_v9  ;;  %v2333_v9 = vld [vmem:[#allocation10] sm:$0xff] }
 0x22a   :  { %1336 = vmatpush1.bf16.msra.mxu1 %v13461_v56  ;;  %v13422_v56 = vcombine.high %v403_v50, %v411_v51  ;;  %v2374_v50 = vld [vmem:[#allocation10 + $0x148] sm:$0xff] }
 0x22b   :  { %1337 = vmatprep.subr.bf16.mxu1 %v13478_v59  ;;  %v443_v59 = vld [vmem:[#allocation2 + $0x2f8] sm:$0xff] }
 0x22c   :  { %1459 = vmatpush1.bf16.msra.mxu0 %v13467_v14 }
 0x22d   :  { %1460 = vmatprep.subr.bf16.mxu0 %v13484_v15 }
 0x22e   :  { %1338 = vmatpush1.bf16.msra.mxu1 %v13477_v1  ;;  %v13453_v1 = vcombine.low %v435_v58, %v443_v59 }
 0x22f   :  { %1405 = vmatprep.subr.bf16.mxu1 %v13370_v5  ;;  %v13470_v5 = vcombine.high %v451_v62, %v459_v63 }
 0x230   :  { %1461 = vmatpush1.bf16.msra.mxu0 %v13483_v20  ;;  %v13496_v20 = vcombine.high %v2341_v17, %v2345_v18  ;;  %v2405_v17 = vld [vmem:[#allocation10 + $0x240] sm:$0xff] }
 0x231   :  { %1356 = vmatmul.mubr.bf16.vlgmr.msra.gmra.mrb[8].mxu1 %v16664_v2  ;;  %v2409_v18 = vld [vmem:[#allocation10 + $0x260] sm:$0xff] }
 0x232   :  { %1406 = vmatpush1.bf16.msra.mxu1 %v13369_v10  ;;  %1437 = vmatprep.mubr.bf16.mxu1 %v16257_v0  ;;  %v2337_v10 = vld [vmem:[#allocation10 + $0x20] sm:$0xff] }
 0x233   :  { %1407 = vmatprep.subr.bf16.mxu1 %v13386_v13  ;;  %1479 = vmatmul.mubr.bf16.vlgmr.msra.gmra.mrb[8].mxu0 %v16664_v2  ;;  %v13488_v12 = vcombine.high %v2333_v9, %v2337_v10  ;;  %v2338_v13 = vld [vmem:[#allocation10 + $0x28] sm:$0xff]  ;;  %v13487_v14 = vcombine.low %v2333_v9, %v2337_v10  ;;  %v2397_v9 = vld [vmem:[#allocation10 + $0x200] sm:$0xff] }
 0x234   :  { %v13489_v15 = vcombine.low %v2334_v11, %v2338_v13  ;;  %v2401_v10 = vld [vmem:[#allocation10 + $0x220] sm:$0xff] }
 0x235   :  { %8519 = vmatprep.subr.bf16.mxu0 %v13488_v12  ;;  %v13552_v12 = vcombine.high %v2397_v9, %v2401_v10 }
 0x236   :  { %1408 = vmatpush1.bf16.msra.mxu1 %v13385_v16  ;;  %v13490_v16 = vcombine.high %v2334_v11, %v2338_v13  ;;  %8520 = vmatpush1.bf16.msra.mxu0 %v13487_v14  ;;  %v2398_v11 = vld [vmem:[#allocation10 + $0x208] sm:$0xff]  ;;  %v13551_v14 = vcombine.low %v2397_v9, %v2401_v10 }
 0x237   :  { %1409 = vmatprep.subr.bf16.mxu1 %v13402_v19  ;;  %v2342_v19 = vld [vmem:[#allocation10 + $0x48] sm:$0xff]  ;;  %8521 = vmatprep.subr.bf16.mxu0 %v13496_v20  ;;  %v13560_v20 = vcombine.high %v2405_v17, %v2409_v18 }
 0x238   :  { %v2402_v13 = vld [vmem:[#allocation10 + $0x228] sm:$0xff] }
 0x239   :  { %v2458_v9 = vld [vmem:[#allocation10 + $0x3e8] sm:$0xff] }
 0x23a   :  { %1410 = vmatpush1.bf16.msra.mxu1 %v13401_v21  ;;  %v2346_v21 = vld [vmem:[#allocation10 + $0x68] sm:$0xff]  ;;  %8522 = vmatpush1.bf16.msra.mxu0 %v13495_v22  ;;  %v13559_v22 = vcombine.low %v2405_v17, %v2409_v18 }
 0x23b   :  { %1411 = vmatprep.subr.bf16.mxu1 %v13418_v24  ;;  %v13497_v23 = vcombine.low %v2342_v19, %v2346_v21  ;;  %v2349_v24 = vld [vmem:[#allocation10 + $0x80] sm:$0xff] }
 0x23e   :  { %1412 = vmatpush1.bf16.msra.mxu1 %v13417_v25  ;;  %v2353_v25 = vld [vmem:[#allocation10 + $0xa0] sm:$0xff] }
 0x23f   :  { %1413 = vmatprep.subr.bf16.mxu1 %v13434_v28  ;;  %v13504_v27 = vcombine.high %v2349_v24, %v2353_v25  ;;  %v2354_v28 = vld [vmem:[#allocation10 + $0xa8] sm:$0xff] }
 0x240   :  { %v13505_v30 = vcombine.low %v2350_v26, %v2354_v28  ;;  %v13506_v31 = vcombine.high %v2350_v26, %v2354_v28  ;;  %v2414_v26 = vld [vmem:[#allocation10 + $0x288] sm:$0xff] }
 0x241   :  { %8523 = vmatprep.subr.bf16.mxu0 %v13504_v27  ;;  %v2418_v28 = vld [vmem:[#allocation10 + $0x2a8] sm:$0xff] }
 0x242   :  { %1414 = vmatpush1.bf16.msra.mxu1 %v13433_v29  ;;  %v13503_v29 = vcombine.low %v2349_v24, %v2353_v25  ;;  %v2413_v24 = vld [vmem:[#allocation10 + $0x280] sm:$0xff] }
 0x243   :  { %1415 = vmatprep.subr.bf16.mxu1 %v13450_v32  ;;  %v2357_v32 = vld [vmem:[#allocation10 + $0xc0] sm:$0xff] }
 0x244   :  { %8524 = vmatpush1.bf16.msra.mxu0 %v13503_v29  ;;  %v2417_v25 = vld [vmem:[#allocation10 + $0x2a0] sm:$0xff]  ;;  %v480_v29 = vlaneseq }
 0x245   :  { %v13568_v27 = vcombine.high %v2413_v24, %v2417_v25 }
 0x246   :  { %1416 = vmatpush1.bf16.msra.mxu1 %v13449_v33  ;;  %v2361_v33 = vld [vmem:[#allocation10 + $0xe0] sm:$0xff] }
 0x247   :  { %1417 = vmatprep.subr.bf16.mxu1 %v13466_v36  ;;  %v13512_v35 = vcombine.high %v2357_v32, %v2361_v33  ;;  %v2362_v36 = vld [vmem:[#allocation10 + $0xe8] sm:$0xff] }
 0x248   :  { %v13513_v38 = vcombine.low %v2358_v34, %v2362_v36  ;;  %v13514_v39 = vcombine.high %v2358_v34, %v2362_v36  ;;  %v2425_v34 = vld [vmem:[#allocation10 + $0x2e0] sm:$0xff] }
 0x249   :  { %8525 = vmatprep.subr.bf16.mxu0 %v13512_v35  ;;  %v2422_v35 = vld [vmem:[#allocation10 + $0x2c8] sm:$0xff] }
 0x24a   :  { %1418 = vmatpush1.bf16.msra.mxu1 %v13465_v37  ;;  %v13511_v37 = vcombine.low %v2357_v32, %v2361_v33  ;;  %v13570_v32 = vcombine.high %v2414_v26, %v2418_v28  ;;  %v2421_v33 = vld [vmem:[#allocation10 + $0x2c0] sm:$0xff] }
 0x24b   :  { %1419 = vmatprep.subr.bf16.mxu1 %v13482_v40  ;;  %v2365_v40 = vld [vmem:[#allocation10 + $0x100] sm:$0xff]  ;;  %v13576_v36 = vcombine.high %v2421_v33, %v2425_v34 }
 0x24c   :  { %8526 = vmatpush1.bf16.msra.mxu0 %v13511_v37  ;;  %v2426_v37 = vld [vmem:[#allocation10 + $0x2e8] sm:$0xff] }
 0x24e   :  { %1420 = vmatpush1.bf16.msra.mxu1 %v13481_v41  ;;  %v2369_v41 = vld [vmem:[#allocation10 + $0x120] sm:$0xff] }
 0x24f   :  { %1487 = vmatprep.subr.bf16.mxu1 %v13374_v44  ;;  %v13520_v43 = vcombine.high %v2365_v40, %v2369_v41  ;;  %v2370_v44 = vld [vmem:[#allocation10 + $0x128] sm:$0xff] }
 0x250   :  { %v13521_v46 = vcombine.low %v2366_v42, %v2370_v44  ;;  %v13522_v47 = vcombine.high %v2366_v42, %v2370_v44  ;;  %v2429_v42 = vld [vmem:[#allocation10 + $0x300] sm:$0xff]  ;;  %v2430_v44 = vld [vmem:[#allocation10 + $0x308] sm:$0xff] }
 0x251   :  { %1438 = vmatmul.mubr.bf16.vlgmr.msra.gmra.mrb[12].mxu1 %v16664_v2  ;;  %8527 = vmatprep.subr.bf16.mxu0 %v13520_v43  ;;  %v2433_v43 = vld [vmem:[#allocation10 + $0x320] sm:$0xff] }
 0x252   :  { %1488 = vmatpush1.bf16.msra.mxu1 %v13373_v45  ;;  %1519 = vmatprep.mubr.bf16.mxu1 %v16257_v0  ;;  %v13454_v0 = vcombine.high %v435_v58, %v443_v59  ;;  %v13519_v45 = vcombine.low %v2365_v40, %v2369_v41  ;;  %v2382_v58 = vld [vmem:[#allocation10 + $0x188] sm:$0xff]  ;;  %v13577_v40 = vcombine.low %v2422_v35, %v2426_v37 }
 0x253   :  { %1489 = vmatprep.subr.bf16.mxu1 %v13390_v48  ;;  %v2373_v48 = vld [vmem:[#allocation10 + $0x140] sm:$0xff]  ;;  %v13578_v41 = vcombine.high %v2422_v35, %v2426_v37  ;;  %v16710_v35 = vld [vmem:[#allocation10 + $0x408] sm:$0xff] }
 0x254   :  { %8528 = vmatpush1.bf16.msra.mxu0 %v13519_v45  ;;  %v13584_v45 = vcombine.high %v2429_v42, %v2433_v43  ;;  %17711 = vst [vmem:[#allocation53_spill] sm:$0xff] %v16710_v35 }
 0x256   :  { %1490 = vmatpush1.bf16.msra.mxu1 %v13389_v49  ;;  %v2377_v49 = vld [vmem:[#allocation10 + $0x160] sm:$0xff] }
 0x257   :  { %1491 = vmatprep.subr.bf16.mxu1 %v13406_v52  ;;  %v13528_v51 = vcombine.high %v2373_v48, %v2377_v49  ;;  %v2378_v52 = vld [vmem:[#allocation10 + $0x168] sm:$0xff] }
 0x258   :  { %v13529_v54 = vcombine.low %v2374_v50, %v2378_v52  ;;  %v13530_v55 = vcombine.high %v2374_v50, %v2378_v52 }
 0x259   :  { %8529 = vmatprep.subr.bf16.mxu0 %v13528_v51  ;;  %v16685_v51 = vld [vmem:[#allocation5] sm:$0xff] }
 0x25a   :  { %1492 = vmatpush1.bf16.msra.mxu1 %v13405_v53  ;;  %v13527_v53 = vcombine.low %v2373_v48, %v2377_v49  ;;  %v13583_v48 = vcombine.low %v2429_v42, %v2433_v43 }
 0x25b   :  { %1493 = vmatprep.subr.bf16.mxu1 %v13422_v56  ;;  %v2381_v56 = vld [vmem:[#allocation10 + $0x180] sm:$0xff] }
 0x25c   :  { %8530 = vmatpush1.bf16.msra.mxu0 %v13527_v53  ;;  %v2437_v53 = vld [vmem:[#allocation10 + $0x340] sm:$0xff] }
 0x25e   :  { %1494 = vmatpush1.bf16.msra.mxu1 %v13421_v57  ;;  %v2385_v57 = vld [vmem:[#allocation10 + $0x1a0] sm:$0xff] }
 0x25f   :  { %1495 = vmatprep.subr.bf16.mxu1 %v13438_v60  ;;  %v13536_v59 = vcombine.high %v2381_v56, %v2385_v57  ;;  %v2386_v60 = vld [vmem:[#allocation10 + $0x1a8] sm:$0xff] }
 0x260   :  { %v13537_v62 = vcombine.low %v2382_v58, %v2386_v60  ;;  %v13538_v63 = vcombine.high %v2382_v58, %v2386_v60  ;;  %v2442_v58 = vld [vmem:[#allocation10 + $0x368] sm:$0xff]  ;;  %v2449_v60 = vld [vmem:[#allocation10 + $0x3a0] sm:$0xff] }
 0x261   :  { %8531 = vmatprep.subr.bf16.mxu0 %v13536_v59  ;;  %v2445_v59 = vld [vmem:[#allocation10 + $0x380] sm:$0xff] }
 0x262   :  { %1496 = vmatpush1.bf16.msra.mxu1 %v13437_v61  ;;  %v13535_v61 = vcombine.low %v2381_v56, %v2385_v57  ;;  %v13599_v10 = vcombine.low %v2445_v59, %v2449_v60 }
 0x263   :  { %1497 = vmatprep.subr.bf16.mxu1 %v13454_v0  ;;  %v2389_v0 = vld [vmem:[#allocation10 + $0x1c0] sm:$0xff] }
 0x264   :  { %8532 = vmatpush1.bf16.msra.mxu0 %v13535_v61 }
 0x266   :  { %1498 = vmatpush1.bf16.msra.mxu1 %v13453_v1  ;;  %v2393_v1 = vld [vmem:[#allocation10 + $0x1e0] sm:$0xff] }
 0x267   :  { %1499 = vmatprep.subr.bf16.mxu1 %v13470_v5  ;;  %v13544_v4 = vcombine.high %v2389_v0, %v2393_v1  ;;  %v2394_v5 = vld [vmem:[#allocation10 + $0x1e8] sm:$0xff] }
 0x269   :  { %8533 = vmatprep.subr.bf16.mxu0 %v13544_v4  ;;  %v2453_v4 = vld [vmem:[#allocation10 + $0x3c0] sm:$0xff] }
 0x26a   :  { %1500 = vmatpush1.bf16.msra.mxu1 %v13469_v6  ;;  %v13543_v6 = vcombine.low %v2389_v0, %v2393_v1  ;;  %v13600_v0 = vcombine.high %v2445_v59, %v2449_v60  ;;  %v2446_v1 = vld [vmem:[#allocation10 + $0x388] sm:$0xff] }
 0x26b   :  { %1501 = vmatprep.subr.bf16.mxu1 %v13486_v7  ;;  %v13545_v7 = vcombine.low %v2390_v3, %v2394_v5 }
 0x26c   :  { %8534 = vmatpush1.bf16.msra.mxu0 %v13543_v6 }
 0x26d   :  { %8535 = vmatprep.subr.bf16.mxu0 %v13552_v12 }
 0x26e   :  { %1502 = vmatpush1.bf16.msra.mxu1 %v13485_v8  ;;  %v13546_v8 = vcombine.high %v2390_v3, %v2394_v5  ;;  %v2450_v3 = vld [vmem:[#allocation10 + $0x3a8] sm:$0xff] }
 0x26f   :  { %8847 = vmatprep.subr.bf16.mxu1 %v13490_v16  ;;  %v13554_v16 = vcombine.high %v2398_v11, %v2402_v13  ;;  %v13602_v6 = vcombine.high %v2446_v1, %v2450_v3  ;;  %v13601_v12 = vcombine.low %v2446_v1, %v2450_v3 }
 0x270   :  { %8536 = vmatpush1.bf16.msra.mxu0 %v13551_v14 }
 0x271   :  { %1520 = vmatmul.mubr.bf16.vlgmr.msra.gmra.mrb[16].mxu1 %v16664_v2  ;;  %v13498_v2 = vcombine.high %v2342_v19, %v2346_v21  ;;  %v2406_v19 = vld [vmem:[#allocation10 + $0x248] sm:$0xff]  ;;  %8537 = vmatprep.subr.bf16.mxu0 %v13560_v20 }
 0x272   :  { %8848 = vmatpush1.bf16.msra.mxu1 %v13489_v15  ;;  %v13553_v15 = vcombine.low %v2398_v11, %v2402_v13  ;;  %v2410_v21 = vld [vmem:[#allocation10 + $0x268] sm:$0xff] }
 0x273   :  { %8849 = vmatprep.subr.bf16.mxu1 %v13498_v2  ;;  %v13562_v2 = vcombine.high %v2406_v19, %v2410_v21 }
 0x274   :  { %8538 = vmatpush1.bf16.msra.mxu0 %v13559_v22 }
 0x275   :  { %8539 = vmatprep.subr.bf16.mxu0 %v13568_v27 }
 0x276   :  { %8850 = vmatpush1.bf16.msra.mxu1 %v13497_v23  ;;  %v13561_v23 = vcombine.low %v2406_v19, %v2410_v21 }
 0x277   :  { %8851 = vmatprep.subr.bf16.mxu1 %v13506_v31  ;;  %v13569_v31 = vcombine.low %v2414_v26, %v2418_v28 }
 0x27a   :  { %8852 = vmatpush1.bf16.msra.mxu1 %v13505_v30  ;;  %v13567_v30 = vcombine.low %v2413_v24, %v2417_v25 }
 0x27b   :  { %8853 = vmatprep.subr.bf16.mxu1 %v13514_v39  ;;  %v13575_v39 = vcombine.low %v2421_v33, %v2425_v34  ;;  %v16706_v33 = vld [vmem:[#allocation10 + $0x400] sm:$0xff] }
 0x27c   :  { %8540 = vmatpush1.bf16.msra.mxu0 %v13567_v30  ;;  %17709 = vst [vmem:[#allocation51_spill] sm:$0xff] %v16706_v33  ;;  %v16708_v34 = vld [vmem:[#allocation10 + $0x420] sm:$0xff] }
 0x27d   :  { %8541 = vmatprep.subr.bf16.mxu0 %v13576_v36  ;;  %17710 = vst [vmem:[#allocation52_spill] sm:$0xff] %v16708_v34 }
 0x27e   :  { %8854 = vmatpush1.bf16.msra.mxu1 %v13513_v38  ;;  %v16680_v38 = vshrl.u32 %v480_v29, 7 }
 0x27f   :  { %8855 = vmatprep.subr.bf16.mxu1 %v13522_v47 }
 0x280   :  { %8542 = vmatpush1.bf16.msra.mxu0 %v13575_v39  ;;  %v16683_v47 = vsub.s32 0, %v16680_v38  ;;  %v16688_v52 = vsub.s32 1, %v16680_v38  ;;  %v13616_v39 = vcombine.high %v16706_v33, %v16708_v34 }
 0x281   :  { %8543 = vmatprep.subr.bf16.mxu0 %v13584_v45 }
 0x282   :  { %8856 = vmatpush1.bf16.msra.mxu1 %v13521_v46  ;;  %v2434_v46 = vld [vmem:[#allocation10 + $0x328] sm:$0xff]  ;;  %v483_v61 = vrot.slane %v16685_v51, %v16683_v47  ;;  %v487_v5 = vrot.slane %v16685_v51, %v16688_v52 }
 0x283   :  { %8857 = vmatprep.subr.bf16.mxu1 %v13530_v55  ;;  %v13585_v49 = vcombine.low %v2430_v44, %v2434_v46  ;;  %v13586_v50 = vcombine.high %v2430_v44, %v2434_v46  ;;  %v2438_v55 = vld [vmem:[#allocation10 + $0x348] sm:$0xff] }
 0x284   :  { %8544 = vmatpush1.bf16.msra.mxu0 %v13583_v48 }
 0x286   :  { %8858 = vmatpush1.bf16.msra.mxu1 %v13529_v54  ;;  %v2441_v54 = vld [vmem:[#allocation10 + $0x360] sm:$0xff] }
 0x287   :  { %8859 = vmatprep.subr.bf16.mxu1 %v13538_v63  ;;  %v13591_v56 = vcombine.low %v2437_v53, %v2441_v54  ;;  %v13592_v57 = vcombine.high %v2437_v53, %v2441_v54  ;;  %v13594_v63 = vcombine.high %v2438_v55, %v2442_v58 }
 0x289   :  { %8545 = vmatprep.subr.bf16.mxu0 %v13592_v57 }
 0x28a   :  { %8860 = vmatpush1.bf16.msra.mxu1 %v13537_v62  ;;  %v13593_v62 = vcombine.low %v2438_v55, %v2442_v58  ;;  %8546 = vmatpush1.bf16.msra.mxu0 %v13591_v56 }
 0x28b   :  { %8861 = vmatprep.subr.bf16.mxu1 %v13546_v8  ;;  %v2454_v8 = vld [vmem:[#allocation10 + $0x3c8] sm:$0xff]  ;;  %8547 = vmatprep.subr.bf16.mxu0 %v13600_v0 }
 0x28c   :  { %v13609_v24 = vcombine.low %v2454_v8, %v2458_v9 }
 0x28e   :  { %8862 = vmatpush1.bf16.msra.mxu1 %v13545_v7  ;;  %v2457_v7 = vld [vmem:[#allocation10 + $0x3e0] sm:$0xff]  ;;  %8548 = vmatpush1.bf16.msra.mxu0 %v13599_v10 }
 0x28f   :  { %8863 = vmatprep.subr.bf16.mxu1 %v13554_v16  ;;  %v13608_v13 = vcombine.high %v2453_v4, %v2457_v7  ;;  %v13610_v16 = vcombine.high %v2454_v8, %v2458_v9  ;;  %v13607_v22 = vcombine.low %v2453_v4, %v2457_v7  ;;  %v16731_v8 = vsub.s32 4, %v16680_v38 }
 0x291   :  { %8549 = vmatprep.subr.bf16.mxu0 %v13608_v13 }
 0x292   :  { %8864 = vmatpush1.bf16.msra.mxu1 %v13553_v15  ;;  %8550 = vmatpush1.bf16.msra.mxu0 %v13607_v22 }
 0x293   :  { %8865 = vmatprep.subr.bf16.mxu1 %v13562_v2  ;;  %8560 = vmatprep.subr.bf16.mxu0 %v13616_v39 }
 0x296   :  { %8866 = vmatpush1.bf16.msra.mxu1 %v13561_v23 }
 0x297   :  { %8867 = vmatprep.subr.bf16.mxu1 %v13570_v32 }
 0x29a   :  { %8868 = vmatpush1.bf16.msra.mxu1 %v13569_v31 }
 0x29b   :  { %8869 = vmatprep.subr.bf16.mxu1 %v13578_v41 }
 0x29e   :  { %8870 = vmatpush1.bf16.msra.mxu1 %v13577_v40  ;;  %v16714_v40 = vld [vmem:[#allocation10 + $0x428] sm:$0xff] }
 0x29f   :  { %8871 = vmatprep.subr.bf16.mxu1 %v13586_v50  ;;  %17712 = vst [vmem:[#allocation54_spill] sm:$0xff] %v16714_v40  ;;  %v13618_v50 = vcombine.high %v16710_v35, %v16714_v40 }
 0x2a2   :  { %8872 = vmatpush1.bf16.msra.mxu1 %v13585_v49 }
 0x2a3   :  { %8873 = vmatprep.subr.bf16.mxu1 %v13594_v63 }
 0x2a6   :  { %8874 = vmatpush1.bf16.msra.mxu1 %v13593_v62 }
 0x2a7   :  { %8875 = vmatprep.subr.bf16.mxu1 %v13602_v6 }
 0x2aa   :  { %8876 = vmatpush1.bf16.msra.mxu1 %v13601_v12 }
 0x2ab   :  { %8877 = vmatprep.subr.bf16.mxu1 %v13610_v16  ;;  %v16739_v16 = vsub.s32 2, %v16680_v38 }
 0x2ae   :  { %8878 = vmatpush1.bf16.msra.mxu1 %v13609_v24 }
 0x2af   :  { %8888 = vmatprep.subr.bf16.mxu1 %v13618_v50 }
 0x2c4   :  { %v1234_v11 = vpop.f32.mrb[0].mxu1  ;;  %v1316_v43 = vpop.f32.mrb[0].mxu0 }
 0x2c5   :  { %v16694_v14 = vadd.f32 %v1234_v11, %v483_v61  ;;  %v1236_v15 = vpop.f32.mrb[1].mxu1  ;;  %v1318_v49 = vpop.f32.mrb[1].mxu0  ;;  %v16734_v11 = vsub.s32 5, %v16680_v38 }
 0x2c6   :  { %v16696_v17 = vadd.f32 %v1236_v15, %v487_v5  ;;  %v1238_v18 = vpop.f32.mrb[2].mxu1  ;;  %v1320_v55 = vpop.f32.mrb[2].mxu0  ;;  %v499_v15 = vrot.slane %v16685_v51, %v16731_v8 }
 0x2c7   :  { %v1528_v19 = vrot.slane %v16694_v14, 4  ;;  %v1641_v20 = vmul.f32 %v16694_v14, %v16694_v14  ;;  %v1239_v21 = vpop.f32.mrb[3].mxu1  ;;  %v1321_v58 = vpop.f32.mrb[3].mxu0  ;;  %v16742_v18 = vsub.s32 3, %v16680_v38 }
 0x2c8   :  { %v1534_v23 = vrot.slane %v16696_v17, 4  ;;  %v1642_v2 = vmul.f32 %v16696_v17, %v16696_v17  ;;  %v491_v21 = vrot.slane %v16685_v51, %v16739_v16 }
 0x2c9   :  { %v1529_v25 = vadd.f32 %v1528_v19, %v16694_v14  ;;  %v1657_v26 = vrot.slane %v1641_v20, 4  ;;  %v503_v19 = vrot.slane %v16685_v51, %v16734_v11  ;;  %v495_v22 = vrot.slane %v16685_v51, %v16742_v18 }
 0x2ca   :  { %v1535_v27 = vadd.f32 %v1534_v23, %v16696_v17  ;;  %v1663_v28 = vrot.slane %v1642_v2, 4 }
 0x2cb   :  { %v1530_v29 = vrot.slane %v1529_v25, 2  ;;  %v1658_v30 = vadd.f32 %v1657_v26, %v1641_v20  ;;  %v16746_v20 = vadd.f32 %v1316_v43, %v499_v15  ;;  %v16752_v23 = vadd.f32 %v1318_v49, %v503_v19 }
 0x2cc   :  { %v1536_v31 = vrot.slane %v1535_v27, 2  ;;  %v1664_v32 = vadd.f32 %v1663_v28, %v1642_v2 }
 0x2cd   :  { %v1531_v36 = vadd.f32 %v1530_v29, %v1529_v25  ;;  %v1659_v37 = vrot.slane %v1658_v30, 2  ;;  %17713 = vst [vmem:[#allocation55_spill] sm:$0xff] %v16746_v20  ;;  %17714 = vst [vmem:[#allocation56_spill] sm:$0xff] %v16752_v23  ;;  %v1552_v24 = vrot.slane %v16746_v20, 4 }
 0x2ce   :  { %v1537_v41 = vadd.f32 %v1536_v31, %v1535_v27  ;;  %v1665_v42 = vrot.slane %v1664_v32, 2  ;;  %v1645_v27 = vmul.f32 %v16746_v20, %v16746_v20  ;;  %v1646_v31 = vmul.f32 %v16752_v23, %v16752_v23 }
 0x2cf   :  { %v1532_v46 = vrot.slane %v1531_v36, 1  ;;  %v1660_v48 = vadd.f32 %v1659_v37, %v1658_v30  ;;  %v1558_v30 = vrot.slane %v16752_v23, 4 }
 0x2d0   :  { %v1538_v53 = vrot.slane %v1537_v41, 1  ;;  %v1666_v54 = vadd.f32 %v1665_v42, %v1664_v32 }
 0x2d1   :  { %v1533_v56 = vadd.f32 %v1532_v46, %v1531_v36  ;;  %v1661_v57 = vrot.slane %v1660_v48, 1  ;;  %v1553_v46 = vadd.f32 %v1552_v24, %v16746_v20 }
 0x2d2   :  { %v1539_v59 = vadd.f32 %v1538_v53, %v1537_v41  ;;  %v1667_v60 = vrot.slane %v1666_v54, 1  ;;  %v1681_v53 = vrot.slane %v1645_v27, 4 }
 0x2d3   :  { %v16722_v61 = vmul.f32 0.125, %v1533_v56  ;;  %v1662_v62 = vadd.f32 %v1661_v57, %v1660_v48  ;;  %v1559_v56 = vadd.f32 %v1558_v30, %v16752_v23  ;;  %v1687_v57 = vrot.slane %v1646_v31, 4 }
 0x2d4   :  { %v16724_v63 = vmul.f32 0.125, %v1539_v59  ;;  %v1668_v0 = vadd.f32 %v1667_v60, %v1666_v54 }
 0x2d5   :  { %v1753_v1 = vmul.f32 0.125, %v1662_v62  ;;  %v1769_v3 = vmul.f32 %v16722_v61, %v16722_v61 }
 0x2d6   :  { %v1754_v4 = vmul.f32 0.125, %v1668_v0  ;;  %v1770_v5 = vmul.f32 %v16724_v63, %v16724_v63 }
 0x2d7   :  { %v1785_v6 = vsub.f32 %v1753_v1, %v1769_v3  ;;  %v1554_v3 = vrot.slane %v1553_v46, 2 }
 0x2d8   :  { %v1786_v7 = vsub.f32 %v1754_v4, %v1770_v5  ;;  %v1682_v4 = vadd.f32 %v1681_v53, %v1645_v27 }
 0x2d9   :  { %v1801_v9 = vmax.f32 %v1785_v6, 0.0 }
 0x2da   :  { %v1802_v10 = vmax.f32 %v1786_v7, 0.0  ;;  %v1560_v7 = vrot.slane %v1559_v56, 2 }
 0x2db   :  { %v1819_v12 = vadd.f32 1e-05, %v1801_v9  ;;  %v1688_v9 = vadd.f32 %v1687_v57, %v1646_v31 }
 0x2dc   :  { %v1820_v13 = vadd.f32 1e-05, %v1802_v10 }
 0x2dd   :  { %15629 = vrsqrt.f32 %v1819_v12  ;;  %v1689_v30 = vrot.slane %v1688_v9, 2 }
 0x2de   :  { %15631 = vrsqrt.f32 %v1820_v13 }
 0x2e4   :  { %v1275_v2 = vpop.f32.mrb[4].mxu1 }
 0x2e5   :  { %v16755_v25 = vadd.f32 %v1275_v2, %v491_v21  ;;  %v1277_v26 = vpop.f32.mrb[5].mxu1  ;;  %v1683_v2 = vrot.slane %v1682_v4, 2 }
 0x2e6   :  { %v16759_v28 = vadd.f32 %v1277_v26, %v495_v22  ;;  %v1279_v29 = vpop.f32.mrb[6].mxu1  ;;  %v1555_v22 = vadd.f32 %v1554_v3, %v1553_v46  ;;  %v16258_v3 = vmov 1966171168  }
 0x2e7   :  { %v16764_v32 = vpop.eup %15629  ;;  %v1540_v36 = vrot.slane %v16755_v25, 4  ;;  %v1643_v37 = vmul.f32 %v16755_v25, %v16755_v25  ;;  %v1280_v39 = vpop.f32.mrb[7].mxu1  ;;  %v1561_v29 = vadd.f32 %v1560_v7, %v1559_v56 }
 0x2e8   :  { %v16769_v41 = vpop.eup %15631  ;;  %v1546_v42 = vrot.slane %v16759_v28, 4  ;;  %v1644_v43 = vmul.f32 %v16759_v28, %v16759_v28 }
 0x2e9   :  { %v1867_v48 = vcombine.low %v16764_v32, %v16769_v41  ;;  %v1541_v49 = vadd.f32 %v1540_v36, %v16755_v25  ;;  %v1669_v50 = vrot.slane %v1643_v37, 4  ;;  %v1562_v53 = vrot.slane %v1561_v29, 1 }
 0x2ea   :  { %v1547_v54 = vadd.f32 %v1546_v42, %v16759_v28  ;;  %v1675_v55 = vrot.slane %v1644_v43, 4 }
 0x2eb   :  { %v1542_v58 = vrot.slane %v1541_v49, 2  ;;  %v1670_v59 = vadd.f32 %v1669_v50, %v1643_v37 }
 0x2ec   :  { %v1548_v60 = vrot.slane %v1547_v54, 2  ;;  %v1676_v62 = vadd.f32 %v1675_v55, %v1644_v43  ;;  %v1556_v43 = vrot.slane %v1555_v22, 1 }
 0x2ed   :  { %v1543_v0 = vadd.f32 %v1542_v58, %v1541_v49  ;;  %v1671_v1 = vrot.slane %v1670_v59, 2  ;;  %v1684_v49 = vadd.f32 %v1683_v2, %v1682_v4 }
 0x2ee   :  { %v1549_v5 = vadd.f32 %v1548_v60, %v1547_v54  ;;  %v1677_v6 = vrot.slane %v1676_v62, 2  ;;  %v1690_v54 = vadd.f32 %v1689_v30, %v1688_v9  ;;  %v1557_v58 = vadd.f32 %v1556_v43, %v1555_v22  ;;  %v1398_v22 = vpop.f32.mrb[4].mxu0 }
 0x2ef   :  { %v1544_v10 = vrot.slane %v1543_v0, 1  ;;  %v1672_v12 = vadd.f32 %v1671_v1, %v1670_v59  ;;  %v1685_v59 = vrot.slane %v1684_v49, 1  ;;  %v1400_v30 = vpop.f32.mrb[5].mxu0 }
 0x2f0   :  { %v1550_v13 = vrot.slane %v1549_v5, 1  ;;  %v1678_v15 = vadd.f32 %v1677_v6, %v1676_v62  ;;  %v1563_v62 = vadd.f32 %v1562_v53, %v1561_v29  ;;  %v16788_v4 = vmul.f32 0.125, %v1557_v58 }
 0x2f1   :  { %v1545_v19 = vadd.f32 %v1544_v10, %v1543_v0  ;;  %v1673_v21 = vrot.slane %v1672_v12, 1  ;;  %v1691_v0 = vrot.slane %v1690_v54, 1  ;;  %v1686_v7 = vadd.f32 %v1685_v59, %v1684_v49 }
 0x2f2   :  { %v1551_v24 = vadd.f32 %v1550_v13, %v1549_v5  ;;  %v1679_v26 = vrot.slane %v1678_v15, 1  ;;  %v1872_v5 = vunpack.c.l.s4 %v16258_v3  ;;  %v16791_v10 = vsub.s32 6, %v16680_v38 }
 0x2f3   :  { %v16780_v36 = vmul.f32 0.125, %v1545_v19  ;;  %v1674_v37 = vadd.f32 %v1673_v21, %v1672_v12  ;;  %v16793_v9 = vmul.f32 0.125, %v1563_v62  ;;  %v1692_v12 = vadd.f32 %v1691_v0, %v1690_v54 }
 0x2f4   :  { %v16782_v27 = vmul.f32 0.125, %v1551_v24  ;;  %v1680_v39 = vadd.f32 %v1679_v26, %v1678_v15  ;;  %v16796_v13 = vsub.s32 7, %v16680_v38  ;;  %v1757_v15 = vmul.f32 0.125, %v1686_v7 }
 0x2f5   :  { %v1755_v42 = vmul.f32 0.125, %v1674_v37  ;;  %v1771_v31 = vmul.f32 %v16780_v36, %v16780_v36  ;;  %v1773_v19 = vmul.f32 %v16788_v4, %v16788_v4  ;;  %v507_v21 = vrot.slane %v16685_v51, %v16791_v10  ;;  %v1402_v37 = vpop.f32.mrb[6].mxu0 }
 0x2f6   :  { %v1756_v50 = vmul.f32 0.125, %v1680_v39  ;;  %v1772_v46 = vmul.f32 %v16782_v27, %v16782_v27  ;;  %v1873_v2 = vunpack.c.0.s8 %v1872_v5  ;;  %v1758_v24 = vmul.f32 0.125, %v1692_v12 }
 0x2f7   :  { %v1787_v55 = vsub.f32 %v1755_v42, %v1771_v31  ;;  %v1774_v26 = vmul.f32 %v16793_v9, %v16793_v9  ;;  %v511_v29 = vrot.slane %v16685_v51, %v16796_v13  ;;  %v1403_v42 = vpop.f32.mrb[7].mxu0  ;;  %v1789_v31 = vsub.f32 %v1757_v15, %v1773_v19 }
 0x2f8   :  { %v1788_v56 = vsub.f32 %v1756_v50, %v1772_v46  ;;  %v16808_v50 = vld [vmem:[#allocation5 + $0x8] sm:$0xff]  ;;  %v16811_v46 = vsub.s32 %v1873_v2, %v16680_v38 }
 0x2f9   :  { %v1803_v57 = vmax.f32 %v1787_v55, 0.0  ;;  %v1790_v53 = vsub.f32 %v1758_v24, %v1774_v26  ;;  %v515_v38 = vrot.slane %v16808_v50, %v16683_v47  ;;  %v519_v24 = vrot.slane %v16808_v50, %v16688_v52 }
 0x2fa   :  { %v1804_v60 = vmax.f32 %v1788_v56, 0.0 }
 0x2fb   :  { %v1821_v1 = vadd.f32 1e-05, %v1803_v57  ;;  %v1806_v7 = vmax.f32 %v1790_v53, 0.0  ;;  %v16836_v37 = vadd.f32 %v1398_v22, %v515_v38 }
 0x2fc   :  { %v1822_v6 = vadd.f32 1e-05, %v1804_v60 }
 0x2fd   :  { %15633 = vrsqrt.f32 %v1821_v1  ;;  %v1805_v1 = vmax.f32 %v1789_v31, 0.0  ;;  %17716 = vst [vmem:[#allocation58_spill] sm:$0xff] %v16836_v37  ;;  %v1824_v53 = vadd.f32 1e-05, %v1806_v7  ;;  %v1576_v22 = vrot.slane %v16836_v37, 4 }
 0x2fe   :  { %15635 = vrsqrt.f32 %v1822_v6  ;;  %v16828_v6 = vrot.slane %v1867_v48, %v16811_v46  ;;  %v531_v7 = vrot.slane %v16808_v50, %v16731_v8 }
 0x2ff   :  { %v1823_v41 = vadd.f32 1e-05, %v1805_v1 }
 0x301   :  { %15637 = vrsqrt.f32 %v1823_v41 }
 0x302   :  { %15639 = vrsqrt.f32 %v1824_v53 }
 0x304   :  { %v1357_v39 = vpop.f32.mrb[8].mxu1 }
 0x305   :  { %v16806_v43 = vadd.f32 %v1357_v39, %v507_v21  ;;  %v1359_v49 = vpop.f32.mrb[9].mxu1 }
 0x306   :  { %v16813_v54 = vadd.f32 %v1359_v49, %v511_v29  ;;  %v1361_v55 = vpop.f32.mrb[10].mxu1  ;;  %v1480_v49 = vpop.f32.mrb[8].mxu0 }
 0x307   :  { %17715 = vst [vmem:[#allocation57_spill] sm:$0xff] %v16806_v43  ;;  %v15634_v56 = vpop.eup %15633  ;;  %v1564_v51 = vrot.slane %v16806_v43, 4  ;;  %v1647_v57 = vmul.f32 %v16806_v43, %v16806_v43  ;;  %v1362_v58 = vpop.f32.mrb[11].mxu1  ;;  %v16861_v53 = vadd.f32 %v1480_v49, %v531_v7 }
 0x308   :  { %v15636_v59 = vpop.eup %15635  ;;  %v1570_v60 = vrot.slane %v16813_v54, 4  ;;  %v1648_v62 = vmul.f32 %v16813_v54, %v16813_v54 }
 0x309   :  { %v1868_v0 = vcombine.low %v15634_v56, %v15636_v59  ;;  %v1565_v3 = vadd.f32 %v1564_v51, %v16806_v43  ;;  %v1693_v5 = vrot.slane %v1647_v57, 4  ;;  %v16840_v51 = vadd.f32 %v1400_v30, %v519_v24  ;;  %17718 = vst [vmem:[#allocation60_spill] sm:$0xff] %v16861_v53 }
 0x30a   :  { %v1571_v12 = vadd.f32 %v1570_v60, %v16813_v54  ;;  %v1699_v15 = vrot.slane %v1648_v62, 4  ;;  %v1577_v24 = vadd.f32 %v1576_v22, %v16836_v37  ;;  %v1653_v49 = vmul.f32 %v16861_v53, %v16861_v53 }
 0x30b   :  { %v16832_v19 = vrot.slane %v1868_v0, %v16811_v46  ;;  %v1566_v21 = vrot.slane %v1565_v3, 2  ;;  %v1694_v2 = vadd.f32 %v1693_v5, %v1647_v57  ;;  %17717 = vst [vmem:[#allocation59_spill] sm:$0xff] %v16840_v51  ;;  %v1482_v57 = vpop.f32.mrb[9].mxu0  ;;  %v1649_v5 = vmul.f32 %v16836_v37, %v16836_v37 }
 0x30c   :  { %v1572_v26 = vrot.slane %v1571_v12, 2  ;;  %v1700_v29 = vadd.f32 %v1699_v15, %v1648_v62  ;;  %v1484_v60 = vpop.f32.mrb[10].mxu0  ;;  %v1582_v15 = vrot.slane %v16840_v51, 4 }
 0x30d   :  { %v1899_v32 = vcombine.low %v16828_v6, %v16832_v19  ;;  %v1567_v48 = vadd.f32 %v1566_v21, %v1565_v3  ;;  %v1695_v39 = vrot.slane %v1694_v2, 2  ;;  %v1485_v0 = vpop.f32.mrb[11].mxu0 }
 0x30e   :  { %v1573_v42 = vadd.f32 %v1572_v26, %v1571_v12  ;;  %v1701_v31 = vrot.slane %v1700_v29, 2  ;;  %v1650_v26 = vmul.f32 %v16840_v51, %v16840_v51 }
 0x30f   :  { %v1568_v55 = vrot.slane %v1567_v48, 1  ;;  %v1696_v56 = vadd.f32 %v1695_v39, %v1694_v2 }
 0x310   :  { %v1574_v58 = vrot.slane %v1573_v42, 1  ;;  %v1702_v59 = vadd.f32 %v1701_v31, %v1700_v29  ;;  %v1705_v31 = vrot.slane %v1649_v5, 4  ;;  %v1711_v22 = vrot.slane %v1650_v26, 4 }
 0x311   :  { %v1569_v62 = vadd.f32 %v1568_v55, %v1567_v48  ;;  %v1697_v38 = vrot.slane %v1696_v56, 1  ;;  %v535_v48 = vrot.slane %v16808_v50, %v16734_v11 }
 0x312   :  { %v1575_v1 = vadd.f32 %v1574_v58, %v1573_v42  ;;  %v1703_v3 = vrot.slane %v1702_v59, 1  ;;  %v1706_v0 = vadd.f32 %v1705_v31, %v1649_v5  ;;  %v1729_v31 = vrot.slane %v1653_v49, 4 }
 0x313   :  { %v16847_v30 = vmul.f32 0.125, %v1569_v62  ;;  %v1698_v12 = vadd.f32 %v1697_v38, %v1696_v56  ;;  %v1583_v56 = vadd.f32 %v1582_v15, %v16840_v51  ;;  %v16864_v62 = vadd.f32 %v1482_v57, %v535_v48 }
 0x314   :  { %v16850_v21 = vmul.f32 0.125, %v1575_v1  ;;  %v1704_v2 = vadd.f32 %v1703_v3, %v1702_v59  ;;  %v1578_v59 = vrot.slane %v1577_v24, 2  ;;  %v1600_v1 = vrot.slane %v16861_v53, 4  ;;  %v15638_v3 = vpop.eup %15637 }
 0x315   :  { %v1759_v29 = vmul.f32 0.125, %v1698_v12  ;;  %v1775_v41 = vmul.f32 %v16847_v30, %v16847_v30  ;;  %17719 = vst [vmem:[#allocation61_spill] sm:$0xff] %v16864_v62  ;;  %v15640_v15 = vpop.eup %15639  ;;  %v1707_v57 = vrot.slane %v1706_v0, 2  ;;  %v1654_v5 = vmul.f32 %v16864_v62, %v16864_v62 }
 0x316   :  { %v1760_v39 = vmul.f32 0.125, %v1704_v2  ;;  %v1776_v42 = vmul.f32 %v16850_v21, %v16850_v21  ;;  %v1584_v2 = vrot.slane %v1583_v56, 2  ;;  %v1601_v48 = vadd.f32 %v1600_v1, %v16861_v53 }
 0x317   :  { %v1791_v55 = vsub.f32 %v1759_v29, %v1775_v41  ;;  %v1579_v29 = vadd.f32 %v1578_v59, %v1577_v24  ;;  %v1712_v41 = vadd.f32 %v1711_v22, %v1650_v26  ;;  %v523_v24 = vrot.slane %v16808_v50, %v16739_v16 }
 0x318   :  { %v1792_v58 = vsub.f32 %v1760_v39, %v1776_v42  ;;  %v1606_v39 = vrot.slane %v16864_v62, 4  ;;  %v1585_v42 = vadd.f32 %v1584_v2, %v1583_v56  ;;  %v1708_v59 = vadd.f32 %v1707_v57, %v1706_v0 }
 0x319   :  { %v1807_v60 = vmax.f32 %v1791_v55, 0.0  ;;  %v1580_v55 = vrot.slane %v1579_v29, 1  ;;  %v527_v22 = vrot.slane %v16808_v50, %v16742_v18 }
 0x31a   :  { %v1808_v38 = vmax.f32 %v1792_v58, 0.0  ;;  %v1713_v58 = vrot.slane %v1712_v41, 2  ;;  %v1607_v26 = vadd.f32 %v1606_v39, %v16864_v62  ;;  %v1586_v1 = vrot.slane %v1585_v42, 1 }
 0x31b   :  { %v1825_v12 = vadd.f32 1e-05, %v1807_v60  ;;  %v1869_v60 = vcombine.low %v15638_v3, %v15640_v15  ;;  %v1581_v45 = vadd.f32 %v1580_v55, %v1579_v29  ;;  %v1907_v3 = vrot.slane %v1899_v32, %v16811_v46 }
 0x31c   :  { %v1826_v7 = vadd.f32 1e-05, %v1808_v38  ;;  %v1602_v38 = vrot.slane %v1601_v48, 2  ;;  %v1714_v56 = vadd.f32 %v1713_v58, %v1712_v41  ;;  %v1608_v39 = vrot.slane %v1607_v26, 2 }
 0x31d   :  { %15641 = vrsqrt.f32 %v1825_v12  ;;  %v1735_v12 = vrot.slane %v1654_v5, 4  ;;  %v1891_v2 = vrot.slane %v1869_v60, %v16811_v46  ;;  %v1709_v57 = vrot.slane %v1708_v59, 1 }
 0x31e   :  { %15643 = vrsqrt.f32 %v1826_v7  ;;  %v1730_v7 = vadd.f32 %v1729_v31, %v1653_v49  ;;  %v1603_v37 = vadd.f32 %v1602_v38, %v1601_v48  ;;  %v1587_v6 = vadd.f32 %v1586_v1, %v1585_v42 }
 0x31f   :  { %v1736_v49 = vadd.f32 %v1735_v12, %v1654_v5  ;;  %v1715_v58 = vrot.slane %v1714_v56, 1  ;;  %v1710_v43 = vadd.f32 %v1709_v57, %v1708_v59 }
 0x320   :  { %v1731_v32 = vrot.slane %v1730_v7, 2  ;;  %v1604_v42 = vrot.slane %v1603_v37, 1  ;;  %v16898_v20 = vmul.f32 0.125, %v1587_v6 }
 0x321   :  { %v1737_v1 = vrot.slane %v1736_v49, 2 }
 0x322   :  { %v1732_v51 = vadd.f32 %v1731_v32, %v1730_v7  ;;  %v1761_v32 = vmul.f32 0.125, %v1710_v43 }
 0x324   :  { %v1439_v44 = vpop.f32.mrb[12].mxu1  ;;  %v1733_v23 = vrot.slane %v1732_v51, 1 }
 0x325   :  { %v16883_v15 = vadd.f32 %v1439_v44, %v523_v24  ;;  %v1441_v0 = vpop.f32.mrb[13].mxu1  ;;  %v16890_v44 = vmul.f32 0.125, %v1581_v45 }
 0x326   :  { %v16885_v53 = vadd.f32 %v1441_v0, %v527_v22  ;;  %v1443_v62 = vpop.f32.mrb[14].mxu1  ;;  %v1609_v22 = vadd.f32 %v1608_v39, %v1607_v26 }
 0x327   :  { %17720 = vst [vmem:[#allocation62_spill] sm:$0xff] %v16883_v15  ;;  %v15642_v29 = vpop.eup %15641  ;;  %v1588_v41 = vrot.slane %v16883_v15, 4  ;;  %v1651_v31 = vmul.f32 %v16883_v15, %v16883_v15  ;;  %v1444_v19 = vpop.f32.mrb[15].mxu1 }
 0x328   :  { %17721 = vst [vmem:[#allocation63_spill] sm:$0xff] %v16885_v53  ;;  %v15644_v55 = vpop.eup %15643  ;;  %v1594_v60 = vrot.slane %v16885_v53, 4  ;;  %v1652_v62 = vmul.f32 %v16885_v53, %v16885_v53 }
 0x329   :  { %v1870_v48 = vcombine.low %v15642_v29, %v15644_v55  ;;  %v1589_v5 = vadd.f32 %v1588_v41, %v16883_v15  ;;  %v1717_v24 = vrot.slane %v1651_v31, 4  ;;  %v1716_v15 = vadd.f32 %v1715_v58, %v1714_v56 }
 0x32a   :  { %v1595_v38 = vadd.f32 %v1594_v60, %v16885_v53  ;;  %v1723_v12 = vrot.slane %v1652_v62, 4  ;;  %v1610_v60 = vrot.slane %v1609_v22, 1  ;;  %v1738_v53 = vadd.f32 %v1737_v1, %v1736_v49 }
 0x32b   :  { %v1898_v0 = vrot.slane %v1870_v48, %v16811_v46  ;;  %v1590_v45 = vrot.slane %v1589_v5, 2  ;;  %v1718_v19 = vadd.f32 %v1717_v24, %v1651_v31  ;;  %v1605_v48 = vadd.f32 %v1604_v42, %v1603_v37  ;;  %v1817_v31 = vld [vmem:[#allocation7] sm:$0xff] }
 0x32c   :  { %v1596_v40 = vrot.slane %v1595_v38, 2  ;;  %v1724_v35 = vadd.f32 %v1723_v12, %v1652_v62  ;;  %v1762_v56 = vmul.f32 0.125, %v1716_v15  ;;  %v1611_v49 = vadd.f32 %v1610_v60, %v1609_v22 }
 0x32d   :  { %v1900_v29 = vcombine.low %v1891_v2, %v1898_v0  ;;  %v1591_v55 = vadd.f32 %v1590_v45, %v1589_v5  ;;  %v1719_v41 = vrot.slane %v1718_v19, 2  ;;  %v1777_v2 = vmul.f32 %v16890_v44, %v16890_v44 }
 0x32e   :  { %v1597_v26 = vadd.f32 %v1596_v40, %v1595_v38  ;;  %v1725_v39 = vrot.slane %v1724_v35, 2  ;;  %v1778_v40 = vmul.f32 %v16898_v20, %v16898_v20  ;;  %v16905_v5 = vmul.f32 0.125, %v1605_v48 }
 0x32f   :  { %v1914_v34 = vrot.slane %v1900_v29, %v16811_v46  ;;  %v1592_v33 = vrot.slane %v1591_v55, 1  ;;  %v1720_v7 = vadd.f32 %v1719_v41, %v1718_v19  ;;  %v1734_v37 = vadd.f32 %v1733_v23, %v1732_v51 }
 0x330   :  { %v1598_v59 = vrot.slane %v1597_v26, 1  ;;  %v1726_v57 = vadd.f32 %v1725_v39, %v1724_v35  ;;  %v1739_v24 = vrot.slane %v1738_v53, 1 }
 0x331   :  { %v1915_v6 = vcombine.low %v1907_v3, %v1914_v34  ;;  %v1593_v62 = vadd.f32 %v1592_v33, %v1591_v55  ;;  %v1721_v12 = vrot.slane %v1720_v7, 1 }
 0x332   :  { %v1599_v35 = vadd.f32 %v1598_v59, %v1597_v26  ;;  %v1727_v34 = vrot.slane %v1726_v57, 1 }
 0x333   :  { %v1967_v58 = vmul.f32 %v1915_v6, %v1817_v31  ;;  %v16907_v38 = vmul.f32 0.125, %v1593_v62  ;;  %v1793_v31 = vsub.f32 %v1761_v32, %v1777_v2  ;;  %v16952_v6 = vmul.f32 0.125, %v1611_v49 }
 0x334   :  { %v16963_v2 = vmul.f32 0.125, %v1599_v35  ;;  %v16975_v35 = vld [vmem:[#allocation10 + $0x480] sm:$0xff] }
 0x335   :  { %v16910_v33 = vrot.slane %v1967_v58, %v16731_v8  ;;  %v16913_v43 = vrot.slane %v1967_v58, %v16734_v11  ;;  %v16916_v3 = vrot.slane %v1967_v58, %v16791_v10  ;;  %v2004_v15 = vrot.slane %v1967_v58, %v16796_v13 }
 0x336   :  { %v1976_v22 = vrot.slane %v1967_v58, %v16683_v47  ;;  %v1980_v23 = vrot.slane %v1967_v58, %v16688_v52  ;;  %v16922_v51 = vrot.slane %v1967_v58, %v16739_v16  ;;  %v1988_v42 = vrot.slane %v1967_v58, %v16742_v18  ;;  %v16955_v58 = vld [vmem:[#allocation10 + $0x440] sm:$0xff] }
 0x337   :  { %v2057_v1 = vmul.f32 %v16910_v33, %v16788_v4  ;;  %v2058_v0 = vmul.f32 %v16913_v43, %v16793_v9  ;;  %v2059_v45 = vmul.f32 %v16916_v3, %v16847_v30  ;;  %v2060_v19 = vmul.f32 %v2004_v15, %v16850_v21 }
 0x338   :  { %v16933_v29 = vmul.f32 %v2004_v15, %v16813_v54  ;;  %v2053_v55 = vmul.f32 %v1976_v22, %v16722_v61  ;;  %v2054_v41 = vmul.f32 %v1980_v23, %v16724_v63  ;;  %v2055_v26 = vmul.f32 %v16922_v51, %v16780_v36 }
 0x339   :  { %v2087_v39 = vcombine.low %v2057_v1, %v2058_v0  ;;  %v2088_v4 = vcombine.low %v2059_v45, %v2060_v19  ;;  %v2056_v60 = vmul.f32 %v1988_v42, %v16782_v27  ;;  %v16941_v9 = vmul.f32 %v1980_v23, %v16696_v17  ;;  %v1969_v19 = vld [vmem:[#allocation8] sm:$0xff] }
 0x33a   :  { %v2085_v30 = vcombine.low %v2053_v55, %v2054_v41  ;;  %v16944_v21 = vmul.f32 %v1976_v22, %v16694_v14  ;;  %v16947_v54 = vmul.f32 %v1988_v42, %v16759_v28  ;;  %v1722_v61 = vadd.f32 %v1721_v12, %v1720_v7  ;;  %v16957_v28 = vld [vmem:[#allocation10 + $0x460] sm:$0xff]  ;;  %v16970_v22 = vld [vmem:[#allocation10 + $0x468] sm:$0xff] }
 0x33b   :  { %v2109_v63 = vrot.slane %v2087_v39, %v16811_v46  ;;  %v2116_v48 = vrot.slane %v2088_v4, %v16811_v46  ;;  %v2086_v36 = vcombine.low %v2055_v26, %v2056_v60  ;;  %v1794_v27 = vsub.f32 %v1762_v56, %v1778_v40 }
 0x33c   :  { %v2095_v59 = vrot.slane %v2085_v30, %v16811_v46  ;;  %v1740_v17 = vadd.f32 %v1739_v24, %v1738_v53  ;;  %v1765_v7 = vmul.f32 0.125, %v1734_v37  ;;  %v1781_v12 = vmul.f32 %v16905_v5, %v16905_v5  ;;  %v16968_v24 = vld [vmem:[#allocation10 + $0x448] sm:$0xff] }
 0x33d   :  { %v2118_v62 = vcombine.low %v2109_v63, %v2116_v48  ;;  %v2102_v14 = vrot.slane %v2086_v36, %v16811_v46  ;;  %v1763_v15 = vmul.f32 0.125, %v1722_v61  ;;  %v1779_v32 = vmul.f32 %v16907_v38, %v16907_v38 }
 0x33e   :  { %v1728_v56 = vadd.f32 %v1727_v34, %v1726_v57  ;;  %v13623_v49 = vcombine.low %v16955_v58, %v16957_v28  ;;  %v1809_v37 = vmax.f32 %v1793_v31, 0.0  ;;  %v1810_v23 = vmax.f32 %v1794_v27, 0.0  ;;  %v16977_v57 = vld [vmem:[#allocation10 + $0x4a0] sm:$0xff] }
 0x33f   :  { %v2132_v53 = vrot.slane %v2118_v62, %v16811_v46  ;;  %v2117_v40 = vcombine.low %v2095_v59, %v2102_v14  ;;  %v539_v42 = vrot.slane %v16808_v50, %v16791_v10  ;;  %v1797_v34 = vsub.f32 %v1765_v7, %v1781_v12 }
 0x340   :  { %v1766_v0 = vmul.f32 0.125, %v1740_v17  ;;  %v1782_v45 = vmul.f32 %v16952_v6, %v16952_v6  ;;  %v1795_v55 = vsub.f32 %v1763_v15, %v1779_v32  ;;  %v1764_v41 = vmul.f32 0.125, %v1728_v56 }
 0x341   :  { %v2125_v1 = vrot.slane %v2117_v40, %v16811_v46  ;;  %v1780_v26 = vmul.f32 %v16963_v2, %v16963_v2  ;;  %v543_v39 = vrot.slane %v16808_v50, %v16796_v13  ;;  %v13624_v60 = vcombine.high %v16955_v58, %v16957_v28 }
 0x342   :  { %v13626_v61 = vcombine.high %v16968_v24, %v16970_v22  ;;  %v16995_v36 = vadd.f32 1e-05, %v1809_v37  ;;  %v16997_v31 = vadd.f32 1e-05, %v1810_v23  ;;  %v17001_v27 = vmax.f32 %v1797_v34, 0.0 }
 0x343   :  { %v2133_v4 = vcombine.low %v2125_v1, %v2132_v53  ;;  %v1798_v62 = vsub.f32 %v1766_v0, %v1782_v45  ;;  %v1811_v7 = vmax.f32 %v1795_v55, 0.0  ;;  %v1796_v12 = vsub.f32 %v1764_v41, %v1780_v26 }
 0x344   :  { %v1521_v50 = vpop.f32.mrb[16].mxu1  ;;  %v2189_v32 = vmul.f32 %v16922_v51, %v16755_v25  ;;  %15645 = vrsqrt.f32 %v16995_v36  ;;  %v2490_v36 = vld [vmem:[#allocation10 + $0x4e8] sm:$0xff] }
 0x345   :  { %v16999_v59 = vsub.f32 %v1969_v19, %v2133_v4  ;;  %v17003_v17 = vadd.f32 %v1521_v50, %v539_v42  ;;  %v1523_v14 = vpop.f32.mrb[17].mxu1  ;;  %15647 = vrsqrt.f32 %v16997_v31 }
 0x346   :  { %v17005_v15 = vadd.f32 %v1523_v14, %v543_v39  ;;  %v1525_v56 = vpop.f32.mrb[18].mxu1 }
 0x347   :  { %v2212_v53 = vrot.slane %v16999_v59, %v16688_v52  ;;  %v2208_v40 = vrot.slane %v16999_v59, %v16683_v47  ;;  %v2220_v37 = vrot.slane %v16999_v59, %v16742_v18  ;;  %v1612_v23 = vrot.slane %v17003_v17, 4  ;;  %v1526_v42 = vpop.f32.mrb[19].mxu1 }
 0x348   :  { %v1655_v1 = vmul.f32 %v17003_v17, %v17003_v17  ;;  %v1618_v34 = vrot.slane %v17005_v15, 4  ;;  %v1656_v25 = vmul.f32 %v17005_v15, %v17005_v15  ;;  %v2216_v51 = vrot.slane %v16999_v59, %v16739_v16 }
 0x349   :  { %v2286_v0 = vadd.f32 %v2212_v53, %v16941_v9  ;;  %v2285_v45 = vadd.f32 %v2208_v40, %v16944_v21  ;;  %v2288_v19 = vadd.f32 %v2220_v37, %v16947_v54  ;;  %v1613_v55 = vadd.f32 %v1612_v23, %v17003_v17  ;;  %v17034_v37 = vld [vmem:[#allocation10 + $0x488] sm:$0xff] }
 0x34a   :  { %v1741_v41 = vrot.slane %v1655_v1, 4  ;;  %v1619_v26 = vadd.f32 %v1618_v34, %v17005_v15  ;;  %v1747_v39 = vrot.slane %v1656_v25, 4  ;;  %v17028_v4 = vadd.f32 %v2216_v51, %v2189_v32  ;;  %v17036_v23 = vld [vmem:[#allocation10 + $0x4a8] sm:$0xff] }
 0x34b   :  { %v2302_v50 = vmax.f32 %v2286_v0, 0.0  ;;  %v2301_v14 = vmax.f32 %v2285_v45, 0.0  ;;  %v1812_v56 = vmax.f32 %v1796_v12, 0.0  ;;  %v1614_v42 = vrot.slane %v1613_v55, 2  ;;  %v17722_v0 = vld [vmem:[#allocation56_spill] sm:$0xff] }
 0x34c   :  { %v2304_v63 = vmax.f32 %v2288_v19, 0.0  ;;  %v1742_v48 = vadd.f32 %v1741_v41, %v1655_v1  ;;  %v1620_v30 = vrot.slane %v1619_v26, 2  ;;  %v1748_v9 = vadd.f32 %v1747_v39, %v1656_v25 }
 0x34d   :  { %v17030_v53 = vpack.c.bf16 %v2302_v50, %v2302_v50  ;;  %v17032_v21 = vpack.c.bf16 %v2301_v14, %v2301_v14  ;;  %v1615_v54 = vadd.f32 %v1614_v42, %v1613_v55  ;;  %v1814_v40 = vmax.f32 %v1798_v62, 0.0  ;;  %v17726_v50 = vld [vmem:[#allocation53_spill] sm:$0xff] }
 0x34e   :  { %v1743_v32 = vrot.slane %v1742_v48, 2  ;;  %v1621_v34 = vadd.f32 %v1620_v30, %v1619_v26  ;;  %v1749_v51 = vrot.slane %v1748_v9, 2  ;;  %v2192_v12 = vmul.f32 %v16913_v43, %v17722_v0  ;;  %v17723_v43 = vld [vmem:[#allocation51_spill] sm:$0xff]  ;;  %v17724_v26 = vld [vmem:[#allocation52_spill] sm:$0xff] }
 0x34f   :  { %8551 = vmatprep.mubr.bf16.mxu0 %v17030_v53  ;;  %8879 = vmatprep.mubr.bf16.mxu1 %v17030_v53  ;;  %v1829_v1 = vadd.f32 1e-05, %v1811_v7  ;;  %v1830_v25 = vadd.f32 1e-05, %v1812_v56  ;;  %v1616_v45 = vrot.slane %v1615_v54, 1  ;;  %v2228_v62 = vrot.slane %v16999_v59, %v16734_v11  ;;  %v17727_v7 = vld [vmem:[#allocation54_spill] sm:$0xff] }
 0x350   :  { %8552 = vmatmul.mubr.bf16.vlgmr.msra.gmra.mrb[12].mxu0 %v17032_v21  ;;  %8880 = vmatmul.mubr.bf16.vlgmr.msra.gmra.mrb[20].mxu1 %v17032_v21  ;;  %v17046_v19 = vpack.c.bf16 %v2304_v63, %v2304_v63  ;;  %v1744_v30 = vadd.f32 %v1743_v32, %v1742_v48  ;;  %v1622_v55 = vrot.slane %v1621_v34, 1  ;;  %v1750_v41 = vadd.f32 %v1749_v51, %v1748_v9  ;;  %v2485_v63 = vld [vmem:[#allocation10 + $0x4c0] sm:$0xff]  ;;  %v2486_v9 = vld [vmem:[#allocation10 + $0x4c8] sm:$0xff] }
 0x351   :  { %v17725_v39 = vcombine.low %v17723_v43, %v17724_v26  ;;  %v17728_v14 = vcombine.low %v17726_v50, %v17727_v7  ;;  %v13634_v56 = vcombine.high %v17034_v37, %v17036_v23  ;;  %v1617_v42 = vadd.f32 %v1616_v45, %v1615_v54  ;;  %v2489_v48 = vld [vmem:[#allocation10 + $0x4e0] sm:$0xff] }
 0x352   :  { %v17057_v0 = vadd.f32 %v2228_v62, %v2192_v12  ;;  %8592 = vmatprep.mubr.bf16.mxu0 %v17046_v19  ;;  %8920 = vmatprep.mubr.bf16.mxu1 %v17046_v19  ;;  %v1745_v32 = vrot.slane %v1744_v30, 1  ;;  %v1623_v51 = vadd.f32 %v1622_v55, %v1621_v34  ;;  %v1751_v43 = vrot.slane %v1750_v41, 1  ;;  %v2498_v55 = vld [vmem:[#allocation10 + $0x528] sm:$0xff] }
 0x353   :  { %8561 = vmatpush1.bf16.msra.mxu0 %v17725_v39  ;;  %8889 = vmatpush1.bf16.msra.mxu1 %v17728_v14  ;;  %15649 = vrsqrt.f32 %v1829_v1  ;;  %v1831_v54 = vadd.f32 1e-05, %v17001_v27  ;;  %v17069_v12 = vmul.f32 0.125, %v1617_v42  ;;  %v1832_v45 = vadd.f32 1e-05, %v1814_v40  ;;  %v2501_v14 = vld [vmem:[#allocation10 + $0x540] sm:$0xff] }
 0x354   :  { %8562 = vmatprep.subr.bf16.mxu0 %v13624_v60  ;;  %8890 = vmatprep.subr.bf16.mxu1 %v13626_v61  ;;  %15651 = vrsqrt.f32 %v1830_v25  ;;  %v1746_v31 = vadd.f32 %v1745_v32, %v1744_v30  ;;  %v17071_v62 = vmul.f32 0.125, %v1623_v51  ;;  %v1752_v34 = vadd.f32 %v1751_v43, %v1750_v41  ;;  %v2493_v30 = vld [vmem:[#allocation10 + $0x500] sm:$0xff]  ;;  %v15646_v32 = vpop.eup %15645  ;;  %v2502_v43 = vld [vmem:[#allocation10 + $0x548] sm:$0xff] }
 0x355   :  { %v17729_v60 = vcombine.low %v16968_v24, %v16970_v22  ;;  %v13633_v61 = vcombine.low %v17034_v37, %v17036_v23  ;;  %v13640_v27 = vcombine.high %v2485_v63, %v2489_v48  ;;  %v1783_v40 = vmul.f32 %v17069_v12, %v17069_v12  ;;  %v2497_v24 = vld [vmem:[#allocation10 + $0x520] sm:$0xff]  ;;  %v2494_v22 = vld [vmem:[#allocation10 + $0x508] sm:$0xff] }
 0x356   :  { %v17730_v1 = vcombine.high %v16975_v35, %v16977_v57  ;;  %v13642_v25 = vcombine.high %v2486_v9, %v2490_v36  ;;  %v1767_v58 = vmul.f32 0.125, %v1746_v31  ;;  %v1768_v28 = vmul.f32 0.125, %v1752_v34  ;;  %v2505_v51 = vld [vmem:[#allocation10 + $0x560] sm:$0xff] }
 0x357   :  { %8563 = vmatpush1.bf16.msra.mxu0 %v13623_v49  ;;  %8891 = vmatpush1.bf16.msra.mxu1 %v17729_v60  ;;  %v1784_v49 = vmul.f32 %v17071_v62, %v17071_v62  ;;  %15653 = vrsqrt.f32 %v1831_v54  ;;  %v17731_v41 = vcombine.low %v16975_v35, %v16977_v57  ;;  %v13639_v26 = vcombine.low %v2485_v63, %v2489_v48  ;;  %v2506_v54 = vld [vmem:[#allocation10 + $0x568] sm:$0xff] }
 0x358   :  { %8564 = vmatprep.subr.bf16.mxu0 %v17730_v1  ;;  %8892 = vmatprep.subr.bf16.mxu1 %v13634_v56  ;;  %v1799_v37 = vsub.f32 %v1767_v58, %v1783_v40  ;;  %15655 = vrsqrt.f32 %v1832_v45  ;;  %v13641_v39 = vcombine.low %v2486_v9, %v2490_v36  ;;  %v13648_v50 = vcombine.high %v2493_v30, %v2497_v24  ;;  %v15648_v45 = vpop.eup %15647  ;;  %v2509_v36 = vld [vmem:[#allocation10 + $0x580] sm:$0xff]  ;;  %v2514_v40 = vld [vmem:[#allocation10 + $0x5a8] sm:$0xff] }
 0x359   :  { %v1800_v23 = vsub.f32 %v1768_v28, %v1784_v49  ;;  %v13650_v7 = vcombine.high %v2494_v22, %v2498_v55  ;;  %v13647_v35 = vcombine.low %v2493_v30, %v2497_v24  ;;  %v13649_v57 = vcombine.low %v2494_v22, %v2498_v55  ;;  %v17732_v1 = vld [vmem:[#allocation55_spill] sm:$0xff] }
 0x35a   :  { %v1815_v56 = vmax.f32 %v1799_v37, 0.0  ;;  %v13656_v48 = vcombine.high %v2501_v14, %v2505_v51  ;;  %v13658_v9 = vcombine.high %v2502_v43, %v2506_v54  ;;  %v2224_v58 = vrot.slane %v16999_v59, %v16731_v8 }
 0x35b   :  { %8565 = vmatpush1.bf16.msra.mxu0 %v17731_v41  ;;  %8893 = vmatpush1.bf16.msra.mxu1 %v13633_v61  ;;  %v1816_v42 = vmax.f32 %v1800_v23, 0.0  ;;  %v2513_v61 = vld [vmem:[#allocation10 + $0x5a0] sm:$0xff]  ;;  %v13655_v28 = vcombine.low %v2501_v14, %v2505_v51  ;;  %v13657_v30 = vcombine.low %v2502_v43, %v2506_v54  ;;  %v1916_v49 = vcombine.low %v15646_v32, %v15648_v45 }
 0x35c   :  { %8566 = vmatprep.subr.bf16.mxu0 %v13640_v27  ;;  %8894 = vmatprep.subr.bf16.mxu1 %v13642_v25  ;;  %v1833_v31 = vadd.f32 1e-05, %v1815_v56  ;;  %v2510_v27 = vld [vmem:[#allocation10 + $0x588] sm:$0xff]  ;;  %v2191_v25 = vmul.f32 %v16910_v33, %v17732_v1  ;;  %v2236_v37 = vrot.slane %v16999_v59, %v16796_v13  ;;  %v13664_v41 = vcombine.high %v2509_v36, %v2513_v61  ;;  %v2525_v32 = vld [vmem:[#allocation10 + $0x600] sm:$0xff] }
 0x35d   :  { %v1834_v34 = vadd.f32 1e-05, %v1816_v42  ;;  %v15650_v60 = vpop.eup %15649  ;;  %v13666_v33 = vcombine.high %v2510_v27, %v2514_v40  ;;  %v13663_v56 = vcombine.low %v2509_v36, %v2513_v61  ;;  %v13665_v42 = vcombine.low %v2510_v27, %v2514_v40  ;;  %v2529_v51 = vld [vmem:[#allocation10 + $0x620] sm:$0xff] }
 0x35e   :  { %v15652_v63 = vpop.eup %15651  ;;  %15657 = vrsqrt.f32 %v1833_v31  ;;  %v17095_v55 = vadd.f32 %v2224_v58, %v2191_v25  ;;  %v17100_v14 = vadd.f32 %v2236_v37, %v16933_v29  ;;  %v1926_v43 = vrot.slane %v1916_v49, %v16811_v46  ;;  %v2533_v40 = vld [vmem:[#allocation10 + $0x640] sm:$0xff]  ;;  %v17733_v58 = vld [vmem:[#allocation57_spill] sm:$0xff] }
 0x35f   :  { %8567 = vmatpush1.bf16.msra.mxu0 %v13639_v26  ;;  %8895 = vmatpush1.bf16.msra.mxu1 %v13641_v39  ;;  %15659 = vrsqrt.f32 %v1834_v34  ;;  %v1917_v22 = vcombine.low %v15650_v60, %v15652_v63  ;;  %v2517_v26 = vld [vmem:[#allocation10 + $0x5c0] sm:$0xff]  ;;  %v2526_v60 = vld [vmem:[#allocation10 + $0x608] sm:$0xff] }
 0x360   :  { %8568 = vmatprep.subr.bf16.mxu0 %v13648_v50  ;;  %8896 = vmatprep.subr.bf16.mxu1 %v13650_v7  ;;  %v2521_v39 = vld [vmem:[#allocation10 + $0x5e0] sm:$0xff]  ;;  %v2518_v50 = vld [vmem:[#allocation10 + $0x5c8] sm:$0xff] }
 0x361   :  { %v15654_v24 = vpop.eup %15653  ;;  %v2522_v7 = vld [vmem:[#allocation10 + $0x5e8] sm:$0xff]  ;;  %v1933_v54 = vrot.slane %v1917_v22, %v16811_v46  ;;  %v13672_v31 = vcombine.high %v2517_v26, %v2521_v39  ;;  %v13671_v29 = vcombine.low %v2517_v26, %v2521_v39  ;;  %v2537_v1 = vld [vmem:[#allocation10 + $0x660] sm:$0xff] }
 0x362   :  { %v15656_v23 = vpop.eup %15655  ;;  %v13674_v34 = vcombine.high %v2518_v50, %v2522_v7  ;;  %v13673_v63 = vcombine.low %v2518_v50, %v2522_v7  ;;  %v2534_v49 = vld [vmem:[#allocation10 + $0x648] sm:$0xff]  ;;  %v2541_v39 = vld [vmem:[#allocation10 + $0x680] sm:$0xff] }
 0x363   :  { %8569 = vmatpush1.bf16.msra.mxu0 %v13647_v35  ;;  %8897 = vmatpush1.bf16.msra.mxu1 %v13649_v57  ;;  %v1918_v45 = vcombine.low %v15654_v24, %v15656_v23  ;;  %v2530_v35 = vld [vmem:[#allocation10 + $0x628] sm:$0xff]  ;;  %v1948_v61 = vcombine.low %v1926_v43, %v1933_v54  ;;  %v13679_v23 = vcombine.low %v2525_v32, %v2529_v51  ;;  %v2545_v7 = vld [vmem:[#allocation10 + $0x6a0] sm:$0xff] }
 0x364   :  { %8570 = vmatprep.subr.bf16.mxu0 %v13656_v48  ;;  %8898 = vmatprep.subr.bf16.mxu1 %v13658_v9  ;;  %v13680_v48 = vcombine.high %v2525_v32, %v2529_v51  ;;  %v13682_v36 = vcombine.high %v2526_v60, %v2530_v35  ;;  %v2538_v24 = vld [vmem:[#allocation10 + $0x668] sm:$0xff]  ;;  %v13687_v43 = vcombine.low %v2533_v40, %v2537_v1 }
 0x365   :  { %v1940_v27 = vrot.slane %v1918_v45, %v16811_v46  ;;  %v13690_v26 = vcombine.high %v2534_v49, %v2538_v24  ;;  %v13689_v54 = vcombine.low %v2534_v49, %v2538_v24  ;;  %v2549_v45 = vld [vmem:[#allocation10 + $0x6c0] sm:$0xff]  ;;  %v1818_v32 = vld [vmem:[#allocation7 + $0x8] sm:$0xff]  ;;  %v13696_v51 = vcombine.high %v2541_v39, %v2545_v7 }
 0x367   :  { %8571 = vmatpush1.bf16.msra.mxu0 %v13655_v28  ;;  %8899 = vmatpush1.bf16.msra.mxu1 %v13657_v30  ;;  %v2193_v28 = vmul.f32 %v16916_v3, %v17733_v58  ;;  %v2232_v30 = vrot.slane %v16999_v59, %v16791_v10  ;;  %v1956_v3 = vrot.slane %v1948_v61, %v16811_v46  ;;  %v2542_v59 = vld [vmem:[#allocation10 + $0x688] sm:$0xff] }
 0x368   :  { %8572 = vmatprep.subr.bf16.mxu0 %v13664_v41  ;;  %8900 = vmatprep.subr.bf16.mxu1 %v13666_v33  ;;  %v15658_v57 = vpop.eup %15657  ;;  %v13681_v41 = vcombine.low %v2526_v60, %v2530_v35  ;;  %v13688_v33 = vcombine.high %v2533_v40, %v2537_v1  ;;  %v2550_v60 = vld [vmem:[#allocation10 + $0x6c8] sm:$0xff] }
 0x369   :  { %v15660_v9 = vpop.eup %15659  ;;  %v17110_v37 = vadd.f32 %v2232_v30, %v2193_v28  ;;  %v2554_v35 = vld [vmem:[#allocation10 + $0x6e8] sm:$0xff] }
 0x36a   :  { %v1919_v25 = vcombine.low %v15658_v57, %v15660_v9  ;;  %v2558_v40 = vld [vmem:[#allocation10 + $0x708] sm:$0xff]  ;;  %v13705_v49 = vcombine.low %v2550_v60, %v2554_v35 }
 0x36b   :  { %8573 = vmatpush1.bf16.msra.mxu0 %v13663_v56  ;;  %8901 = vmatpush1.bf16.msra.mxu1 %v13665_v42  ;;  %v2546_v56 = vld [vmem:[#allocation10 + $0x6a8] sm:$0xff] }
 0x36c   :  { %8574 = vmatprep.subr.bf16.mxu0 %v13672_v31  ;;  %8902 = vmatprep.subr.bf16.mxu1 %v13674_v34  ;;  %v1947_v22 = vrot.slane %v1919_v25, %v16811_v46  ;;  %v13698_v31 = vcombine.high %v2542_v59, %v2546_v56  ;;  %v2553_v34 = vld [vmem:[#allocation10 + $0x6e0] sm:$0xff]  ;;  %v2562_v1 = vld [vmem:[#allocation10 + $0x728] sm:$0xff] }
 0x36d   :  { %v13704_v61 = vcombine.high %v2549_v45, %v2553_v34  ;;  %v13703_v30 = vcombine.low %v2549_v45, %v2553_v34 }
 0x36e   :  { %v1949_v50 = vcombine.low %v1940_v27, %v1947_v22  ;;  %v13706_v27 = vcombine.high %v2550_v60, %v2554_v35 }
 0x36f   :  { %8575 = vmatpush1.bf16.msra.mxu0 %v13671_v29  ;;  %8903 = vmatpush1.bf16.msra.mxu1 %v13673_v63  ;;  %v13695_v29 = vcombine.low %v2541_v39, %v2545_v7  ;;  %v2557_v63 = vld [vmem:[#allocation10 + $0x700] sm:$0xff]  ;;  %v13714_v39 = vcombine.high %v2558_v40, %v2562_v1 }
 0x370   :  { %8576 = vmatprep.subr.bf16.mxu0 %v13680_v48  ;;  %8904 = vmatprep.subr.bf16.mxu1 %v13682_v36  ;;  %v1963_v42 = vrot.slane %v1949_v50, %v16811_v46  ;;  %v2561_v48 = vld [vmem:[#allocation10 + $0x720] sm:$0xff]  ;;  %v13697_v36 = vcombine.low %v2542_v59, %v2546_v56 }
 0x371   :  { %v13712_v24 = vcombine.high %v2557_v63, %v2561_v48  ;;  %v2569_v50 = vld [vmem:[#allocation10 + $0x760] sm:$0xff]  ;;  %v13711_v56 = vcombine.low %v2557_v63, %v2561_v48 }
 0x372   :  { %v1964_v57 = vcombine.low %v1956_v3, %v1963_v42  ;;  %v2565_v3 = vld [vmem:[#allocation10 + $0x740] sm:$0xff]  ;;  %v2566_v42 = vld [vmem:[#allocation10 + $0x748] sm:$0xff] }
 0x373   :  { %8577 = vmatpush1.bf16.msra.mxu0 %v13679_v23  ;;  %8905 = vmatpush1.bf16.msra.mxu1 %v13681_v41  ;;  %v17734_v63 = vld [vmem:[#allocation59_spill] sm:$0xff] }
 0x374   :  { %8578 = vmatprep.subr.bf16.mxu0 %v13688_v33  ;;  %8906 = vmatprep.subr.bf16.mxu1 %v13690_v26  ;;  %v1968_v9 = vmul.f32 %v1964_v57, %v1818_v32  ;;  %v13713_v32 = vcombine.low %v2558_v40, %v2562_v1  ;;  %v2573_v57 = vld [vmem:[#allocation10 + $0x780] sm:$0xff] }
 0x376   :  { %v17115_v25 = vrot.slane %v1968_v9, %v16731_v8  ;;  %v17118_v58 = vrot.slane %v1968_v9, %v16734_v11  ;;  %v17121_v28 = vrot.slane %v1968_v9, %v16791_v10  ;;  %v2036_v22 = vrot.slane %v1968_v9, %v16796_v13 }
 0x377   :  { %8579 = vmatpush1.bf16.msra.mxu0 %v13687_v43  ;;  %8907 = vmatpush1.bf16.msra.mxu1 %v13689_v54  ;;  %v17131_v26 = vrot.slane %v1968_v9, %v16683_v47  ;;  %v2570_v43 = vld [vmem:[#allocation10 + $0x768] sm:$0xff]  ;;  %v17142_v45 = vrot.slane %v1968_v9, %v16742_v18 }
 0x378   :  { %8580 = vmatprep.subr.bf16.mxu0 %v13696_v51  ;;  %8908 = vmatprep.subr.bf16.mxu1 %v13698_v31  ;;  %v2065_v23 = vmul.f32 %v17115_v25, %v16905_v5  ;;  %v2066_v41 = vmul.f32 %v17118_v58, %v16952_v6  ;;  %v2067_v33 = vmul.f32 %v17121_v28, %v17069_v12 }
 0x379   :  { %v2068_v7 = vmul.f32 %v2036_v22, %v17071_v62  ;;  %v17135_v59 = vmul.f32 %v2036_v22, %v17005_v15  ;;  %v2012_v6 = vrot.slane %v1968_v9, %v16688_v52  ;;  %v17139_v12 = vrot.slane %v1968_v9, %v16739_v16  ;;  %v2577_v9 = vld [vmem:[#allocation10 + $0x7a0] sm:$0xff] }
 0x37a   :  { %v2136_v5 = vcombine.low %v2065_v23, %v2066_v41  ;;  %v13720_v62 = vcombine.high %v2565_v3, %v2569_v50  ;;  %v2061_v51 = vmul.f32 %v17131_v26, %v16890_v44  ;;  %v13722_v35 = vcombine.high %v2566_v42, %v2570_v43  ;;  %v2585_v22 = vld [vmem:[#allocation10 + $0x7e0] sm:$0xff]  ;;  %v2582_v23 = vld [vmem:[#allocation10 + $0x7c8] sm:$0xff] }
 0x37b   :  { %8581 = vmatpush1.bf16.msra.mxu0 %v13695_v29  ;;  %8909 = vmatpush1.bf16.msra.mxu1 %v13697_v36  ;;  %v2137_v54 = vcombine.low %v2067_v33, %v2068_v7  ;;  %v2062_v34 = vmul.f32 %v2012_v6, %v16898_v20  ;;  %v2063_v60 = vmul.f32 %v17139_v12, %v16907_v38  ;;  %v2574_v36 = vld [vmem:[#allocation10 + $0x788] sm:$0xff] }
 0x37c   :  { %8582 = vmatprep.subr.bf16.mxu0 %v13704_v61  ;;  %8910 = vmatprep.subr.bf16.mxu1 %v13706_v27  ;;  %v2158_v15 = vrot.slane %v2136_v5, %v16811_v46  ;;  %v2064_v29 = vmul.f32 %v17142_v45, %v16963_v2  ;;  %v17154_v48 = vmul.f32 %v2012_v6, %v17734_v63  ;;  %v2578_v61 = vld [vmem:[#allocation10 + $0x7a8] sm:$0xff]  ;;  %v2581_v2 = vld [vmem:[#allocation10 + $0x7c0] sm:$0xff] }
 0x37d   :  { %v2165_v31 = vrot.slane %v2137_v54, %v16811_v46  ;;  %v2134_v27 = vcombine.low %v2061_v51, %v2062_v34  ;;  %v13719_v20 = vcombine.low %v2565_v3, %v2569_v50  ;;  %v13721_v38 = vcombine.low %v2566_v42, %v2570_v43  ;;  %v2586_v41 = vld [vmem:[#allocation10 + $0x7e8] sm:$0xff]  ;;  %v2589_v6 = vld [vmem:[#allocation10 + $0x800] sm:$0xff] }
 0x37e   :  { %v2135_v40 = vcombine.low %v2063_v60, %v2064_v29  ;;  %v13727_v7 = vcombine.low %v2573_v57, %v2577_v9  ;;  %v13729_v3 = vcombine.low %v2574_v36, %v2578_v61  ;;  %v13736_v50 = vcombine.high %v2581_v2, %v2585_v22  ;;  %v2590_v43 = vld [vmem:[#allocation10 + $0x808] sm:$0xff] }
 0x37f   :  { %8583 = vmatpush1.bf16.msra.mxu0 %v13703_v30  ;;  %8911 = vmatpush1.bf16.msra.mxu1 %v13705_v49  ;;  %v2167_v44 = vcombine.low %v2158_v15, %v2165_v31  ;;  %v2144_v1 = vrot.slane %v2134_v27, %v16811_v46  ;;  %v13728_v30 = vcombine.high %v2573_v57, %v2577_v9  ;;  %v2594_v54 = vld [vmem:[#allocation10 + $0x828] sm:$0xff]  ;;  %v2303_v15 = vmax.f32 %v17028_v4, 0.0  ;;  %v2601_v57 = vld [vmem:[#allocation10 + $0x860] sm:$0xff] }
 0x380   :  { %8584 = vmatprep.subr.bf16.mxu0 %v13712_v24  ;;  %8912 = vmatprep.subr.bf16.mxu1 %v13714_v39  ;;  %v13730_v49 = vcombine.high %v2574_v36, %v2578_v61  ;;  %v2151_v24 = vrot.slane %v2135_v40, %v16811_v46  ;;  %v13738_v5 = vcombine.high %v2582_v23, %v2586_v41  ;;  %v2306_v61 = vmax.f32 %v17057_v0, 0.0  ;;  %v17736_v4 = vld [vmem:[#allocation63_spill] sm:$0xff]  ;;  %v17737_v40 = vld [vmem:[#allocation62_spill] sm:$0xff] }
 0x381   :  { %v2181_v33 = vrot.slane %v2167_v44, %v16811_v46  ;;  %v13737_v31 = vcombine.low %v2582_v23, %v2586_v41  ;;  %v13746_v29 = vcombine.high %v2590_v43, %v2594_v54  ;;  %v17735_v44 = vld [vmem:[#allocation58_spill] sm:$0xff]  ;;  %v13745_v36 = vcombine.low %v2590_v43, %v2594_v54 }
 0x382   :  { %v2166_v39 = vcombine.low %v2144_v1, %v2151_v24  ;;  %v2195_v9 = vmul.f32 %v17131_v26, %v17735_v44  ;;  %v2198_v27 = vmul.f32 %v17142_v45, %v17736_v4 }
 0x383   :  { %8585 = vmatpush1.bf16.msra.mxu0 %v13711_v56  ;;  %8913 = vmatpush1.bf16.msra.mxu1 %v13713_v32  ;;  %v2593_v56 = vld [vmem:[#allocation10 + $0x820] sm:$0xff]  ;;  %v1970_v32 = vld [vmem:[#allocation8 + $0x8] sm:$0xff] }
 0x384   :  { %8586 = vmatprep.subr.bf16.mxu0 %v13720_v62  ;;  %8914 = vmatprep.subr.bf16.mxu1 %v13722_v35  ;;  %v2174_v42 = vrot.slane %v2166_v39, %v16811_v46  ;;  %v13735_v62 = vcombine.low %v2581_v2, %v2585_v22  ;;  %v13743_v34 = vcombine.low %v2589_v6, %v2593_v56  ;;  %v2597_v35 = vld [vmem:[#allocation10 + $0x840] sm:$0xff] }
 0x385   :  { %v13744_v60 = vcombine.high %v2589_v6, %v2593_v56  ;;  %v13752_v1 = vcombine.high %v2597_v35, %v2601_v57  ;;  %v17739_v56 = vld [vmem:[#allocation60_spill] sm:$0xff]  ;;  %v13751_v54 = vcombine.low %v2597_v35, %v2601_v57  ;;  %v2201_v57 = vmul.f32 %v17121_v28, %v17003_v17 }
 0x386   :  { %v2182_v51 = vcombine.low %v2174_v42, %v2181_v33  ;;  %v17189_v33 = vpack.c.bf16 %v2306_v61, %v2306_v61  ;;  %v2199_v42 = vmul.f32 %v17115_v25, %v17739_v56  ;;  %v2617_v25 = vld [vmem:[#allocation10 + $0x8e0] sm:$0xff] }
 0x387   :  { %8587 = vmatpush1.bf16.msra.mxu0 %v13719_v20  ;;  %8915 = vmatpush1.bf16.msra.mxu1 %v13721_v38  ;;  %v2197_v20 = vmul.f32 %v17139_v12, %v17737_v40  ;;  %v17170_v38 = vpack.c.bf16 %v2303_v15, %v2303_v15  ;;  %v17738_v12 = vld [vmem:[#allocation61_spill] sm:$0xff]  ;;  %v2625_v40 = vld [vmem:[#allocation10 + $0x920] sm:$0xff] }
 0x388   :  { %8588 = vmatprep.subr.bf16.mxu0 %v13728_v30  ;;  %8916 = vmatprep.subr.bf16.mxu1 %v13730_v49  ;;  %v17161_v63 = vsub.f32 %v1970_v32, %v2182_v51  ;;  %v2598_v30 = vld [vmem:[#allocation10 + $0x848] sm:$0xff]  ;;  %v2200_v24 = vmul.f32 %v17118_v58, %v17738_v12 }
 0x389   :  { %v2602_v49 = vld [vmem:[#allocation10 + $0x868] sm:$0xff] }
 0x38a   :  { %v2244_v2 = vrot.slane %v17161_v63, %v16688_v52  ;;  %v2240_v26 = vrot.slane %v17161_v63, %v16683_v47  ;;  %v2252_v0 = vrot.slane %v17161_v63, %v16742_v18  ;;  %v2248_v45 = vrot.slane %v17161_v63, %v16739_v16  ;;  %v2606_v58 = vld [vmem:[#allocation10 + $0x888] sm:$0xff] }
 0x38b   :  { %8589 = vmatpush1.bf16.msra.mxu0 %v13727_v7  ;;  %8917 = vmatpush1.bf16.msra.mxu1 %v13729_v3  ;;  %v2260_v41 = vrot.slane %v17161_v63, %v16734_v11  ;;  %v13754_v39 = vcombine.high %v2598_v30, %v2602_v49  ;;  %v2605_v7 = vld [vmem:[#allocation10 + $0x880] sm:$0xff]  ;;  %v2256_v43 = vrot.slane %v17161_v63, %v16731_v8 }
 0x38c   :  { %8590 = vmatprep.subr.bf16.mxu0 %v13736_v50  ;;  %8918 = vmatprep.subr.bf16.mxu1 %v13738_v5  ;;  %v17183_v22 = vadd.f32 %v2244_v2, %v17154_v48  ;;  %v17185_v23 = vadd.f32 %v2240_v26, %v2195_v9  ;;  %v2609_v3 = vld [vmem:[#allocation10 + $0x8a0] sm:$0xff]  ;;  %v17191_v50 = vadd.f32 %v2252_v0, %v2198_v27  ;;  %v2610_v48 = vld [vmem:[#allocation10 + $0x8a8] sm:$0xff] }
 0x38d   :  { %v17193_v5 = vadd.f32 %v2248_v45, %v2197_v20  ;;  %v17197_v6 = vadd.f32 %v2260_v41, %v2200_v24  ;;  %v2268_v32 = vrot.slane %v17161_v63, %v16796_v13  ;;  %v13760_v15 = vcombine.high %v2605_v7, %v2609_v3  ;;  %v2621_v27 = vld [vmem:[#allocation10 + $0x900] sm:$0xff]  ;;  %v2622_v20 = vld [vmem:[#allocation10 + $0x908] sm:$0xff] }
 0x38e   :  { %v13762_v51 = vcombine.high %v2606_v58, %v2610_v48  ;;  %v17207_v44 = vadd.f32 %v2256_v43, %v2199_v42  ;;  %v13761_v9 = vcombine.low %v2606_v58, %v2610_v48  ;;  %v2264_v61 = vrot.slane %v17161_v63, %v16791_v10  ;;  %v2629_v2 = vld [vmem:[#allocation10 + $0x940] sm:$0xff]  ;;  %v2630_v0 = vld [vmem:[#allocation10 + $0x948] sm:$0xff] }
 0x38f   :  { %8591 = vmatpush1.bf16.msra.mxu0 %v13735_v62  ;;  %8919 = vmatpush1.bf16.msra.mxu1 %v13737_v31  ;;  %v13753_v62 = vcombine.low %v2598_v30, %v2602_v49  ;;  %v2613_v31 = vld [vmem:[#allocation10 + $0x8c0] sm:$0xff]  ;;  %v17210_v35 = vadd.f32 %v2268_v32, %v17135_v59  ;;  %v13776_v28 = vcombine.high %v2621_v27, %v2625_v40  ;;  %v2634_v63 = vld [vmem:[#allocation10 + $0x968] sm:$0xff] }
 0x390   :  { %8601 = vmatprep.subr.bf16.mxu0 %v13744_v60  ;;  %8929 = vmatprep.subr.bf16.mxu1 %v13746_v29  ;;  %v2614_v60 = vld [vmem:[#allocation10 + $0x8c8] sm:$0xff]  ;;  %v17216_v30 = vadd.f32 %v2264_v61, %v2201_v57  ;;  %v13767_v59 = vcombine.low %v2613_v31, %v2617_v25  ;;  %v2633_v26 = vld [vmem:[#allocation10 + $0x960] sm:$0xff]  ;;  %v13775_v45 = vcombine.low %v2621_v27, %v2625_v40 }
 0x391   :  { %v2618_v29 = vld [vmem:[#allocation10 + $0x8e8] sm:$0xff]  ;;  %v13784_v24 = vcombine.high %v2629_v2, %v2633_v26  ;;  %v13786_v41 = vcombine.high %v2630_v0, %v2634_v63  ;;  %v13783_v48 = vcombine.low %v2629_v2, %v2633_v26  ;;  %v13785_v56 = vcombine.low %v2630_v0, %v2634_v63  ;;  %v2649_v32 = vld [vmem:[#allocation10 + $0x9e0] sm:$0xff] }
 0x392   :  { %8593 = vmatmul.mubr.bf16.vlgmr.msra.gmra.mrb[12].mxu0 %v17170_v38  ;;  %8921 = vmatmul.mubr.bf16.vlgmr.msra.gmra.mrb[20].mxu1 %v17170_v38  ;;  %v13770_v4 = vcombine.high %v2614_v60, %v2618_v29  ;;  %v13769_v17 = vcombine.low %v2614_v60, %v2618_v29  ;;  %v2642_v58 = vld [vmem:[#allocation10 + $0x9a8] sm:$0xff]  ;;  %v2653_v29 = vld [vmem:[#allocation10 + $0xa00] sm:$0xff] }
 0x393   :  { %8602 = vmatpush1.bf16.msra.mxu0 %v13743_v34  ;;  %8633 = vmatprep.mubr.bf16.mxu0 %v17189_v33  ;;  %v13759_v34 = vcombine.low %v2605_v7, %v2609_v3  ;;  %v2641_v7 = vld [vmem:[#allocation10 + $0x9a0] sm:$0xff]  ;;  %v2638_v3 = vld [vmem:[#allocation10 + $0x988] sm:$0xff] }
 0x394   :  { %8930 = vmatpush1.bf16.msra.mxu1 %v13745_v36  ;;  %8961 = vmatprep.mubr.bf16.mxu1 %v17189_v33  ;;  %v13768_v36 = vcombine.high %v2613_v31, %v2617_v25  ;;  %v13794_v43 = vcombine.high %v2638_v3, %v2642_v58  ;;  %v13793_v31 = vcombine.low %v2638_v3, %v2642_v58  ;;  %v2654_v57 = vld [vmem:[#allocation10 + $0xa08] sm:$0xff]  ;;  %v2661_v40 = vld [vmem:[#allocation10 + $0xa40] sm:$0xff] }
 0x395   :  { %8603 = vmatprep.subr.bf16.mxu0 %v13752_v1  ;;  %8931 = vmatprep.subr.bf16.mxu1 %v13754_v39  ;;  %v2626_v1 = vld [vmem:[#allocation10 + $0x928] sm:$0xff]  ;;  %v2637_v39 = vld [vmem:[#allocation10 + $0x980] sm:$0xff] }
 0x396   :  { %v13778_v49 = vcombine.high %v2622_v20, %v2626_v1  ;;  %v13777_v12 = vcombine.low %v2622_v20, %v2626_v1  ;;  %v13792_v42 = vcombine.high %v2637_v39, %v2641_v7  ;;  %v2665_v20 = vld [vmem:[#allocation10 + $0xa60] sm:$0xff]  ;;  %v2662_v1 = vld [vmem:[#allocation10 + $0xa48] sm:$0xff] }
 0x397   :  { %8604 = vmatpush1.bf16.msra.mxu0 %v13751_v54  ;;  %v2645_v54 = vld [vmem:[#allocation10 + $0x9c0] sm:$0xff]  ;;  %v2670_v63 = vld [vmem:[#allocation10 + $0xa88] sm:$0xff] }
 0x398   :  { %8932 = vmatpush1.bf16.msra.mxu1 %v13753_v62  ;;  %8605 = vmatprep.subr.bf16.mxu0 %v13760_v15  ;;  %v2646_v62 = vld [vmem:[#allocation10 + $0x9c8] sm:$0xff]  ;;  %v13800_v25 = vcombine.high %v2645_v54, %v2649_v32  ;;  %v2669_v26 = vld [vmem:[#allocation10 + $0xa80] sm:$0xff] }
 0x399   :  { %8933 = vmatprep.subr.bf16.mxu1 %v13762_v51  ;;  %v2650_v15 = vld [vmem:[#allocation10 + $0x9e8] sm:$0xff]  ;;  %v13791_v51 = vcombine.low %v2637_v39, %v2641_v7  ;;  %v2673_v0 = vld [vmem:[#allocation10 + $0xaa0] sm:$0xff] }
 0x39a   :  { %v13802_v60 = vcombine.high %v2646_v62, %v2650_v15  ;;  %v13801_v61 = vcombine.low %v2646_v62, %v2650_v15  ;;  %v2677_v7 = vld [vmem:[#allocation10 + $0xac0] sm:$0xff]  ;;  %v2678_v58 = vld [vmem:[#allocation10 + $0xac8] sm:$0xff] }
 0x39b   :  { %8606 = vmatpush1.bf16.msra.mxu0 %v13759_v34  ;;  %v2657_v34 = vld [vmem:[#allocation10 + $0xa20] sm:$0xff]  ;;  %v2686_v15 = vld [vmem:[#allocation10 + $0xb08] sm:$0xff] }
 0x39c   :  { %8934 = vmatpush1.bf16.msra.mxu1 %v13761_v9  ;;  %8607 = vmatprep.subr.bf16.mxu0 %v13768_v36  ;;  %v2658_v9 = vld [vmem:[#allocation10 + $0xa28] sm:$0xff]  ;;  %v13799_v36 = vcombine.low %v2645_v54, %v2649_v32  ;;  %v2681_v3 = vld [vmem:[#allocation10 + $0xae0] sm:$0xff] }
 0x39d   :  { %8935 = vmatprep.subr.bf16.mxu1 %v13770_v4  ;;  %v13808_v4 = vcombine.high %v2653_v29, %v2657_v34  ;;  %v13810_v27 = vcombine.high %v2654_v57, %v2658_v9  ;;  %v2685_v32 = vld [vmem:[#allocation10 + $0xb00] sm:$0xff] }
 0x39e   :  { %v2689_v62 = vld [vmem:[#allocation10 + $0xb20] sm:$0xff] }
 0x39f   :  { %8608 = vmatpush1.bf16.msra.mxu0 %v13767_v59  ;;  %v2666_v59 = vld [vmem:[#allocation10 + $0xa68] sm:$0xff] }
 0x3a0   :  { %8936 = vmatpush1.bf16.msra.mxu1 %v13769_v17  ;;  %8609 = vmatprep.subr.bf16.mxu0 %v13776_v28  ;;  %v13807_v17 = vcombine.low %v2653_v29, %v2657_v34  ;;  %v13809_v28 = vcombine.low %v2654_v57, %v2658_v9  ;;  %v13818_v2 = vcombine.high %v2662_v1, %v2666_v59  ;;  %v2693_v34 = vld [vmem:[#allocation10 + $0xb40] sm:$0xff]  ;;  %v2694_v9 = vld [vmem:[#allocation10 + $0xb48] sm:$0xff] }
 0x3a1   :  { %8937 = vmatprep.subr.bf16.mxu1 %v13778_v49  ;;  %v13816_v49 = vcombine.high %v2661_v40, %v2665_v20  ;;  %v2697_v57 = vld [vmem:[#allocation10 + $0xb60] sm:$0xff] }
 0x3a3   :  { %8610 = vmatpush1.bf16.msra.mxu0 %v13775_v45  ;;  %v2674_v45 = vld [vmem:[#allocation10 + $0xaa8] sm:$0xff] }
 0x3a4   :  { %8938 = vmatpush1.bf16.msra.mxu1 %v13777_v12  ;;  %8611 = vmatprep.subr.bf16.mxu0 %v13784_v24  ;;  %v13815_v12 = vcombine.low %v2661_v40, %v2665_v20  ;;  %v13817_v24 = vcombine.low %v2662_v1, %v2666_v59  ;;  %v13826_v39 = vcombine.high %v2670_v63, %v2674_v45  ;;  %v2701_v20 = vld [vmem:[#allocation10 + $0xb80] sm:$0xff]  ;;  %v2702_v59 = vld [vmem:[#allocation10 + $0xb88] sm:$0xff] }
 0x3a5   :  { %8939 = vmatprep.subr.bf16.mxu1 %v13786_v41  ;;  %v13824_v41 = vcombine.high %v2669_v26, %v2673_v0  ;;  %v2705_v1 = vld [vmem:[#allocation10 + $0xba0] sm:$0xff] }
 0x3a7   :  { %8612 = vmatpush1.bf16.msra.mxu0 %v13783_v48  ;;  %v2682_v48 = vld [vmem:[#allocation10 + $0xae8] sm:$0xff] }
 0x3a8   :  { %8940 = vmatpush1.bf16.msra.mxu1 %v13785_v56  ;;  %8613 = vmatprep.subr.bf16.mxu0 %v13792_v42  ;;  %v13823_v56 = vcombine.low %v2669_v26, %v2673_v0  ;;  %v13825_v42 = vcombine.low %v2670_v63, %v2674_v45  ;;  %v13834_v54 = vcombine.high %v2678_v58, %v2682_v48  ;;  %v2709_v0 = vld [vmem:[#allocation10 + $0xbc0] sm:$0xff]  ;;  %v2710_v45 = vld [vmem:[#allocation10 + $0xbc8] sm:$0xff] }
 0x3a9   :  { %8941 = vmatprep.subr.bf16.mxu1 %v13794_v43  ;;  %v13832_v43 = vcombine.high %v2677_v7, %v2681_v3  ;;  %v2713_v63 = vld [vmem:[#allocation10 + $0xbe0] sm:$0xff] }
 0x3ab   :  { %8614 = vmatpush1.bf16.msra.mxu0 %v13791_v51  ;;  %v2690_v51 = vld [vmem:[#allocation10 + $0xb28] sm:$0xff] }
 0x3ac   :  { %8942 = vmatpush1.bf16.msra.mxu1 %v13793_v31  ;;  %8615 = vmatprep.subr.bf16.mxu0 %v13800_v25  ;;  %v13831_v31 = vcombine.low %v2677_v7, %v2681_v3  ;;  %v13833_v25 = vcombine.low %v2678_v58, %v2682_v48  ;;  %v13842_v29 = vcombine.high %v2686_v15, %v2690_v51  ;;  %v2717_v3 = vld [vmem:[#allocation10 + $0xc00] sm:$0xff]  ;;  %v2718_v48 = vld [vmem:[#allocation10 + $0xc08] sm:$0xff] }
 0x3ad   :  { %8943 = vmatprep.subr.bf16.mxu1 %v13802_v60  ;;  %v13840_v60 = vcombine.high %v2685_v32, %v2689_v62  ;;  %v2721_v58 = vld [vmem:[#allocation10 + $0xc20] sm:$0xff] }
 0x3af   :  { %8616 = vmatpush1.bf16.msra.mxu0 %v13799_v36  ;;  %v2698_v36 = vld [vmem:[#allocation10 + $0xb68] sm:$0xff] }
 0x3b0   :  { %8944 = vmatpush1.bf16.msra.mxu1 %v13801_v61  ;;  %8617 = vmatprep.subr.bf16.mxu0 %v13808_v4  ;;  %v13839_v61 = vcombine.low %v2685_v32, %v2689_v62  ;;  %v13841_v4 = vcombine.low %v2686_v15, %v2690_v51  ;;  %v13850_v40 = vcombine.high %v2694_v9, %v2698_v36  ;;  %v2308_v15 = vmax.f32 %v17100_v14, 0.0  ;;  %v2725_v51 = vld [vmem:[#allocation10 + $0xc40] sm:$0xff] }
 0x3b1   :  { %8945 = vmatprep.subr.bf16.mxu1 %v13810_v27  ;;  %v13848_v27 = vcombine.high %v2693_v34, %v2697_v57  ;;  %v13872_v32 = vcombine.high %v2717_v3, %v2721_v58 }
 0x3b3   :  { %8618 = vmatpush1.bf16.msra.mxu0 %v13807_v17  ;;  %v2706_v17 = vld [vmem:[#allocation10 + $0xba8] sm:$0xff] }
 0x3b4   :  { %8946 = vmatpush1.bf16.msra.mxu1 %v13809_v28  ;;  %8619 = vmatprep.subr.bf16.mxu0 %v13816_v49  ;;  %v13847_v28 = vcombine.low %v2693_v34, %v2697_v57  ;;  %v13849_v49 = vcombine.low %v2694_v9, %v2698_v36  ;;  %v13858_v26 = vcombine.high %v2702_v59, %v2706_v17  ;;  %v2733_v36 = vld [vmem:[#allocation10 + $0xc80] sm:$0xff] }
 0x3b5   :  { %8947 = vmatprep.subr.bf16.mxu1 %v13818_v2  ;;  %v13856_v2 = vcombine.high %v2701_v20, %v2705_v1 }
 0x3b7   :  { %8620 = vmatpush1.bf16.msra.mxu0 %v13815_v12  ;;  %v2714_v12 = vld [vmem:[#allocation10 + $0xbe8] sm:$0xff] }
 0x3b8   :  { %8948 = vmatpush1.bf16.msra.mxu1 %v13817_v24  ;;  %8621 = vmatprep.subr.bf16.mxu0 %v13824_v41  ;;  %v13855_v24 = vcombine.low %v2701_v20, %v2705_v1  ;;  %v13857_v41 = vcombine.low %v2702_v59, %v2706_v17  ;;  %v13866_v7 = vcombine.high %v2710_v45, %v2714_v12  ;;  %v2741_v17 = vld [vmem:[#allocation10 + $0xcc0] sm:$0xff] }
 0x3b9   :  { %8949 = vmatprep.subr.bf16.mxu1 %v13826_v39  ;;  %v13864_v39 = vcombine.high %v2709_v0, %v2713_v63 }
 0x3bb   :  { %8622 = vmatpush1.bf16.msra.mxu0 %v13823_v56  ;;  %v2722_v56 = vld [vmem:[#allocation10 + $0xc28] sm:$0xff] }
 0x3bc   :  { %8950 = vmatpush1.bf16.msra.mxu1 %v13825_v42  ;;  %8623 = vmatprep.subr.bf16.mxu0 %v13832_v43  ;;  %v13863_v42 = vcombine.low %v2709_v0, %v2713_v63  ;;  %v13865_v43 = vcombine.low %v2710_v45, %v2714_v12  ;;  %v13874_v62 = vcombine.high %v2718_v48, %v2722_v56  ;;  %v2749_v12 = vld [vmem:[#allocation10 + $0xd00] sm:$0xff] }
 0x3bd   :  { %8951 = vmatprep.subr.bf16.mxu1 %v13834_v54  ;;  %v2305_v54 = vmax.f32 %v17095_v55, 0.0  ;;  %v13873_v57 = vcombine.low %v2718_v48, %v2722_v56  ;;  %v2737_v55 = vld [vmem:[#allocation10 + $0xca0] sm:$0xff] }
 0x3be   :  { %v13888_v1 = vcombine.high %v2733_v36, %v2737_v55  ;;  %v2757_v56 = vld [vmem:[#allocation10 + $0xd40] sm:$0xff] }
 0x3bf   :  { %8624 = vmatpush1.bf16.msra.mxu0 %v13831_v31  ;;  %v2729_v31 = vld [vmem:[#allocation10 + $0xc60] sm:$0xff]  ;;  %v17220_v34 = vpack.c.bf16 %v2305_v54, %v2305_v54  ;;  %v2762_v54 = vld [vmem:[#allocation10 + $0xd68] sm:$0xff] }
 0x3c0   :  { %8952 = vmatpush1.bf16.msra.mxu1 %v13833_v25  ;;  %8625 = vmatprep.subr.bf16.mxu0 %v13840_v60  ;;  %v13871_v25 = vcombine.low %v2717_v3, %v2721_v58  ;;  %v2726_v60 = vld [vmem:[#allocation10 + $0xc48] sm:$0xff]  ;;  %v13880_v9 = vcombine.high %v2725_v51, %v2729_v31 }
 0x3c1   :  { %8953 = vmatprep.subr.bf16.mxu1 %v13842_v29  ;;  %v2730_v29 = vld [vmem:[#allocation10 + $0xc68] sm:$0xff] }
 0x3c2   :  { %v13882_v14 = vcombine.high %v2726_v60, %v2730_v29  ;;  %v13881_v20 = vcombine.low %v2726_v60, %v2730_v29  ;;  %v2766_v60 = vld [vmem:[#allocation10 + $0xd88] sm:$0xff] }
 0x3c3   :  { %8626 = vmatpush1.bf16.msra.mxu0 %v13839_v61  ;;  %v17223_v61 = vpack.c.bf16 %v2308_v15, %v2308_v15  ;;  %v2770_v29 = vld [vmem:[#allocation10 + $0xda8] sm:$0xff] }
 0x3c4   :  { %8954 = vmatpush1.bf16.msra.mxu1 %v13841_v4  ;;  %8627 = vmatprep.subr.bf16.mxu0 %v13848_v27  ;;  %v2734_v4 = vld [vmem:[#allocation10 + $0xc88] sm:$0xff] }
 0x3c5   :  { %8955 = vmatprep.subr.bf16.mxu1 %v13850_v40  ;;  %v2738_v27 = vld [vmem:[#allocation10 + $0xca8] sm:$0xff]  ;;  %v13879_v40 = vcombine.low %v2725_v51, %v2729_v31  ;;  %v2765_v31 = vld [vmem:[#allocation10 + $0xd80] sm:$0xff] }
 0x3c6   :  { %v13890_v59 = vcombine.high %v2734_v4, %v2738_v27  ;;  %v13889_v0 = vcombine.low %v2734_v4, %v2738_v27  ;;  %v2777_v4 = vld [vmem:[#allocation10 + $0xde0] sm:$0xff]  ;;  %v2774_v27 = vld [vmem:[#allocation10 + $0xdc8] sm:$0xff] }
 0x3c7   :  { %8628 = vmatpush1.bf16.msra.mxu0 %v13847_v28  ;;  %v2745_v28 = vld [vmem:[#allocation10 + $0xce0] sm:$0xff] }
 0x3c8   :  { %8956 = vmatpush1.bf16.msra.mxu1 %v13849_v49  ;;  %8629 = vmatprep.subr.bf16.mxu0 %v13856_v2  ;;  %v2742_v49 = vld [vmem:[#allocation10 + $0xcc8] sm:$0xff]  ;;  %v13896_v63 = vcombine.high %v2741_v17, %v2745_v28 }
 0x3c9   :  { %8957 = vmatprep.subr.bf16.mxu1 %v13858_v26  ;;  %v2746_v2 = vld [vmem:[#allocation10 + $0xce8] sm:$0xff]  ;;  %v13887_v26 = vcombine.low %v2733_v36, %v2737_v55  ;;  %v13922_v55 = vcombine.high %v2766_v60, %v2770_v29 }
 0x3ca   :  { %v13898_v45 = vcombine.high %v2742_v49, %v2746_v2  ;;  %v13897_v3 = vcombine.low %v2742_v49, %v2746_v2  ;;  %v2785_v49 = vld [vmem:[#allocation10 + $0xe20] sm:$0xff]  ;;  %v2782_v2 = vld [vmem:[#allocation10 + $0xe08] sm:$0xff] }
 0x3cb   :  { %8630 = vmatpush1.bf16.msra.mxu0 %v13855_v24  ;;  %v2753_v24 = vld [vmem:[#allocation10 + $0xd20] sm:$0xff] }
 0x3cc   :  { %8958 = vmatpush1.bf16.msra.mxu1 %v13857_v41  ;;  %8631 = vmatprep.subr.bf16.mxu0 %v13864_v39  ;;  %v2750_v41 = vld [vmem:[#allocation10 + $0xd08] sm:$0xff]  ;;  %v13904_v58 = vcombine.high %v2749_v12, %v2753_v24 }
 0x3cd   :  { %8959 = vmatprep.subr.bf16.mxu1 %v13866_v7  ;;  %v2754_v39 = vld [vmem:[#allocation10 + $0xd28] sm:$0xff]  ;;  %v13895_v7 = vcombine.low %v2741_v17, %v2745_v28  ;;  %v2781_v28 = vld [vmem:[#allocation10 + $0xe00] sm:$0xff] }
 0x3ce   :  { %v13906_v48 = vcombine.high %v2750_v41, %v2754_v39 }
 0x3cf   :  { %8632 = vmatpush1.bf16.msra.mxu0 %v13863_v42  ;;  %v2761_v42 = vld [vmem:[#allocation10 + $0xd60] sm:$0xff] }
 0x3d0   :  { %8960 = vmatpush1.bf16.msra.mxu1 %v13865_v43  ;;  %8642 = vmatprep.subr.bf16.mxu0 %v13872_v32  ;;  %v2758_v43 = vld [vmem:[#allocation10 + $0xd48] sm:$0xff]  ;;  %v13903_v32 = vcombine.low %v2749_v12, %v2753_v24  ;;  %v13912_v15 = vcombine.high %v2757_v56, %v2761_v42  ;;  %v2789_v24 = vld [vmem:[#allocation10 + $0xe40] sm:$0xff] }
 0x3d1   :  { %8970 = vmatprep.subr.bf16.mxu1 %v13874_v62  ;;  %v13905_v62 = vcombine.low %v2750_v41, %v2754_v39  ;;  %v13914_v51 = vcombine.high %v2758_v43, %v2762_v54  ;;  %v2793_v41 = vld [vmem:[#allocation10 + $0xe60] sm:$0xff]  ;;  %v2790_v39 = vld [vmem:[#allocation10 + $0xe48] sm:$0xff] }
 0x3d2   :  { %8634 = vmatmul.mubr.bf16.vlgmr.msra.gmra.mrb[12].mxu0 %v17220_v34 }
 0x3d3   :  { %8962 = vmatmul.mubr.bf16.vlgmr.msra.gmra.mrb[20].mxu1 %v17220_v34  ;;  %8643 = vmatpush1.bf16.msra.mxu0 %v13871_v25  ;;  %v2769_v25 = vld [vmem:[#allocation10 + $0xda0] sm:$0xff] }
 0x3d4   :  { %8674 = vmatprep.mubr.bf16.mxu0 %v17223_v61  ;;  %8971 = vmatpush1.bf16.msra.mxu1 %v13873_v57  ;;  %v13911_v57 = vcombine.low %v2757_v56, %v2761_v42  ;;  %v13920_v36 = vcombine.high %v2765_v31, %v2769_v25  ;;  %v2797_v42 = vld [vmem:[#allocation10 + $0xe80] sm:$0xff] }
 0x3d5   :  { %9002 = vmatprep.mubr.bf16.mxu1 %v17223_v61  ;;  %8644 = vmatprep.subr.bf16.mxu0 %v13880_v9  ;;  %v13913_v9 = vcombine.low %v2758_v43, %v2762_v54  ;;  %v2801_v43 = vld [vmem:[#allocation10 + $0xea0] sm:$0xff]  ;;  %v2798_v54 = vld [vmem:[#allocation10 + $0xe88] sm:$0xff] }
 0x3d6   :  { %8972 = vmatprep.subr.bf16.mxu1 %v13882_v14  ;;  %v2773_v14 = vld [vmem:[#allocation10 + $0xdc0] sm:$0xff] }
 0x3d7   :  { %8645 = vmatpush1.bf16.msra.mxu0 %v13879_v40  ;;  %v2778_v40 = vld [vmem:[#allocation10 + $0xde8] sm:$0xff] }
 0x3d8   :  { %8973 = vmatpush1.bf16.msra.mxu1 %v13881_v20  ;;  %8646 = vmatprep.subr.bf16.mxu0 %v13888_v1  ;;  %v13919_v20 = vcombine.low %v2765_v31, %v2769_v25  ;;  %v13921_v1 = vcombine.low %v2766_v60, %v2770_v29  ;;  %v13930_v17 = vcombine.high %v2774_v27, %v2778_v40  ;;  %v2805_v25 = vld [vmem:[#allocation10 + $0xec0] sm:$0xff]  ;;  %v2806_v29 = vld [vmem:[#allocation10 + $0xec8] sm:$0xff] }
 0x3d9   :  { %8974 = vmatprep.subr.bf16.mxu1 %v13890_v59  ;;  %v13928_v59 = vcombine.high %v2773_v14, %v2777_v4  ;;  %v2809_v60 = vld [vmem:[#allocation10 + $0xee0] sm:$0xff] }
 0x3db   :  { %8647 = vmatpush1.bf16.msra.mxu0 %v13887_v26  ;;  %v2786_v26 = vld [vmem:[#allocation10 + $0xe28] sm:$0xff] }
 0x3dc   :  { %8975 = vmatpush1.bf16.msra.mxu1 %v13889_v0  ;;  %8648 = vmatprep.subr.bf16.mxu0 %v13896_v63  ;;  %v13927_v0 = vcombine.low %v2773_v14, %v2777_v4  ;;  %v13929_v63 = vcombine.low %v2774_v27, %v2778_v40  ;;  %v13938_v12 = vcombine.high %v2782_v2, %v2786_v26  ;;  %v2813_v4 = vld [vmem:[#allocation10 + $0xf00] sm:$0xff]  ;;  %v2814_v40 = vld [vmem:[#allocation10 + $0xf08] sm:$0xff] }
 0x3dd   :  { %8976 = vmatprep.subr.bf16.mxu1 %v13898_v45  ;;  %v13936_v45 = vcombine.high %v2781_v28, %v2785_v49  ;;  %v2817_v27 = vld [vmem:[#allocation10 + $0xf20] sm:$0xff] }
 0x3df   :  { %8649 = vmatpush1.bf16.msra.mxu0 %v13895_v7  ;;  %v2794_v7 = vld [vmem:[#allocation10 + $0xe68] sm:$0xff] }
 0x3e0   :  { %8977 = vmatpush1.bf16.msra.mxu1 %v13897_v3  ;;  %8650 = vmatprep.subr.bf16.mxu0 %v13904_v58  ;;  %v13935_v3 = vcombine.low %v2781_v28, %v2785_v49  ;;  %v13937_v58 = vcombine.low %v2782_v2, %v2786_v26  ;;  %v13946_v56 = vcombine.high %v2790_v39, %v2794_v7  ;;  %v2821_v49 = vld [vmem:[#allocation10 + $0xf40] sm:$0xff]  ;;  %v2822_v26 = vld [vmem:[#allocation10 + $0xf48] sm:$0xff] }
 0x3e1   :  { %8978 = vmatprep.subr.bf16.mxu1 %v13906_v48  ;;  %v13944_v48 = vcombine.high %v2789_v24, %v2793_v41  ;;  %v2825_v2 = vld [vmem:[#allocation10 + $0xf60] sm:$0xff] }
 0x3e3   :  { %8651 = vmatpush1.bf16.msra.mxu0 %v13903_v32  ;;  %v2802_v32 = vld [vmem:[#allocation10 + $0xea8] sm:$0xff] }
 0x3e4   :  { %8979 = vmatpush1.bf16.msra.mxu1 %v13905_v62  ;;  %8652 = vmatprep.subr.bf16.mxu0 %v13912_v15  ;;  %v13943_v62 = vcombine.low %v2789_v24, %v2793_v41  ;;  %v13945_v15 = vcombine.low %v2790_v39, %v2794_v7  ;;  %v13954_v31 = vcombine.high %v2798_v54, %v2802_v32  ;;  %v2829_v41 = vld [vmem:[#allocation10 + $0xf80] sm:$0xff]  ;;  %v2830_v7 = vld [vmem:[#allocation10 + $0xf88] sm:$0xff] }
 0x3e5   :  { %8980 = vmatprep.subr.bf16.mxu1 %v13914_v51  ;;  %v13952_v51 = vcombine.high %v2797_v42, %v2801_v43  ;;  %v2833_v39 = vld [vmem:[#allocation10 + $0xfa0] sm:$0xff] }
 0x3e7   :  { %8653 = vmatpush1.bf16.msra.mxu0 %v13911_v57  ;;  %v2810_v57 = vld [vmem:[#allocation10 + $0xee8] sm:$0xff] }
 0x3e8   :  { %8981 = vmatpush1.bf16.msra.mxu1 %v13913_v9  ;;  %8654 = vmatprep.subr.bf16.mxu0 %v13920_v36  ;;  %v13951_v9 = vcombine.low %v2797_v42, %v2801_v43  ;;  %v13953_v36 = vcombine.low %v2798_v54, %v2802_v32  ;;  %v13962_v14 = vcombine.high %v2806_v29, %v2810_v57  ;;  %v2837_v43 = vld [vmem:[#allocation10 + $0xfc0] sm:$0xff]  ;;  %v2838_v32 = vld [vmem:[#allocation10 + $0xfc8] sm:$0xff] }
 0x3e9   :  { %8982 = vmatprep.subr.bf16.mxu1 %v13922_v55  ;;  %v13960_v55 = vcombine.high %v2805_v25, %v2809_v60  ;;  %v2841_v54 = vld [vmem:[#allocation10 + $0xfe0] sm:$0xff] }
 0x3eb   :  { %8655 = vmatpush1.bf16.msra.mxu0 %v13919_v20  ;;  %v2818_v20 = vld [vmem:[#allocation10 + $0xf28] sm:$0xff] }
 0x3ec   :  { %8983 = vmatpush1.bf16.msra.mxu1 %v13921_v1  ;;  %8656 = vmatprep.subr.bf16.mxu0 %v13928_v59  ;;  %v13959_v1 = vcombine.low %v2805_v25, %v2809_v60  ;;  %v13961_v59 = vcombine.low %v2806_v29, %v2810_v57  ;;  %v13970_v28 = vcombine.high %v2814_v40, %v2818_v20  ;;  %v2845_v60 = vld [vmem:[#allocation10 + $0x1000] sm:$0xff]  ;;  %v2846_v57 = vld [vmem:[#allocation10 + $0x1008] sm:$0xff] }
 0x3ed   :  { %8984 = vmatprep.subr.bf16.mxu1 %v13930_v17  ;;  %v13968_v17 = vcombine.high %v2813_v4, %v2817_v27  ;;  %v2849_v29 = vld [vmem:[#allocation10 + $0x1020] sm:$0xff] }
 0x3ef   :  { %8657 = vmatpush1.bf16.msra.mxu0 %v13927_v0  ;;  %v2826_v0 = vld [vmem:[#allocation10 + $0xf68] sm:$0xff] }
 0x3f0   :  { %8985 = vmatpush1.bf16.msra.mxu1 %v13929_v63  ;;  %8658 = vmatprep.subr.bf16.mxu0 %v13936_v45  ;;  %v13967_v63 = vcombine.low %v2813_v4, %v2817_v27  ;;  %v13969_v45 = vcombine.low %v2814_v40, %v2818_v20  ;;  %v13978_v24 = vcombine.high %v2822_v26, %v2826_v0  ;;  %v2310_v40 = vmax.f32 %v17183_v22, 0.0  ;;  %v2853_v20 = vld [vmem:[#allocation10 + $0x1040] sm:$0xff] }
 0x3f1   :  { %8986 = vmatprep.subr.bf16.mxu1 %v13938_v12  ;;  %v13976_v12 = vcombine.high %v2821_v49, %v2825_v2  ;;  %v14000_v4 = vcombine.high %v2845_v60, %v2849_v29 }
 0x3f3   :  { %8659 = vmatpush1.bf16.msra.mxu0 %v13935_v3  ;;  %v2834_v3 = vld [vmem:[#allocation10 + $0xfa8] sm:$0xff] }
 0x3f4   :  { %8987 = vmatpush1.bf16.msra.mxu1 %v13937_v58  ;;  %8660 = vmatprep.subr.bf16.mxu0 %v13944_v48  ;;  %v13975_v58 = vcombine.low %v2821_v49, %v2825_v2  ;;  %v13977_v48 = vcombine.low %v2822_v26, %v2826_v0  ;;  %v13986_v42 = vcombine.high %v2830_v7, %v2834_v3  ;;  %v2861_v0 = vld [vmem:[#allocation10 + $0x1080] sm:$0xff] }
 0x3f5   :  { %8988 = vmatprep.subr.bf16.mxu1 %v13946_v56  ;;  %v13984_v56 = vcombine.high %v2829_v41, %v2833_v39 }
 0x3f7   :  { %8661 = vmatpush1.bf16.msra.mxu0 %v13943_v62  ;;  %v2842_v62 = vld [vmem:[#allocation10 + $0xfe8] sm:$0xff] }
 0x3f8   :  { %8989 = vmatpush1.bf16.msra.mxu1 %v13945_v15  ;;  %8662 = vmatprep.subr.bf16.mxu0 %v13952_v51  ;;  %v13983_v15 = vcombine.low %v2829_v41, %v2833_v39  ;;  %v13985_v51 = vcombine.low %v2830_v7, %v2834_v3  ;;  %v13994_v25 = vcombine.high %v2838_v32, %v2842_v62  ;;  %v2869_v3 = vld [vmem:[#allocation10 + $0x10c0] sm:$0xff] }
 0x3f9   :  { %8990 = vmatprep.subr.bf16.mxu1 %v13954_v31  ;;  %v13992_v31 = vcombine.high %v2837_v43, %v2841_v54 }
 0x3fb   :  { %8663 = vmatpush1.bf16.msra.mxu0 %v13951_v9  ;;  %v2850_v9 = vld [vmem:[#allocation10 + $0x1028] sm:$0xff] }
 0x3fc   :  { %8991 = vmatpush1.bf16.msra.mxu1 %v13953_v36  ;;  %8664 = vmatprep.subr.bf16.mxu0 %v13960_v55  ;;  %v13991_v36 = vcombine.low %v2837_v43, %v2841_v54  ;;  %v13993_v55 = vcombine.low %v2838_v32, %v2842_v62  ;;  %v14002_v27 = vcombine.high %v2846_v57, %v2850_v9  ;;  %v2877_v62 = vld [vmem:[#allocation10 + $0x1100] sm:$0xff] }
 0x3fd   :  { %8992 = vmatprep.subr.bf16.mxu1 %v13962_v14  ;;  %v2307_v14 = vmax.f32 %v17110_v37, 0.0  ;;  %v14001_v2 = vcombine.low %v2846_v57, %v2850_v9  ;;  %v2865_v37 = vld [vmem:[#allocation10 + $0x10a0] sm:$0xff] }
 0x3fe   :  { %v14016_v39 = vcombine.high %v2861_v0, %v2865_v37  ;;  %v2885_v9 = vld [vmem:[#allocation10 + $0x1140] sm:$0xff] }
 0x3ff   :  { %8665 = vmatpush1.bf16.msra.mxu0 %v13959_v1  ;;  %v2857_v1 = vld [vmem:[#allocation10 + $0x1060] sm:$0xff]  ;;  %v17230_v49 = vpack.c.bf16 %v2307_v14, %v2307_v14  ;;  %v2890_v14 = vld [vmem:[#allocation10 + $0x1168] sm:$0xff] }
 0x400   :  { %8993 = vmatpush1.bf16.msra.mxu1 %v13961_v59  ;;  %8666 = vmatprep.subr.bf16.mxu0 %v13968_v17  ;;  %v13999_v59 = vcombine.low %v2845_v60, %v2849_v29  ;;  %v2854_v17 = vld [vmem:[#allocation10 + $0x1048] sm:$0xff]  ;;  %v14008_v26 = vcombine.high %v2853_v20, %v2857_v1 }
 0x401   :  { %8994 = vmatprep.subr.bf16.mxu1 %v13970_v28  ;;  %v2858_v28 = vld [vmem:[#allocation10 + $0x1068] sm:$0xff] }
 0x402   :  { %v14010_v22 = vcombine.high %v2854_v17, %v2858_v28  ;;  %v14009_v41 = vcombine.low %v2854_v17, %v2858_v28  ;;  %v2894_v17 = vld [vmem:[#allocation10 + $0x1188] sm:$0xff] }
 0x403   :  { %8667 = vmatpush1.bf16.msra.mxu0 %v13967_v63  ;;  %v17233_v63 = vpack.c.bf16 %v2310_v40, %v2310_v40  ;;  %v2898_v28 = vld [vmem:[#allocation10 + $0x11a8] sm:$0xff] }
 0x404   :  { %8995 = vmatpush1.bf16.msra.mxu1 %v13969_v45  ;;  %8668 = vmatprep.subr.bf16.mxu0 %v13976_v12  ;;  %v2862_v45 = vld [vmem:[#allocation10 + $0x1088] sm:$0xff] }
 0x405   :  { %8996 = vmatprep.subr.bf16.mxu1 %v13978_v24  ;;  %v2866_v12 = vld [vmem:[#allocation10 + $0x10a8] sm:$0xff]  ;;  %v14007_v24 = vcombine.low %v2853_v20, %v2857_v1  ;;  %v2893_v1 = vld [vmem:[#allocation10 + $0x1180] sm:$0xff] }
 0x406   :  { %v14018_v7 = vcombine.high %v2862_v45, %v2866_v12  ;;  %v14017_v43 = vcombine.low %v2862_v45, %v2866_v12  ;;  %v2905_v45 = vld [vmem:[#allocation10 + $0x11e0] sm:$0xff]  ;;  %v2902_v12 = vld [vmem:[#allocation10 + $0x11c8] sm:$0xff] }
 0x407   :  { %8669 = vmatpush1.bf16.msra.mxu0 %v13975_v58  ;;  %v2873_v58 = vld [vmem:[#allocation10 + $0x10e0] sm:$0xff] }
 0x408   :  { %8997 = vmatpush1.bf16.msra.mxu1 %v13977_v48  ;;  %8670 = vmatprep.subr.bf16.mxu0 %v13984_v56  ;;  %v2870_v48 = vld [vmem:[#allocation10 + $0x10c8] sm:$0xff]  ;;  %v14024_v54 = vcombine.high %v2869_v3, %v2873_v58 }
 0x409   :  { %8998 = vmatprep.subr.bf16.mxu1 %v13986_v42  ;;  %v2874_v56 = vld [vmem:[#allocation10 + $0x10e8] sm:$0xff]  ;;  %v14015_v42 = vcombine.low %v2861_v0, %v2865_v37  ;;  %v14050_v37 = vcombine.high %v2894_v17, %v2898_v28 }
 0x40a   :  { %v14026_v32 = vcombine.high %v2870_v48, %v2874_v56  ;;  %v14025_v60 = vcombine.low %v2870_v48, %v2874_v56  ;;  %v2913_v48 = vld [vmem:[#allocation10 + $0x1220] sm:$0xff]  ;;  %v2910_v56 = vld [vmem:[#allocation10 + $0x1208] sm:$0xff] }
 0x40b   :  { %8671 = vmatpush1.bf16.msra.mxu0 %v13983_v15  ;;  %v2881_v15 = vld [vmem:[#allocation10 + $0x1120] sm:$0xff] }
 0x40c   :  { %8999 = vmatpush1.bf16.msra.mxu1 %v13985_v51  ;;  %8672 = vmatprep.subr.bf16.mxu0 %v13992_v31  ;;  %v2878_v51 = vld [vmem:[#allocation10 + $0x1108] sm:$0xff]  ;;  %v14032_v29 = vcombine.high %v2877_v62, %v2881_v15 }
 0x40d   :  { %9000 = vmatprep.subr.bf16.mxu1 %v13994_v25  ;;  %v2882_v31 = vld [vmem:[#allocation10 + $0x1128] sm:$0xff]  ;;  %v14023_v25 = vcombine.low %v2869_v3, %v2873_v58  ;;  %v2909_v58 = vld [vmem:[#allocation10 + $0x1200] sm:$0xff] }
 0x40e   :  { %v14034_v57 = vcombine.high %v2878_v51, %v2882_v31 }
 0x40f   :  { %8673 = vmatpush1.bf16.msra.mxu0 %v13991_v36  ;;  %v2889_v36 = vld [vmem:[#allocation10 + $0x1160] sm:$0xff] }
 0x410   :  { %9001 = vmatpush1.bf16.msra.mxu1 %v13993_v55  ;;  %8683 = vmatprep.subr.bf16.mxu0 %v14000_v4  ;;  %v2886_v55 = vld [vmem:[#allocation10 + $0x1148] sm:$0xff]  ;;  %v14031_v4 = vcombine.low %v2877_v62, %v2881_v15  ;;  %v14040_v40 = vcombine.high %v2885_v9, %v2889_v36  ;;  %v2917_v15 = vld [vmem:[#allocation10 + $0x1240] sm:$0xff] }
 0x411   :  { %9011 = vmatprep.subr.bf16.mxu1 %v14002_v27  ;;  %v14033_v27 = vcombine.low %v2878_v51, %v2882_v31  ;;  %v14042_v20 = vcombine.high %v2886_v55, %v2890_v14  ;;  %v2921_v51 = vld [vmem:[#allocation10 + $0x1260] sm:$0xff]  ;;  %v2918_v31 = vld [vmem:[#allocation10 + $0x1248] sm:$0xff] }
 0x412   :  { %8675 = vmatmul.mubr.bf16.vlgmr.msra.gmra.mrb[12].mxu0 %v17230_v49 }
 0x413   :  { %9003 = vmatmul.mubr.bf16.vlgmr.msra.gmra.mrb[20].mxu1 %v17230_v49  ;;  %8684 = vmatpush1.bf16.msra.mxu0 %v13999_v59  ;;  %v2897_v59 = vld [vmem:[#allocation10 + $0x11a0] sm:$0xff] }
 0x414   :  { %8715 = vmatprep.mubr.bf16.mxu0 %v17233_v63  ;;  %9012 = vmatpush1.bf16.msra.mxu1 %v14001_v2  ;;  %v14039_v2 = vcombine.low %v2885_v9, %v2889_v36  ;;  %v14048_v0 = vcombine.high %v2893_v1, %v2897_v59  ;;  %v2925_v36 = vld [vmem:[#allocation10 + $0x1280] sm:$0xff] }
 0x415   :  { %9043 = vmatprep.mubr.bf16.mxu1 %v17233_v63  ;;  %8685 = vmatprep.subr.bf16.mxu0 %v14008_v26  ;;  %v14041_v26 = vcombine.low %v2886_v55, %v2890_v14  ;;  %v2929_v55 = vld [vmem:[#allocation10 + $0x12a0] sm:$0xff]  ;;  %v2926_v14 = vld [vmem:[#allocation10 + $0x1288] sm:$0xff] }
 0x416   :  { %9013 = vmatprep.subr.bf16.mxu1 %v14010_v22  ;;  %v2901_v22 = vld [vmem:[#allocation10 + $0x11c0] sm:$0xff] }
 0x417   :  { %8686 = vmatpush1.bf16.msra.mxu0 %v14007_v24  ;;  %v2906_v24 = vld [vmem:[#allocation10 + $0x11e8] sm:$0xff] }
 0x418   :  { %9014 = vmatpush1.bf16.msra.mxu1 %v14009_v41  ;;  %8687 = vmatprep.subr.bf16.mxu0 %v14016_v39  ;;  %v14047_v41 = vcombine.low %v2893_v1, %v2897_v59  ;;  %v14049_v39 = vcombine.low %v2894_v17, %v2898_v28  ;;  %v14058_v3 = vcombine.high %v2902_v12, %v2906_v24  ;;  %v2933_v59 = vld [vmem:[#allocation10 + $0x12c0] sm:$0xff]  ;;  %v2934_v28 = vld [vmem:[#allocation10 + $0x12c8] sm:$0xff] }
 0x419   :  { %9015 = vmatprep.subr.bf16.mxu1 %v14018_v7  ;;  %v14056_v7 = vcombine.high %v2901_v22, %v2905_v45  ;;  %v2937_v17 = vld [vmem:[#allocation10 + $0x12e0] sm:$0xff] }
 0x41b   :  { %8688 = vmatpush1.bf16.msra.mxu0 %v14015_v42  ;;  %v2914_v42 = vld [vmem:[#allocation10 + $0x1228] sm:$0xff] }
 0x41c   :  { %9016 = vmatpush1.bf16.msra.mxu1 %v14017_v43  ;;  %8689 = vmatprep.subr.bf16.mxu0 %v14024_v54  ;;  %v14055_v43 = vcombine.low %v2901_v22, %v2905_v45  ;;  %v14057_v54 = vcombine.low %v2902_v12, %v2906_v24  ;;  %v14066_v62 = vcombine.high %v2910_v56, %v2914_v42  ;;  %v2941_v45 = vld [vmem:[#allocation10 + $0x1300] sm:$0xff]  ;;  %v2942_v24 = vld [vmem:[#allocation10 + $0x1308] sm:$0xff] }
 0x41d   :  { %9017 = vmatprep.subr.bf16.mxu1 %v14026_v32  ;;  %v14064_v32 = vcombine.high %v2909_v58, %v2913_v48  ;;  %v2945_v12 = vld [vmem:[#allocation10 + $0x1320] sm:$0xff] }
 0x41f   :  { %8690 = vmatpush1.bf16.msra.mxu0 %v14023_v25  ;;  %v2922_v25 = vld [vmem:[#allocation10 + $0x1268] sm:$0xff] }
 0x420   :  { %9018 = vmatpush1.bf16.msra.mxu1 %v14025_v60  ;;  %8691 = vmatprep.subr.bf16.mxu0 %v14032_v29  ;;  %v14063_v60 = vcombine.low %v2909_v58, %v2913_v48  ;;  %v14065_v29 = vcombine.low %v2910_v56, %v2914_v42  ;;  %v14074_v9 = vcombine.high %v2918_v31, %v2922_v25  ;;  %v2949_v48 = vld [vmem:[#allocation10 + $0x1340] sm:$0xff]  ;;  %v2950_v42 = vld [vmem:[#allocation10 + $0x1348] sm:$0xff] }
 0x421   :  { %9019 = vmatprep.subr.bf16.mxu1 %v14034_v57  ;;  %v14072_v57 = vcombine.high %v2917_v15, %v2921_v51  ;;  %v2953_v56 = vld [vmem:[#allocation10 + $0x1360] sm:$0xff] }
 0x423   :  { %8692 = vmatpush1.bf16.msra.mxu0 %v14031_v4  ;;  %v2930_v4 = vld [vmem:[#allocation10 + $0x12a8] sm:$0xff] }
 0x424   :  { %9020 = vmatpush1.bf16.msra.mxu1 %v14033_v27  ;;  %8693 = vmatprep.subr.bf16.mxu0 %v14040_v40  ;;  %v14071_v27 = vcombine.low %v2917_v15, %v2921_v51  ;;  %v14073_v40 = vcombine.low %v2918_v31, %v2922_v25  ;;  %v14082_v1 = vcombine.high %v2926_v14, %v2930_v4  ;;  %v2957_v51 = vld [vmem:[#allocation10 + $0x1380] sm:$0xff]  ;;  %v2958_v25 = vld [vmem:[#allocation10 + $0x1388] sm:$0xff] }
 0x425   :  { %9021 = vmatprep.subr.bf16.mxu1 %v14042_v20  ;;  %v14080_v20 = vcombine.high %v2925_v36, %v2929_v55  ;;  %v2961_v31 = vld [vmem:[#allocation10 + $0x13a0] sm:$0xff] }
 0x427   :  { %8694 = vmatpush1.bf16.msra.mxu0 %v14039_v2  ;;  %v2938_v2 = vld [vmem:[#allocation10 + $0x12e8] sm:$0xff] }
 0x428   :  { %9022 = vmatpush1.bf16.msra.mxu1 %v14041_v26  ;;  %8695 = vmatprep.subr.bf16.mxu0 %v14048_v0  ;;  %v14079_v26 = vcombine.low %v2925_v36, %v2929_v55  ;;  %v14081_v0 = vcombine.low %v2926_v14, %v2930_v4  ;;  %v14090_v22 = vcombine.high %v2934_v28, %v2938_v2  ;;  %v2965_v55 = vld [vmem:[#allocation10 + $0x13c0] sm:$0xff]  ;;  %v2966_v4 = vld [vmem:[#allocation10 + $0x13c8] sm:$0xff] }
 0x429   :  { %9023 = vmatprep.subr.bf16.mxu1 %v14050_v37  ;;  %v14088_v37 = vcombine.high %v2933_v59, %v2937_v17  ;;  %v2969_v14 = vld [vmem:[#allocation10 + $0x13e0] sm:$0xff] }
 0x42b   :  { %8696 = vmatpush1.bf16.msra.mxu0 %v14047_v41  ;;  %v2946_v41 = vld [vmem:[#allocation10 + $0x1328] sm:$0xff] }
 0x42c   :  { %9024 = vmatpush1.bf16.msra.mxu1 %v14049_v39  ;;  %8697 = vmatprep.subr.bf16.mxu0 %v14056_v7  ;;  %v14087_v39 = vcombine.low %v2933_v59, %v2937_v17  ;;  %v14089_v7 = vcombine.low %v2934_v28, %v2938_v2  ;;  %v14098_v58 = vcombine.high %v2942_v24, %v2946_v41  ;;  %v2973_v17 = vld [vmem:[#allocation10 + $0x1400] sm:$0xff]  ;;  %v2974_v2 = vld [vmem:[#allocation10 + $0x1408] sm:$0xff] }
 0x42d   :  { %9025 = vmatprep.subr.bf16.mxu1 %v14058_v3  ;;  %v14096_v3 = vcombine.high %v2941_v45, %v2945_v12  ;;  %v2977_v28 = vld [vmem:[#allocation10 + $0x1420] sm:$0xff] }
 0x42f   :  { %8698 = vmatpush1.bf16.msra.mxu0 %v14055_v43  ;;  %v2954_v43 = vld [vmem:[#allocation10 + $0x1368] sm:$0xff] }
 0x430   :  { %9026 = vmatpush1.bf16.msra.mxu1 %v14057_v54  ;;  %8699 = vmatprep.subr.bf16.mxu0 %v14064_v32  ;;  %v14095_v54 = vcombine.low %v2941_v45, %v2945_v12  ;;  %v14097_v32 = vcombine.low %v2942_v24, %v2946_v41  ;;  %v14106_v15 = vcombine.high %v2950_v42, %v2954_v43  ;;  %v2312_v24 = vmax.f32 %v17191_v50, 0.0  ;;  %v2981_v41 = vld [vmem:[#allocation10 + $0x1440] sm:$0xff] }
 0x431   :  { %9027 = vmatprep.subr.bf16.mxu1 %v14066_v62  ;;  %v14104_v62 = vcombine.high %v2949_v48, %v2953_v56  ;;  %v14128_v45 = vcombine.high %v2973_v17, %v2977_v28 }
 0x433   :  { %8700 = vmatpush1.bf16.msra.mxu0 %v14063_v60  ;;  %v2962_v60 = vld [vmem:[#allocation10 + $0x13a8] sm:$0xff] }
 0x434   :  { %9028 = vmatpush1.bf16.msra.mxu1 %v14065_v29  ;;  %8701 = vmatprep.subr.bf16.mxu0 %v14072_v57  ;;  %v14103_v29 = vcombine.low %v2949_v48, %v2953_v56  ;;  %v14105_v57 = vcombine.low %v2950_v42, %v2954_v43  ;;  %v14114_v36 = vcombine.high %v2958_v25, %v2962_v60  ;;  %v2989_v43 = vld [vmem:[#allocation10 + $0x1480] sm:$0xff] }
 0x435   :  { %9029 = vmatprep.subr.bf16.mxu1 %v14074_v9  ;;  %v14112_v9 = vcombine.high %v2957_v51, %v2961_v31 }
 0x437   :  { %8702 = vmatpush1.bf16.msra.mxu0 %v14071_v27  ;;  %v2970_v27 = vld [vmem:[#allocation10 + $0x13e8] sm:$0xff] }
 0x438   :  { %9030 = vmatpush1.bf16.msra.mxu1 %v14073_v40  ;;  %8703 = vmatprep.subr.bf16.mxu0 %v14080_v20  ;;  %v14111_v40 = vcombine.low %v2957_v51, %v2961_v31  ;;  %v14113_v20 = vcombine.low %v2958_v25, %v2962_v60  ;;  %v14122_v59 = vcombine.high %v2966_v4, %v2970_v27  ;;  %v2997_v60 = vld [vmem:[#allocation10 + $0x14c0] sm:$0xff] }
 0x439   :  { %9031 = vmatprep.subr.bf16.mxu1 %v14082_v1  ;;  %v14120_v1 = vcombine.high %v2965_v55, %v2969_v14 }
 0x43b   :  { %8704 = vmatpush1.bf16.msra.mxu0 %v14079_v26  ;;  %v2978_v26 = vld [vmem:[#allocation10 + $0x1428] sm:$0xff] }
 0x43c   :  { %9032 = vmatpush1.bf16.msra.mxu1 %v14081_v0  ;;  %8705 = vmatprep.subr.bf16.mxu0 %v14088_v37  ;;  %v14119_v0 = vcombine.low %v2965_v55, %v2969_v14  ;;  %v14121_v37 = vcombine.low %v2966_v4, %v2970_v27  ;;  %v14130_v12 = vcombine.high %v2974_v2, %v2978_v26  ;;  %v3005_v27 = vld [vmem:[#allocation10 + $0x1500] sm:$0xff] }
 0x43d   :  { %9033 = vmatprep.subr.bf16.mxu1 %v14090_v22  ;;  %v2309_v22 = vmax.f32 %v17185_v23, 0.0  ;;  %v14129_v56 = vcombine.low %v2974_v2, %v2978_v26  ;;  %v2993_v23 = vld [vmem:[#allocation10 + $0x14a0] sm:$0xff] }
 0x43e   :  { %v14144_v31 = vcombine.high %v2989_v43, %v2993_v23  ;;  %v3013_v26 = vld [vmem:[#allocation10 + $0x1540] sm:$0xff] }
 0x43f   :  { %8706 = vmatpush1.bf16.msra.mxu0 %v14087_v39  ;;  %v2985_v39 = vld [vmem:[#allocation10 + $0x1460] sm:$0xff]  ;;  %v17240_v48 = vpack.c.bf16 %v2309_v22, %v2309_v22  ;;  %v3018_v22 = vld [vmem:[#allocation10 + $0x1568] sm:$0xff] }
 0x440   :  { %9034 = vmatpush1.bf16.msra.mxu1 %v14089_v7  ;;  %8707 = vmatprep.subr.bf16.mxu0 %v14096_v3  ;;  %v14127_v7 = vcombine.low %v2973_v17, %v2977_v28  ;;  %v2982_v3 = vld [vmem:[#allocation10 + $0x1448] sm:$0xff]  ;;  %v14136_v42 = vcombine.high %v2981_v41, %v2985_v39 }
 0x441   :  { %9035 = vmatprep.subr.bf16.mxu1 %v14098_v58  ;;  %v2986_v58 = vld [vmem:[#allocation10 + $0x1468] sm:$0xff] }
 0x442   :  { %v14138_v50 = vcombine.high %v2982_v3, %v2986_v58  ;;  %v14137_v51 = vcombine.low %v2982_v3, %v2986_v58  ;;  %v3022_v3 = vld [vmem:[#allocation10 + $0x1588] sm:$0xff] }
 0x443   :  { %8708 = vmatpush1.bf16.msra.mxu0 %v14095_v54  ;;  %v17243_v54 = vpack.c.bf16 %v2312_v24, %v2312_v24  ;;  %v3026_v58 = vld [vmem:[#allocation10 + $0x15a8] sm:$0xff] }
 0x444   :  { %9036 = vmatpush1.bf16.msra.mxu1 %v14097_v32  ;;  %8709 = vmatprep.subr.bf16.mxu0 %v14104_v62  ;;  %v2990_v32 = vld [vmem:[#allocation10 + $0x1488] sm:$0xff] }
 0x445   :  { %9037 = vmatprep.subr.bf16.mxu1 %v14106_v15  ;;  %v2994_v62 = vld [vmem:[#allocation10 + $0x14a8] sm:$0xff]  ;;  %v14135_v15 = vcombine.low %v2981_v41, %v2985_v39  ;;  %v3021_v39 = vld [vmem:[#allocation10 + $0x1580] sm:$0xff] }
 0x446   :  { %v14146_v25 = vcombine.high %v2990_v32, %v2994_v62  ;;  %v14145_v55 = vcombine.low %v2990_v32, %v2994_v62  ;;  %v3033_v32 = vld [vmem:[#allocation10 + $0x15e0] sm:$0xff]  ;;  %v3030_v62 = vld [vmem:[#allocation10 + $0x15c8] sm:$0xff] }
 0x447   :  { %8710 = vmatpush1.bf16.msra.mxu0 %v14103_v29  ;;  %v3001_v29 = vld [vmem:[#allocation10 + $0x14e0] sm:$0xff] }
 0x448   :  { %9038 = vmatpush1.bf16.msra.mxu1 %v14105_v57  ;;  %8711 = vmatprep.subr.bf16.mxu0 %v14112_v9  ;;  %v2998_v57 = vld [vmem:[#allocation10 + $0x14c8] sm:$0xff]  ;;  %v14152_v14 = vcombine.high %v2997_v60, %v3001_v29 }
 0x449   :  { %9039 = vmatprep.subr.bf16.mxu1 %v14114_v36  ;;  %v3002_v9 = vld [vmem:[#allocation10 + $0x14e8] sm:$0xff]  ;;  %v14143_v36 = vcombine.low %v2989_v43, %v2993_v23  ;;  %v14178_v23 = vcombine.high %v3022_v3, %v3026_v58 }
 0x44a   :  { %v14154_v4 = vcombine.high %v2998_v57, %v3002_v9  ;;  %v14153_v17 = vcombine.low %v2998_v57, %v3002_v9  ;;  %v3041_v57 = vld [vmem:[#allocation10 + $0x1620] sm:$0xff]  ;;  %v3038_v9 = vld [vmem:[#allocation10 + $0x1608] sm:$0xff] }
 0x44b   :  { %8712 = vmatpush1.bf16.msra.mxu0 %v14111_v40  ;;  %v3009_v40 = vld [vmem:[#allocation10 + $0x1520] sm:$0xff] }
 0x44c   :  { %9040 = vmatpush1.bf16.msra.mxu1 %v14113_v20  ;;  %8713 = vmatprep.subr.bf16.mxu0 %v14120_v1  ;;  %v3006_v20 = vld [vmem:[#allocation10 + $0x1508] sm:$0xff]  ;;  %v14160_v28 = vcombine.high %v3005_v27, %v3009_v40 }
 0x44d   :  { %9041 = vmatprep.subr.bf16.mxu1 %v14122_v59  ;;  %v3010_v1 = vld [vmem:[#allocation10 + $0x1528] sm:$0xff]  ;;  %v14151_v59 = vcombine.low %v2997_v60, %v3001_v29  ;;  %v3037_v29 = vld [vmem:[#allocation10 + $0x1600] sm:$0xff] }
 0x44e   :  { %v14162_v2 = vcombine.high %v3006_v20, %v3010_v1 }
 0x44f   :  { %8714 = vmatpush1.bf16.msra.mxu0 %v14119_v0  ;;  %v3017_v0 = vld [vmem:[#allocation10 + $0x1560] sm:$0xff] }
 0x450   :  { %9042 = vmatpush1.bf16.msra.mxu1 %v14121_v37  ;;  %8724 = vmatprep.subr.bf16.mxu0 %v14128_v45  ;;  %v3014_v37 = vld [vmem:[#allocation10 + $0x1548] sm:$0xff]  ;;  %v14159_v45 = vcombine.low %v3005_v27, %v3009_v40  ;;  %v14168_v24 = vcombine.high %v3013_v26, %v3017_v0  ;;  %v3045_v40 = vld [vmem:[#allocation10 + $0x1640] sm:$0xff] }
 0x451   :  { %9052 = vmatprep.subr.bf16.mxu1 %v14130_v12  ;;  %v14161_v12 = vcombine.low %v3006_v20, %v3010_v1  ;;  %v14170_v41 = vcombine.high %v3014_v37, %v3018_v22  ;;  %v3049_v20 = vld [vmem:[#allocation10 + $0x1660] sm:$0xff]  ;;  %v3046_v1 = vld [vmem:[#allocation10 + $0x1648] sm:$0xff] }
 0x452   :  { %8716 = vmatmul.mubr.bf16.vlgmr.msra.gmra.mrb[12].mxu0 %v17240_v48 }
 0x453   :  { %9044 = vmatmul.mubr.bf16.vlgmr.msra.gmra.mrb[20].mxu1 %v17240_v48  ;;  %8725 = vmatpush1.bf16.msra.mxu0 %v14127_v7  ;;  %v3025_v7 = vld [vmem:[#allocation10 + $0x15a0] sm:$0xff] }
 0x454   :  { %8756 = vmatprep.mubr.bf16.mxu0 %v17243_v54  ;;  %9053 = vmatpush1.bf16.msra.mxu1 %v14129_v56  ;;  %v14167_v56 = vcombine.low %v3013_v26, %v3017_v0  ;;  %v14176_v43 = vcombine.high %v3021_v39, %v3025_v7  ;;  %v3053_v0 = vld [vmem:[#allocation10 + $0x1680] sm:$0xff] }
 0x455   :  { %9084 = vmatprep.mubr.bf16.mxu1 %v17243_v54  ;;  %8726 = vmatprep.subr.bf16.mxu0 %v14136_v42  ;;  %v14169_v42 = vcombine.low %v3014_v37, %v3018_v22  ;;  %v3057_v37 = vld [vmem:[#allocation10 + $0x16a0] sm:$0xff]  ;;  %v3054_v22 = vld [vmem:[#allocation10 + $0x1688] sm:$0xff] }
 0x456   :  { %9054 = vmatprep.subr.bf16.mxu1 %v14138_v50  ;;  %v3029_v50 = vld [vmem:[#allocation10 + $0x15c0] sm:$0xff] }
 0x457   :  { %8727 = vmatpush1.bf16.msra.mxu0 %v14135_v15  ;;  %v3034_v15 = vld [vmem:[#allocation10 + $0x15e8] sm:$0xff] }
 0x458   :  { %9055 = vmatpush1.bf16.msra.mxu1 %v14137_v51  ;;  %8728 = vmatprep.subr.bf16.mxu0 %v14144_v31  ;;  %v14175_v51 = vcombine.low %v3021_v39, %v3025_v7  ;;  %v14177_v31 = vcombine.low %v3022_v3, %v3026_v58  ;;  %v14186_v60 = vcombine.high %v3030_v62, %v3034_v15  ;;  %v3061_v7 = vld [vmem:[#allocation10 + $0x16c0] sm:$0xff]  ;;  %v3062_v58 = vld [vmem:[#allocation10 + $0x16c8] sm:$0xff] }
 0x459   :  { %9056 = vmatprep.subr.bf16.mxu1 %v14146_v25  ;;  %v14184_v25 = vcombine.high %v3029_v50, %v3033_v32  ;;  %v3065_v3 = vld [vmem:[#allocation10 + $0x16e0] sm:$0xff] }
 0x45b   :  { %8729 = vmatpush1.bf16.msra.mxu0 %v14143_v36  ;;  %v3042_v36 = vld [vmem:[#allocation10 + $0x1628] sm:$0xff] }
 0x45c   :  { %9057 = vmatpush1.bf16.msra.mxu1 %v14145_v55  ;;  %8730 = vmatprep.subr.bf16.mxu0 %v14152_v14  ;;  %v14183_v55 = vcombine.low %v3029_v50, %v3033_v32  ;;  %v14185_v14 = vcombine.low %v3030_v62, %v3034_v15  ;;  %v14194_v27 = vcombine.high %v3038_v9, %v3042_v36  ;;  %v3069_v32 = vld [vmem:[#allocation10 + $0x1700] sm:$0xff]  ;;  %v3070_v15 = vld [vmem:[#allocation10 + $0x1708] sm:$0xff] }
 0x45d   :  { %9058 = vmatprep.subr.bf16.mxu1 %v14154_v4  ;;  %v14192_v4 = vcombine.high %v3037_v29, %v3041_v57  ;;  %v3073_v62 = vld [vmem:[#allocation10 + $0x1720] sm:$0xff] }
 0x45f   :  { %8731 = vmatpush1.bf16.msra.mxu0 %v14151_v59  ;;  %v3050_v59 = vld [vmem:[#allocation10 + $0x1668] sm:$0xff] }
 0x460   :  { %9059 = vmatpush1.bf16.msra.mxu1 %v14153_v17  ;;  %8732 = vmatprep.subr.bf16.mxu0 %v14160_v28  ;;  %v14191_v17 = vcombine.low %v3037_v29, %v3041_v57  ;;  %v14193_v28 = vcombine.low %v3038_v9, %v3042_v36  ;;  %v14202_v26 = vcombine.high %v3046_v1, %v3050_v59  ;;  %v3077_v57 = vld [vmem:[#allocation10 + $0x1740] sm:$0xff]  ;;  %v3078_v36 = vld [vmem:[#allocation10 + $0x1748] sm:$0xff] }
 0x461   :  { %9060 = vmatprep.subr.bf16.mxu1 %v14162_v2  ;;  %v14200_v2 = vcombine.high %v3045_v40, %v3049_v20  ;;  %v3081_v9 = vld [vmem:[#allocation10 + $0x1760] sm:$0xff] }
 0x463   :  { %8733 = vmatpush1.bf16.msra.mxu0 %v14159_v45  ;;  %v3058_v45 = vld [vmem:[#allocation10 + $0x16a8] sm:$0xff] }
 0x464   :  { %9061 = vmatpush1.bf16.msra.mxu1 %v14161_v12  ;;  %8734 = vmatprep.subr.bf16.mxu0 %v14168_v24  ;;  %v14199_v12 = vcombine.low %v3045_v40, %v3049_v20  ;;  %v14201_v24 = vcombine.low %v3046_v1, %v3050_v59  ;;  %v14210_v39 = vcombine.high %v3054_v22, %v3058_v45  ;;  %v3085_v20 = vld [vmem:[#allocation10 + $0x1780] sm:$0xff]  ;;  %v3086_v59 = vld [vmem:[#allocation10 + $0x1788] sm:$0xff] }
 0x465   :  { %9062 = vmatprep.subr.bf16.mxu1 %v14170_v41  ;;  %v14208_v41 = vcombine.high %v3053_v0, %v3057_v37  ;;  %v3089_v1 = vld [vmem:[#allocation10 + $0x17a0] sm:$0xff] }
 0x467   :  { %8735 = vmatpush1.bf16.msra.mxu0 %v14167_v56  ;;  %v3066_v56 = vld [vmem:[#allocation10 + $0x16e8] sm:$0xff] }
 0x468   :  { %9063 = vmatpush1.bf16.msra.mxu1 %v14169_v42  ;;  %8736 = vmatprep.subr.bf16.mxu0 %v14176_v43  ;;  %v14207_v42 = vcombine.low %v3053_v0, %v3057_v37  ;;  %v14209_v43 = vcombine.low %v3054_v22, %v3058_v45  ;;  %v14218_v50 = vcombine.high %v3062_v58, %v3066_v56  ;;  %v3093_v37 = vld [vmem:[#allocation10 + $0x17c0] sm:$0xff]  ;;  %v3094_v45 = vld [vmem:[#allocation10 + $0x17c8] sm:$0xff] }
 0x469   :  { %9064 = vmatprep.subr.bf16.mxu1 %v14178_v23  ;;  %v14216_v23 = vcombine.high %v3061_v7, %v3065_v3  ;;  %v3097_v22 = vld [vmem:[#allocation10 + $0x17e0] sm:$0xff] }
 0x46b   :  { %8737 = vmatpush1.bf16.msra.mxu0 %v14175_v51  ;;  %v3074_v51 = vld [vmem:[#allocation10 + $0x1728] sm:$0xff] }
 0x46c   :  { %9065 = vmatpush1.bf16.msra.mxu1 %v14177_v31  ;;  %8738 = vmatprep.subr.bf16.mxu0 %v14184_v25  ;;  %v14215_v31 = vcombine.low %v3061_v7, %v3065_v3  ;;  %v14217_v25 = vcombine.low %v3062_v58, %v3066_v56  ;;  %v14226_v29 = vcombine.high %v3070_v15, %v3074_v51  ;;  %v3101_v3 = vld [vmem:[#allocation10 + $0x1800] sm:$0xff]  ;;  %v3102_v56 = vld [vmem:[#allocation10 + $0x1808] sm:$0xff] }
 0x46d   :  { %9066 = vmatprep.subr.bf16.mxu1 %v14186_v60  ;;  %v14224_v60 = vcombine.high %v3069_v32, %v3073_v62  ;;  %v3105_v58 = vld [vmem:[#allocation10 + $0x1820] sm:$0xff] }
 0x46f   :  { %8739 = vmatpush1.bf16.msra.mxu0 %v14183_v55  ;;  %v3082_v55 = vld [vmem:[#allocation10 + $0x1768] sm:$0xff] }
 0x470   :  { %9067 = vmatpush1.bf16.msra.mxu1 %v14185_v14  ;;  %8740 = vmatprep.subr.bf16.mxu0 %v14192_v4  ;;  %v14223_v14 = vcombine.low %v3069_v32, %v3073_v62  ;;  %v14225_v4 = vcombine.low %v3070_v15, %v3074_v51  ;;  %v14234_v40 = vcombine.high %v3078_v36, %v3082_v55  ;;  %v2314_v15 = vmax.f32 %v17197_v6, 0.0  ;;  %v3109_v51 = vld [vmem:[#allocation10 + $0x1840] sm:$0xff] }
 0x471   :  { %9068 = vmatprep.subr.bf16.mxu1 %v14194_v27  ;;  %v14232_v27 = vcombine.high %v3077_v57, %v3081_v9  ;;  %v14256_v32 = vcombine.high %v3101_v3, %v3105_v58 }
 0x473   :  { %8741 = vmatpush1.bf16.msra.mxu0 %v14191_v17  ;;  %v3090_v17 = vld [vmem:[#allocation10 + $0x17a8] sm:$0xff] }
 0x474   :  { %9069 = vmatpush1.bf16.msra.mxu1 %v14193_v28  ;;  %8742 = vmatprep.subr.bf16.mxu0 %v14200_v2  ;;  %v14231_v28 = vcombine.low %v3077_v57, %v3081_v9  ;;  %v14233_v2 = vcombine.low %v3078_v36, %v3082_v55  ;;  %v14242_v0 = vcombine.high %v3086_v59, %v3090_v17  ;;  %v3117_v55 = vld [vmem:[#allocation10 + $0x1880] sm:$0xff] }
 0x475   :  { %9070 = vmatprep.subr.bf16.mxu1 %v14202_v26  ;;  %v14240_v26 = vcombine.high %v3085_v20, %v3089_v1 }
 0x477   :  { %8743 = vmatpush1.bf16.msra.mxu0 %v14199_v12  ;;  %v3098_v12 = vld [vmem:[#allocation10 + $0x17e8] sm:$0xff] }
 0x478   :  { %9071 = vmatpush1.bf16.msra.mxu1 %v14201_v24  ;;  %8744 = vmatprep.subr.bf16.mxu0 %v14208_v41  ;;  %v14239_v24 = vcombine.low %v3085_v20, %v3089_v1  ;;  %v14241_v41 = vcombine.low %v3086_v59, %v3090_v17  ;;  %v14250_v7 = vcombine.high %v3094_v45, %v3098_v12  ;;  %v3125_v17 = vld [vmem:[#allocation10 + $0x18c0] sm:$0xff] }
 0x479   :  { %9072 = vmatprep.subr.bf16.mxu1 %v14210_v39  ;;  %v14248_v39 = vcombine.high %v3093_v37, %v3097_v22 }
 0x47b   :  { %8745 = vmatpush1.bf16.msra.mxu0 %v14207_v42  ;;  %v3106_v42 = vld [vmem:[#allocation10 + $0x1828] sm:$0xff] }
 0x47c   :  { %9073 = vmatpush1.bf16.msra.mxu1 %v14209_v43  ;;  %8746 = vmatprep.subr.bf16.mxu0 %v14216_v23  ;;  %v14247_v43 = vcombine.low %v3093_v37, %v3097_v22  ;;  %v14249_v23 = vcombine.low %v3094_v45, %v3098_v12  ;;  %v14258_v62 = vcombine.high %v3102_v56, %v3106_v42  ;;  %v3133_v12 = vld [vmem:[#allocation10 + $0x1900] sm:$0xff] }
 0x47d   :  { %9074 = vmatprep.subr.bf16.mxu1 %v14218_v50  ;;  %v2311_v50 = vmax.f32 %v17193_v5, 0.0  ;;  %v14257_v9 = vcombine.low %v3102_v56, %v3106_v42  ;;  %v3121_v5 = vld [vmem:[#allocation10 + $0x18a0] sm:$0xff] }
 0x47e   :  { %v14272_v1 = vcombine.high %v3117_v55, %v3121_v5  ;;  %v3141_v42 = vld [vmem:[#allocation10 + $0x1940] sm:$0xff] }
 0x47f   :  { %8747 = vmatpush1.bf16.msra.mxu0 %v14215_v31  ;;  %v3113_v31 = vld [vmem:[#allocation10 + $0x1860] sm:$0xff]  ;;  %v17250_v57 = vpack.c.bf16 %v2311_v50, %v2311_v50  ;;  %v3146_v50 = vld [vmem:[#allocation10 + $0x1968] sm:$0xff] }
 0x480   :  { %9075 = vmatpush1.bf16.msra.mxu1 %v14217_v25  ;;  %8748 = vmatprep.subr.bf16.mxu0 %v14224_v60  ;;  %v14255_v25 = vcombine.low %v3101_v3, %v3105_v58  ;;  %v3110_v60 = vld [vmem:[#allocation10 + $0x1848] sm:$0xff]  ;;  %v14264_v36 = vcombine.high %v3109_v51, %v3113_v31 }
 0x481   :  { %9076 = vmatprep.subr.bf16.mxu1 %v14226_v29  ;;  %v3114_v29 = vld [vmem:[#allocation10 + $0x1868] sm:$0xff] }
 0x482   :  { %v14266_v6 = vcombine.high %v3110_v60, %v3114_v29  ;;  %v14265_v20 = vcombine.low %v3110_v60, %v3114_v29  ;;  %v3150_v60 = vld [vmem:[#allocation10 + $0x1988] sm:$0xff] }
 0x483   :  { %8749 = vmatpush1.bf16.msra.mxu0 %v14223_v14  ;;  %v17253_v14 = vpack.c.bf16 %v2314_v15, %v2314_v15  ;;  %v3154_v29 = vld [vmem:[#allocation10 + $0x19a8] sm:$0xff] }
 0x484   :  { %9077 = vmatpush1.bf16.msra.mxu1 %v14225_v4  ;;  %8750 = vmatprep.subr.bf16.mxu0 %v14232_v27  ;;  %v3118_v4 = vld [vmem:[#allocation10 + $0x1888] sm:$0xff] }
 0x485   :  { %9078 = vmatprep.subr.bf16.mxu1 %v14234_v40  ;;  %v3122_v27 = vld [vmem:[#allocation10 + $0x18a8] sm:$0xff]  ;;  %v14263_v40 = vcombine.low %v3109_v51, %v3113_v31  ;;  %v3149_v31 = vld [vmem:[#allocation10 + $0x1980] sm:$0xff] }
 0x486   :  { %v14274_v59 = vcombine.high %v3118_v4, %v3122_v27  ;;  %v14273_v37 = vcombine.low %v3118_v4, %v3122_v27  ;;  %v3161_v4 = vld [vmem:[#allocation10 + $0x19e0] sm:$0xff]  ;;  %v3158_v27 = vld [vmem:[#allocation10 + $0x19c8] sm:$0xff] }
 0x487   :  { %8751 = vmatpush1.bf16.msra.mxu0 %v14231_v28  ;;  %v3129_v28 = vld [vmem:[#allocation10 + $0x18e0] sm:$0xff] }
 0x488   :  { %9079 = vmatpush1.bf16.msra.mxu1 %v14233_v2  ;;  %8752 = vmatprep.subr.bf16.mxu0 %v14240_v26  ;;  %v3126_v2 = vld [vmem:[#allocation10 + $0x18c8] sm:$0xff]  ;;  %v14280_v22 = vcombine.high %v3125_v17, %v3129_v28 }
 0x489   :  { %9080 = vmatprep.subr.bf16.mxu1 %v14242_v0  ;;  %v3130_v26 = vld [vmem:[#allocation10 + $0x18e8] sm:$0xff]  ;;  %v14271_v0 = vcombine.low %v3117_v55, %v3121_v5  ;;  %v14306_v5 = vcombine.high %v3150_v60, %v3154_v29 }
 0x48a   :  { %v14282_v45 = vcombine.high %v3126_v2, %v3130_v26  ;;  %v14281_v3 = vcombine.low %v3126_v2, %v3130_v26  ;;  %v3169_v2 = vld [vmem:[#allocation10 + $0x1a20] sm:$0xff]  ;;  %v3166_v26 = vld [vmem:[#allocation10 + $0x1a08] sm:$0xff] }
 0x48b   :  { %8753 = vmatpush1.bf16.msra.mxu0 %v14239_v24  ;;  %v3137_v24 = vld [vmem:[#allocation10 + $0x1920] sm:$0xff] }
 0x48c   :  { %9081 = vmatpush1.bf16.msra.mxu1 %v14241_v41  ;;  %8754 = vmatprep.subr.bf16.mxu0 %v14248_v39  ;;  %v3134_v41 = vld [vmem:[#allocation10 + $0x1908] sm:$0xff]  ;;  %v14288_v58 = vcombine.high %v3133_v12, %v3137_v24 }
 0x48d   :  { %9082 = vmatprep.subr.bf16.mxu1 %v14250_v7  ;;  %v3138_v39 = vld [vmem:[#allocation10 + $0x1928] sm:$0xff]  ;;  %v14279_v7 = vcombine.low %v3125_v17, %v3129_v28  ;;  %v3165_v28 = vld [vmem:[#allocation10 + $0x1a00] sm:$0xff] }
 0x48e   :  { %v14290_v56 = vcombine.high %v3134_v41, %v3138_v39 }
 0x48f   :  { %8755 = vmatpush1.bf16.msra.mxu0 %v14247_v43  ;;  %v3145_v43 = vld [vmem:[#allocation10 + $0x1960] sm:$0xff] }
 0x490   :  { %9083 = vmatpush1.bf16.msra.mxu1 %v14249_v23  ;;  %8765 = vmatprep.subr.bf16.mxu0 %v14256_v32  ;;  %v3142_v23 = vld [vmem:[#allocation10 + $0x1948] sm:$0xff]  ;;  %v14287_v32 = vcombine.low %v3133_v12, %v3137_v24  ;;  %v14296_v15 = vcombine.high %v3141_v42, %v3145_v43  ;;  %v3173_v24 = vld [vmem:[#allocation10 + $0x1a40] sm:$0xff] }
 0x491   :  { %9093 = vmatprep.subr.bf16.mxu1 %v14258_v62  ;;  %v14289_v62 = vcombine.low %v3134_v41, %v3138_v39  ;;  %v14298_v51 = vcombine.high %v3142_v23, %v3146_v50  ;;  %v3177_v41 = vld [vmem:[#allocation10 + $0x1a60] sm:$0xff]  ;;  %v3174_v39 = vld [vmem:[#allocation10 + $0x1a48] sm:$0xff] }
 0x492   :  { %8757 = vmatmul.mubr.bf16.vlgmr.msra.gmra.mrb[12].mxu0 %v17250_v57 }
 0x493   :  { %9085 = vmatmul.mubr.bf16.vlgmr.msra.gmra.mrb[20].mxu1 %v17250_v57  ;;  %8766 = vmatpush1.bf16.msra.mxu0 %v14255_v25  ;;  %v3153_v25 = vld [vmem:[#allocation10 + $0x19a0] sm:$0xff] }
 0x494   :  { %8797 = vmatprep.mubr.bf16.mxu0 %v17253_v14  ;;  %9094 = vmatpush1.bf16.msra.mxu1 %v14257_v9  ;;  %v14295_v9 = vcombine.low %v3141_v42, %v3145_v43  ;;  %v14304_v55 = vcombine.high %v3149_v31, %v3153_v25  ;;  %v3181_v43 = vld [vmem:[#allocation10 + $0x1a80] sm:$0xff] }
 0x495   :  { %9125 = vmatprep.mubr.bf16.mxu1 %v17253_v14  ;;  %8767 = vmatprep.subr.bf16.mxu0 %v14264_v36  ;;  %v14297_v36 = vcombine.low %v3142_v23, %v3146_v50  ;;  %v3185_v23 = vld [vmem:[#allocation10 + $0x1aa0] sm:$0xff]  ;;  %v3182_v50 = vld [vmem:[#allocation10 + $0x1a88] sm:$0xff] }
 0x496   :  { %9095 = vmatprep.subr.bf16.mxu1 %v14266_v6  ;;  %v3157_v6 = vld [vmem:[#allocation10 + $0x19c0] sm:$0xff] }
 0x497   :  { %8768 = vmatpush1.bf16.msra.mxu0 %v14263_v40  ;;  %v3162_v40 = vld [vmem:[#allocation10 + $0x19e8] sm:$0xff] }
 0x498   :  { %9096 = vmatpush1.bf16.msra.mxu1 %v14265_v20  ;;  %8769 = vmatprep.subr.bf16.mxu0 %v14272_v1  ;;  %v14303_v20 = vcombine.low %v3149_v31, %v3153_v25  ;;  %v14305_v1 = vcombine.low %v3150_v60, %v3154_v29  ;;  %v14314_v17 = vcombine.high %v3158_v27, %v3162_v40  ;;  %v3189_v25 = vld [vmem:[#allocation10 + $0x1ac0] sm:$0xff]  ;;  %v3190_v29 = vld [vmem:[#allocation10 + $0x1ac8] sm:$0xff] }
 0x499   :  { %9097 = vmatprep.subr.bf16.mxu1 %v14274_v59  ;;  %v14312_v59 = vcombine.high %v3157_v6, %v3161_v4  ;;  %v3193_v60 = vld [vmem:[#allocation10 + $0x1ae0] sm:$0xff] }
 0x49b   :  { %8770 = vmatpush1.bf16.msra.mxu0 %v14271_v0  ;;  %v3170_v0 = vld [vmem:[#allocation10 + $0x1a28] sm:$0xff] }
 0x49c   :  { %9098 = vmatpush1.bf16.msra.mxu1 %v14273_v37  ;;  %8771 = vmatprep.subr.bf16.mxu0 %v14280_v22  ;;  %v14311_v37 = vcombine.low %v3157_v6, %v3161_v4  ;;  %v14313_v22 = vcombine.low %v3158_v27, %v3162_v40  ;;  %v14322_v12 = vcombine.high %v3166_v26, %v3170_v0  ;;  %v3197_v4 = vld [vmem:[#allocation10 + $0x1b00] sm:$0xff]  ;;  %v3198_v40 = vld [vmem:[#allocation10 + $0x1b08] sm:$0xff] }
 0x49d   :  { %9099 = vmatprep.subr.bf16.mxu1 %v14282_v45  ;;  %v14320_v45 = vcombine.high %v3165_v28, %v3169_v2  ;;  %v3201_v27 = vld [vmem:[#allocation10 + $0x1b20] sm:$0xff] }
 0x49f   :  { %8772 = vmatpush1.bf16.msra.mxu0 %v14279_v7  ;;  %v3178_v7 = vld [vmem:[#allocation10 + $0x1a68] sm:$0xff] }
 0x4a0   :  { %9100 = vmatpush1.bf16.msra.mxu1 %v14281_v3  ;;  %8773 = vmatprep.subr.bf16.mxu0 %v14288_v58  ;;  %v14319_v3 = vcombine.low %v3165_v28, %v3169_v2  ;;  %v14321_v58 = vcombine.low %v3166_v26, %v3170_v0  ;;  %v14330_v42 = vcombine.high %v3174_v39, %v3178_v7  ;;  %v3205_v2 = vld [vmem:[#allocation10 + $0x1b40] sm:$0xff]  ;;  %v3206_v0 = vld [vmem:[#allocation10 + $0x1b48] sm:$0xff] }
 0x4a1   :  { %9101 = vmatprep.subr.bf16.mxu1 %v14290_v56  ;;  %v14328_v56 = vcombine.high %v3173_v24, %v3177_v41  ;;  %v3209_v26 = vld [vmem:[#allocation10 + $0x1b60] sm:$0xff] }
 0x4a3   :  { %8774 = vmatpush1.bf16.msra.mxu0 %v14287_v32  ;;  %v3186_v32 = vld [vmem:[#allocation10 + $0x1aa8] sm:$0xff] }
 0x4a4   :  { %9102 = vmatpush1.bf16.msra.mxu1 %v14289_v62  ;;  %8775 = vmatprep.subr.bf16.mxu0 %v14296_v15  ;;  %v14327_v62 = vcombine.low %v3173_v24, %v3177_v41  ;;  %v14329_v15 = vcombine.low %v3174_v39, %v3178_v7  ;;  %v14338_v31 = vcombine.high %v3182_v50, %v3186_v32  ;;  %v3213_v41 = vld [vmem:[#allocation10 + $0x1b80] sm:$0xff]  ;;  %v3214_v7 = vld [vmem:[#allocation10 + $0x1b88] sm:$0xff] }
 0x4a5   :  { %9103 = vmatprep.subr.bf16.mxu1 %v14298_v51  ;;  %v14336_v51 = vcombine.high %v3181_v43, %v3185_v23  ;;  %v3217_v39 = vld [vmem:[#allocation10 + $0x1ba0] sm:$0xff] }
 0x4a7   :  { %8776 = vmatpush1.bf16.msra.mxu0 %v14295_v9  ;;  %v3194_v9 = vld [vmem:[#allocation10 + $0x1ae8] sm:$0xff] }
 0x4a8   :  { %9104 = vmatpush1.bf16.msra.mxu1 %v14297_v36  ;;  %8777 = vmatprep.subr.bf16.mxu0 %v14304_v55  ;;  %v14335_v36 = vcombine.low %v3181_v43, %v3185_v23  ;;  %v14337_v55 = vcombine.low %v3182_v50, %v3186_v32  ;;  %v14346_v6 = vcombine.high %v3190_v29, %v3194_v9  ;;  %v3221_v23 = vld [vmem:[#allocation10 + $0x1bc0] sm:$0xff]  ;;  %v3222_v32 = vld [vmem:[#allocation10 + $0x1bc8] sm:$0xff] }
 0x4a9   :  { %9105 = vmatprep.subr.bf16.mxu1 %v14306_v5  ;;  %v14344_v5 = vcombine.high %v3189_v25, %v3193_v60  ;;  %v3225_v50 = vld [vmem:[#allocation10 + $0x1be0] sm:$0xff] }
 0x4ab   :  { %8778 = vmatpush1.bf16.msra.mxu0 %v14303_v20  ;;  %v3202_v20 = vld [vmem:[#allocation10 + $0x1b28] sm:$0xff] }
 0x4ac   :  { %9106 = vmatpush1.bf16.msra.mxu1 %v14305_v1  ;;  %8779 = vmatprep.subr.bf16.mxu0 %v14312_v59  ;;  %v14343_v1 = vcombine.low %v3189_v25, %v3193_v60  ;;  %v14345_v59 = vcombine.low %v3190_v29, %v3194_v9  ;;  %v14354_v28 = vcombine.high %v3198_v40, %v3202_v20  ;;  %v3229_v60 = vld [vmem:[#allocation10 + $0x1c00] sm:$0xff]  ;;  %v3230_v9 = vld [vmem:[#allocation10 + $0x1c08] sm:$0xff] }
 0x4ad   :  { %9107 = vmatprep.subr.bf16.mxu1 %v14314_v17  ;;  %v14352_v17 = vcombine.high %v3197_v4, %v3201_v27  ;;  %v3233_v29 = vld [vmem:[#allocation10 + $0x1c20] sm:$0xff] }
 0x4af   :  { %8780 = vmatpush1.bf16.msra.mxu0 %v14311_v37  ;;  %v3210_v37 = vld [vmem:[#allocation10 + $0x1b68] sm:$0xff] }
 0x4b0   :  { %9108 = vmatpush1.bf16.msra.mxu1 %v14313_v22  ;;  %8781 = vmatprep.subr.bf16.mxu0 %v14320_v45  ;;  %v14351_v22 = vcombine.low %v3197_v4, %v3201_v27  ;;  %v14353_v45 = vcombine.low %v3198_v40, %v3202_v20  ;;  %v14362_v24 = vcombine.high %v3206_v0, %v3210_v37  ;;  %v2316_v40 = vmax.f32 %v17210_v35, 0.0  ;;  %v3237_v20 = vld [vmem:[#allocation10 + $0x1c40] sm:$0xff] }
 0x4b1   :  { %9109 = vmatprep.subr.bf16.mxu1 %v14322_v12  ;;  %v14360_v12 = vcombine.high %v3205_v2, %v3209_v26  ;;  %v14384_v4 = vcombine.high %v3229_v60, %v3233_v29 }
 0x4b3   :  { %8782 = vmatpush1.bf16.msra.mxu0 %v14319_v3  ;;  %v3218_v3 = vld [vmem:[#allocation10 + $0x1ba8] sm:$0xff] }
 0x4b4   :  { %9110 = vmatpush1.bf16.msra.mxu1 %v14321_v58  ;;  %8783 = vmatprep.subr.bf16.mxu0 %v14328_v56  ;;  %v14359_v58 = vcombine.low %v3205_v2, %v3209_v26  ;;  %v14361_v56 = vcombine.low %v3206_v0, %v3210_v37  ;;  %v14370_v43 = vcombine.high %v3214_v7, %v3218_v3  ;;  %v3245_v37 = vld [vmem:[#allocation10 + $0x1c80] sm:$0xff] }
 0x4b5   :  { %9111 = vmatprep.subr.bf16.mxu1 %v14330_v42  ;;  %v14368_v42 = vcombine.high %v3213_v41, %v3217_v39 }
 0x4b7   :  { %8784 = vmatpush1.bf16.msra.mxu0 %v14327_v62  ;;  %v3226_v62 = vld [vmem:[#allocation10 + $0x1be8] sm:$0xff] }
 0x4b8   :  { %9112 = vmatpush1.bf16.msra.mxu1 %v14329_v15  ;;  %8785 = vmatprep.subr.bf16.mxu0 %v14336_v51  ;;  %v14367_v15 = vcombine.low %v3213_v41, %v3217_v39  ;;  %v14369_v51 = vcombine.low %v3214_v7, %v3218_v3  ;;  %v14378_v25 = vcombine.high %v3222_v32, %v3226_v62  ;;  %v3253_v3 = vld [vmem:[#allocation10 + $0x1cc0] sm:$0xff] }
 0x4b9   :  { %9113 = vmatprep.subr.bf16.mxu1 %v14338_v31  ;;  %v14376_v31 = vcombine.high %v3221_v23, %v3225_v50 }
 0x4bb   :  { %8786 = vmatpush1.bf16.msra.mxu0 %v14335_v36  ;;  %v3234_v36 = vld [vmem:[#allocation10 + $0x1c28] sm:$0xff] }
 0x4bc   :  { %9114 = vmatpush1.bf16.msra.mxu1 %v14337_v55  ;;  %8787 = vmatprep.subr.bf16.mxu0 %v14344_v5  ;;  %v14375_v55 = vcombine.low %v3221_v23, %v3225_v50  ;;  %v14377_v5 = vcombine.low %v3222_v32, %v3226_v62  ;;  %v14386_v27 = vcombine.high %v3230_v9, %v3234_v36  ;;  %v3261_v62 = vld [vmem:[#allocation10 + $0x1d00] sm:$0xff] }
 0x4bd   :  { %9115 = vmatprep.subr.bf16.mxu1 %v14346_v6  ;;  %v2313_v6 = vmax.f32 %v17207_v44, 0.0  ;;  %v14385_v26 = vcombine.low %v3230_v9, %v3234_v36  ;;  %v3249_v44 = vld [vmem:[#allocation10 + $0x1ca0] sm:$0xff] }
 0x4be   :  { %v14400_v39 = vcombine.high %v3245_v37, %v3249_v44  ;;  %v3269_v36 = vld [vmem:[#allocation10 + $0x1d40] sm:$0xff] }
 0x4bf   :  { %8788 = vmatpush1.bf16.msra.mxu0 %v14343_v1  ;;  %v3241_v1 = vld [vmem:[#allocation10 + $0x1c60] sm:$0xff]  ;;  %v17260_v2 = vpack.c.bf16 %v2313_v6, %v2313_v6  ;;  %v3274_v6 = vld [vmem:[#allocation10 + $0x1d68] sm:$0xff] }
 0x4c0   :  { %9116 = vmatpush1.bf16.msra.mxu1 %v14345_v59  ;;  %8789 = vmatprep.subr.bf16.mxu0 %v14352_v17  ;;  %v14383_v59 = vcombine.low %v3229_v60, %v3233_v29  ;;  %v3238_v17 = vld [vmem:[#allocation10 + $0x1c48] sm:$0xff]  ;;  %v14392_v0 = vcombine.high %v3237_v20, %v3241_v1 }
 0x4c1   :  { %9117 = vmatprep.subr.bf16.mxu1 %v14354_v28  ;;  %v3242_v28 = vld [vmem:[#allocation10 + $0x1c68] sm:$0xff] }
 0x4c2   :  { %v14394_v35 = vcombine.high %v3238_v17, %v3242_v28  ;;  %v14393_v41 = vcombine.low %v3238_v17, %v3242_v28  ;;  %v3278_v17 = vld [vmem:[#allocation10 + $0x1d88] sm:$0xff] }
 0x4c3   :  { %8790 = vmatpush1.bf16.msra.mxu0 %v14351_v22  ;;  %v17263_v22 = vpack.c.bf16 %v2316_v40, %v2316_v40  ;;  %v3282_v28 = vld [vmem:[#allocation10 + $0x1da8] sm:$0xff] }
 0x4c4   :  { %9118 = vmatpush1.bf16.msra.mxu1 %v14353_v45  ;;  %8791 = vmatprep.subr.bf16.mxu0 %v14360_v12  ;;  %v3246_v45 = vld [vmem:[#allocation10 + $0x1c88] sm:$0xff] }
 0x4c5   :  { %9119 = vmatprep.subr.bf16.mxu1 %v14362_v24  ;;  %v3250_v12 = vld [vmem:[#allocation10 + $0x1ca8] sm:$0xff]  ;;  %v14391_v24 = vcombine.low %v3237_v20, %v3241_v1  ;;  %v3277_v1 = vld [vmem:[#allocation10 + $0x1d80] sm:$0xff] }
 0x4c6   :  { %v14402_v7 = vcombine.high %v3246_v45, %v3250_v12  ;;  %v14401_v23 = vcombine.low %v3246_v45, %v3250_v12  ;;  %v3289_v45 = vld [vmem:[#allocation10 + $0x1de0] sm:$0xff]  ;;  %v3286_v12 = vld [vmem:[#allocation10 + $0x1dc8] sm:$0xff] }
 0x4c7   :  { %8792 = vmatpush1.bf16.msra.mxu0 %v14359_v58  ;;  %v3257_v58 = vld [vmem:[#allocation10 + $0x1ce0] sm:$0xff] }
 0x4c8   :  { %9120 = vmatpush1.bf16.msra.mxu1 %v14361_v56  ;;  %8793 = vmatprep.subr.bf16.mxu0 %v14368_v42  ;;  %v3254_v56 = vld [vmem:[#allocation10 + $0x1cc8] sm:$0xff]  ;;  %v14408_v50 = vcombine.high %v3253_v3, %v3257_v58 }
 0x4c9   :  { %9121 = vmatprep.subr.bf16.mxu1 %v14370_v43  ;;  %v3258_v42 = vld [vmem:[#allocation10 + $0x1ce8] sm:$0xff]  ;;  %v14399_v43 = vcombine.low %v3245_v37, %v3249_v44  ;;  %v14434_v44 = vcombine.high %v3278_v17, %v3282_v28 }
 0x4ca   :  { %v14410_v32 = vcombine.high %v3254_v56, %v3258_v42  ;;  %v14409_v60 = vcombine.low %v3254_v56, %v3258_v42  ;;  %v3297_v56 = vld [vmem:[#allocation10 + $0x1e20] sm:$0xff]  ;;  %v3294_v42 = vld [vmem:[#allocation10 + $0x1e08] sm:$0xff] }
 0x4cb   :  { %8794 = vmatpush1.bf16.msra.mxu0 %v14367_v15  ;;  %v3265_v15 = vld [vmem:[#allocation10 + $0x1d20] sm:$0xff] }
 0x4cc   :  { %9122 = vmatpush1.bf16.msra.mxu1 %v14369_v51  ;;  %8795 = vmatprep.subr.bf16.mxu0 %v14376_v31  ;;  %v3262_v51 = vld [vmem:[#allocation10 + $0x1d08] sm:$0xff]  ;;  %v14416_v29 = vcombine.high %v3261_v62, %v3265_v15 }
 0x4cd   :  { %9123 = vmatprep.subr.bf16.mxu1 %v14378_v25  ;;  %v3266_v31 = vld [vmem:[#allocation10 + $0x1d28] sm:$0xff]  ;;  %v14407_v25 = vcombine.low %v3253_v3, %v3257_v58  ;;  %v3293_v58 = vld [vmem:[#allocation10 + $0x1e00] sm:$0xff] }
 0x4ce   :  { %v14418_v9 = vcombine.high %v3262_v51, %v3266_v31 }
 0x4cf   :  { %8796 = vmatpush1.bf16.msra.mxu0 %v14375_v55  ;;  %v3273_v55 = vld [vmem:[#allocation10 + $0x1d60] sm:$0xff] }
 0x4d0   :  { %9124 = vmatpush1.bf16.msra.mxu1 %v14377_v5  ;;  %8806 = vmatprep.subr.bf16.mxu0 %v14384_v4  ;;  %v3270_v5 = vld [vmem:[#allocation10 + $0x1d48] sm:$0xff]  ;;  %v14415_v4 = vcombine.low %v3261_v62, %v3265_v15  ;;  %v14424_v40 = vcombine.high %v3269_v36, %v3273_v55  ;;  %v3301_v15 = vld [vmem:[#allocation10 + $0x1e40] sm:$0xff] }
 0x4d1   :  { %9134 = vmatprep.subr.bf16.mxu1 %v14386_v27  ;;  %v14417_v27 = vcombine.low %v3262_v51, %v3266_v31  ;;  %v14426_v20 = vcombine.high %v3270_v5, %v3274_v6  ;;  %v3305_v51 = vld [vmem:[#allocation10 + $0x1e60] sm:$0xff]  ;;  %v3302_v31 = vld [vmem:[#allocation10 + $0x1e48] sm:$0xff] }
 0x4d2   :  { %8798 = vmatmul.mubr.bf16.vlgmr.msra.gmra.mrb[12].mxu0 %v17260_v2 }
 0x4d3   :  { %9126 = vmatmul.mubr.bf16.vlgmr.msra.gmra.mrb[20].mxu1 %v17260_v2  ;;  %8807 = vmatpush1.bf16.msra.mxu0 %v14383_v59  ;;  %v3281_v59 = vld [vmem:[#allocation10 + $0x1da0] sm:$0xff] }
 0x4d4   :  { %8838 = vmatprep.mubr.bf16.mxu0 %v17263_v22  ;;  %9135 = vmatpush1.bf16.msra.mxu1 %v14385_v26  ;;  %v14423_v26 = vcombine.low %v3269_v36, %v3273_v55  ;;  %v14432_v37 = vcombine.high %v3277_v1, %v3281_v59  ;;  %v3309_v55 = vld [vmem:[#allocation10 + $0x1e80] sm:$0xff] }
 0x4d5   :  { %9166 = vmatprep.mubr.bf16.mxu1 %v17263_v22  ;;  %8808 = vmatprep.subr.bf16.mxu0 %v14392_v0  ;;  %v14425_v0 = vcombine.low %v3270_v5, %v3274_v6  ;;  %v3313_v5 = vld [vmem:[#allocation10 + $0x1ea0] sm:$0xff]  ;;  %v3310_v6 = vld [vmem:[#allocation10 + $0x1e88] sm:$0xff] }
 0x4d6   :  { %9136 = vmatprep.subr.bf16.mxu1 %v14394_v35  ;;  %v3285_v35 = vld [vmem:[#allocation10 + $0x1dc0] sm:$0xff] }
 0x4d7   :  { %8809 = vmatpush1.bf16.msra.mxu0 %v14391_v24  ;;  %v3290_v24 = vld [vmem:[#allocation10 + $0x1de8] sm:$0xff] }
 0x4d8   :  { %9137 = vmatpush1.bf16.msra.mxu1 %v14393_v41  ;;  %8810 = vmatprep.subr.bf16.mxu0 %v14400_v39  ;;  %v14431_v41 = vcombine.low %v3277_v1, %v3281_v59  ;;  %v14433_v39 = vcombine.low %v3278_v17, %v3282_v28  ;;  %v14442_v3 = vcombine.high %v3286_v12, %v3290_v24  ;;  %v3317_v59 = vld [vmem:[#allocation10 + $0x1ec0] sm:$0xff]  ;;  %v3318_v28 = vld [vmem:[#allocation10 + $0x1ec8] sm:$0xff] }
 0x4d9   :  { %9138 = vmatprep.subr.bf16.mxu1 %v14402_v7  ;;  %v14440_v7 = vcombine.high %v3285_v35, %v3289_v45  ;;  %v3321_v17 = vld [vmem:[#allocation10 + $0x1ee0] sm:$0xff] }
 0x4db   :  { %8811 = vmatpush1.bf16.msra.mxu0 %v14399_v43  ;;  %v3298_v43 = vld [vmem:[#allocation10 + $0x1e28] sm:$0xff] }
 0x4dc   :  { %9139 = vmatpush1.bf16.msra.mxu1 %v14401_v23  ;;  %8812 = vmatprep.subr.bf16.mxu0 %v14408_v50  ;;  %v14439_v23 = vcombine.low %v3285_v35, %v3289_v45  ;;  %v14441_v50 = vcombine.low %v3286_v12, %v3290_v24  ;;  %v14450_v62 = vcombine.high %v3294_v42, %v3298_v43  ;;  %v3325_v45 = vld [vmem:[#allocation10 + $0x1f00] sm:$0xff]  ;;  %v3326_v24 = vld [vmem:[#allocation10 + $0x1f08] sm:$0xff] }
 0x4dd   :  { %9140 = vmatprep.subr.bf16.mxu1 %v14410_v32  ;;  %v14448_v32 = vcombine.high %v3293_v58, %v3297_v56  ;;  %v3329_v12 = vld [vmem:[#allocation10 + $0x1f20] sm:$0xff] }
 0x4df   :  { %8813 = vmatpush1.bf16.msra.mxu0 %v14407_v25  ;;  %v3306_v25 = vld [vmem:[#allocation10 + $0x1e68] sm:$0xff] }
 0x4e0   :  { %9141 = vmatpush1.bf16.msra.mxu1 %v14409_v60  ;;  %8814 = vmatprep.subr.bf16.mxu0 %v14416_v29  ;;  %v14447_v60 = vcombine.low %v3293_v58, %v3297_v56  ;;  %v14449_v29 = vcombine.low %v3294_v42, %v3298_v43  ;;  %v14458_v36 = vcombine.high %v3302_v31, %v3306_v25  ;;  %v3333_v56 = vld [vmem:[#allocation10 + $0x1f40] sm:$0xff]  ;;  %v3334_v43 = vld [vmem:[#allocation10 + $0x1f48] sm:$0xff] }
 0x4e1   :  { %9142 = vmatprep.subr.bf16.mxu1 %v14418_v9  ;;  %v14456_v9 = vcombine.high %v3301_v15, %v3305_v51  ;;  %v3337_v42 = vld [vmem:[#allocation10 + $0x1f60] sm:$0xff] }
 0x4e3   :  { %8815 = vmatpush1.bf16.msra.mxu0 %v14415_v4  ;;  %v3314_v4 = vld [vmem:[#allocation10 + $0x1ea8] sm:$0xff] }
 0x4e4   :  { %9143 = vmatpush1.bf16.msra.mxu1 %v14417_v27  ;;  %8816 = vmatprep.subr.bf16.mxu0 %v14424_v40  ;;  %v14455_v27 = vcombine.low %v3301_v15, %v3305_v51  ;;  %v14457_v40 = vcombine.low %v3302_v31, %v3306_v25  ;;  %v14466_v1 = vcombine.high %v3310_v6, %v3314_v4  ;;  %v3341_v51 = vld [vmem:[#allocation10 + $0x1f80] sm:$0xff]  ;;  %v3342_v25 = vld [vmem:[#allocation10 + $0x1f88] sm:$0xff] }
 0x4e5   :  { %9144 = vmatprep.subr.bf16.mxu1 %v14426_v20  ;;  %v14464_v20 = vcombine.high %v3309_v55, %v3313_v5  ;;  %v3345_v31 = vld [vmem:[#allocation10 + $0x1fa0] sm:$0xff] }
 0x4e7   :  { %8817 = vmatpush1.bf16.msra.mxu0 %v14423_v26  ;;  %v3322_v26 = vld [vmem:[#allocation10 + $0x1ee8] sm:$0xff] }
 0x4e8   :  { %9145 = vmatpush1.bf16.msra.mxu1 %v14425_v0  ;;  %8818 = vmatprep.subr.bf16.mxu0 %v14432_v37  ;;  %v14463_v0 = vcombine.low %v3309_v55, %v3313_v5  ;;  %v14465_v37 = vcombine.low %v3310_v6, %v3314_v4  ;;  %v14474_v35 = vcombine.high %v3318_v28, %v3322_v26  ;;  %v3349_v5 = vld [vmem:[#allocation10 + $0x1fc0] sm:$0xff]  ;;  %v3350_v4 = vld [vmem:[#allocation10 + $0x1fc8] sm:$0xff] }
 0x4e9   :  { %9146 = vmatprep.subr.bf16.mxu1 %v14434_v44  ;;  %v14472_v44 = vcombine.high %v3317_v59, %v3321_v17  ;;  %v3353_v6 = vld [vmem:[#allocation10 + $0x1fe0] sm:$0xff] }
 0x4eb   :  { %8819 = vmatpush1.bf16.msra.mxu0 %v14431_v41  ;;  %v3330_v41 = vld [vmem:[#allocation10 + $0x1f28] sm:$0xff] }
 0x4ec   :  { %9147 = vmatpush1.bf16.msra.mxu1 %v14433_v39  ;;  %8820 = vmatprep.subr.bf16.mxu0 %v14440_v7  ;;  %v14471_v39 = vcombine.low %v3317_v59, %v3321_v17  ;;  %v14473_v7 = vcombine.low %v3318_v28, %v3322_v26  ;;  %v14482_v58 = vcombine.high %v3326_v24, %v3330_v41  ;;  %v2335_v17 = vld [vmem:[#allocation10 + $0x10] sm:$0xff]  ;;  %v2336_v26 = vld [vmem:[#allocation10 + $0x18] sm:$0xff] }
 0x4ed   :  { %9148 = vmatprep.subr.bf16.mxu1 %v14442_v3  ;;  %v14480_v3 = vcombine.high %v3325_v45, %v3329_v12  ;;  %v2339_v28 = vld [vmem:[#allocation10 + $0x30] sm:$0xff] }
 0x4ef   :  { %8821 = vmatpush1.bf16.msra.mxu0 %v14439_v23  ;;  %v3338_v23 = vld [vmem:[#allocation10 + $0x1f68] sm:$0xff] }
 0x4f0   :  { %9149 = vmatpush1.bf16.msra.mxu1 %v14441_v50  ;;  %8822 = vmatprep.subr.bf16.mxu0 %v14448_v32  ;;  %v14479_v50 = vcombine.low %v3325_v45, %v3329_v12  ;;  %v14481_v32 = vcombine.low %v3326_v24, %v3330_v41  ;;  %v14490_v15 = vcombine.high %v3334_v43, %v3338_v23  ;;  %v2343_v24 = vld [vmem:[#allocation10 + $0x50] sm:$0xff] }
 0x4f1   :  { %9150 = vmatprep.subr.bf16.mxu1 %v14450_v62  ;;  %v14488_v62 = vcombine.high %v3333_v56, %v3337_v42  ;;  %v13492_v45 = vcombine.high %v2335_v17, %v2339_v28  ;;  %v2347_v41 = vld [vmem:[#allocation10 + $0x70] sm:$0xff] }
 0x4f3   :  { %8823 = vmatpush1.bf16.msra.mxu0 %v14447_v60  ;;  %v3346_v60 = vld [vmem:[#allocation10 + $0x1fa8] sm:$0xff] }
 0x4f4   :  { %9151 = vmatpush1.bf16.msra.mxu1 %v14449_v29  ;;  %8824 = vmatprep.subr.bf16.mxu0 %v14456_v9  ;;  %v14487_v29 = vcombine.low %v3333_v56, %v3337_v42  ;;  %v14489_v9 = vcombine.low %v3334_v43, %v3338_v23  ;;  %v14498_v55 = vcombine.high %v3342_v25, %v3346_v60  ;;  %v2351_v43 = vld [vmem:[#allocation10 + $0x90] sm:$0xff] }
 0x4f5   :  { %9152 = vmatprep.subr.bf16.mxu1 %v14458_v36  ;;  %v14496_v36 = vcombine.high %v3341_v51, %v3345_v31  ;;  %v13500_v42 = vcombine.high %v2343_v24, %v2347_v41  ;;  %v2355_v23 = vld [vmem:[#allocation10 + $0xb0] sm:$0xff] }
 0x4f7   :  { %8825 = vmatpush1.bf16.msra.mxu0 %v14455_v27  ;;  %v3354_v27 = vld [vmem:[#allocation10 + $0x1fe8] sm:$0xff] }
 0x4f8   :  { %9153 = vmatpush1.bf16.msra.mxu1 %v14457_v40  ;;  %8826 = vmatprep.subr.bf16.mxu0 %v14464_v20  ;;  %v14495_v40 = vcombine.low %v3341_v51, %v3345_v31  ;;  %v14497_v20 = vcombine.low %v3342_v25, %v3346_v60  ;;  %v14506_v59 = vcombine.high %v3350_v4, %v3354_v27  ;;  %v2359_v25 = vld [vmem:[#allocation10 + $0xd0] sm:$0xff] }
 0x4f9   :  { %9154 = vmatprep.subr.bf16.mxu1 %v14466_v1  ;;  %v14504_v1 = vcombine.high %v3349_v5, %v3353_v6  ;;  %v13508_v51 = vcombine.high %v2351_v43, %v2355_v23  ;;  %v2363_v60 = vld [vmem:[#allocation10 + $0xf0] sm:$0xff] }
 0x4fb   :  { %8827 = vmatpush1.bf16.msra.mxu0 %v14463_v0  ;;  %v2340_v0 = vld [vmem:[#allocation10 + $0x38] sm:$0xff] }
 0x4fc   :  { %9155 = vmatpush1.bf16.msra.mxu1 %v14465_v37  ;;  %8828 = vmatprep.subr.bf16.mxu0 %v14472_v44  ;;  %v14503_v37 = vcombine.low %v3349_v5, %v3353_v6  ;;  %v14505_v44 = vcombine.low %v3350_v4, %v3354_v27  ;;  %v13494_v12 = vcombine.high %v2336_v26, %v2340_v0  ;;  %v2367_v4 = vld [vmem:[#allocation10 + $0x110] sm:$0xff] }
 0x4fd   :  { %9156 = vmatprep.subr.bf16.mxu1 %v14474_v35  ;;  %v2315_v35 = vmax.f32 %v17216_v30, 0.0  ;;  %v13493_v56 = vcombine.low %v2336_v26, %v2340_v0  ;;  %v13516_v5 = vcombine.high %v2359_v25, %v2363_v60  ;;  %v2371_v27 = vld [vmem:[#allocation10 + $0x130] sm:$0xff]  ;;  %v2376_v0 = vld [vmem:[#allocation10 + $0x158] sm:$0xff] }
 0x4fe   :  { %v2379_v26 = vld [vmem:[#allocation10 + $0x170] sm:$0xff] }
 0x4ff   :  { %8829 = vmatpush1.bf16.msra.mxu0 %v14471_v39  ;;  %v13491_v39 = vcombine.low %v2335_v17, %v2339_v28  ;;  %v2375_v28 = vld [vmem:[#allocation10 + $0x150] sm:$0xff] }
 0x500   :  { %9157 = vmatpush1.bf16.msra.mxu1 %v14473_v7  ;;  %8830 = vmatprep.subr.bf16.mxu0 %v14480_v3  ;;  %v2344_v7 = vld [vmem:[#allocation10 + $0x58] sm:$0xff] }
 0x501   :  { %9158 = vmatprep.subr.bf16.mxu1 %v14482_v58  ;;  %v2348_v3 = vld [vmem:[#allocation10 + $0x78] sm:$0xff]  ;;  %v17269_v58 = vpack.c.bf16 %v2315_v35, %v2315_v35 }
 0x502   :  { %v13502_v30 = vcombine.high %v2344_v7, %v2348_v3 }
 0x503   :  { %8831 = vmatpush1.bf16.msra.mxu0 %v14479_v50  ;;  %v2352_v50 = vld [vmem:[#allocation10 + $0x98] sm:$0xff] }
 0x504   :  { %9159 = vmatpush1.bf16.msra.mxu1 %v14481_v32  ;;  %8832 = vmatprep.subr.bf16.mxu0 %v14488_v62  ;;  %v2356_v32 = vld [vmem:[#allocation10 + $0xb8] sm:$0xff]  ;;  %v13499_v62 = vcombine.low %v2343_v24, %v2347_v41  ;;  %v2383_v24 = vld [vmem:[#allocation10 + $0x190] sm:$0xff] }
 0x505   :  { %9160 = vmatprep.subr.bf16.mxu1 %v14490_v15  ;;  %v13501_v15 = vcombine.low %v2344_v7, %v2348_v3  ;;  %v13510_v31 = vcombine.high %v2352_v50, %v2356_v32  ;;  %v2387_v41 = vld [vmem:[#allocation10 + $0x1b0] sm:$0xff]  ;;  %v2388_v7 = vld [vmem:[#allocation10 + $0x1b8] sm:$0xff]  ;;  %v13531_v3 = vcombine.low %v2375_v28, %v2379_v26 }
 0x507   :  { %8833 = vmatpush1.bf16.msra.mxu0 %v14487_v29  ;;  %v2360_v29 = vld [vmem:[#allocation10 + $0xd8] sm:$0xff] }
 0x508   :  { %9161 = vmatpush1.bf16.msra.mxu1 %v14489_v9  ;;  %8834 = vmatprep.subr.bf16.mxu0 %v14496_v36  ;;  %v2364_v9 = vld [vmem:[#allocation10 + $0xf8] sm:$0xff]  ;;  %v13507_v36 = vcombine.low %v2351_v43, %v2355_v23  ;;  %v2391_v23 = vld [vmem:[#allocation10 + $0x1d0] sm:$0xff] }
 0x509   :  { %9162 = vmatprep.subr.bf16.mxu1 %v14498_v55  ;;  %v13509_v55 = vcombine.low %v2352_v50, %v2356_v32  ;;  %v13518_v6 = vcombine.high %v2360_v29, %v2364_v9  ;;  %v2392_v50 = vld [vmem:[#allocation10 + $0x1d8] sm:$0xff] }
 0x50a   :  { %v2396_v32 = vld [vmem:[#allocation10 + $0x1f8] sm:$0xff] }
 0x50b   :  { %8835 = vmatpush1.bf16.msra.mxu0 %v14495_v40  ;;  %v2368_v40 = vld [vmem:[#allocation10 + $0x118] sm:$0xff] }
 0x50c   :  { %9163 = vmatpush1.bf16.msra.mxu1 %v14497_v20  ;;  %8836 = vmatprep.subr.bf16.mxu0 %v14504_v1  ;;  %v2372_v20 = vld [vmem:[#allocation10 + $0x138] sm:$0xff]  ;;  %v13517_v1 = vcombine.low %v2360_v29, %v2364_v9 }
 0x50d   :  { %9164 = vmatprep.subr.bf16.mxu1 %v14506_v59  ;;  %v13524_v59 = vcombine.high %v2367_v4, %v2371_v27  ;;  %v13526_v17 = vcombine.high %v2368_v40, %v2372_v20  ;;  %v13525_v35 = vcombine.low %v2368_v40, %v2372_v20  ;;  %v2400_v29 = vld [vmem:[#allocation10 + $0x218] sm:$0xff] }
 0x50e   :  { %v2404_v9 = vld [vmem:[#allocation10 + $0x238] sm:$0xff] }
 0x50f   :  { %8837 = vmatpush1.bf16.msra.mxu0 %v14503_v37  ;;  %v2380_v37 = vld [vmem:[#allocation10 + $0x178] sm:$0xff] }
 0x510   :  { %9165 = vmatpush1.bf16.msra.mxu1 %v14505_v44  ;;  %9175 = vmatprep.subr.bf16.mxu0 %v13492_v45  ;;  %v13523_v44 = vcombine.low %v2367_v4, %v2371_v27  ;;  %v13532_v45 = vcombine.high %v2375_v28, %v2379_v26  ;;  %v2407_v4 = vld [vmem:[#allocation10 + $0x250] sm:$0xff]  ;;  %v2408_v40 = vld [vmem:[#allocation10 + $0x258] sm:$0xff] }
 0x511   :  { %9503 = vmatprep.subr.bf16.mxu1 %v13494_v12  ;;  %v13534_v12 = vcombine.high %v2376_v0, %v2380_v37  ;;  %v2411_v27 = vld [vmem:[#allocation10 + $0x270] sm:$0xff]  ;;  %v2412_v20 = vld [vmem:[#allocation10 + $0x278] sm:$0xff] }
 0x512   :  { %8839 = vmatmul.mubr.bf16.vlgmr.msra.gmra.mrb[12].mxu0 %v17269_v58  ;;  %v2415_v28 = vld [vmem:[#allocation10 + $0x290] sm:$0xff] }
 0x513   :  { %9167 = vmatmul.mubr.bf16.vlgmr.msra.gmra.mrb[20].mxu1 %v17269_v58  ;;  %9176 = vmatpush1.bf16.msra.mxu0 %v13491_v39  ;;  %v2384_v39 = vld [vmem:[#allocation10 + $0x198] sm:$0xff]  ;;  %v2419_v26 = vld [vmem:[#allocation10 + $0x2b0] sm:$0xff] }
 0x514   :  { %9207 = vmatprep.mubr.bf16.mxu0 %v17030_v53  ;;  %9504 = vmatpush1.bf16.msra.mxu1 %v13493_v56  ;;  %v13533_v56 = vcombine.low %v2376_v0, %v2380_v37  ;;  %v13542_v43 = vcombine.high %v2384_v39, %v2388_v7  ;;  %v2416_v0 = vld [vmem:[#allocation10 + $0x298] sm:$0xff] }
 0x515   :  { %9535 = vmatprep.mubr.bf16.mxu1 %v17030_v53  ;;  %9177 = vmatprep.subr.bf16.mxu0 %v13500_v42  ;;  %v13515_v53 = vcombine.low %v2359_v25, %v2363_v60  ;;  %v13540_v42 = vcombine.high %v2383_v24, %v2387_v41  ;;  %v2399_v25 = vld [vmem:[#allocation10 + $0x210] sm:$0xff]  ;;  %v2420_v37 = vld [vmem:[#allocation10 + $0x2b8] sm:$0xff] }
 0x516   :  { %9505 = vmatprep.subr.bf16.mxu1 %v13502_v30  ;;  %v2395_v30 = vld [vmem:[#allocation10 + $0x1f0] sm:$0xff] }
 0x517   :  { %9178 = vmatpush1.bf16.msra.mxu0 %v13499_v62  ;;  %v13539_v62 = vcombine.low %v2383_v24, %v2387_v41  ;;  %v2403_v60 = vld [vmem:[#allocation10 + $0x230] sm:$0xff] }
 0x518   :  { %9506 = vmatpush1.bf16.msra.mxu1 %v13501_v15  ;;  %9179 = vmatprep.subr.bf16.mxu0 %v13508_v51  ;;  %v13541_v15 = vcombine.low %v2384_v39, %v2388_v7  ;;  %v13548_v51 = vcombine.high %v2391_v23, %v2395_v30  ;;  %v2423_v24 = vld [vmem:[#allocation10 + $0x2d0] sm:$0xff]  ;;  %v2424_v39 = vld [vmem:[#allocation10 + $0x2d8] sm:$0xff] }
 0x519   :  { %9507 = vmatprep.subr.bf16.mxu1 %v13510_v31  ;;  %v13550_v31 = vcombine.high %v2392_v50, %v2396_v32  ;;  %v2427_v41 = vld [vmem:[#allocation10 + $0x2f0] sm:$0xff]  ;;  %v2428_v7 = vld [vmem:[#allocation10 + $0x2f8] sm:$0xff] }
 0x51b   :  { %9180 = vmatpush1.bf16.msra.mxu0 %v13507_v36  ;;  %v13547_v36 = vcombine.low %v2391_v23, %v2395_v30  ;;  %v2431_v23 = vld [vmem:[#allocation10 + $0x310] sm:$0xff] }
 0x51c   :  { %9508 = vmatpush1.bf16.msra.mxu1 %v13509_v55  ;;  %9181 = vmatprep.subr.bf16.mxu0 %v13516_v5  ;;  %v13549_v55 = vcombine.low %v2392_v50, %v2396_v32  ;;  %v13556_v5 = vcombine.high %v2399_v25, %v2403_v60  ;;  %v2435_v30 = vld [vmem:[#allocation10 + $0x330] sm:$0xff]  ;;  %v2432_v50 = vld [vmem:[#allocation10 + $0x318] sm:$0xff] }
 0x51d   :  { %9509 = vmatprep.subr.bf16.mxu1 %v13518_v6  ;;  %v13558_v6 = vcombine.high %v2400_v29, %v2404_v9  ;;  %v2436_v32 = vld [vmem:[#allocation10 + $0x338] sm:$0xff] }
 0x51f   :  { %9182 = vmatpush1.bf16.msra.mxu0 %v13515_v53  ;;  %v13555_v53 = vcombine.low %v2399_v25, %v2403_v60  ;;  %v2439_v25 = vld [vmem:[#allocation10 + $0x350] sm:$0xff] }
 0x520   :  { %9510 = vmatpush1.bf16.msra.mxu1 %v13517_v1  ;;  %9183 = vmatprep.subr.bf16.mxu0 %v13524_v59  ;;  %v13557_v1 = vcombine.low %v2400_v29, %v2404_v9  ;;  %v13564_v59 = vcombine.high %v2407_v4, %v2411_v27  ;;  %v2443_v60 = vld [vmem:[#allocation10 + $0x370] sm:$0xff]  ;;  %v2440_v29 = vld [vmem:[#allocation10 + $0x358] sm:$0xff] }
 0x521   :  { %9511 = vmatprep.subr.bf16.mxu1 %v13526_v17  ;;  %v13566_v17 = vcombine.high %v2408_v40, %v2412_v20  ;;  %v2444_v9 = vld [vmem:[#allocation10 + $0x378] sm:$0xff] }
 0x523   :  { %9184 = vmatpush1.bf16.msra.mxu0 %v13523_v44  ;;  %v13563_v44 = vcombine.low %v2407_v4, %v2411_v27  ;;  %v2447_v4 = vld [vmem:[#allocation10 + $0x390] sm:$0xff] }
 0x524   :  { %9512 = vmatpush1.bf16.msra.mxu1 %v13525_v35  ;;  %9185 = vmatprep.subr.bf16.mxu0 %v13532_v45  ;;  %v13565_v35 = vcombine.low %v2408_v40, %v2412_v20  ;;  %v13572_v45 = vcombine.high %v2415_v28, %v2419_v26  ;;  %v2451_v27 = vld [vmem:[#allocation10 + $0x3b0] sm:$0xff]  ;;  %v2448_v40 = vld [vmem:[#allocation10 + $0x398] sm:$0xff] }
 0x525   :  { %9513 = vmatprep.subr.bf16.mxu1 %v13534_v12  ;;  %v13574_v12 = vcombine.high %v2416_v0, %v2420_v37  ;;  %v2452_v20 = vld [vmem:[#allocation10 + $0x3b8] sm:$0xff] }
 0x527   :  { %9186 = vmatpush1.bf16.msra.mxu0 %v13531_v3  ;;  %v13571_v3 = vcombine.low %v2415_v28, %v2419_v26  ;;  %v2455_v28 = vld [vmem:[#allocation10 + $0x3d0] sm:$0xff] }
 0x528   :  { %9514 = vmatpush1.bf16.msra.mxu1 %v13533_v56  ;;  %9187 = vmatprep.subr.bf16.mxu0 %v13540_v42  ;;  %v13573_v56 = vcombine.low %v2416_v0, %v2420_v37  ;;  %v13580_v42 = vcombine.high %v2423_v24, %v2427_v41  ;;  %v2459_v26 = vld [vmem:[#allocation10 + $0x3f0] sm:$0xff]  ;;  %v2456_v0 = vld [vmem:[#allocation10 + $0x3d8] sm:$0xff] }
 0x529   :  { %9515 = vmatprep.subr.bf16.mxu1 %v13542_v43  ;;  %v13582_v43 = vcombine.high %v2424_v39, %v2428_v7  ;;  %v2460_v37 = vld [vmem:[#allocation10 + $0x3f8] sm:$0xff] }
 0x52b   :  { %9188 = vmatpush1.bf16.msra.mxu0 %v13539_v62  ;;  %v13579_v62 = vcombine.low %v2423_v24, %v2427_v41  ;;  %v2463_v24 = vld [vmem:[#allocation10 + $0x410] sm:$0xff] }
 0x52c   :  { %9516 = vmatpush1.bf16.msra.mxu1 %v13541_v15  ;;  %9189 = vmatprep.subr.bf16.mxu0 %v13548_v51  ;;  %v13581_v15 = vcombine.low %v2424_v39, %v2428_v7  ;;  %v13588_v51 = vcombine.high %v2431_v23, %v2435_v30  ;;  %v2467_v41 = vld [vmem:[#allocation10 + $0x430] sm:$0xff]  ;;  %v2464_v39 = vld [vmem:[#allocation10 + $0x418] sm:$0xff] }
 0x52d   :  { %9517 = vmatprep.subr.bf16.mxu1 %v13550_v31  ;;  %v13590_v31 = vcombine.high %v2432_v50, %v2436_v32  ;;  %v2468_v7 = vld [vmem:[#allocation10 + $0x438] sm:$0xff] }
 0x52f   :  { %9190 = vmatpush1.bf16.msra.mxu0 %v13547_v36  ;;  %v13587_v36 = vcombine.low %v2431_v23, %v2435_v30  ;;  %v2471_v23 = vld [vmem:[#allocation10 + $0x450] sm:$0xff] }
 0x530   :  { %9518 = vmatpush1.bf16.msra.mxu1 %v13549_v55  ;;  %9191 = vmatprep.subr.bf16.mxu0 %v13556_v5  ;;  %v13589_v55 = vcombine.low %v2432_v50, %v2436_v32  ;;  %v13596_v5 = vcombine.high %v2439_v25, %v2443_v60  ;;  %v2475_v30 = vld [vmem:[#allocation10 + $0x470] sm:$0xff]  ;;  %v13619_v50 = vcombine.low %v2463_v24, %v2467_v41  ;;  %v2472_v32 = vld [vmem:[#allocation10 + $0x458] sm:$0xff] }
 0x531   :  { %9519 = vmatprep.subr.bf16.mxu1 %v13558_v6  ;;  %v13598_v6 = vcombine.high %v2440_v29, %v2444_v9 }
 0x533   :  { %9192 = vmatpush1.bf16.msra.mxu0 %v13555_v53  ;;  %v13595_v53 = vcombine.low %v2439_v25, %v2443_v60  ;;  %v2483_v25 = vld [vmem:[#allocation10 + $0x4b0] sm:$0xff] }
 0x534   :  { %9520 = vmatpush1.bf16.msra.mxu1 %v13557_v1  ;;  %9193 = vmatprep.subr.bf16.mxu0 %v13564_v59  ;;  %v13597_v1 = vcombine.low %v2440_v29, %v2444_v9  ;;  %v13604_v59 = vcombine.high %v2447_v4, %v2451_v27  ;;  %v2480_v29 = vld [vmem:[#allocation10 + $0x498] sm:$0xff] }
 0x535   :  { %9521 = vmatprep.subr.bf16.mxu1 %v13566_v17  ;;  %v13606_v17 = vcombine.high %v2448_v40, %v2452_v20  ;;  %v2484_v9 = vld [vmem:[#allocation10 + $0x4b8] sm:$0xff] }
 0x537   :  { %9194 = vmatpush1.bf16.msra.mxu0 %v13563_v44  ;;  %v13603_v44 = vcombine.low %v2447_v4, %v2451_v27  ;;  %v2487_v4 = vld [vmem:[#allocation10 + $0x4d0] sm:$0xff] }
 0x538   :  { %9522 = vmatpush1.bf16.msra.mxu1 %v13565_v35  ;;  %9195 = vmatprep.subr.bf16.mxu0 %v13572_v45  ;;  %v13605_v35 = vcombine.low %v2448_v40, %v2452_v20  ;;  %v13612_v45 = vcombine.high %v2455_v28, %v2459_v26  ;;  %v2491_v27 = vld [vmem:[#allocation10 + $0x4f0] sm:$0xff]  ;;  %v2488_v40 = vld [vmem:[#allocation10 + $0x4d8] sm:$0xff] }
 0x539   :  { %9523 = vmatprep.subr.bf16.mxu1 %v13574_v12  ;;  %v13614_v12 = vcombine.high %v2456_v0, %v2460_v37  ;;  %v2492_v20 = vld [vmem:[#allocation10 + $0x4f8] sm:$0xff] }
 0x53b   :  { %9196 = vmatpush1.bf16.msra.mxu0 %v13571_v3  ;;  %v13611_v3 = vcombine.low %v2455_v28, %v2459_v26  ;;  %v2499_v28 = vld [vmem:[#allocation10 + $0x530] sm:$0xff]  ;;  %v2496_v26 = vld [vmem:[#allocation10 + $0x518] sm:$0xff] }
 0x53c   :  { %9524 = vmatpush1.bf16.msra.mxu1 %v13573_v56  ;;  %9197 = vmatprep.subr.bf16.mxu0 %v13580_v42  ;;  %v13613_v56 = vcombine.low %v2456_v0, %v2460_v37  ;;  %v13620_v42 = vcombine.high %v2463_v24, %v2467_v41  ;;  %v2500_v0 = vld [vmem:[#allocation10 + $0x538] sm:$0xff]  ;;  %v13645_v37 = vcombine.low %v2488_v40, %v2492_v20 }
 0x53d   :  { %9525 = vmatprep.subr.bf16.mxu1 %v13582_v43  ;;  %v13622_v43 = vcombine.high %v2464_v39, %v2468_v7  ;;  %v2504_v24 = vld [vmem:[#allocation10 + $0x558] sm:$0xff] }
 0x53e   :  { %v2508_v41 = vld [vmem:[#allocation10 + $0x578] sm:$0xff] }
 0x53f   :  { %9198 = vmatpush1.bf16.msra.mxu0 %v13579_v62  ;;  %v2476_v62 = vld [vmem:[#allocation10 + $0x478] sm:$0xff] }
 0x540   :  { %9526 = vmatpush1.bf16.msra.mxu1 %v13581_v15  ;;  %9199 = vmatprep.subr.bf16.mxu0 %v13588_v51  ;;  %v13621_v15 = vcombine.low %v2464_v39, %v2468_v7  ;;  %v13628_v51 = vcombine.high %v2471_v23, %v2475_v30  ;;  %v13630_v60 = vcombine.high %v2472_v32, %v2476_v62 }
 0x541   :  { %9527 = vmatprep.subr.bf16.mxu1 %v13590_v31  ;;  %v2479_v31 = vld [vmem:[#allocation10 + $0x490] sm:$0xff]  ;;  %v13653_v7 = vcombine.low %v2496_v26, %v2500_v0 }
 0x543   :  { %9200 = vmatpush1.bf16.msra.mxu0 %v13587_v36  ;;  %v13627_v36 = vcombine.low %v2471_v23, %v2475_v30  ;;  %v2512_v23 = vld [vmem:[#allocation10 + $0x598] sm:$0xff] }
 0x544   :  { %9528 = vmatpush1.bf16.msra.mxu1 %v13589_v55  ;;  %9201 = vmatprep.subr.bf16.mxu0 %v13596_v5  ;;  %v13629_v55 = vcombine.low %v2472_v32, %v2476_v62  ;;  %v13636_v5 = vcombine.high %v2479_v31, %v2483_v25  ;;  %v2516_v30 = vld [vmem:[#allocation10 + $0x5b8] sm:$0xff]  ;;  %v13661_v32 = vcombine.low %v2504_v24, %v2508_v41 }
 0x545   :  { %9529 = vmatprep.subr.bf16.mxu1 %v13598_v6  ;;  %v13638_v6 = vcombine.high %v2480_v29, %v2484_v9 }
 0x547   :  { %9202 = vmatpush1.bf16.msra.mxu0 %v13595_v53  ;;  %v13635_v53 = vcombine.low %v2479_v31, %v2483_v25  ;;  %v2523_v31 = vld [vmem:[#allocation10 + $0x5f0] sm:$0xff]  ;;  %v2520_v25 = vld [vmem:[#allocation10 + $0x5d8] sm:$0xff] }
 0x548   :  { %9530 = vmatpush1.bf16.msra.mxu1 %v13597_v1  ;;  %9203 = vmatprep.subr.bf16.mxu0 %v13604_v59  ;;  %v13644_v1 = vcombine.high %v2487_v4, %v2491_v27  ;;  %v13646_v59 = vcombine.high %v2488_v40, %v2492_v20 }
 0x549   :  { %9531 = vmatprep.subr.bf16.mxu1 %v13606_v17  ;;  %v2495_v17 = vld [vmem:[#allocation10 + $0x510] sm:$0xff] }
 0x54a   :  { %v13651_v39 = vcombine.low %v2495_v17, %v2499_v28 }
 0x54b   :  { %9204 = vmatpush1.bf16.msra.mxu0 %v13603_v44  ;;  %v13652_v44 = vcombine.high %v2495_v17, %v2499_v28  ;;  %v2536_v17 = vld [vmem:[#allocation10 + $0x658] sm:$0xff] }
 0x54c   :  { %9532 = vmatpush1.bf16.msra.mxu1 %v13605_v35  ;;  %9205 = vmatprep.subr.bf16.mxu0 %v13612_v45  ;;  %v13654_v35 = vcombine.high %v2496_v26, %v2500_v0  ;;  %v2503_v45 = vld [vmem:[#allocation10 + $0x550] sm:$0xff]  ;;  %v2540_v28 = vld [vmem:[#allocation10 + $0x678] sm:$0xff] }
 0x54d   :  { %9533 = vmatprep.subr.bf16.mxu1 %v13614_v12  ;;  %v2507_v12 = vld [vmem:[#allocation10 + $0x570] sm:$0xff] }
 0x54f   :  { %9206 = vmatpush1.bf16.msra.mxu0 %v13611_v3  ;;  %v13660_v3 = vcombine.high %v2503_v45, %v2507_v12 }
 0x550   :  { %9534 = vmatpush1.bf16.msra.mxu1 %v13613_v56  ;;  %9216 = vmatprep.subr.bf16.mxu0 %v13620_v42  ;;  %v13662_v56 = vcombine.high %v2504_v24, %v2508_v41  ;;  %v2511_v42 = vld [vmem:[#allocation10 + $0x590] sm:$0xff]  ;;  %v13693_v41 = vcombine.low %v2536_v17, %v2540_v28 }
 0x551   :  { %9544 = vmatprep.subr.bf16.mxu1 %v13622_v43  ;;  %v2515_v43 = vld [vmem:[#allocation10 + $0x5b0] sm:$0xff] }
 0x552   :  { %9208 = vmatmul.mubr.bf16.vlgmr.msra.gmra.mrb[16].mxu0 %v17032_v21  ;;  %v13668_v62 = vcombine.high %v2511_v42, %v2515_v43 }
 0x553   :  { %9536 = vmatmul.mubr.bf16.vlgmr.msra.gmra.mrb[24].mxu1 %v17032_v21  ;;  %9217 = vmatpush1.bf16.msra.mxu0 %v13619_v50  ;;  %v13637_v21 = vcombine.low %v2480_v29, %v2484_v9  ;;  %v13659_v50 = vcombine.low %v2503_v45, %v2507_v12  ;;  %v13667_v29 = vcombine.low %v2511_v42, %v2515_v43  ;;  %v2544_v45 = vld [vmem:[#allocation10 + $0x698] sm:$0xff] }
 0x554   :  { %9248 = vmatprep.mubr.bf16.mxu0 %v17046_v19  ;;  %9545 = vmatpush1.bf16.msra.mxu1 %v13621_v15  ;;  %v13670_v15 = vcombine.high %v2512_v23, %v2516_v30  ;;  %v13669_v9 = vcombine.low %v2512_v23, %v2516_v30  ;;  %v2548_v12 = vld [vmem:[#allocation10 + $0x6b8] sm:$0xff] }
 0x555   :  { %9576 = vmatprep.mubr.bf16.mxu1 %v17046_v19  ;;  %9218 = vmatprep.subr.bf16.mxu0 %v13628_v51  ;;  %v13643_v19 = vcombine.low %v2487_v4, %v2491_v27  ;;  %v2519_v51 = vld [vmem:[#allocation10 + $0x5d0] sm:$0xff]  ;;  %v2528_v4 = vld [vmem:[#allocation10 + $0x618] sm:$0xff]  ;;  %v13701_v30 = vcombine.low %v2544_v45, %v2548_v12 }
 0x556   :  { %9546 = vmatprep.subr.bf16.mxu1 %v13630_v60  ;;  %v2524_v60 = vld [vmem:[#allocation10 + $0x5f8] sm:$0xff]  ;;  %v13675_v40 = vcombine.low %v2519_v51, %v2523_v31 }
 0x557   :  { %9219 = vmatpush1.bf16.msra.mxu0 %v13627_v36  ;;  %v13676_v36 = vcombine.high %v2519_v51, %v2523_v31  ;;  %v2532_v27 = vld [vmem:[#allocation10 + $0x638] sm:$0xff]  ;;  %v13677_v20 = vcombine.low %v2520_v25, %v2524_v60 }
 0x558   :  { %9547 = vmatpush1.bf16.msra.mxu1 %v13629_v55  ;;  %9220 = vmatprep.subr.bf16.mxu0 %v13636_v5  ;;  %v13678_v55 = vcombine.high %v2520_v25, %v2524_v60  ;;  %v2527_v5 = vld [vmem:[#allocation10 + $0x610] sm:$0xff]  ;;  %v13685_v0 = vcombine.low %v2528_v4, %v2532_v27  ;;  %v2552_v42 = vld [vmem:[#allocation10 + $0x6d8] sm:$0xff] }
 0x559   :  { %9548 = vmatprep.subr.bf16.mxu1 %v13638_v6  ;;  %v2531_v6 = vld [vmem:[#allocation10 + $0x630] sm:$0xff]  ;;  %v2556_v43 = vld [vmem:[#allocation10 + $0x6f8] sm:$0xff] }
 0x55a   :  { %v13683_v26 = vcombine.low %v2527_v5, %v2531_v6  ;;  %v2560_v51 = vld [vmem:[#allocation10 + $0x718] sm:$0xff]  ;;  %v13709_v60 = vcombine.low %v2552_v42, %v2556_v43 }
 0x55b   :  { %9221 = vmatpush1.bf16.msra.mxu0 %v13635_v53  ;;  %v13684_v53 = vcombine.high %v2527_v5, %v2531_v6  ;;  %v2564_v31 = vld [vmem:[#allocation10 + $0x738] sm:$0xff] }
 0x55c   :  { %9549 = vmatpush1.bf16.msra.mxu1 %v13637_v21  ;;  %9222 = vmatprep.subr.bf16.mxu0 %v13644_v1  ;;  %v13686_v21 = vcombine.high %v2528_v4, %v2532_v27  ;;  %v2535_v1 = vld [vmem:[#allocation10 + $0x650] sm:$0xff]  ;;  %v2568_v5 = vld [vmem:[#allocation10 + $0x758] sm:$0xff]  ;;  %v13717_v27 = vcombine.low %v2560_v51, %v2564_v31 }
 0x55d   :  { %9550 = vmatprep.subr.bf16.mxu1 %v13646_v59  ;;  %v2539_v59 = vld [vmem:[#allocation10 + $0x670] sm:$0xff]  ;;  %v2572_v6 = vld [vmem:[#allocation10 + $0x778] sm:$0xff] }
 0x55e   :  { %v13691_v24 = vcombine.low %v2535_v1, %v2539_v59 }
 0x55f   :  { %9223 = vmatpush1.bf16.msra.mxu0 %v13643_v19  ;;  %v13692_v19 = vcombine.high %v2535_v1, %v2539_v59  ;;  %v2576_v1 = vld [vmem:[#allocation10 + $0x798] sm:$0xff] }
 0x560   :  { %9551 = vmatpush1.bf16.msra.mxu1 %v13645_v37  ;;  %9224 = vmatprep.subr.bf16.mxu0 %v13652_v44  ;;  %v13694_v37 = vcombine.high %v2536_v17, %v2540_v28  ;;  %v2543_v44 = vld [vmem:[#allocation10 + $0x690] sm:$0xff]  ;;  %v2580_v59 = vld [vmem:[#allocation10 + $0x7b8] sm:$0xff]  ;;  %v13725_v28 = vcombine.low %v2568_v5, %v2572_v6 }
 0x561   :  { %9552 = vmatprep.subr.bf16.mxu1 %v13654_v35  ;;  %v2547_v35 = vld [vmem:[#allocation10 + $0x6b0] sm:$0xff] }
 0x562   :  { %v13699_v23 = vcombine.low %v2543_v44, %v2547_v35 }
 0x563   :  { %9225 = vmatpush1.bf16.msra.mxu0 %v13651_v39  ;;  %v13700_v39 = vcombine.high %v2543_v44, %v2547_v35  ;;  %v2584_v44 = vld [vmem:[#allocation10 + $0x7d8] sm:$0xff] }
 0x564   :  { %9553 = vmatpush1.bf16.msra.mxu1 %v13653_v7  ;;  %9226 = vmatprep.subr.bf16.mxu0 %v13660_v3  ;;  %v13702_v7 = vcombine.high %v2544_v45, %v2548_v12  ;;  %v2551_v3 = vld [vmem:[#allocation10 + $0x6d0] sm:$0xff]  ;;  %v2588_v35 = vld [vmem:[#allocation10 + $0x7f8] sm:$0xff]  ;;  %v13733_v12 = vcombine.low %v2576_v1, %v2580_v59 }
 0x565   :  { %9554 = vmatprep.subr.bf16.mxu1 %v13662_v56  ;;  %v2555_v56 = vld [vmem:[#allocation10 + $0x6f0] sm:$0xff] }
 0x566   :  { %v13707_v25 = vcombine.low %v2551_v3, %v2555_v56 }
 0x567   :  { %9227 = vmatpush1.bf16.msra.mxu0 %v13659_v50  ;;  %v13708_v50 = vcombine.high %v2551_v3, %v2555_v56  ;;  %v2592_v3 = vld [vmem:[#allocation10 + $0x818] sm:$0xff] }
 0x568   :  { %9555 = vmatpush1.bf16.msra.mxu1 %v13661_v32  ;;  %9228 = vmatprep.subr.bf16.mxu0 %v13668_v62  ;;  %v13710_v32 = vcombine.high %v2552_v42, %v2556_v43  ;;  %v2559_v62 = vld [vmem:[#allocation10 + $0x710] sm:$0xff]  ;;  %v2596_v56 = vld [vmem:[#allocation10 + $0x838] sm:$0xff]  ;;  %v13741_v43 = vcombine.low %v2584_v44, %v2588_v35 }
 0x569   :  { %9556 = vmatprep.subr.bf16.mxu1 %v13670_v15  ;;  %v2563_v15 = vld [vmem:[#allocation10 + $0x730] sm:$0xff] }
 0x56a   :  { %v13715_v4 = vcombine.low %v2559_v62, %v2563_v15 }
 0x56b   :  { %9229 = vmatpush1.bf16.msra.mxu0 %v13667_v29  ;;  %v13716_v29 = vcombine.high %v2559_v62, %v2563_v15  ;;  %v2600_v15 = vld [vmem:[#allocation10 + $0x858] sm:$0xff] }
 0x56c   :  { %9557 = vmatpush1.bf16.msra.mxu1 %v13669_v9  ;;  %9230 = vmatprep.subr.bf16.mxu0 %v13676_v36  ;;  %v13718_v9 = vcombine.high %v2560_v51, %v2564_v31  ;;  %v2567_v36 = vld [vmem:[#allocation10 + $0x750] sm:$0xff]  ;;  %v2604_v51 = vld [vmem:[#allocation10 + $0x878] sm:$0xff]  ;;  %v13749_v31 = vcombine.low %v2592_v3, %v2596_v56 }
 0x56d   :  { %9558 = vmatprep.subr.bf16.mxu1 %v13678_v55  ;;  %v2571_v55 = vld [vmem:[#allocation10 + $0x770] sm:$0xff] }
 0x56e   :  { %v13723_v17 = vcombine.low %v2567_v36, %v2571_v55 }
 0x56f   :  { %9231 = vmatpush1.bf16.msra.mxu0 %v13675_v40  ;;  %v13724_v40 = vcombine.high %v2567_v36, %v2571_v55  ;;  %v2608_v36 = vld [vmem:[#allocation10 + $0x898] sm:$0xff] }
 0x570   :  { %9559 = vmatpush1.bf16.msra.mxu1 %v13677_v20  ;;  %9232 = vmatprep.subr.bf16.mxu0 %v13684_v53  ;;  %v13726_v20 = vcombine.high %v2568_v5, %v2572_v6  ;;  %v2575_v53 = vld [vmem:[#allocation10 + $0x790] sm:$0xff]  ;;  %v2612_v55 = vld [vmem:[#allocation10 + $0x8b8] sm:$0xff]  ;;  %v13757_v6 = vcombine.low %v2600_v15, %v2604_v51 }
 0x571   :  { %9560 = vmatprep.subr.bf16.mxu1 %v13686_v21  ;;  %v2579_v21 = vld [vmem:[#allocation10 + $0x7b0] sm:$0xff] }
 0x572   :  { %v13731_v45 = vcombine.low %v2575_v53, %v2579_v21 }
 0x573   :  { %9233 = vmatpush1.bf16.msra.mxu0 %v13683_v26  ;;  %v13732_v26 = vcombine.high %v2575_v53, %v2579_v21  ;;  %v2616_v53 = vld [vmem:[#allocation10 + $0x8d8] sm:$0xff] }
 0x574   :  { %9561 = vmatpush1.bf16.msra.mxu1 %v13685_v0  ;;  %9234 = vmatprep.subr.bf16.mxu0 %v13692_v19  ;;  %v13734_v0 = vcombine.high %v2576_v1, %v2580_v59  ;;  %v2583_v19 = vld [vmem:[#allocation10 + $0x7d0] sm:$0xff]  ;;  %v2620_v21 = vld [vmem:[#allocation10 + $0x8f8] sm:$0xff] }
 0x575   :  { %9562 = vmatprep.subr.bf16.mxu1 %v13694_v37  ;;  %v2587_v37 = vld [vmem:[#allocation10 + $0x7f0] sm:$0xff] }
 0x576   :  { %v13739_v42 = vcombine.low %v2583_v19, %v2587_v37 }
 0x577   :  { %9235 = vmatpush1.bf16.msra.mxu0 %v13691_v24  ;;  %v13740_v24 = vcombine.high %v2583_v19, %v2587_v37  ;;  %v2628_v19 = vld [vmem:[#allocation10 + $0x938] sm:$0xff]  ;;  %v13773_v37 = vcombine.low %v2616_v53, %v2620_v21 }
 0x578   :  { %9563 = vmatpush1.bf16.msra.mxu1 %v13693_v41  ;;  %9236 = vmatprep.subr.bf16.mxu0 %v13700_v39  ;;  %v13742_v41 = vcombine.high %v2584_v44, %v2588_v35  ;;  %v2591_v39 = vld [vmem:[#allocation10 + $0x810] sm:$0xff] }
 0x579   :  { %9564 = vmatprep.subr.bf16.mxu1 %v13702_v7  ;;  %v2595_v7 = vld [vmem:[#allocation10 + $0x830] sm:$0xff] }
 0x57a   :  { %v13747_v62 = vcombine.low %v2591_v39, %v2595_v7 }
 0x57b   :  { %9237 = vmatpush1.bf16.msra.mxu0 %v13699_v23  ;;  %v13748_v23 = vcombine.high %v2591_v39, %v2595_v7 }
 0x57c   :  { %9565 = vmatpush1.bf16.msra.mxu1 %v13701_v30  ;;  %9238 = vmatprep.subr.bf16.mxu0 %v13708_v50  ;;  %v13750_v30 = vcombine.high %v2592_v3, %v2596_v56  ;;  %v2599_v50 = vld [vmem:[#allocation10 + $0x850] sm:$0xff] }
 0x57d   :  { %9566 = vmatprep.subr.bf16.mxu1 %v13710_v32  ;;  %v2603_v32 = vld [vmem:[#allocation10 + $0x870] sm:$0xff] }
 0x57e   :  { %v13755_v5 = vcombine.low %v2599_v50, %v2603_v32 }
 0x57f   :  { %9239 = vmatpush1.bf16.msra.mxu0 %v13707_v25  ;;  %v13756_v25 = vcombine.high %v2599_v50, %v2603_v32 }
 0x580   :  { %9567 = vmatpush1.bf16.msra.mxu1 %v13709_v60  ;;  %9240 = vmatprep.subr.bf16.mxu0 %v13716_v29  ;;  %v2607_v60 = vld [vmem:[#allocation10 + $0x890] sm:$0xff] }
 0x581   :  { %9568 = vmatprep.subr.bf16.mxu1 %v13718_v9  ;;  %v2611_v29 = vld [vmem:[#allocation10 + $0x8b0] sm:$0xff]  ;;  %v13758_v9 = vcombine.high %v2600_v15, %v2604_v51 }
 0x582   :  { %v13763_v1 = vcombine.low %v2607_v60, %v2611_v29  ;;  %v2647_v51 = vld [vmem:[#allocation10 + $0x9d0] sm:$0xff] }
 0x583   :  { %9241 = vmatpush1.bf16.msra.mxu0 %v13715_v4  ;;  %v13764_v4 = vcombine.high %v2607_v60, %v2611_v29  ;;  %v2652_v60 = vld [vmem:[#allocation10 + $0x9f8] sm:$0xff] }
 0x584   :  { %9569 = vmatpush1.bf16.msra.mxu1 %v13717_v27  ;;  %9242 = vmatprep.subr.bf16.mxu0 %v13724_v40  ;;  %v13766_v27 = vcombine.high %v2608_v36, %v2612_v55  ;;  %v2615_v40 = vld [vmem:[#allocation10 + $0x8d0] sm:$0xff] }
 0x585   :  { %9570 = vmatprep.subr.bf16.mxu1 %v13726_v20  ;;  %v2619_v20 = vld [vmem:[#allocation10 + $0x8f0] sm:$0xff] }
 0x586   :  { %v13772_v59 = vcombine.high %v2615_v40, %v2619_v20 }
 0x587   :  { %9243 = vmatpush1.bf16.msra.mxu0 %v13723_v17  ;;  %v13774_v17 = vcombine.high %v2616_v53, %v2620_v21 }
 0x588   :  { %9571 = vmatpush1.bf16.msra.mxu1 %v13725_v28  ;;  %9244 = vmatprep.subr.bf16.mxu0 %v13732_v26  ;;  %v2623_v28 = vld [vmem:[#allocation10 + $0x910] sm:$0xff] }
 0x589   :  { %9572 = vmatprep.subr.bf16.mxu1 %v13734_v0  ;;  %v2627_v26 = vld [vmem:[#allocation10 + $0x930] sm:$0xff]  ;;  %v2624_v0 = vld [vmem:[#allocation10 + $0x918] sm:$0xff] }
 0x58a   :  { %v13780_v44 = vcombine.high %v2623_v28, %v2627_v26  ;;  %v13782_v35 = vcombine.high %v2624_v0, %v2628_v19  ;;  %v13779_v39 = vcombine.low %v2623_v28, %v2627_v26  ;;  %v13781_v7 = vcombine.low %v2624_v0, %v2628_v19 }
 0x58b   :  { %9245 = vmatpush1.bf16.msra.mxu0 %v13731_v45  ;;  %v2631_v45 = vld [vmem:[#allocation10 + $0x950] sm:$0xff] }
 0x58c   :  { %9573 = vmatpush1.bf16.msra.mxu1 %v13733_v12  ;;  %9246 = vmatprep.subr.bf16.mxu0 %v13740_v24  ;;  %v2635_v12 = vld [vmem:[#allocation10 + $0x970] sm:$0xff]  ;;  %v2632_v24 = vld [vmem:[#allocation10 + $0x958] sm:$0xff] }
 0x58d   :  { %9574 = vmatprep.subr.bf16.mxu1 %v13742_v41  ;;  %v2636_v41 = vld [vmem:[#allocation10 + $0x978] sm:$0xff]  ;;  %v13788_v3 = vcombine.high %v2631_v45, %v2635_v12  ;;  %v13787_v50 = vcombine.low %v2631_v45, %v2635_v12 }
 0x58e   :  { %v13790_v56 = vcombine.high %v2632_v24, %v2636_v41  ;;  %v13789_v32 = vcombine.low %v2632_v24, %v2636_v41 }
 0x58f   :  { %9247 = vmatpush1.bf16.msra.mxu0 %v13739_v42  ;;  %v2639_v42 = vld [vmem:[#allocation10 + $0x990] sm:$0xff] }
 0x590   :  { %9575 = vmatpush1.bf16.msra.mxu1 %v13741_v43  ;;  %9257 = vmatprep.subr.bf16.mxu0 %v13748_v23  ;;  %v2643_v43 = vld [vmem:[#allocation10 + $0x9b0] sm:$0xff]  ;;  %v2640_v23 = vld [vmem:[#allocation10 + $0x998] sm:$0xff] }
 0x591   :  { %9585 = vmatprep.subr.bf16.mxu1 %v13750_v30  ;;  %v2644_v30 = vld [vmem:[#allocation10 + $0x9b8] sm:$0xff]  ;;  %v13795_v29 = vcombine.low %v2639_v42, %v2643_v43 }
 0x592   :  { %9249 = vmatmul.mubr.bf16.vlgmr.msra.gmra.mrb[16].mxu0 %v17170_v38  ;;  %v13798_v15 = vcombine.high %v2640_v23, %v2644_v30 }
 0x593   :  { %9577 = vmatmul.mubr.bf16.vlgmr.msra.gmra.mrb[24].mxu1 %v17170_v38  ;;  %9258 = vmatpush1.bf16.msra.mxu0 %v13747_v62  ;;  %v13765_v38 = vcombine.low %v2608_v36, %v2612_v55  ;;  %v13796_v62 = vcombine.high %v2639_v42, %v2643_v43 }
 0x594   :  { %9289 = vmatprep.mubr.bf16.mxu0 %v17189_v33  ;;  %9586 = vmatpush1.bf16.msra.mxu1 %v13749_v31  ;;  %v2651_v31 = vld [vmem:[#allocation10 + $0x9f0] sm:$0xff] }
 0x595   :  { %9617 = vmatprep.mubr.bf16.mxu1 %v17189_v33  ;;  %9259 = vmatprep.subr.bf16.mxu0 %v13756_v25  ;;  %v13771_v33 = vcombine.low %v2615_v40, %v2619_v20  ;;  %v2648_v25 = vld [vmem:[#allocation10 + $0x9d8] sm:$0xff]  ;;  %v13804_v36 = vcombine.high %v2647_v51, %v2651_v31  ;;  %v13803_v40 = vcombine.low %v2647_v51, %v2651_v31 }
 0x596   :  { %9587 = vmatprep.subr.bf16.mxu1 %v13758_v9  ;;  %v13797_v9 = vcombine.low %v2640_v23, %v2644_v30  ;;  %v13806_v55 = vcombine.high %v2648_v25, %v2652_v60  ;;  %v13805_v20 = vcombine.low %v2648_v25, %v2652_v60 }
 0x597   :  { %9260 = vmatpush1.bf16.msra.mxu0 %v13755_v5  ;;  %v2655_v5 = vld [vmem:[#allocation10 + $0xa10] sm:$0xff] }
 0x598   :  { %9588 = vmatpush1.bf16.msra.mxu1 %v13757_v6  ;;  %9261 = vmatprep.subr.bf16.mxu0 %v13764_v4  ;;  %v2659_v6 = vld [vmem:[#allocation10 + $0xa30] sm:$0xff]  ;;  %v2656_v4 = vld [vmem:[#allocation10 + $0xa18] sm:$0xff] }
 0x599   :  { %9589 = vmatprep.subr.bf16.mxu1 %v13766_v27  ;;  %v2660_v27 = vld [vmem:[#allocation10 + $0xa38] sm:$0xff]  ;;  %v13812_v53 = vcombine.high %v2655_v5, %v2659_v6  ;;  %v13811_v28 = vcombine.low %v2655_v5, %v2659_v6 }
 0x59a   :  { %v13814_v21 = vcombine.high %v2656_v4, %v2660_v27  ;;  %v13813_v26 = vcombine.low %v2656_v4, %v2660_v27 }
 0x59b   :  { %9262 = vmatpush1.bf16.msra.mxu0 %v13763_v1  ;;  %v2663_v1 = vld [vmem:[#allocation10 + $0xa50] sm:$0xff] }
 0x59c   :  { %9590 = vmatpush1.bf16.msra.mxu1 %v13765_v38  ;;  %9263 = vmatprep.subr.bf16.mxu0 %v13772_v59  ;;  %v2667_v38 = vld [vmem:[#allocation10 + $0xa70] sm:$0xff]  ;;  %v2664_v59 = vld [vmem:[#allocation10 + $0xa58] sm:$0xff] }
 0x59d   :  { %9591 = vmatprep.subr.bf16.mxu1 %v13774_v17  ;;  %v2668_v17 = vld [vmem:[#allocation10 + $0xa78] sm:$0xff]  ;;  %v13820_v0 = vcombine.high %v2663_v1, %v2667_v38  ;;  %v13819_v45 = vcombine.low %v2663_v1, %v2667_v38 }
 0x59e   :  { %v13822_v19 = vcombine.high %v2664_v59, %v2668_v17  ;;  %v13821_v12 = vcombine.low %v2664_v59, %v2668_v17 }
 0x59f   :  { %9264 = vmatpush1.bf16.msra.mxu0 %v13771_v33  ;;  %v2671_v33 = vld [vmem:[#allocation10 + $0xa90] sm:$0xff] }
 0x5a0   :  { %9592 = vmatpush1.bf16.msra.mxu1 %v13773_v37  ;;  %9265 = vmatprep.subr.bf16.mxu0 %v13780_v44  ;;  %v2675_v37 = vld [vmem:[#allocation10 + $0xab0] sm:$0xff]  ;;  %v2672_v44 = vld [vmem:[#allocation10 + $0xa98] sm:$0xff] }
 0x5a1   :  { %9593 = vmatprep.subr.bf16.mxu1 %v13782_v35  ;;  %v2676_v35 = vld [vmem:[#allocation10 + $0xab8] sm:$0xff]  ;;  %v13828_v24 = vcombine.high %v2671_v33, %v2675_v37  ;;  %v13827_v42 = vcombine.low %v2671_v33, %v2675_v37 }
 0x5a2   :  { %v13830_v41 = vcombine.high %v2672_v44, %v2676_v35  ;;  %v13829_v43 = vcombine.low %v2672_v44, %v2676_v35 }
 0x5a3   :  { %9266 = vmatpush1.bf16.msra.mxu0 %v13779_v39  ;;  %v2679_v39 = vld [vmem:[#allocation10 + $0xad0] sm:$0xff] }
 0x5a4   :  { %9594 = vmatpush1.bf16.msra.mxu1 %v13781_v7  ;;  %9267 = vmatprep.subr.bf16.mxu0 %v13788_v3  ;;  %v2683_v7 = vld [vmem:[#allocation10 + $0xaf0] sm:$0xff]  ;;  %v2680_v3 = vld [vmem:[#allocation10 + $0xad8] sm:$0xff] }
 0x5a5   :  { %9595 = vmatprep.subr.bf16.mxu1 %v13790_v56  ;;  %v2684_v56 = vld [vmem:[#allocation10 + $0xaf8] sm:$0xff]  ;;  %v13836_v23 = vcombine.high %v2679_v39, %v2683_v7  ;;  %v13835_v51 = vcombine.low %v2679_v39, %v2683_v7 }
 0x5a6   :  { %v13838_v30 = vcombine.high %v2680_v3, %v2684_v56  ;;  %v13837_v31 = vcombine.low %v2680_v3, %v2684_v56 }
 0x5a7   :  { %9268 = vmatpush1.bf16.msra.mxu0 %v13787_v50  ;;  %v2687_v50 = vld [vmem:[#allocation10 + $0xb10] sm:$0xff] }
 0x5a8   :  { %9596 = vmatpush1.bf16.msra.mxu1 %v13789_v32  ;;  %9269 = vmatprep.subr.bf16.mxu0 %v13796_v62  ;;  %v2691_v32 = vld [vmem:[#allocation10 + $0xb30] sm:$0xff]  ;;  %v2688_v62 = vld [vmem:[#allocation10 + $0xb18] sm:$0xff] }
 0x5a9   :  { %9597 = vmatprep.subr.bf16.mxu1 %v13798_v15  ;;  %v2692_v15 = vld [vmem:[#allocation10 + $0xb38] sm:$0xff]  ;;  %v13844_v25 = vcombine.high %v2687_v50, %v2691_v32  ;;  %v13843_v5 = vcombine.low %v2687_v50, %v2691_v32 }
 0x5aa   :  { %v13846_v60 = vcombine.high %v2688_v62, %v2692_v15  ;;  %v13845_v6 = vcombine.low %v2688_v62, %v2692_v15  ;;  %v2732_v50 = vld [vmem:[#allocation10 + $0xc78] sm:$0xff]  ;;  %v2735_v15 = vld [vmem:[#allocation10 + $0xc90] sm:$0xff] }
 0x5ab   :  { %9270 = vmatpush1.bf16.msra.mxu0 %v13795_v29  ;;  %v2695_v29 = vld [vmem:[#allocation10 + $0xb50] sm:$0xff] }
 0x5ac   :  { %9598 = vmatpush1.bf16.msra.mxu1 %v13797_v9  ;;  %9271 = vmatprep.subr.bf16.mxu0 %v13804_v36  ;;  %v2699_v9 = vld [vmem:[#allocation10 + $0xb70] sm:$0xff]  ;;  %v2696_v36 = vld [vmem:[#allocation10 + $0xb58] sm:$0xff] }
 0x5ad   :  { %9599 = vmatprep.subr.bf16.mxu1 %v13806_v55  ;;  %v2700_v55 = vld [vmem:[#allocation10 + $0xb78] sm:$0xff]  ;;  %v13852_v4 = vcombine.high %v2695_v29, %v2699_v9  ;;  %v13851_v1 = vcombine.low %v2695_v29, %v2699_v9 }
 0x5ae   :  { %v13854_v27 = vcombine.high %v2696_v36, %v2700_v55  ;;  %v13853_v38 = vcombine.low %v2696_v36, %v2700_v55 }
 0x5af   :  { %9272 = vmatpush1.bf16.msra.mxu0 %v13803_v40  ;;  %v2703_v40 = vld [vmem:[#allocation10 + $0xb90] sm:$0xff] }
 0x5b0   :  { %9600 = vmatpush1.bf16.msra.mxu1 %v13805_v20  ;;  %9273 = vmatprep.subr.bf16.mxu0 %v13812_v53  ;;  %v2707_v20 = vld [vmem:[#allocation10 + $0xbb0] sm:$0xff]  ;;  %v2704_v53 = vld [vmem:[#allocation10 + $0xb98] sm:$0xff] }
 0x5b1   :  { %9601 = vmatprep.subr.bf16.mxu1 %v13814_v21  ;;  %v2708_v21 = vld [vmem:[#allocation10 + $0xbb8] sm:$0xff]  ;;  %v13860_v59 = vcombine.high %v2703_v40, %v2707_v20  ;;  %v13859_v33 = vcombine.low %v2703_v40, %v2707_v20 }
 0x5b2   :  { %v13862_v17 = vcombine.high %v2704_v53, %v2708_v21  ;;  %v13861_v37 = vcombine.low %v2704_v53, %v2708_v21  ;;  %v2751_v21 = vld [vmem:[#allocation10 + $0xd10] sm:$0xff] }
 0x5b3   :  { %9274 = vmatpush1.bf16.msra.mxu0 %v13811_v28  ;;  %v2711_v28 = vld [vmem:[#allocation10 + $0xbd0] sm:$0xff] }
 0x5b4   :  { %9602 = vmatpush1.bf16.msra.mxu1 %v13813_v26  ;;  %9275 = vmatprep.subr.bf16.mxu0 %v13820_v0  ;;  %v2715_v26 = vld [vmem:[#allocation10 + $0xbf0] sm:$0xff]  ;;  %v2712_v0 = vld [vmem:[#allocation10 + $0xbd8] sm:$0xff] }
 0x5b5   :  { %9603 = vmatprep.subr.bf16.mxu1 %v13822_v19  ;;  %v2716_v19 = vld [vmem:[#allocation10 + $0xbf8] sm:$0xff]  ;;  %v13868_v44 = vcombine.high %v2711_v28, %v2715_v26  ;;  %v13867_v39 = vcombine.low %v2711_v28, %v2715_v26 }
 0x5b6   :  { %v13870_v35 = vcombine.high %v2712_v0, %v2716_v19  ;;  %v13869_v7 = vcombine.low %v2712_v0, %v2716_v19  ;;  %v2759_v0 = vld [vmem:[#allocation10 + $0xd50] sm:$0xff] }
 0x5b7   :  { %9276 = vmatpush1.bf16.msra.mxu0 %v13819_v45  ;;  %v2719_v45 = vld [vmem:[#allocation10 + $0xc10] sm:$0xff] }
 0x5b8   :  { %9604 = vmatpush1.bf16.msra.mxu1 %v13821_v12  ;;  %9277 = vmatprep.subr.bf16.mxu0 %v13828_v24  ;;  %v2723_v12 = vld [vmem:[#allocation10 + $0xc30] sm:$0xff]  ;;  %v2720_v24 = vld [vmem:[#allocation10 + $0xc18] sm:$0xff] }
 0x5b9   :  { %9605 = vmatprep.subr.bf16.mxu1 %v13830_v41  ;;  %v2724_v41 = vld [vmem:[#allocation10 + $0xc38] sm:$0xff]  ;;  %v13876_v3 = vcombine.high %v2719_v45, %v2723_v12  ;;  %v2763_v19 = vld [vmem:[#allocation10 + $0xd70] sm:$0xff] }
 0x5ba   :  { %v13878_v56 = vcombine.high %v2720_v24, %v2724_v41  ;;  %v13877_v32 = vcombine.low %v2720_v24, %v2724_v41  ;;  %v17287_v24 = vld [vmem:[#allocation10 + $0xd90] sm:$0xff] }
 0x5bb   :  { %9278 = vmatpush1.bf16.msra.mxu0 %v13827_v42  ;;  %v2727_v42 = vld [vmem:[#allocation10 + $0xc50] sm:$0xff] }
 0x5bc   :  { %9606 = vmatpush1.bf16.msra.mxu1 %v13829_v43  ;;  %9279 = vmatprep.subr.bf16.mxu0 %v13836_v23  ;;  %v2731_v43 = vld [vmem:[#allocation10 + $0xc70] sm:$0xff]  ;;  %v13875_v23 = vcombine.low %v2719_v45, %v2723_v12  ;;  %v13916_v12 = vcombine.high %v2759_v0, %v2763_v19 }
 0x5bd   :  { %9607 = vmatprep.subr.bf16.mxu1 %v13838_v30  ;;  %v2728_v30 = vld [vmem:[#allocation10 + $0xc58] sm:$0xff]  ;;  %v13884_v62 = vcombine.high %v2727_v42, %v2731_v43  ;;  %v13883_v29 = vcombine.low %v2727_v42, %v2731_v43  ;;  %v17289_v41 = vld [vmem:[#allocation10 + $0xdb0] sm:$0xff] }
 0x5be   :  { %v13885_v9 = vcombine.low %v2728_v30, %v2732_v50 }
 0x5bf   :  { %9280 = vmatpush1.bf16.msra.mxu0 %v13835_v51  ;;  %v2739_v51 = vld [vmem:[#allocation10 + $0xcb0] sm:$0xff] }
 0x5c0   :  { %9608 = vmatpush1.bf16.msra.mxu1 %v13837_v31  ;;  %9281 = vmatprep.subr.bf16.mxu0 %v13844_v25  ;;  %v13886_v31 = vcombine.high %v2728_v30, %v2732_v50  ;;  %v2736_v25 = vld [vmem:[#allocation10 + $0xc98] sm:$0xff]  ;;  %v13892_v36 = vcombine.high %v2735_v15, %v2739_v51  ;;  %v13891_v40 = vcombine.low %v2735_v15, %v2739_v51 }
 0x5c1   :  { %9609 = vmatprep.subr.bf16.mxu1 %v13846_v60  ;;  %v2740_v60 = vld [vmem:[#allocation10 + $0xcb8] sm:$0xff]  ;;  %v13915_v15 = vcombine.low %v2759_v0, %v2763_v19 }
 0x5c2   :  { %v13894_v55 = vcombine.high %v2736_v25, %v2740_v60  ;;  %v17301_v30 = vld [vmem:[#allocation10 + $0xdd8] sm:$0xff] }
 0x5c3   :  { %9282 = vmatpush1.bf16.msra.mxu0 %v13843_v5  ;;  %v2743_v5 = vld [vmem:[#allocation10 + $0xcd0] sm:$0xff]  ;;  %v17303_v50 = vld [vmem:[#allocation10 + $0xdf8] sm:$0xff] }
 0x5c4   :  { %9610 = vmatpush1.bf16.msra.mxu1 %v13845_v6  ;;  %9283 = vmatprep.subr.bf16.mxu0 %v13852_v4  ;;  %v2747_v6 = vld [vmem:[#allocation10 + $0xcf0] sm:$0xff]  ;;  %v2744_v4 = vld [vmem:[#allocation10 + $0xcd8] sm:$0xff] }
 0x5c5   :  { %9611 = vmatprep.subr.bf16.mxu1 %v13854_v27  ;;  %v2748_v27 = vld [vmem:[#allocation10 + $0xcf8] sm:$0xff]  ;;  %v13900_v20 = vcombine.high %v2743_v5, %v2747_v6 }
 0x5c6   :  { %v13902_v53 = vcombine.high %v2744_v4, %v2748_v27 }
 0x5c7   :  { %9284 = vmatpush1.bf16.msra.mxu0 %v13851_v1  ;;  %v2755_v1 = vld [vmem:[#allocation10 + $0xd30] sm:$0xff] }
 0x5c8   :  { %9612 = vmatpush1.bf16.msra.mxu1 %v13853_v38  ;;  %9285 = vmatprep.subr.bf16.mxu0 %v13860_v59  ;;  %v2752_v38 = vld [vmem:[#allocation10 + $0xd18] sm:$0xff]  ;;  %v13908_v28 = vcombine.high %v2751_v21, %v2755_v1 }
 0x5c9   :  { %9613 = vmatprep.subr.bf16.mxu1 %v13862_v17  ;;  %v2756_v59 = vld [vmem:[#allocation10 + $0xd38] sm:$0xff]  ;;  %v13901_v17 = vcombine.low %v2744_v4, %v2748_v27 }
 0x5ca   :  { %v13910_v26 = vcombine.high %v2752_v38, %v2756_v59  ;;  %v13909_v45 = vcombine.low %v2752_v38, %v2756_v59  ;;  %v13934_v38 = vcombine.high %v17301_v30, %v17303_v50 }
 0x5cb   :  { %9286 = vmatpush1.bf16.msra.mxu0 %v13859_v33  ;;  %v2760_v33 = vld [vmem:[#allocation10 + $0xd58] sm:$0xff] }
 0x5cc   :  { %9614 = vmatpush1.bf16.msra.mxu1 %v13861_v37  ;;  %9287 = vmatprep.subr.bf16.mxu0 %v13868_v44  ;;  %v2764_v37 = vld [vmem:[#allocation10 + $0xd78] sm:$0xff]  ;;  %v13907_v44 = vcombine.low %v2751_v21, %v2755_v1 }
 0x5cd   :  { %9615 = vmatprep.subr.bf16.mxu1 %v13870_v35  ;;  %v3357_v35 = vld [vmem:[#allocation11] sm:$0xff]  ;;  %v13917_v51 = vcombine.low %v2760_v33, %v2764_v37 }
 0x5ce   :  { %v3362_v42 = vrot.slane %v3357_v35, %v16683_v47  ;;  %v3370_v43 = vrot.slane %v3357_v35, %v16739_v16 }
 0x5cf   :  { %9288 = vmatpush1.bf16.msra.mxu0 %v13867_v39  ;;  %v13918_v39 = vcombine.high %v2760_v33, %v2764_v37 }
 0x5d0   :  { %9616 = vmatpush1.bf16.msra.mxu1 %v13869_v7  ;;  %9298 = vmatprep.subr.bf16.mxu0 %v13876_v3  ;;  %v17291_v7 = vld [vmem:[#allocation10 + $0xd98] sm:$0xff] }
 0x5d1   :  { %9626 = vmatprep.subr.bf16.mxu1 %v13878_v56  ;;  %v17293_v3 = vld [vmem:[#allocation10 + $0xdb8] sm:$0xff]  ;;  %v17295_v56 = vld [vmem:[#allocation10 + $0xdd0] sm:$0xff] }
 0x5d2   :  { %9290 = vmatmul.mubr.bf16.vlgmr.msra.gmra.mrb[16].mxu0 %v17220_v34 }
 0x5d3   :  { %9618 = vmatmul.mubr.bf16.vlgmr.msra.gmra.mrb[24].mxu1 %v17220_v34  ;;  %9299 = vmatpush1.bf16.msra.mxu0 %v13875_v23  ;;  %v13893_v34 = vcombine.low %v2736_v25, %v2740_v60  ;;  %v17299_v23 = vld [vmem:[#allocation10 + $0xdf0] sm:$0xff]  ;;  %v13923_v60 = vcombine.low %v17287_v24, %v17289_v41 }
 0x5d4   :  { %9330 = vmatprep.mubr.bf16.mxu0 %v17223_v61  ;;  %9627 = vmatpush1.bf16.msra.mxu1 %v13877_v32  ;;  %v3366_v32 = vrot.slane %v3357_v35, %v16688_v52  ;;  %v17309_v25 = vld [vmem:[#allocation10 + $0xe30] sm:$0xff]  ;;  %v13931_v4 = vcombine.low %v17295_v56, %v17299_v23  ;;  %v13932_v27 = vcombine.high %v17295_v56, %v17299_v23 }
 0x5d5   :  { %9658 = vmatprep.mubr.bf16.mxu1 %v17223_v61  ;;  %9300 = vmatprep.subr.bf16.mxu0 %v13884_v62  ;;  %v13899_v61 = vcombine.low %v2743_v5, %v2747_v6  ;;  %v3374_v62 = vrot.slane %v3357_v35, %v16742_v18  ;;  %v13926_v6 = vcombine.high %v17291_v7, %v17293_v3 }
 0x5d6   :  { %9628 = vmatprep.subr.bf16.mxu1 %v13886_v31  ;;  %v17307_v31 = vld [vmem:[#allocation10 + $0xe10] sm:$0xff] }
 0x5d7   :  { %9301 = vmatpush1.bf16.msra.mxu0 %v13883_v29  ;;  %v13924_v29 = vcombine.high %v17287_v24, %v17289_v41  ;;  %v2792_v24 = vld [vmem:[#allocation10 + $0xe58] sm:$0xff] }
 0x5d8   :  { %9629 = vmatpush1.bf16.msra.mxu1 %v13885_v9  ;;  %9302 = vmatprep.subr.bf16.mxu0 %v13892_v36  ;;  %v13925_v9 = vcombine.low %v17291_v7, %v17293_v3  ;;  %v17317_v36 = vld [vmem:[#allocation10 + $0xe18] sm:$0xff] }
 0x5d9   :  { %9630 = vmatprep.subr.bf16.mxu1 %v13894_v55  ;;  %v17319_v55 = vld [vmem:[#allocation10 + $0xe38] sm:$0xff] }
 0x5da   :  { %v13942_v33 = vcombine.high %v17317_v36, %v17319_v55 }
 0x5db   :  { %9303 = vmatpush1.bf16.msra.mxu0 %v13891_v40  ;;  %v13933_v40 = vcombine.low %v17301_v30, %v17303_v50 }
 0x5dc   :  { %9631 = vmatpush1.bf16.msra.mxu1 %v13893_v34  ;;  %9304 = vmatprep.subr.bf16.mxu0 %v13900_v20  ;;  %v17329_v34 = vld [vmem:[#allocation10 + $0xe50] sm:$0xff] }
 0x5dd   :  { %9632 = vmatprep.subr.bf16.mxu1 %v13902_v53  ;;  %v17331_v20 = vld [vmem:[#allocation10 + $0xe70] sm:$0xff] }
 0x5df   :  { %9305 = vmatpush1.bf16.msra.mxu0 %v13899_v61  ;;  %v13940_v61 = vcombine.high %v17307_v31, %v17309_v25 }
 0x5e0   :  { %9633 = vmatpush1.bf16.msra.mxu1 %v13901_v17  ;;  %9306 = vmatprep.subr.bf16.mxu0 %v13908_v28 }
 0x5e1   :  { %9634 = vmatprep.subr.bf16.mxu1 %v13910_v26 }
 0x5e3   :  { %9307 = vmatpush1.bf16.msra.mxu0 %v13907_v44 }
 0x5e4   :  { %9635 = vmatpush1.bf16.msra.mxu1 %v13909_v45  ;;  %9308 = vmatprep.subr.bf16.mxu0 %v13916_v12 }
 0x5e5   :  { %v8840_v5 = vpop.f32.mrb[12].mxu0  ;;  %9636 = vmatprep.subr.bf16.mxu1 %v13918_v39 }
 0x5e6   :  { %v17333_v53 = vadd.f32 %v8840_v5, %v3362_v42  ;;  %v9168_v21 = vpop.f32.mrb[20].mxu1  ;;  %v8842_v1 = vpop.f32.mrb[13].mxu0 }
 0x5e7   :  { %v17341_v17 = vadd.f32 %v9168_v21, %v3370_v43  ;;  %v17343_v28 = vadd.f32 %v8842_v1, %v3366_v32  ;;  %v9170_v26 = vpop.f32.mrb[21].mxu1  ;;  %v8844_v0 = vpop.f32.mrb[14].mxu0  ;;  %9309 = vmatpush1.bf16.msra.mxu0 %v13915_v15 }
 0x5e8   :  { %v9831_v37 = vrot.slane %v17333_v53, 4  ;;  %v9887_v44 = vmul.f32 %v17333_v53, %v17333_v53  ;;  %v17352_v35 = vadd.f32 %v9170_v26, %v3374_v62  ;;  %v9172_v45 = vpop.f32.mrb[22].mxu1  ;;  %9637 = vmatpush1.bf16.msra.mxu1 %v13917_v51  ;;  %v8845_v12 = vpop.f32.mrb[15].mxu0  ;;  %9310 = vmatprep.subr.bf16.mxu0 %v13924_v29 }
 0x5e9   :  { %17740 = vst [vmem:[#allocation56_spill] sm:$0xff] %v17341_v17  ;;  %v9843_v41 = vrot.slane %v17341_v17, 4  ;;  %v9889_v39 = vmul.f32 %v17341_v17, %v17341_v17  ;;  %v9837_v7 = vrot.slane %v17343_v28, 4  ;;  %v9888_v3 = vmul.f32 %v17343_v28, %v17343_v28  ;;  %v9173_v56 = vpop.f32.mrb[23].mxu1  ;;  %9638 = vmatprep.subr.bf16.mxu1 %v13926_v6 }
 0x5ea   :  { %v9832_v42 = vadd.f32 %v17333_v53, %v9831_v37  ;;  %v9895_v43 = vrot.slane %v9887_v44, 4  ;;  %v9849_v23 = vrot.slane %v17352_v35, 4  ;;  %v9890_v32 = vmul.f32 %v17352_v35, %v17352_v35 }
 0x5eb   :  { %v9844_v62 = vadd.f32 %v17341_v17, %v9843_v41  ;;  %v9907_v15 = vrot.slane %v9889_v39, 4  ;;  %v9838_v51 = vadd.f32 %v17343_v28, %v9837_v7  ;;  %v9901_v29 = vrot.slane %v9888_v3, 4  ;;  %9311 = vmatpush1.bf16.msra.mxu0 %v13923_v60  ;;  %v2796_v60 = vld [vmem:[#allocation10 + $0xe78] sm:$0xff] }
 0x5ec   :  { %v9833_v5 = vrot.slane %v9832_v42, 2  ;;  %v9896_v21 = vadd.f32 %v9895_v43, %v9887_v44  ;;  %v9850_v1 = vadd.f32 %v17352_v35, %v9849_v23  ;;  %v9913_v6 = vrot.slane %v9890_v32, 4  ;;  %9639 = vmatpush1.bf16.msra.mxu1 %v13925_v9  ;;  %9312 = vmatprep.subr.bf16.mxu0 %v13932_v27  ;;  %v17371_v9 = vld [vmem:[#allocation10 + $0xe90] sm:$0xff] }
 0x5ed   :  { %v9845_v26 = vrot.slane %v9844_v62, 2  ;;  %v9908_v0 = vadd.f32 %v9907_v15, %v9889_v39  ;;  %v9902_v37 = vadd.f32 %v9901_v29, %v9888_v3  ;;  %9640 = vmatprep.subr.bf16.mxu1 %v13934_v38  ;;  %v13948_v45 = vcombine.high %v17329_v34, %v17331_v20  ;;  %v2804_v15 = vld [vmem:[#allocation10 + $0xeb8] sm:$0xff] }
 0x5ee   :  { %v9834_v12 = vadd.f32 %v9833_v5, %v9832_v42  ;;  %v9897_v41 = vrot.slane %v9896_v21, 2  ;;  %v9851_v56 = vrot.slane %v9850_v1, 2  ;;  %v9914_v7 = vadd.f32 %v9913_v6, %v9890_v32  ;;  %v2803_v42 = vld [vmem:[#allocation10 + $0xeb0] sm:$0xff]  ;;  %v2800_v32 = vld [vmem:[#allocation10 + $0xe98] sm:$0xff] }
 0x5ef   :  { %v9846_v19 = vadd.f32 %v9845_v26, %v9844_v62  ;;  %v9909_v44 = vrot.slane %v9908_v0, 2  ;;  %v9839_v43 = vrot.slane %v9838_v51, 2  ;;  %v9903_v23 = vrot.slane %v9902_v37, 2  ;;  %9313 = vmatpush1.bf16.msra.mxu0 %v13931_v4 }
 0x5f0   :  { %v9835_v27 = vrot.slane %v9834_v12, 1  ;;  %v9898_v39 = vadd.f32 %v9897_v41, %v9896_v21  ;;  %v9852_v3 = vadd.f32 %v9851_v56, %v9850_v1  ;;  %v9915_v38 = vrot.slane %v9914_v7, 2  ;;  %9641 = vmatpush1.bf16.msra.mxu1 %v13933_v40  ;;  %9314 = vmatprep.subr.bf16.mxu0 %v13940_v61 }
 0x5f1   :  { %v9847_v29 = vrot.slane %v9846_v19, 1  ;;  %v9910_v62 = vadd.f32 %v9909_v44, %v9908_v0  ;;  %9642 = vmatprep.subr.bf16.mxu1 %v13942_v33  ;;  %v13949_v5 = vcombine.low %v2792_v24, %v2796_v60  ;;  %v13950_v6 = vcombine.high %v2792_v24, %v2796_v60  ;;  %v2807_v24 = vld [vmem:[#allocation10 + $0xed0] sm:$0xff]  ;;  %v2812_v44 = vld [vmem:[#allocation10 + $0xef8] sm:$0xff] }
 0x5f2   :  { %v9836_v4 = vadd.f32 %v9835_v27, %v9834_v12  ;;  %v9899_v26 = vrot.slane %v9898_v39, 1  ;;  %v9853_v59 = vrot.slane %v9852_v3, 1  ;;  %v9916_v17 = vadd.f32 %v9915_v38, %v9914_v7  ;;  %v2811_v12 = vld [vmem:[#allocation10 + $0xef0] sm:$0xff] }
 0x5f3   :  { %v9848_v21 = vadd.f32 %v9847_v29, %v9846_v19  ;;  %v9911_v1 = vrot.slane %v9910_v62, 1  ;;  %v17741_v41 = vcombine.low %v17307_v31, %v17309_v25  ;;  %v13956_v30 = vcombine.high %v17371_v9, %v2803_v42  ;;  %v2808_v25 = vld [vmem:[#allocation10 + $0xed8] sm:$0xff]  ;;  %v2815_v38 = vld [vmem:[#allocation10 + $0xf10] sm:$0xff] }
 0x5f4   :  { %v13958_v50 = vcombine.high %v2800_v32, %v2804_v15  ;;  %v9840_v40 = vadd.f32 %v9839_v43, %v9838_v51  ;;  %v9904_v61 = vadd.f32 %v9903_v23, %v9902_v37  ;;  %v9854_v56 = vadd.f32 %v9853_v59, %v9852_v3 }
 0x5f5   :  { %9315 = vmatpush1.bf16.msra.mxu0 %v17741_v41  ;;  %v9917_v0 = vrot.slane %v9916_v17, 1  ;;  %v17742_v33 = vcombine.low %v17317_v36, %v17319_v55  ;;  %v17383_v19 = vmul.f32 0.125, %v9836_v4  ;;  %v9900_v7 = vadd.f32 %v9899_v26, %v9898_v39 }
 0x5f6   :  { %9316 = vmatprep.subr.bf16.mxu0 %v13948_v45  ;;  %v17385_v60 = vmul.f32 0.125, %v9848_v21  ;;  %v9912_v31 = vadd.f32 %v9911_v1, %v9910_v62  ;;  %v17387_v51 = vmul.f32 0.125, %v9854_v56  ;;  %v13955_v37 = vcombine.low %v17371_v9, %v2803_v42  ;;  %v2823_v1 = vld [vmem:[#allocation10 + $0xf50] sm:$0xff] }
 0x5f7   :  { %9643 = vmatpush1.bf16.msra.mxu1 %v17742_v33  ;;  %v9918_v59 = vadd.f32 %v9917_v0, %v9916_v17  ;;  %v17743_v55 = vcombine.low %v17329_v34, %v17331_v20  ;;  %v13957_v45 = vcombine.low %v2800_v32, %v2804_v15  ;;  %v13964_v23 = vcombine.high %v2807_v24, %v2811_v12  ;;  %v2819_v34 = vld [vmem:[#allocation10 + $0xf30] sm:$0xff]  ;;  %v2816_v20 = vld [vmem:[#allocation10 + $0xf18] sm:$0xff] }
 0x5f8   :  { %9644 = vmatprep.subr.bf16.mxu1 %v13950_v6  ;;  %v9945_v43 = vmul.f32 0.125, %v9912_v31  ;;  %v9953_v36 = vmul.f32 %v17385_v60, %v17385_v60  ;;  %v9841_v27 = vrot.slane %v9840_v40, 1  ;;  %v9954_v3 = vmul.f32 %v17387_v51, %v17387_v51  ;;  %v2820_v32 = vld [vmem:[#allocation10 + $0xf38] sm:$0xff]  ;;  %v2827_v33 = vld [vmem:[#allocation10 + $0xf70] sm:$0xff] }
 0x5f9   :  { %9317 = vmatpush1.bf16.msra.mxu0 %v17743_v55  ;;  %v9946_v39 = vmul.f32 0.125, %v9918_v59  ;;  %v13966_v17 = vcombine.high %v2808_v25, %v2812_v44  ;;  %v9943_v9 = vmul.f32 0.125, %v9900_v7  ;;  %v9951_v42 = vmul.f32 %v17383_v19, %v17383_v19  ;;  %v2828_v7 = vld [vmem:[#allocation10 + $0xf78] sm:$0xff] }
 0x5fa   :  { %9318 = vmatprep.subr.bf16.mxu0 %v13956_v30  ;;  %v9961_v29 = vsub.f32 %v9945_v43, %v9953_v36  ;;  %v9905_v62 = vrot.slane %v9904_v61, 1  ;;  %v13963_v6 = vcombine.low %v2807_v24, %v2811_v12  ;;  %v13972_v26 = vcombine.high %v2815_v38, %v2819_v34  ;;  %v2832_v55 = vld [vmem:[#allocation10 + $0xf98] sm:$0xff] }
 0x5fb   :  { %9645 = vmatpush1.bf16.msra.mxu1 %v13949_v5  ;;  %v9962_v15 = vsub.f32 %v9946_v39, %v9954_v3  ;;  %v13965_v5 = vcombine.low %v2808_v25, %v2812_v44  ;;  %v13974_v21 = vcombine.high %v2816_v20, %v2820_v32  ;;  %v9959_v41 = vsub.f32 %v9943_v9, %v9951_v42  ;;  %v2831_v25 = vld [vmem:[#allocation10 + $0xf90] sm:$0xff] }
 0x5fc   :  { %9646 = vmatprep.subr.bf16.mxu1 %v13958_v50  ;;  %v9969_v4 = vmax.f32 %v9961_v29, 0.0  ;;  %v9842_v30 = vadd.f32 %v9841_v27, %v9840_v40  ;;  %v9906_v56 = vadd.f32 %v9905_v62, %v9904_v61  ;;  %v2824_v50 = vld [vmem:[#allocation10 + $0xf58] sm:$0xff]  ;;  %v13971_v31 = vcombine.low %v2815_v38, %v2819_v34  ;;  %v2835_v40 = vld [vmem:[#allocation10 + $0xfb0] sm:$0xff] }
 0x5fd   :  { %9319 = vmatpush1.bf16.msra.mxu0 %v13955_v37  ;;  %v9970_v0 = vmax.f32 %v9962_v15, 0.0  ;;  %v13973_v24 = vcombine.low %v2816_v20, %v2820_v32  ;;  %v13980_v12 = vcombine.high %v2823_v1, %v2827_v33  ;;  %v13982_v37 = vcombine.high %v2824_v50, %v2828_v7  ;;  %v2839_v9 = vld [vmem:[#allocation10 + $0xfd0] sm:$0xff]  ;;  %v2840_v62 = vld [vmem:[#allocation10 + $0xfd8] sm:$0xff] }
 0x5fe   :  { %9320 = vmatprep.subr.bf16.mxu0 %v13964_v23  ;;  %v9978_v59 = vadd.f32 1e-05, %v9969_v4  ;;  %v9967_v44 = vmax.f32 %v9959_v41, 0.0  ;;  %v9944_v43 = vmul.f32 0.125, %v9906_v56  ;;  %v17399_v61 = vmul.f32 0.125, %v9842_v30  ;;  %v2843_v42 = vld [vmem:[#allocation10 + $0xff0] sm:$0xff] }
 0x5ff   :  { %9647 = vmatpush1.bf16.msra.mxu1 %v13957_v45  ;;  %v9979_v36 = vadd.f32 1e-05, %v9970_v0  ;;  %v2836_v45 = vld [vmem:[#allocation10 + $0xfb8] sm:$0xff]  ;;  %v13979_v23 = vcombine.low %v2823_v1, %v2827_v33  ;;  %v13981_v39 = vcombine.low %v2824_v50, %v2828_v7  ;;  %v13988_v3 = vcombine.high %v2831_v25, %v2835_v40  ;;  %v2855_v7 = vld [vmem:[#allocation10 + $0x1050] sm:$0xff] }
 0x600   :  { %9648 = vmatprep.subr.bf16.mxu1 %v13966_v17  ;;  %v9952_v27 = vmul.f32 %v17399_v61, %v17399_v61  ;;  %15661 = vrsqrt.f32 %v9978_v59  ;;  %v9976_v17 = vadd.f32 1e-05, %v9967_v44  ;;  %v13990_v38 = vcombine.high %v2832_v55, %v2836_v45  ;;  %v2844_v34 = vld [vmem:[#allocation10 + $0xff8] sm:$0xff] }
 0x601   :  { %9321 = vmatpush1.bf16.msra.mxu0 %v13963_v6  ;;  %15663 = vrsqrt.f32 %v9979_v36  ;;  %v13987_v20 = vcombine.low %v2831_v25, %v2835_v40  ;;  %v13989_v15 = vcombine.low %v2832_v55, %v2836_v45  ;;  %v13996_v6 = vcombine.high %v2839_v9, %v2843_v42  ;;  %v2848_v1 = vld [vmem:[#allocation10 + $0x1018] sm:$0xff]  ;;  %v2867_v36 = vld [vmem:[#allocation10 + $0x10b0] sm:$0xff] }
 0x602   :  { %9322 = vmatprep.subr.bf16.mxu0 %v13972_v26  ;;  %v9960_v29 = vsub.f32 %v9944_v43, %v9952_v27  ;;  %15665 = vrsqrt.f32 %v9976_v17  ;;  %v13998_v4 = vcombine.high %v2840_v62, %v2844_v34  ;;  %v2851_v26 = vld [vmem:[#allocation10 + $0x1030] sm:$0xff]  ;;  %v2852_v41 = vld [vmem:[#allocation10 + $0x1038] sm:$0xff]  ;;  %v13995_v30 = vcombine.low %v2839_v9, %v2843_v42 }
 0x603   :  { %9649 = vmatpush1.bf16.msra.mxu1 %v13965_v5  ;;  %v2847_v5 = vld [vmem:[#allocation10 + $0x1010] sm:$0xff]  ;;  %v13997_v56 = vcombine.low %v2840_v62, %v2844_v34  ;;  %v14006_v33 = vcombine.high %v2848_v1, %v2852_v41  ;;  %v14005_v25 = vcombine.low %v2848_v1, %v2852_v41  ;;  %v2864_v45 = vld [vmem:[#allocation10 + $0x1098] sm:$0xff] }
 0x604   :  { %9650 = vmatprep.subr.bf16.mxu1 %v13974_v21  ;;  %v9968_v32 = vmax.f32 %v9960_v29, 0.0  ;;  %v14004_v0 = vcombine.high %v2847_v5, %v2851_v26  ;;  %v2863_v43 = vld [vmem:[#allocation10 + $0x1090] sm:$0xff]  ;;  %v2872_v34 = vld [vmem:[#allocation10 + $0x10d8] sm:$0xff] }
 0x605   :  { %9323 = vmatpush1.bf16.msra.mxu0 %v13971_v31  ;;  %v2859_v31 = vld [vmem:[#allocation10 + $0x1070] sm:$0xff]  ;;  %v14020_v17 = vcombine.high %v2863_v43, %v2867_v36  ;;  %v2884_v1 = vld [vmem:[#allocation10 + $0x1138] sm:$0xff] }
 0x606   :  { %9324 = vmatprep.subr.bf16.mxu0 %v13980_v12  ;;  %v9977_v21 = vadd.f32 1e-05, %v9968_v32  ;;  %v2856_v12 = vld [vmem:[#allocation10 + $0x1058] sm:$0xff]  ;;  %v14012_v44 = vcombine.high %v2855_v7, %v2859_v31  ;;  %v2871_v42 = vld [vmem:[#allocation10 + $0x10d0] sm:$0xff]  ;;  %v14019_v32 = vcombine.low %v2863_v43, %v2867_v36 }
 0x607   :  { %9651 = vmatpush1.bf16.msra.mxu1 %v13973_v24  ;;  %v14003_v24 = vcombine.low %v2847_v5, %v2851_v26  ;;  %v2875_v29 = vld [vmem:[#allocation10 + $0x10f0] sm:$0xff]  ;;  %v2896_v36 = vld [vmem:[#allocation10 + $0x1198] sm:$0xff] }
 0x608   :  { %9652 = vmatprep.subr.bf16.mxu1 %v13982_v37  ;;  %15667 = vrsqrt.f32 %v9977_v21  ;;  %v2860_v37 = vld [vmem:[#allocation10 + $0x1078] sm:$0xff]  ;;  %v2879_v5 = vld [vmem:[#allocation10 + $0x1110] sm:$0xff] }
 0x609   :  { %9325 = vmatpush1.bf16.msra.mxu0 %v13979_v23  ;;  %v14014_v55 = vcombine.high %v2856_v12, %v2860_v37  ;;  %v2868_v23 = vld [vmem:[#allocation10 + $0x10b8] sm:$0xff]  ;;  %v2883_v26 = vld [vmem:[#allocation10 + $0x1130] sm:$0xff] }
 0x60a   :  { %9326 = vmatprep.subr.bf16.mxu0 %v13988_v3  ;;  %v15662_v50 = vpop.eup %15661  ;;  %v14013_v3 = vcombine.low %v2856_v12, %v2860_v37  ;;  %v14022_v9 = vcombine.high %v2864_v45, %v2868_v23  ;;  %v2880_v21 = vld [vmem:[#allocation10 + $0x1118] sm:$0xff]  ;;  %v2899_v43 = vld [vmem:[#allocation10 + $0x11b0] sm:$0xff] }
 0x60b   :  { %9653 = vmatpush1.bf16.msra.mxu1 %v13981_v39  ;;  %v15664_v59 = vpop.eup %15663  ;;  %v14011_v39 = vcombine.low %v2855_v7, %v2859_v31  ;;  %v2891_v7 = vld [vmem:[#allocation10 + $0x1170] sm:$0xff]  ;;  %v2888_v31 = vld [vmem:[#allocation10 + $0x1158] sm:$0xff]  ;;  %v14037_v12 = vcombine.low %v2880_v21, %v2884_v1 }
 0x60c   :  { %9654 = vmatprep.subr.bf16.mxu1 %v13990_v38  ;;  %v10001_v40 = vcombine.low %v15662_v50, %v15664_v59  ;;  %v15666_v27 = vpop.eup %15665  ;;  %v2887_v50 = vld [vmem:[#allocation10 + $0x1150] sm:$0xff]  ;;  %v2892_v59 = vld [vmem:[#allocation10 + $0x1178] sm:$0xff] }
 0x60d   :  { %9327 = vmatpush1.bf16.msra.mxu0 %v13987_v20  ;;  %v14044_v37 = vcombine.high %v2887_v50, %v2891_v7 }
 0x60e   :  { %9328 = vmatprep.subr.bf16.mxu0 %v13996_v6  ;;  %v17408_v62 = vrot.slane %v10001_v40, %v16811_v46  ;;  %v14028_v6 = vcombine.high %v2871_v42, %v2875_v29  ;;  %v2900_v40 = vld [vmem:[#allocation10 + $0x11b8] sm:$0xff] }
 0x60f   :  { %9655 = vmatpush1.bf16.msra.mxu1 %v13989_v15  ;;  %v14021_v15 = vcombine.low %v2864_v45, %v2868_v23  ;;  %v14045_v45 = vcombine.low %v2888_v31, %v2892_v59 }
 0x610   :  { %9656 = vmatprep.subr.bf16.mxu1 %v13998_v4 }
 0x611   :  { %9329 = vmatpush1.bf16.msra.mxu0 %v13995_v30  ;;  %v14027_v30 = vcombine.low %v2871_v42, %v2875_v29  ;;  %v14053_v42 = vcombine.low %v2896_v36, %v2900_v40 }
 0x612   :  { %9339 = vmatprep.subr.bf16.mxu0 %v14004_v0  ;;  %v15668_v38 = vpop.eup %15667  ;;  %v14036_v0 = vcombine.high %v2879_v5, %v2883_v26 }
 0x613   :  { %9657 = vmatpush1.bf16.msra.mxu1 %v13997_v56  ;;  %v10000_v20 = vcombine.low %v15666_v27, %v15668_v38  ;;  %v14054_v27 = vcombine.high %v2896_v36, %v2900_v40  ;;  %v2908_v38 = vld [vmem:[#allocation10 + $0x11f8] sm:$0xff]  ;;  %v2935_v36 = vld [vmem:[#allocation10 + $0x12d0] sm:$0xff] }
 0x614   :  { %9667 = vmatprep.subr.bf16.mxu1 %v14006_v33  ;;  %9331 = vmatmul.mubr.bf16.vlgmr.msra.gmra.mrb[16].mxu0 %v17230_v49  ;;  %v14038_v33 = vcombine.high %v2880_v21, %v2884_v1  ;;  %v2919_v21 = vld [vmem:[#allocation10 + $0x1250] sm:$0xff] }
 0x615   :  { %9340 = vmatpush1.bf16.msra.mxu0 %v14003_v24  ;;  %9371 = vmatprep.mubr.bf16.mxu0 %v17233_v63  ;;  %v17411_v4 = vrot.slane %v10000_v20, %v16811_v46  ;;  %v14035_v24 = vcombine.low %v2879_v5, %v2883_v26  ;;  %v2915_v20 = vld [vmem:[#allocation10 + $0x1230] sm:$0xff] }
 0x616   :  { %9659 = vmatmul.mubr.bf16.vlgmr.msra.gmra.mrb[24].mxu1 %v17230_v49  ;;  %9341 = vmatprep.subr.bf16.mxu0 %v14012_v44  ;;  %v2876_v49 = vld [vmem:[#allocation10 + $0x10f8] sm:$0xff]  ;;  %v2895_v44 = vld [vmem:[#allocation10 + $0x1190] sm:$0xff] }
 0x617   :  { %9668 = vmatpush1.bf16.msra.mxu1 %v14005_v25  ;;  %9699 = vmatprep.mubr.bf16.mxu1 %v17233_v63  ;;  %v14030_v63 = vcombine.high %v2872_v34, %v2876_v49  ;;  %v10032_v41 = vcombine.low %v17411_v4, %v17408_v62  ;;  %v14029_v56 = vcombine.low %v2872_v34, %v2876_v49  ;;  %v2911_v49 = vld [vmem:[#allocation10 + $0x1210] sm:$0xff] }
 0x618   :  { %9669 = vmatprep.subr.bf16.mxu1 %v14014_v55  ;;  %v14046_v25 = vcombine.high %v2888_v31, %v2892_v59  ;;  %v14043_v55 = vcombine.low %v2887_v50, %v2891_v7  ;;  %v14052_v23 = vcombine.high %v2895_v44, %v2899_v43  ;;  %v14068_v5 = vcombine.high %v2911_v49, %v2915_v20  ;;  %v2923_v1 = vld [vmem:[#allocation10 + $0x1270] sm:$0xff] }
 0x619   :  { %9342 = vmatpush1.bf16.msra.mxu0 %v14011_v39  ;;  %v2903_v39 = vld [vmem:[#allocation10 + $0x11d0] sm:$0xff]  ;;  %v14076_v50 = vcombine.high %v2919_v21, %v2923_v1 }
 0x61a   :  { %9343 = vmatprep.subr.bf16.mxu0 %v14020_v17  ;;  %v2904_v17 = vld [vmem:[#allocation10 + $0x11d8] sm:$0xff]  ;;  %v2927_v31 = vld [vmem:[#allocation10 + $0x1290] sm:$0xff] }
 0x61b   :  { %9670 = vmatpush1.bf16.msra.mxu1 %v14013_v3  ;;  %v2907_v3 = vld [vmem:[#allocation10 + $0x11f0] sm:$0xff]  ;;  %v14062_v34 = vcombine.high %v2904_v17, %v2908_v38 }
 0x61c   :  { %9671 = vmatprep.subr.bf16.mxu1 %v14022_v9  ;;  %v14051_v9 = vcombine.low %v2895_v44, %v2899_v43  ;;  %v14060_v29 = vcombine.high %v2903_v39, %v2907_v3  ;;  %v2931_v59 = vld [vmem:[#allocation10 + $0x12b0] sm:$0xff] }
 0x61d   :  { %9344 = vmatpush1.bf16.msra.mxu0 %v14019_v32  ;;  %v2912_v32 = vld [vmem:[#allocation10 + $0x1218] sm:$0xff]  ;;  %v14084_v44 = vcombine.high %v2927_v31, %v2931_v59  ;;  %v2939_v40 = vld [vmem:[#allocation10 + $0x12f0] sm:$0xff] }
 0x61e   :  { %9345 = vmatprep.subr.bf16.mxu0 %v14028_v6  ;;  %v14059_v6 = vcombine.low %v2903_v39, %v2907_v3  ;;  %v14092_v39 = vcombine.high %v2935_v36, %v2939_v40 }
 0x61f   :  { %9672 = vmatpush1.bf16.msra.mxu1 %v14021_v15  ;;  %v2916_v15 = vld [vmem:[#allocation10 + $0x1238] sm:$0xff] }
 0x620   :  { %9673 = vmatprep.subr.bf16.mxu1 %v14030_v63  ;;  %v14061_v63 = vcombine.low %v2904_v17, %v2908_v38  ;;  %v14070_v26 = vcombine.high %v2912_v32, %v2916_v15  ;;  %v2943_v17 = vld [vmem:[#allocation10 + $0x1310] sm:$0xff] }
 0x621   :  { %9346 = vmatpush1.bf16.msra.mxu0 %v14027_v30  ;;  %v2920_v30 = vld [vmem:[#allocation10 + $0x1258] sm:$0xff]  ;;  %v2947_v38 = vld [vmem:[#allocation10 + $0x1330] sm:$0xff] }
 0x622   :  { %9347 = vmatprep.subr.bf16.mxu0 %v14036_v0  ;;  %v14067_v0 = vcombine.low %v2911_v49, %v2915_v20  ;;  %v14100_v49 = vcombine.high %v2943_v17, %v2947_v38 }
 0x623   :  { %9674 = vmatpush1.bf16.msra.mxu1 %v14029_v56  ;;  %v2924_v56 = vld [vmem:[#allocation10 + $0x1278] sm:$0xff] }
 0x624   :  { %9675 = vmatprep.subr.bf16.mxu1 %v14038_v33  ;;  %v14069_v33 = vcombine.low %v2912_v32, %v2916_v15  ;;  %v14078_v7 = vcombine.high %v2920_v30, %v2924_v56  ;;  %v2951_v32 = vld [vmem:[#allocation10 + $0x1350] sm:$0xff] }
 0x625   :  { %9348 = vmatpush1.bf16.msra.mxu0 %v14035_v24  ;;  %v2928_v24 = vld [vmem:[#allocation10 + $0x1298] sm:$0xff]  ;;  %v2955_v15 = vld [vmem:[#allocation10 + $0x1370] sm:$0xff] }
 0x626   :  { %9349 = vmatprep.subr.bf16.mxu0 %v14044_v37  ;;  %v14075_v37 = vcombine.low %v2919_v21, %v2923_v1  ;;  %v14108_v21 = vcombine.high %v2951_v32, %v2955_v15 }
 0x627   :  { %9676 = vmatpush1.bf16.msra.mxu1 %v14037_v12  ;;  %v2932_v12 = vld [vmem:[#allocation10 + $0x12b8] sm:$0xff] }
 0x628   :  { %9677 = vmatprep.subr.bf16.mxu1 %v14046_v25  ;;  %v14077_v25 = vcombine.low %v2920_v30, %v2924_v56  ;;  %v14086_v43 = vcombine.high %v2928_v24, %v2932_v12  ;;  %v2959_v30 = vld [vmem:[#allocation10 + $0x1390] sm:$0xff] }
 0x629   :  { %9350 = vmatpush1.bf16.msra.mxu0 %v14043_v55  ;;  %v2936_v55 = vld [vmem:[#allocation10 + $0x12d8] sm:$0xff]  ;;  %v2963_v56 = vld [vmem:[#allocation10 + $0x13b0] sm:$0xff] }
 0x62a   :  { %9351 = vmatprep.subr.bf16.mxu0 %v14052_v23  ;;  %v14083_v23 = vcombine.low %v2927_v31, %v2931_v59  ;;  %v14116_v31 = vcombine.high %v2959_v30, %v2963_v56 }
 0x62b   :  { %9678 = vmatpush1.bf16.msra.mxu1 %v14045_v45  ;;  %v2940_v45 = vld [vmem:[#allocation10 + $0x12f8] sm:$0xff] }
 0x62c   :  { %9679 = vmatprep.subr.bf16.mxu1 %v14054_v27  ;;  %v14085_v27 = vcombine.low %v2928_v24, %v2932_v12  ;;  %v14094_v3 = vcombine.high %v2936_v55, %v2940_v45  ;;  %v2967_v24 = vld [vmem:[#allocation10 + $0x13d0] sm:$0xff] }
 0x62d   :  { %9352 = vmatpush1.bf16.msra.mxu0 %v14051_v9  ;;  %v2944_v9 = vld [vmem:[#allocation10 + $0x1318] sm:$0xff]  ;;  %v2971_v12 = vld [vmem:[#allocation10 + $0x13f0] sm:$0xff] }
 0x62e   :  { %9353 = vmatprep.subr.bf16.mxu0 %v14060_v29  ;;  %v14091_v29 = vcombine.low %v2935_v36, %v2939_v40  ;;  %v14124_v36 = vcombine.high %v2967_v24, %v2971_v12 }
 0x62f   :  { %9680 = vmatpush1.bf16.msra.mxu1 %v14053_v42  ;;  %v2948_v42 = vld [vmem:[#allocation10 + $0x1338] sm:$0xff] }
 0x630   :  { %9681 = vmatprep.subr.bf16.mxu1 %v14062_v34  ;;  %v14093_v34 = vcombine.low %v2936_v55, %v2940_v45  ;;  %v14102_v20 = vcombine.high %v2944_v9, %v2948_v42  ;;  %v2975_v55 = vld [vmem:[#allocation10 + $0x1410] sm:$0xff] }
 0x631   :  { %9354 = vmatpush1.bf16.msra.mxu0 %v14059_v6  ;;  %v2952_v6 = vld [vmem:[#allocation10 + $0x1358] sm:$0xff]  ;;  %v2979_v45 = vld [vmem:[#allocation10 + $0x1430] sm:$0xff] }
 0x632   :  { %9355 = vmatprep.subr.bf16.mxu0 %v14068_v5  ;;  %v14099_v5 = vcombine.low %v2943_v17, %v2947_v38  ;;  %v14132_v17 = vcombine.high %v2975_v55, %v2979_v45 }
 0x633   :  { %9682 = vmatpush1.bf16.msra.mxu1 %v14061_v63  ;;  %v2956_v63 = vld [vmem:[#allocation10 + $0x1378] sm:$0xff] }
 0x634   :  { %9683 = vmatprep.subr.bf16.mxu1 %v14070_v26  ;;  %v14101_v26 = vcombine.low %v2944_v9, %v2948_v42  ;;  %v14110_v1 = vcombine.high %v2952_v6, %v2956_v63  ;;  %v2983_v9 = vld [vmem:[#allocation10 + $0x1450] sm:$0xff] }
 0x635   :  { %9356 = vmatpush1.bf16.msra.mxu0 %v14067_v0  ;;  %v2960_v0 = vld [vmem:[#allocation10 + $0x1398] sm:$0xff]  ;;  %v2987_v42 = vld [vmem:[#allocation10 + $0x1470] sm:$0xff] }
 0x636   :  { %9357 = vmatprep.subr.bf16.mxu0 %v14076_v50  ;;  %v14107_v50 = vcombine.low %v2951_v32, %v2955_v15  ;;  %v14140_v32 = vcombine.high %v2983_v9, %v2987_v42  ;;  %v2991_v15 = vld [vmem:[#allocation10 + $0x1490] sm:$0xff] }
 0x637   :  { %9684 = vmatpush1.bf16.msra.mxu1 %v14069_v33  ;;  %v2964_v33 = vld [vmem:[#allocation10 + $0x13b8] sm:$0xff] }
 0x638   :  { %9685 = vmatprep.subr.bf16.mxu1 %v14078_v7  ;;  %v14109_v7 = vcombine.low %v2952_v6, %v2956_v63  ;;  %v14118_v59 = vcombine.high %v2960_v0, %v2964_v33  ;;  %v2995_v6 = vld [vmem:[#allocation10 + $0x14b0] sm:$0xff] }
 0x639   :  { %9358 = vmatpush1.bf16.msra.mxu0 %v14075_v37  ;;  %v2968_v37 = vld [vmem:[#allocation10 + $0x13d8] sm:$0xff] }
 0x63a   :  { %9359 = vmatprep.subr.bf16.mxu0 %v14084_v44  ;;  %v14115_v44 = vcombine.low %v2959_v30, %v2963_v56  ;;  %v14148_v30 = vcombine.high %v2991_v15, %v2995_v6 }
 0x63b   :  { %9686 = vmatpush1.bf16.msra.mxu1 %v14077_v25  ;;  %v2972_v25 = vld [vmem:[#allocation10 + $0x13f8] sm:$0xff] }
 0x63c   :  { %9687 = vmatprep.subr.bf16.mxu1 %v14086_v43  ;;  %v14117_v43 = vcombine.low %v2960_v0, %v2964_v33  ;;  %v14126_v40 = vcombine.high %v2968_v37, %v2972_v25  ;;  %v2999_v0 = vld [vmem:[#allocation10 + $0x14d0] sm:$0xff] }
 0x63d   :  { %9360 = vmatpush1.bf16.msra.mxu0 %v14083_v23  ;;  %v2976_v23 = vld [vmem:[#allocation10 + $0x1418] sm:$0xff]  ;;  %v3003_v33 = vld [vmem:[#allocation10 + $0x14f0] sm:$0xff] }
 0x63e   :  { %9361 = vmatprep.subr.bf16.mxu0 %v14092_v39  ;;  %v14123_v39 = vcombine.low %v2967_v24, %v2971_v12  ;;  %v3007_v12 = vld [vmem:[#allocation10 + $0x1510] sm:$0xff] }
 0x63f   :  { %9688 = vmatpush1.bf16.msra.mxu1 %v14085_v27  ;;  %v2980_v27 = vld [vmem:[#allocation10 + $0x1438] sm:$0xff] }
 0x640   :  { %9689 = vmatprep.subr.bf16.mxu1 %v14094_v3  ;;  %v14125_v3 = vcombine.low %v2968_v37, %v2972_v25  ;;  %v14134_v38 = vcombine.high %v2976_v23, %v2980_v27  ;;  %v3011_v37 = vld [vmem:[#allocation10 + $0x1530] sm:$0xff]  ;;  %v3008_v25 = vld [vmem:[#allocation10 + $0x1518] sm:$0xff] }
 0x641   :  { %9362 = vmatpush1.bf16.msra.mxu0 %v14091_v29  ;;  %v14131_v29 = vcombine.low %v2975_v55, %v2979_v45  ;;  %v3015_v55 = vld [vmem:[#allocation10 + $0x1550] sm:$0xff] }
 0x642   :  { %9363 = vmatprep.subr.bf16.mxu0 %v14100_v49  ;;  %v2988_v49 = vld [vmem:[#allocation10 + $0x1478] sm:$0xff]  ;;  %v3019_v45 = vld [vmem:[#allocation10 + $0x1570] sm:$0xff] }
 0x643   :  { %9690 = vmatpush1.bf16.msra.mxu1 %v14093_v34  ;;  %v2984_v34 = vld [vmem:[#allocation10 + $0x1458] sm:$0xff] }
 0x644   :  { %9691 = vmatprep.subr.bf16.mxu1 %v14102_v20  ;;  %v14133_v20 = vcombine.low %v2976_v23, %v2980_v27  ;;  %v14142_v63 = vcombine.high %v2984_v34, %v2988_v49  ;;  %v3016_v23 = vld [vmem:[#allocation10 + $0x1558] sm:$0xff] }
 0x645   :  { %9364 = vmatpush1.bf16.msra.mxu0 %v14099_v5  ;;  %v2992_v5 = vld [vmem:[#allocation10 + $0x1498] sm:$0xff] }
 0x646   :  { %9365 = vmatprep.subr.bf16.mxu0 %v14108_v21  ;;  %v14139_v21 = vcombine.low %v2983_v9, %v2987_v42  ;;  %v3020_v27 = vld [vmem:[#allocation10 + $0x1578] sm:$0xff]  ;;  %v3023_v9 = vld [vmem:[#allocation10 + $0x1590] sm:$0xff] }
 0x647   :  { %9692 = vmatpush1.bf16.msra.mxu1 %v14101_v26  ;;  %v2996_v26 = vld [vmem:[#allocation10 + $0x14b8] sm:$0xff]  ;;  %v3027_v42 = vld [vmem:[#allocation10 + $0x15b0] sm:$0xff] }
 0x648   :  { %9693 = vmatprep.subr.bf16.mxu1 %v14110_v1  ;;  %v14141_v1 = vcombine.low %v2984_v34, %v2988_v49  ;;  %v14150_v56 = vcombine.high %v2992_v5, %v2996_v26  ;;  %v3028_v34 = vld [vmem:[#allocation10 + $0x15b8] sm:$0xff]  ;;  %v14171_v49 = vcombine.low %v3015_v55, %v3019_v45 }
 0x649   :  { %9366 = vmatpush1.bf16.msra.mxu0 %v14107_v50  ;;  %v3000_v50 = vld [vmem:[#allocation10 + $0x14d8] sm:$0xff] }
 0x64a   :  { %9367 = vmatprep.subr.bf16.mxu0 %v14116_v31  ;;  %v14147_v31 = vcombine.low %v2991_v15, %v2995_v6  ;;  %v3031_v6 = vld [vmem:[#allocation10 + $0x15d0] sm:$0xff] }
 0x64b   :  { %9694 = vmatpush1.bf16.msra.mxu1 %v14109_v7  ;;  %v3004_v7 = vld [vmem:[#allocation10 + $0x14f8] sm:$0xff] }
 0x64c   :  { %9695 = vmatprep.subr.bf16.mxu1 %v14118_v59  ;;  %v14156_v59 = vcombine.high %v2999_v0, %v3003_v33  ;;  %v14158_v24 = vcombine.high %v3000_v50, %v3004_v7 }
 0x64d   :  { %9368 = vmatpush1.bf16.msra.mxu0 %v14115_v44  ;;  %v3012_v44 = vld [vmem:[#allocation10 + $0x1538] sm:$0xff] }
 0x64e   :  { %9369 = vmatprep.subr.bf16.mxu0 %v14124_v36  ;;  %v14164_v36 = vcombine.high %v3007_v12, %v3011_v37 }
 0x64f   :  { %9696 = vmatpush1.bf16.msra.mxu1 %v14117_v43  ;;  %v14157_v43 = vcombine.low %v3000_v50, %v3004_v7  ;;  %v3040_v50 = vld [vmem:[#allocation10 + $0x1618] sm:$0xff] }
 0x650   :  { %9697 = vmatprep.subr.bf16.mxu1 %v14126_v40  ;;  %v14166_v40 = vcombine.high %v3008_v25, %v3012_v44  ;;  %v3044_v7 = vld [vmem:[#allocation10 + $0x1638] sm:$0xff] }
 0x651   :  { %9370 = vmatpush1.bf16.msra.mxu0 %v14123_v39  ;;  %v14163_v39 = vcombine.low %v3007_v12, %v3011_v37  ;;  %v3047_v12 = vld [vmem:[#allocation10 + $0x1650] sm:$0xff] }
 0x652   :  { %9380 = vmatprep.subr.bf16.mxu0 %v14132_v17  ;;  %v14172_v17 = vcombine.high %v3015_v55, %v3019_v45  ;;  %v3051_v37 = vld [vmem:[#allocation10 + $0x1670] sm:$0xff] }
 0x653   :  { %9698 = vmatpush1.bf16.msra.mxu1 %v14125_v3  ;;  %v14165_v3 = vcombine.low %v3008_v25, %v3012_v44  ;;  %v3048_v25 = vld [vmem:[#allocation10 + $0x1658] sm:$0xff]  ;;  %v3055_v55 = vld [vmem:[#allocation10 + $0x1690] sm:$0xff] }
 0x654   :  { %9708 = vmatprep.subr.bf16.mxu1 %v14134_v38  ;;  %9372 = vmatmul.mubr.bf16.vlgmr.msra.gmra.mrb[16].mxu0 %v17240_v48  ;;  %v14174_v38 = vcombine.high %v3016_v23, %v3020_v27  ;;  %v3052_v44 = vld [vmem:[#allocation10 + $0x1678] sm:$0xff]  ;;  %v3059_v45 = vld [vmem:[#allocation10 + $0x16b0] sm:$0xff] }
 0x655   :  { %9381 = vmatpush1.bf16.msra.mxu0 %v14131_v29  ;;  %9412 = vmatprep.mubr.bf16.mxu0 %v17243_v54  ;;  %v3024_v29 = vld [vmem:[#allocation10 + $0x1598] sm:$0xff] }
 0x656   :  { %9700 = vmatmul.mubr.bf16.vlgmr.msra.gmra.mrb[24].mxu1 %v17240_v48  ;;  %9382 = vmatprep.subr.bf16.mxu0 %v14140_v32  ;;  %v14149_v48 = vcombine.low %v2992_v5, %v2996_v26  ;;  %v14180_v32 = vcombine.high %v3023_v9, %v3027_v42  ;;  %v14182_v15 = vcombine.high %v3024_v29, %v3028_v34  ;;  %v3032_v5 = vld [vmem:[#allocation10 + $0x15d8] sm:$0xff] }
 0x657   :  { %9709 = vmatpush1.bf16.msra.mxu1 %v14133_v20  ;;  %9740 = vmatprep.mubr.bf16.mxu1 %v17243_v54  ;;  %v14155_v54 = vcombine.low %v2999_v0, %v3003_v33  ;;  %v14173_v20 = vcombine.low %v3016_v23, %v3020_v27  ;;  %v3036_v26 = vld [vmem:[#allocation10 + $0x15f8] sm:$0xff]  ;;  %v3039_v0 = vld [vmem:[#allocation10 + $0x1610] sm:$0xff] }
 0x658   :  { %9710 = vmatprep.subr.bf16.mxu1 %v14142_v63  ;;  %v3035_v63 = vld [vmem:[#allocation10 + $0x15f0] sm:$0xff]  ;;  %v3056_v23 = vld [vmem:[#allocation10 + $0x1698] sm:$0xff] }
 0x659   :  { %9383 = vmatpush1.bf16.msra.mxu0 %v14139_v21  ;;  %v14179_v21 = vcombine.low %v3023_v9, %v3027_v42  ;;  %v3043_v33 = vld [vmem:[#allocation10 + $0x1630] sm:$0xff]  ;;  %v3060_v27 = vld [vmem:[#allocation10 + $0x16b8] sm:$0xff] }
 0x65a   :  { %9384 = vmatprep.subr.bf16.mxu0 %v14148_v30  ;;  %v14188_v30 = vcombine.high %v3031_v6, %v3035_v63  ;;  %v3063_v9 = vld [vmem:[#allocation10 + $0x16d0] sm:$0xff] }
 0x65b   :  { %9711 = vmatpush1.bf16.msra.mxu1 %v14141_v1  ;;  %v14181_v1 = vcombine.low %v3024_v29, %v3028_v34  ;;  %v3067_v42 = vld [vmem:[#allocation10 + $0x16f0] sm:$0xff]  ;;  %v3064_v29 = vld [vmem:[#allocation10 + $0x16d8] sm:$0xff] }
 0x65c   :  { %9712 = vmatprep.subr.bf16.mxu1 %v14150_v56  ;;  %v14190_v56 = vcombine.high %v3032_v5, %v3036_v26  ;;  %v3068_v34 = vld [vmem:[#allocation10 + $0x16f8] sm:$0xff] }
 0x65d   :  { %9385 = vmatpush1.bf16.msra.mxu0 %v14147_v31  ;;  %v14187_v31 = vcombine.low %v3031_v6, %v3035_v63  ;;  %v3071_v6 = vld [vmem:[#allocation10 + $0x1710] sm:$0xff] }
 0x65e   :  { %9386 = vmatprep.subr.bf16.mxu0 %v14156_v59  ;;  %v14196_v59 = vcombine.high %v3039_v0, %v3043_v33  ;;  %v3075_v63 = vld [vmem:[#allocation10 + $0x1730] sm:$0xff] }
 0x65f   :  { %9713 = vmatpush1.bf16.msra.mxu1 %v14149_v48  ;;  %v14189_v48 = vcombine.low %v3032_v5, %v3036_v26  ;;  %v3072_v5 = vld [vmem:[#allocation10 + $0x1718] sm:$0xff] }
 0x660   :  { %9714 = vmatprep.subr.bf16.mxu1 %v14158_v24  ;;  %v14198_v24 = vcombine.high %v3040_v50, %v3044_v7  ;;  %v3076_v26 = vld [vmem:[#allocation10 + $0x1738] sm:$0xff] }
 0x661   :  { %9387 = vmatpush1.bf16.msra.mxu0 %v14155_v54  ;;  %v14195_v54 = vcombine.low %v3039_v0, %v3043_v33  ;;  %v3079_v0 = vld [vmem:[#allocation10 + $0x1750] sm:$0xff] }
 0x662   :  { %9388 = vmatprep.subr.bf16.mxu0 %v14164_v36  ;;  %v14204_v36 = vcombine.high %v3047_v12, %v3051_v37  ;;  %v3083_v33 = vld [vmem:[#allocation10 + $0x1770] sm:$0xff] }
 0x663   :  { %9715 = vmatpush1.bf16.msra.mxu1 %v14157_v43  ;;  %v14197_v43 = vcombine.low %v3040_v50, %v3044_v7  ;;  %v3080_v50 = vld [vmem:[#allocation10 + $0x1758] sm:$0xff] }
 0x664   :  { %9716 = vmatprep.subr.bf16.mxu1 %v14166_v40  ;;  %v14206_v40 = vcombine.high %v3048_v25, %v3052_v44  ;;  %v3084_v7 = vld [vmem:[#allocation10 + $0x1778] sm:$0xff] }
 0x665   :  { %9389 = vmatpush1.bf16.msra.mxu0 %v14163_v39  ;;  %v14203_v39 = vcombine.low %v3047_v12, %v3051_v37  ;;  %v3087_v12 = vld [vmem:[#allocation10 + $0x1790] sm:$0xff] }
 0x666   :  { %9390 = vmatprep.subr.bf16.mxu0 %v14172_v17  ;;  %v14212_v17 = vcombine.high %v3055_v55, %v3059_v45  ;;  %v3091_v37 = vld [vmem:[#allocation10 + $0x17b0] sm:$0xff] }
 0x667   :  { %9717 = vmatpush1.bf16.msra.mxu1 %v14165_v3  ;;  %v14205_v3 = vcombine.low %v3048_v25, %v3052_v44  ;;  %v3088_v25 = vld [vmem:[#allocation10 + $0x1798] sm:$0xff] }
 0x668   :  { %9718 = vmatprep.subr.bf16.mxu1 %v14174_v38  ;;  %v14214_v38 = vcombine.high %v3056_v23, %v3060_v27  ;;  %v3092_v44 = vld [vmem:[#allocation10 + $0x17b8] sm:$0xff] }
 0x669   :  { %9391 = vmatpush1.bf16.msra.mxu0 %v14171_v49  ;;  %v14211_v49 = vcombine.low %v3055_v55, %v3059_v45  ;;  %v3095_v55 = vld [vmem:[#allocation10 + $0x17d0] sm:$0xff] }
 0x66a   :  { %9392 = vmatprep.subr.bf16.mxu0 %v14180_v32  ;;  %v14220_v32 = vcombine.high %v3063_v9, %v3067_v42  ;;  %v3099_v45 = vld [vmem:[#allocation10 + $0x17f0] sm:$0xff] }
 0x66b   :  { %9719 = vmatpush1.bf16.msra.mxu1 %v14173_v20  ;;  %v14213_v20 = vcombine.low %v3056_v23, %v3060_v27  ;;  %v3096_v23 = vld [vmem:[#allocation10 + $0x17d8] sm:$0xff] }
 0x66c   :  { %9720 = vmatprep.subr.bf16.mxu1 %v14182_v15  ;;  %v14222_v15 = vcombine.high %v3064_v29, %v3068_v34  ;;  %v3100_v27 = vld [vmem:[#allocation10 + $0x17f8] sm:$0xff] }
 0x66d   :  { %9393 = vmatpush1.bf16.msra.mxu0 %v14179_v21  ;;  %v14219_v21 = vcombine.low %v3063_v9, %v3067_v42  ;;  %v3103_v9 = vld [vmem:[#allocation10 + $0x1810] sm:$0xff] }
 0x66e   :  { %9394 = vmatprep.subr.bf16.mxu0 %v14188_v30  ;;  %v14228_v30 = vcombine.high %v3071_v6, %v3075_v63  ;;  %v3107_v42 = vld [vmem:[#allocation10 + $0x1830] sm:$0xff] }
 0x66f   :  { %9721 = vmatpush1.bf16.msra.mxu1 %v14181_v1  ;;  %v14221_v1 = vcombine.low %v3064_v29, %v3068_v34  ;;  %v3104_v29 = vld [vmem:[#allocation10 + $0x1818] sm:$0xff] }
 0x670   :  { %9722 = vmatprep.subr.bf16.mxu1 %v14190_v56  ;;  %v14230_v56 = vcombine.high %v3072_v5, %v3076_v26  ;;  %v3108_v34 = vld [vmem:[#allocation10 + $0x1838] sm:$0xff] }
 0x671   :  { %9395 = vmatpush1.bf16.msra.mxu0 %v14187_v31  ;;  %v14227_v31 = vcombine.low %v3071_v6, %v3075_v63  ;;  %v3111_v6 = vld [vmem:[#allocation10 + $0x1850] sm:$0xff] }
 0x672   :  { %9396 = vmatprep.subr.bf16.mxu0 %v14196_v59  ;;  %v14236_v59 = vcombine.high %v3079_v0, %v3083_v33  ;;  %v3115_v63 = vld [vmem:[#allocation10 + $0x1870] sm:$0xff] }
 0x673   :  { %9723 = vmatpush1.bf16.msra.mxu1 %v14189_v48  ;;  %v14229_v48 = vcombine.low %v3072_v5, %v3076_v26  ;;  %v14259_v5 = vcombine.low %v3103_v9, %v3107_v42  ;;  %v3112_v26 = vld [vmem:[#allocation10 + $0x1858] sm:$0xff] }
 0x674   :  { %9724 = vmatprep.subr.bf16.mxu1 %v14198_v24  ;;  %v14238_v24 = vcombine.high %v3080_v50, %v3084_v7 }
 0x675   :  { %9397 = vmatpush1.bf16.msra.mxu0 %v14195_v54  ;;  %v14235_v54 = vcombine.low %v3079_v0, %v3083_v33  ;;  %v3123_v0 = vld [vmem:[#allocation10 + $0x18b0] sm:$0xff] }
 0x676   :  { %9398 = vmatprep.subr.bf16.mxu0 %v14204_v36  ;;  %v14244_v36 = vcombine.high %v3087_v12, %v3091_v37 }
 0x677   :  { %9725 = vmatpush1.bf16.msra.mxu1 %v14197_v43  ;;  %v14237_v43 = vcombine.low %v3080_v50, %v3084_v7  ;;  %v3120_v50 = vld [vmem:[#allocation10 + $0x1898] sm:$0xff] }
 0x678   :  { %9726 = vmatprep.subr.bf16.mxu1 %v14206_v40  ;;  %v14246_v40 = vcombine.high %v3088_v25, %v3092_v44  ;;  %v3124_v7 = vld [vmem:[#allocation10 + $0x18b8] sm:$0xff] }
 0x679   :  { %9399 = vmatpush1.bf16.msra.mxu0 %v14203_v39  ;;  %v14243_v39 = vcombine.low %v3087_v12, %v3091_v37  ;;  %v3127_v12 = vld [vmem:[#allocation10 + $0x18d0] sm:$0xff] }
 0x67a   :  { %9400 = vmatprep.subr.bf16.mxu0 %v14212_v17  ;;  %v14252_v17 = vcombine.high %v3095_v55, %v3099_v45  ;;  %v3131_v37 = vld [vmem:[#allocation10 + $0x18f0] sm:$0xff] }
 0x67b   :  { %9727 = vmatpush1.bf16.msra.mxu1 %v14205_v3  ;;  %v14245_v3 = vcombine.low %v3088_v25, %v3092_v44  ;;  %v3128_v25 = vld [vmem:[#allocation10 + $0x18d8] sm:$0xff] }
 0x67c   :  { %9728 = vmatprep.subr.bf16.mxu1 %v14214_v38  ;;  %v14254_v38 = vcombine.high %v3096_v23, %v3100_v27  ;;  %v3132_v44 = vld [vmem:[#allocation10 + $0x18f8] sm:$0xff] }
 0x67d   :  { %9401 = vmatpush1.bf16.msra.mxu0 %v14211_v49  ;;  %v14251_v49 = vcombine.low %v3095_v55, %v3099_v45  ;;  %v3139_v55 = vld [vmem:[#allocation10 + $0x1930] sm:$0xff]  ;;  %v3136_v45 = vld [vmem:[#allocation10 + $0x1918] sm:$0xff] }
 0x67e   :  { %9402 = vmatprep.subr.bf16.mxu0 %v14220_v32  ;;  %v14260_v32 = vcombine.high %v3103_v9, %v3107_v42  ;;  %v3144_v9 = vld [vmem:[#allocation10 + $0x1958] sm:$0xff] }
 0x67f   :  { %9729 = vmatpush1.bf16.msra.mxu1 %v14213_v20  ;;  %v14253_v20 = vcombine.low %v3096_v23, %v3100_v27  ;;  %v3140_v23 = vld [vmem:[#allocation10 + $0x1938] sm:$0xff]  ;;  %v14285_v27 = vcombine.low %v3128_v25, %v3132_v44 }
 0x680   :  { %9730 = vmatprep.subr.bf16.mxu1 %v14222_v15  ;;  %v14262_v15 = vcombine.high %v3104_v29, %v3108_v34  ;;  %v3148_v42 = vld [vmem:[#allocation10 + $0x1978] sm:$0xff] }
 0x681   :  { %9403 = vmatpush1.bf16.msra.mxu0 %v14219_v21  ;;  %v3116_v21 = vld [vmem:[#allocation10 + $0x1878] sm:$0xff] }
 0x682   :  { %9404 = vmatprep.subr.bf16.mxu0 %v14228_v30  ;;  %v14268_v30 = vcombine.high %v3111_v6, %v3115_v63  ;;  %v14270_v33 = vcombine.high %v3112_v26, %v3116_v21 }
 0x683   :  { %9731 = vmatpush1.bf16.msra.mxu1 %v14221_v1  ;;  %v14261_v1 = vcombine.low %v3104_v29, %v3108_v34  ;;  %v14293_v34 = vcombine.low %v3136_v45, %v3140_v23 }
 0x684   :  { %9732 = vmatprep.subr.bf16.mxu1 %v14230_v56  ;;  %v3119_v56 = vld [vmem:[#allocation10 + $0x1890] sm:$0xff] }
 0x685   :  { %9405 = vmatpush1.bf16.msra.mxu0 %v14227_v31  ;;  %v14267_v31 = vcombine.low %v3111_v6, %v3115_v63  ;;  %v3152_v6 = vld [vmem:[#allocation10 + $0x1998] sm:$0xff] }
 0x686   :  { %9406 = vmatprep.subr.bf16.mxu0 %v14236_v59  ;;  %v14276_v59 = vcombine.high %v3119_v56, %v3123_v0  ;;  %v3156_v63 = vld [vmem:[#allocation10 + $0x19b8] sm:$0xff] }
 0x687   :  { %9733 = vmatpush1.bf16.msra.mxu1 %v14229_v48  ;;  %v14269_v48 = vcombine.low %v3112_v26, %v3116_v21  ;;  %v14301_v26 = vcombine.low %v3144_v9, %v3148_v42 }
 0x688   :  { %9734 = vmatprep.subr.bf16.mxu1 %v14238_v24  ;;  %v14278_v24 = vcombine.high %v3120_v50, %v3124_v7 }
 0x689   :  { %9407 = vmatpush1.bf16.msra.mxu0 %v14235_v54  ;;  %v14275_v54 = vcombine.low %v3119_v56, %v3123_v0  ;;  %v3163_v56 = vld [vmem:[#allocation10 + $0x19f0] sm:$0xff]  ;;  %v3160_v0 = vld [vmem:[#allocation10 + $0x19d8] sm:$0xff] }
 0x68a   :  { %9408 = vmatprep.subr.bf16.mxu0 %v14244_v36  ;;  %v14286_v36 = vcombine.high %v3128_v25, %v3132_v44 }
 0x68b   :  { %9735 = vmatpush1.bf16.msra.mxu1 %v14237_v43  ;;  %v14284_v43 = vcombine.high %v3127_v12, %v3131_v37 }
 0x68c   :  { %9736 = vmatprep.subr.bf16.mxu1 %v14246_v40  ;;  %v3135_v40 = vld [vmem:[#allocation10 + $0x1910] sm:$0xff] }
 0x68d   :  { %9409 = vmatpush1.bf16.msra.mxu0 %v14243_v39  ;;  %v14292_v39 = vcombine.high %v3135_v40, %v3139_v55  ;;  %v14291_v29 = vcombine.low %v3135_v40, %v3139_v55  ;;  %v3176_v40 = vld [vmem:[#allocation10 + $0x1a58] sm:$0xff] }
 0x68e   :  { %9410 = vmatprep.subr.bf16.mxu0 %v14252_v17  ;;  %v3143_v17 = vld [vmem:[#allocation10 + $0x1950] sm:$0xff]  ;;  %v3180_v55 = vld [vmem:[#allocation10 + $0x1a78] sm:$0xff] }
 0x68f   :  { %9737 = vmatpush1.bf16.msra.mxu1 %v14245_v3  ;;  %v14294_v3 = vcombine.high %v3136_v45, %v3140_v23 }
 0x690   :  { %9738 = vmatprep.subr.bf16.mxu1 %v14254_v38  ;;  %v3147_v38 = vld [vmem:[#allocation10 + $0x1970] sm:$0xff] }
 0x691   :  { %9411 = vmatpush1.bf16.msra.mxu0 %v14251_v49  ;;  %v14300_v49 = vcombine.high %v3143_v17, %v3147_v38 }
 0x692   :  { %9421 = vmatprep.subr.bf16.mxu0 %v14260_v32  ;;  %v3151_v32 = vld [vmem:[#allocation10 + $0x1990] sm:$0xff] }
 0x693   :  { %9739 = vmatpush1.bf16.msra.mxu1 %v14253_v20  ;;  %v14302_v20 = vcombine.high %v3144_v9, %v3148_v42  ;;  %v14333_v42 = vcombine.low %v3176_v40, %v3180_v55 }
 0x694   :  { %9749 = vmatprep.subr.bf16.mxu1 %v14262_v15  ;;  %9413 = vmatmul.mubr.bf16.vlgmr.msra.gmra.mrb[16].mxu0 %v17250_v57  ;;  %v3155_v15 = vld [vmem:[#allocation10 + $0x19b0] sm:$0xff] }
 0x695   :  { %9422 = vmatpush1.bf16.msra.mxu0 %v14259_v5  ;;  %9453 = vmatprep.mubr.bf16.mxu0 %v17253_v14  ;;  %v14299_v5 = vcombine.low %v3143_v17, %v3147_v38  ;;  %v14308_v21 = vcombine.high %v3151_v32, %v3155_v15  ;;  %v3184_v17 = vld [vmem:[#allocation10 + $0x1a98] sm:$0xff] }
 0x696   :  { %9741 = vmatmul.mubr.bf16.vlgmr.msra.gmra.mrb[24].mxu1 %v17250_v57  ;;  %9423 = vmatprep.subr.bf16.mxu0 %v14268_v30  ;;  %v14277_v57 = vcombine.low %v3120_v50, %v3124_v7  ;;  %v3159_v30 = vld [vmem:[#allocation10 + $0x19d0] sm:$0xff]  ;;  %v14307_v50 = vcombine.low %v3151_v32, %v3155_v15  ;;  %v14309_v7 = vcombine.low %v3152_v6, %v3156_v63  ;;  %v3188_v38 = vld [vmem:[#allocation10 + $0x1ab8] sm:$0xff] }
 0x697   :  { %9750 = vmatpush1.bf16.msra.mxu1 %v14261_v1  ;;  %9781 = vmatprep.mubr.bf16.mxu1 %v17253_v14  ;;  %v14283_v14 = vcombine.low %v3127_v12, %v3131_v37  ;;  %v14310_v1 = vcombine.high %v3152_v6, %v3156_v63  ;;  %v3168_v12 = vld [vmem:[#allocation10 + $0x1a18] sm:$0xff]  ;;  %v14315_v25 = vcombine.low %v3159_v30, %v3163_v56 }
 0x698   :  { %9751 = vmatprep.subr.bf16.mxu1 %v14270_v33  ;;  %v3164_v33 = vld [vmem:[#allocation10 + $0x19f8] sm:$0xff]  ;;  %v14341_v63 = vcombine.low %v3184_v17, %v3188_v38 }
 0x699   :  { %9424 = vmatpush1.bf16.msra.mxu0 %v14267_v31  ;;  %v14316_v31 = vcombine.high %v3159_v30, %v3163_v56  ;;  %v3172_v37 = vld [vmem:[#allocation10 + $0x1a38] sm:$0xff]  ;;  %v14317_v44 = vcombine.low %v3160_v0, %v3164_v33 }
 0x69a   :  { %9425 = vmatprep.subr.bf16.mxu0 %v14276_v59  ;;  %v3167_v59 = vld [vmem:[#allocation10 + $0x1a10] sm:$0xff]  ;;  %v14325_v23 = vcombine.low %v3168_v12, %v3172_v37  ;;  %v3192_v32 = vld [vmem:[#allocation10 + $0x1ad8] sm:$0xff] }
 0x69b   :  { %9752 = vmatpush1.bf16.msra.mxu1 %v14269_v48  ;;  %v14318_v48 = vcombine.high %v3160_v0, %v3164_v33  ;;  %v3196_v15 = vld [vmem:[#allocation10 + $0x1af8] sm:$0xff] }
 0x69c   :  { %9753 = vmatprep.subr.bf16.mxu1 %v14278_v24  ;;  %v3171_v24 = vld [vmem:[#allocation10 + $0x1a30] sm:$0xff]  ;;  %v3200_v30 = vld [vmem:[#allocation10 + $0x1b18] sm:$0xff]  ;;  %v14349_v33 = vcombine.low %v3192_v32, %v3196_v15 }
 0x69d   :  { %9426 = vmatpush1.bf16.msra.mxu0 %v14275_v54  ;;  %v14324_v54 = vcombine.high %v3167_v59, %v3171_v24  ;;  %v14323_v45 = vcombine.low %v3167_v59, %v3171_v24  ;;  %v3204_v56 = vld [vmem:[#allocation10 + $0x1b38] sm:$0xff] }
 0x69e   :  { %9427 = vmatprep.subr.bf16.mxu0 %v14284_v43  ;;  %v3175_v43 = vld [vmem:[#allocation10 + $0x1a50] sm:$0xff]  ;;  %v3208_v59 = vld [vmem:[#allocation10 + $0x1b58] sm:$0xff] }
 0x69f   :  { %9754 = vmatpush1.bf16.msra.mxu1 %v14277_v57  ;;  %v14326_v57 = vcombine.high %v3168_v12, %v3172_v37  ;;  %v3212_v24 = vld [vmem:[#allocation10 + $0x1b78] sm:$0xff]  ;;  %v14357_v37 = vcombine.low %v3200_v30, %v3204_v56 }
 0x6a0   :  { %9755 = vmatprep.subr.bf16.mxu1 %v14286_v36  ;;  %v3179_v36 = vld [vmem:[#allocation10 + $0x1a70] sm:$0xff] }
 0x6a1   :  { %9428 = vmatpush1.bf16.msra.mxu0 %v14283_v14  ;;  %v14332_v14 = vcombine.high %v3175_v43, %v3179_v36  ;;  %v14331_v9 = vcombine.low %v3175_v43, %v3179_v36  ;;  %v3216_v43 = vld [vmem:[#allocation10 + $0x1b98] sm:$0xff] }
 0x6a2   :  { %9429 = vmatprep.subr.bf16.mxu0 %v14292_v39  ;;  %v3183_v39 = vld [vmem:[#allocation10 + $0x1a90] sm:$0xff]  ;;  %v3220_v36 = vld [vmem:[#allocation10 + $0x1bb8] sm:$0xff] }
 0x6a3   :  { %9756 = vmatpush1.bf16.msra.mxu1 %v14285_v27  ;;  %v14334_v27 = vcombine.high %v3176_v40, %v3180_v55  ;;  %v14365_v55 = vcombine.low %v3208_v59, %v3212_v24 }
 0x6a4   :  { %9757 = vmatprep.subr.bf16.mxu1 %v14294_v3  ;;  %v3187_v3 = vld [vmem:[#allocation10 + $0x1ab0] sm:$0xff] }
 0x6a5   :  { %9430 = vmatpush1.bf16.msra.mxu0 %v14291_v29  ;;  %v14340_v29 = vcombine.high %v3183_v39, %v3187_v3  ;;  %v14339_v6 = vcombine.low %v3183_v39, %v3187_v3  ;;  %v3224_v39 = vld [vmem:[#allocation10 + $0x1bd8] sm:$0xff] }
 0x6a6   :  { %9431 = vmatprep.subr.bf16.mxu0 %v14300_v49  ;;  %v3191_v49 = vld [vmem:[#allocation10 + $0x1ad0] sm:$0xff]  ;;  %v3228_v3 = vld [vmem:[#allocation10 + $0x1bf8] sm:$0xff] }
 0x6a7   :  { %9758 = vmatpush1.bf16.msra.mxu1 %v14293_v34  ;;  %v14342_v34 = vcombine.high %v3184_v17, %v3188_v38  ;;  %v14373_v38 = vcombine.low %v3216_v43, %v3220_v36 }
 0x6a8   :  { %9759 = vmatprep.subr.bf16.mxu1 %v14302_v20  ;;  %v3195_v20 = vld [vmem:[#allocation10 + $0x1af0] sm:$0xff] }
 0x6a9   :  { %9432 = vmatpush1.bf16.msra.mxu0 %v14299_v5  ;;  %v14348_v5 = vcombine.high %v3191_v49, %v3195_v20  ;;  %v14347_v0 = vcombine.low %v3191_v49, %v3195_v20  ;;  %v3232_v49 = vld [vmem:[#allocation10 + $0x1c18] sm:$0xff] }
 0x6aa   :  { %9433 = vmatprep.subr.bf16.mxu0 %v14308_v21  ;;  %v3199_v21 = vld [vmem:[#allocation10 + $0x1b10] sm:$0xff]  ;;  %v3236_v20 = vld [vmem:[#allocation10 + $0x1c38] sm:$0xff] }
 0x6ab   :  { %9760 = vmatpush1.bf16.msra.mxu1 %v14301_v26  ;;  %v14350_v26 = vcombine.high %v3192_v32, %v3196_v15  ;;  %v14381_v15 = vcombine.low %v3224_v39, %v3228_v3 }
 0x6ac   :  { %9761 = vmatprep.subr.bf16.mxu1 %v14310_v1  ;;  %v3203_v1 = vld [vmem:[#allocation10 + $0x1b30] sm:$0xff] }
 0x6ad   :  { %9434 = vmatpush1.bf16.msra.mxu0 %v14307_v50  ;;  %v14356_v50 = vcombine.high %v3199_v21, %v3203_v1  ;;  %v14355_v12 = vcombine.low %v3199_v21, %v3203_v1  ;;  %v3240_v1 = vld [vmem:[#allocation10 + $0x1c58] sm:$0xff] }
 0x6ae   :  { %9435 = vmatprep.subr.bf16.mxu0 %v14316_v31  ;;  %v3207_v31 = vld [vmem:[#allocation10 + $0x1b50] sm:$0xff] }
 0x6af   :  { %9762 = vmatpush1.bf16.msra.mxu1 %v14309_v7  ;;  %v14358_v7 = vcombine.high %v3200_v30, %v3204_v56  ;;  %v3244_v30 = vld [vmem:[#allocation10 + $0x1c78] sm:$0xff]  ;;  %v14389_v56 = vcombine.low %v3232_v49, %v3236_v20 }
 0x6b0   :  { %9763 = vmatprep.subr.bf16.mxu1 %v14318_v48  ;;  %v3211_v48 = vld [vmem:[#allocation10 + $0x1b70] sm:$0xff] }
 0x6b1   :  { %9436 = vmatpush1.bf16.msra.mxu0 %v14315_v25  ;;  %v14364_v25 = vcombine.high %v3207_v31, %v3211_v48  ;;  %v14363_v40 = vcombine.low %v3207_v31, %v3211_v48  ;;  %v3248_v31 = vld [vmem:[#allocation10 + $0x1c98] sm:$0xff] }
 0x6b2   :  { %9437 = vmatprep.subr.bf16.mxu0 %v14324_v54  ;;  %v3215_v54 = vld [vmem:[#allocation10 + $0x1b90] sm:$0xff]  ;;  %v3252_v48 = vld [vmem:[#allocation10 + $0x1cb8] sm:$0xff] }
 0x6b3   :  { %9764 = vmatpush1.bf16.msra.mxu1 %v14317_v44  ;;  %v14366_v44 = vcombine.high %v3208_v59, %v3212_v24  ;;  %v14397_v24 = vcombine.low %v3240_v1, %v3244_v30 }
 0x6b4   :  { %9765 = vmatprep.subr.bf16.mxu1 %v14326_v57  ;;  %v3219_v57 = vld [vmem:[#allocation10 + $0x1bb0] sm:$0xff] }
 0x6b5   :  { %9438 = vmatpush1.bf16.msra.mxu0 %v14323_v45  ;;  %v14372_v45 = vcombine.high %v3215_v54, %v3219_v57  ;;  %v14371_v17 = vcombine.low %v3215_v54, %v3219_v57  ;;  %v3256_v54 = vld [vmem:[#allocation10 + $0x1cd8] sm:$0xff] }
 0x6b6   :  { %9439 = vmatprep.subr.bf16.mxu0 %v14332_v14  ;;  %v3223_v14 = vld [vmem:[#allocation10 + $0x1bd0] sm:$0xff]  ;;  %v3260_v57 = vld [vmem:[#allocation10 + $0x1cf8] sm:$0xff] }
 0x6b7   :  { %9766 = vmatpush1.bf16.msra.mxu1 %v14325_v23  ;;  %v14374_v23 = vcombine.high %v3216_v43, %v3220_v36 }
 0x6b8   :  { %9767 = vmatprep.subr.bf16.mxu1 %v14334_v27  ;;  %v3227_v27 = vld [vmem:[#allocation10 + $0x1bf0] sm:$0xff] }
 0x6b9   :  { %9440 = vmatpush1.bf16.msra.mxu0 %v14331_v9  ;;  %v14380_v9 = vcombine.high %v3223_v14, %v3227_v27  ;;  %v14379_v32 = vcombine.low %v3223_v14, %v3227_v27  ;;  %v3268_v14 = vld [vmem:[#allocation10 + $0x1d38] sm:$0xff]  ;;  %v14413_v27 = vcombine.low %v3256_v54, %v3260_v57 }
 0x6ba   :  { %9441 = vmatprep.subr.bf16.mxu0 %v14340_v29  ;;  %v3231_v29 = vld [vmem:[#allocation10 + $0x1c10] sm:$0xff] }
 0x6bb   :  { %9768 = vmatpush1.bf16.msra.mxu1 %v14333_v42  ;;  %v14382_v42 = vcombine.high %v3224_v39, %v3228_v3 }
 0x6bc   :  { %9769 = vmatprep.subr.bf16.mxu1 %v14342_v34  ;;  %v3235_v34 = vld [vmem:[#allocation10 + $0x1c30] sm:$0xff] }
 0x6bd   :  { %9442 = vmatpush1.bf16.msra.mxu0 %v14339_v6  ;;  %v14388_v6 = vcombine.high %v3231_v29, %v3235_v34  ;;  %v14387_v21 = vcombine.low %v3231_v29, %v3235_v34 }
 0x6be   :  { %9443 = vmatprep.subr.bf16.mxu0 %v14348_v5  ;;  %v3239_v5 = vld [vmem:[#allocation10 + $0x1c50] sm:$0xff] }
 0x6bf   :  { %9770 = vmatpush1.bf16.msra.mxu1 %v14341_v63  ;;  %v14390_v63 = vcombine.high %v3232_v49, %v3236_v20 }
 0x6c0   :  { %9771 = vmatprep.subr.bf16.mxu1 %v14350_v26  ;;  %v3243_v26 = vld [vmem:[#allocation10 + $0x1c70] sm:$0xff] }
 0x6c1   :  { %9444 = vmatpush1.bf16.msra.mxu0 %v14347_v0  ;;  %v14396_v0 = vcombine.high %v3239_v5, %v3243_v26  ;;  %v14395_v59 = vcombine.low %v3239_v5, %v3243_v26 }
 0x6c2   :  { %9445 = vmatprep.subr.bf16.mxu0 %v14356_v50  ;;  %v3251_v50 = vld [vmem:[#allocation10 + $0x1cb0] sm:$0xff] }
 0x6c3   :  { %9772 = vmatpush1.bf16.msra.mxu1 %v14349_v33  ;;  %v3247_v33 = vld [vmem:[#allocation10 + $0x1c90] sm:$0xff] }
 0x6c4   :  { %9773 = vmatprep.subr.bf16.mxu1 %v14358_v7  ;;  %v14398_v7 = vcombine.high %v3240_v1, %v3244_v30  ;;  %v14403_v43 = vcombine.low %v3247_v33, %v3251_v50  ;;  %v3287_v30 = vld [vmem:[#allocation10 + $0x1dd0] sm:$0xff] }
 0x6c5   :  { %9446 = vmatpush1.bf16.msra.mxu0 %v14355_v12  ;;  %v14404_v12 = vcombine.high %v3247_v33, %v3251_v50  ;;  %v3292_v33 = vld [vmem:[#allocation10 + $0x1df8] sm:$0xff] }
 0x6c6   :  { %9447 = vmatprep.subr.bf16.mxu0 %v14364_v25  ;;  %v3255_v25 = vld [vmem:[#allocation10 + $0x1cd0] sm:$0xff] }
 0x6c7   :  { %9774 = vmatpush1.bf16.msra.mxu1 %v14357_v37  ;;  %v14406_v37 = vcombine.high %v3248_v31, %v3252_v48 }
 0x6c8   :  { %9775 = vmatprep.subr.bf16.mxu1 %v14366_v44  ;;  %v3259_v44 = vld [vmem:[#allocation10 + $0x1cf0] sm:$0xff] }
 0x6c9   :  { %9448 = vmatpush1.bf16.msra.mxu0 %v14363_v40  ;;  %v14412_v36 = vcombine.high %v3255_v25, %v3259_v44  ;;  %v14414_v40 = vcombine.high %v3256_v54, %v3260_v57 }
 0x6ca   :  { %9449 = vmatprep.subr.bf16.mxu0 %v14372_v45  ;;  %v3267_v45 = vld [vmem:[#allocation10 + $0x1d30] sm:$0xff] }
 0x6cb   :  { %9776 = vmatpush1.bf16.msra.mxu1 %v14365_v55  ;;  %v3263_v55 = vld [vmem:[#allocation10 + $0x1d10] sm:$0xff] }
 0x6cc   :  { %9777 = vmatprep.subr.bf16.mxu1 %v14374_v23  ;;  %v3264_v23 = vld [vmem:[#allocation10 + $0x1d18] sm:$0xff]  ;;  %v14420_v39 = vcombine.high %v3263_v55, %v3267_v45  ;;  %v14419_v29 = vcombine.low %v3263_v55, %v3267_v45 }
 0x6cd   :  { %9450 = vmatpush1.bf16.msra.mxu0 %v14371_v17  ;;  %v14422_v3 = vcombine.high %v3264_v23, %v3268_v14  ;;  %v3271_v17 = vld [vmem:[#allocation10 + $0x1d50] sm:$0xff]  ;;  %v14421_v34 = vcombine.low %v3264_v23, %v3268_v14 }
 0x6ce   :  { %9451 = vmatprep.subr.bf16.mxu0 %v14380_v9  ;;  %v3272_v9 = vld [vmem:[#allocation10 + $0x1d58] sm:$0xff] }
 0x6cf   :  { %9778 = vmatpush1.bf16.msra.mxu1 %v14373_v38  ;;  %v3275_v38 = vld [vmem:[#allocation10 + $0x1d70] sm:$0xff] }
 0x6d0   :  { %9779 = vmatprep.subr.bf16.mxu1 %v14382_v42  ;;  %v3276_v42 = vld [vmem:[#allocation10 + $0x1d78] sm:$0xff]  ;;  %v14428_v49 = vcombine.high %v3271_v17, %v3275_v38  ;;  %v14427_v5 = vcombine.low %v3271_v17, %v3275_v38 }
 0x6d1   :  { %9452 = vmatpush1.bf16.msra.mxu0 %v14379_v32  ;;  %v14430_v20 = vcombine.high %v3272_v9, %v3276_v42  ;;  %v3279_v32 = vld [vmem:[#allocation10 + $0x1d90] sm:$0xff]  ;;  %v14429_v26 = vcombine.low %v3272_v9, %v3276_v42 }
 0x6d2   :  { %9462 = vmatprep.subr.bf16.mxu0 %v14388_v6  ;;  %v3280_v6 = vld [vmem:[#allocation10 + $0x1d98] sm:$0xff] }
 0x6d3   :  { %9780 = vmatpush1.bf16.msra.mxu1 %v14381_v15  ;;  %v3283_v15 = vld [vmem:[#allocation10 + $0x1db0] sm:$0xff] }
 0x6d4   :  { %9790 = vmatprep.subr.bf16.mxu1 %v14390_v63  ;;  %9454 = vmatmul.mubr.bf16.vlgmr.msra.gmra.mrb[16].mxu0 %v17260_v2  ;;  %v3284_v63 = vld [vmem:[#allocation10 + $0x1db8] sm:$0xff]  ;;  %v14435_v50 = vcombine.low %v3279_v32, %v3283_v15 }
 0x6d5   :  { %9463 = vmatpush1.bf16.msra.mxu0 %v14387_v21  ;;  %9494 = vmatprep.mubr.bf16.mxu0 %v17263_v22  ;;  %v14436_v21 = vcombine.high %v3279_v32, %v3283_v15  ;;  %v14438_v1 = vcombine.high %v3280_v6, %v3284_v63 }
 0x6d6   :  { %9782 = vmatmul.mubr.bf16.vlgmr.msra.gmra.mrb[24].mxu1 %v17260_v2  ;;  %9464 = vmatprep.subr.bf16.mxu0 %v14396_v0  ;;  %v14405_v2 = vcombine.low %v3248_v31, %v3252_v48  ;;  %v3288_v0 = vld [vmem:[#allocation10 + $0x1dd8] sm:$0xff] }
 0x6d7   :  { %9791 = vmatpush1.bf16.msra.mxu1 %v14389_v56  ;;  %9822 = vmatprep.mubr.bf16.mxu1 %v17263_v22  ;;  %v14411_v22 = vcombine.low %v3255_v25, %v3259_v44  ;;  %v3291_v56 = vld [vmem:[#allocation10 + $0x1df0] sm:$0xff]  ;;  %v14446_v48 = vcombine.high %v3288_v0, %v3292_v33  ;;  %v14445_v44 = vcombine.low %v3288_v0, %v3292_v33 }
 0x6d8   :  { %9792 = vmatprep.subr.bf16.mxu1 %v14398_v7  ;;  %v14437_v7 = vcombine.low %v3280_v6, %v3284_v63  ;;  %v14444_v31 = vcombine.high %v3287_v30, %v3291_v56  ;;  %v14443_v25 = vcombine.low %v3287_v30, %v3291_v56 }
 0x6d9   :  { %9465 = vmatpush1.bf16.msra.mxu0 %v14395_v59  ;;  %v3295_v59 = vld [vmem:[#allocation10 + $0x1e10] sm:$0xff] }
 0x6da   :  { %9466 = vmatprep.subr.bf16.mxu0 %v14404_v12  ;;  %v3296_v12 = vld [vmem:[#allocation10 + $0x1e18] sm:$0xff] }
 0x6db   :  { %9793 = vmatpush1.bf16.msra.mxu1 %v14397_v24  ;;  %v3299_v24 = vld [vmem:[#allocation10 + $0x1e30] sm:$0xff] }
 0x6dc   :  { %9794 = vmatprep.subr.bf16.mxu1 %v14406_v37  ;;  %v3300_v37 = vld [vmem:[#allocation10 + $0x1e38] sm:$0xff]  ;;  %v14452_v54 = vcombine.high %v3295_v59, %v3299_v24  ;;  %v14451_v55 = vcombine.low %v3295_v59, %v3299_v24 }
 0x6dd   :  { %9467 = vmatpush1.bf16.msra.mxu0 %v14403_v43  ;;  %v14454_v57 = vcombine.high %v3296_v12, %v3300_v37  ;;  %v3303_v43 = vld [vmem:[#allocation10 + $0x1e50] sm:$0xff]  ;;  %v14453_v45 = vcombine.low %v3296_v12, %v3300_v37 }
 0x6de   :  { %9468 = vmatprep.subr.bf16.mxu0 %v14412_v36  ;;  %v3304_v36 = vld [vmem:[#allocation10 + $0x1e58] sm:$0xff] }
 0x6df   :  { %9795 = vmatpush1.bf16.msra.mxu1 %v14405_v2  ;;  %v3307_v2 = vld [vmem:[#allocation10 + $0x1e70] sm:$0xff] }
 0x6e0   :  { %9796 = vmatprep.subr.bf16.mxu1 %v14414_v40  ;;  %v3308_v40 = vld [vmem:[#allocation10 + $0x1e78] sm:$0xff]  ;;  %v14460_v23 = vcombine.high %v3303_v43, %v3307_v2  ;;  %v14459_v17 = vcombine.low %v3303_v43, %v3307_v2 }
 0x6e1   :  { %9469 = vmatpush1.bf16.msra.mxu0 %v14411_v22  ;;  %v14462_v14 = vcombine.high %v3304_v36, %v3308_v40  ;;  %v3311_v22 = vld [vmem:[#allocation10 + $0x1e90] sm:$0xff]  ;;  %v14461_v38 = vcombine.low %v3304_v36, %v3308_v40 }
 0x6e2   :  { %9470 = vmatprep.subr.bf16.mxu0 %v14420_v39  ;;  %v3312_v39 = vld [vmem:[#allocation10 + $0x1e98] sm:$0xff] }
 0x6e3   :  { %9797 = vmatpush1.bf16.msra.mxu1 %v14413_v27  ;;  %v3315_v27 = vld [vmem:[#allocation10 + $0x1eb0] sm:$0xff] }
 0x6e4   :  { %9798 = vmatprep.subr.bf16.mxu1 %v14422_v3  ;;  %v3316_v3 = vld [vmem:[#allocation10 + $0x1eb8] sm:$0xff]  ;;  %v14468_v9 = vcombine.high %v3311_v22, %v3315_v27  ;;  %v14467_v32 = vcombine.low %v3311_v22, %v3315_v27 }
 0x6e5   :  { %9471 = vmatpush1.bf16.msra.mxu0 %v14419_v29  ;;  %v14470_v42 = vcombine.high %v3312_v39, %v3316_v3  ;;  %v3319_v29 = vld [vmem:[#allocation10 + $0x1ed0] sm:$0xff]  ;;  %v14469_v15 = vcombine.low %v3312_v39, %v3316_v3 }
 0x6e6   :  { %9472 = vmatprep.subr.bf16.mxu0 %v14428_v49  ;;  %v3320_v49 = vld [vmem:[#allocation10 + $0x1ed8] sm:$0xff] }
 0x6e7   :  { %9799 = vmatpush1.bf16.msra.mxu1 %v14421_v34  ;;  %v3323_v34 = vld [vmem:[#allocation10 + $0x1ef0] sm:$0xff] }
 0x6e8   :  { %9800 = vmatprep.subr.bf16.mxu1 %v14430_v20  ;;  %v3324_v20 = vld [vmem:[#allocation10 + $0x1ef8] sm:$0xff]  ;;  %v14476_v6 = vcombine.high %v3319_v29, %v3323_v34  ;;  %v14475_v30 = vcombine.low %v3319_v29, %v3323_v34  ;;  %v15124_v29 = vld [vmem:[#allocation16 + $0x8] ss:$16 sps:$4 sm:$0xff]   ;;  %v15126_v34 = vld [vmem:[#allocation16 + $0xc] ss:$16 sps:$4 sm:$0xff]  }
 0x6e9   :  { %9473 = vmatpush1.bf16.msra.mxu0 %v14427_v5  ;;  %v14478_v63 = vcombine.high %v3320_v49, %v3324_v20  ;;  %v3327_v5 = vld [vmem:[#allocation10 + $0x1f10] sm:$0xff]  ;;  %v14477_v56 = vcombine.low %v3320_v49, %v3324_v20  ;;  %v15129_v49 = vld [vmem:[#allocation16 + $0x24] ss:$16 sps:$4 sm:$0xff]  }
 0x6ea   :  { %9474 = vmatprep.subr.bf16.mxu0 %v14436_v21  ;;  %v3328_v21 = vld [vmem:[#allocation10 + $0x1f18] sm:$0xff]  ;;  %v15132_v20 = vld [vmem:[#allocation16 + $0x2c] ss:$16 sps:$4 sm:$0xff]  }
 0x6eb   :  { %9801 = vmatpush1.bf16.msra.mxu1 %v14429_v26  ;;  %v3331_v26 = vld [vmem:[#allocation10 + $0x1f30] sm:$0xff] }
 0x6ec   :  { %9802 = vmatprep.subr.bf16.mxu1 %v14438_v1  ;;  %v3332_v1 = vld [vmem:[#allocation10 + $0x1f38] sm:$0xff]  ;;  %v14484_v0 = vcombine.high %v3327_v5, %v3331_v26  ;;  %v14483_v59 = vcombine.low %v3327_v5, %v3331_v26 }
 0x6ed   :  { %9475 = vmatpush1.bf16.msra.mxu0 %v14435_v50  ;;  %v14486_v33 = vcombine.high %v3328_v21, %v3332_v1  ;;  %v3335_v50 = vld [vmem:[#allocation10 + $0x1f50] sm:$0xff]  ;;  %v14485_v24 = vcombine.low %v3328_v21, %v3332_v1  ;;  %v15133_v5 = vld [vmem:[#allocation16 + $0x40] ss:$16 sps:$4 sm:$0xff]   ;;  %v15141_v26 = vld [vmem:[#allocation16 + $0x64] ss:$16 sps:$4 sm:$0xff]  }
 0x6ee   :  { %9476 = vmatprep.subr.bf16.mxu0 %v14444_v31  ;;  %v3336_v31 = vld [vmem:[#allocation10 + $0x1f58] sm:$0xff]  ;;  %v15144_v21 = vld [vmem:[#allocation16 + $0x6c] ss:$16 sps:$4 sm:$0xff]  }
 0x6ef   :  { %9803 = vmatpush1.bf16.msra.mxu1 %v14437_v7  ;;  %v3339_v7 = vld [vmem:[#allocation10 + $0x1f70] sm:$0xff]  ;;  %v15139_v1 = vld [vmem:[#allocation16 + $0x60] ss:$16 sps:$4 sm:$0xff]  }
 0x6f0   :  { %9804 = vmatprep.subr.bf16.mxu1 %v14446_v48  ;;  %v3340_v48 = vld [vmem:[#allocation10 + $0x1f78] sm:$0xff]  ;;  %v14492_v12 = vcombine.high %v3335_v50, %v3339_v7  ;;  %v14491_v43 = vcombine.low %v3335_v50, %v3339_v7  ;;  %v15148_v50 = vld [vmem:[#allocation16 + $0x88] ss:$16 sps:$4 sm:$0xff]  }
 0x6f1   :  { %9477 = vmatpush1.bf16.msra.mxu0 %v14443_v25  ;;  %v14494_v37 = vcombine.high %v3336_v31, %v3340_v48  ;;  %v3343_v25 = vld [vmem:[#allocation10 + $0x1f90] sm:$0xff]  ;;  %v14493_v2 = vcombine.low %v3336_v31, %v3340_v48  ;;  %v15153_v7 = vld [vmem:[#allocation16 + $0xa4] ss:$16 sps:$4 sm:$0xff]   ;;  %v15151_v48 = vld [vmem:[#allocation16 + $0xa0] ss:$16 sps:$4 sm:$0xff]  }
 0x6f2   :  { %9478 = vmatprep.subr.bf16.mxu0 %v14452_v54  ;;  %v3344_v54 = vld [vmem:[#allocation10 + $0x1f98] sm:$0xff]  ;;  %v15156_v31 = vld [vmem:[#allocation16 + $0xac] ss:$16 sps:$4 sm:$0xff]  }
 0x6f3   :  { %9805 = vmatpush1.bf16.msra.mxu1 %v14445_v44  ;;  %v3347_v44 = vld [vmem:[#allocation10 + $0x1fb0] sm:$0xff] }
 0x6f4   :  { %9806 = vmatprep.subr.bf16.mxu1 %v14454_v57  ;;  %v3348_v57 = vld [vmem:[#allocation10 + $0x1fb8] sm:$0xff]  ;;  %v14500_v36 = vcombine.high %v3343_v25, %v3347_v44  ;;  %v14499_v22 = vcombine.low %v3343_v25, %v3347_v44  ;;  %v15160_v25 = vld [vmem:[#allocation16 + $0xc8] ss:$16 sps:$4 sm:$0xff]  }
 0x6f5   :  { %9479 = vmatpush1.bf16.msra.mxu0 %v14451_v55  ;;  %v14502_v40 = vcombine.high %v3344_v54, %v3348_v57  ;;  %v3351_v55 = vld [vmem:[#allocation10 + $0x1fd0] sm:$0xff]  ;;  %v14501_v27 = vcombine.low %v3344_v54, %v3348_v57  ;;  %v15165_v44 = vld [vmem:[#allocation16 + $0xe4] ss:$16 sps:$4 sm:$0xff]   ;;  %v15163_v57 = vld [vmem:[#allocation16 + $0xe0] ss:$16 sps:$4 sm:$0xff]  }
 0x6f6   :  { %9480 = vmatprep.subr.bf16.mxu0 %v14460_v23  ;;  %v3352_v23 = vld [vmem:[#allocation10 + $0x1fd8] sm:$0xff]  ;;  %v15168_v54 = vld [vmem:[#allocation16 + $0xec] ss:$16 sps:$4 sm:$0xff]  }
 0x6f7   :  { %9807 = vmatpush1.bf16.msra.mxu1 %v14453_v45  ;;  %v3355_v45 = vld [vmem:[#allocation10 + $0x1ff0] sm:$0xff] }
 0x6f8   :  { %9808 = vmatprep.subr.bf16.mxu1 %v14462_v14  ;;  %v3356_v14 = vld [vmem:[#allocation10 + $0x1ff8] sm:$0xff]  ;;  %v14508_v39 = vcombine.high %v3351_v55, %v3355_v45 }
 0x6f9   :  { %9481 = vmatpush1.bf16.msra.mxu0 %v14459_v17  ;;  %v14510_v3 = vcombine.high %v3352_v23, %v3356_v14  ;;  %v14507_v17 = vcombine.low %v3351_v55, %v3355_v45  ;;  %v15172_v55 = vld [vmem:[#allocation16 + $0x108] ss:$16 sps:$4 sm:$0xff]   ;;  %v15177_v45 = vld [vmem:[#allocation16 + $0x124] ss:$16 sps:$4 sm:$0xff]  }
 0x6fa   :  { %9482 = vmatprep.subr.bf16.mxu0 %v14468_v9  ;;  %v15121_v9 = vld [vmem:[#allocation16] ss:$16 sps:$4 sm:$0xff]  }
 0x6fb   :  { %9809 = vmatpush1.bf16.msra.mxu1 %v14461_v38  ;;  %v14509_v38 = vcombine.low %v3352_v23, %v3356_v14  ;;  %v15180_v23 = vld [vmem:[#allocation16 + $0x12c] ss:$16 sps:$4 sm:$0xff]   ;;  %v15175_v14 = vld [vmem:[#allocation16 + $0x120] ss:$16 sps:$4 sm:$0xff]  }
 0x6fc   :  { %9810 = vmatprep.subr.bf16.mxu1 %v14470_v42  ;;  %v15123_v42 = vld [vmem:[#allocation16 + $0x4] ss:$16 sps:$4 sm:$0xff]  }
 0x6fd   :  { %9483 = vmatpush1.bf16.msra.mxu0 %v14467_v32  ;;  %v15127_v32 = vld [vmem:[#allocation16 + $0x20] ss:$16 sps:$4 sm:$0xff]  }
 0x6fe   :  { %9484 = vmatprep.subr.bf16.mxu0 %v14476_v6  ;;  %v15135_v6 = vld [vmem:[#allocation16 + $0x44] ss:$16 sps:$4 sm:$0xff]  }
 0x6ff   :  { %9811 = vmatpush1.bf16.msra.mxu1 %v14469_v15  ;;  %v15130_v15 = vld [vmem:[#allocation16 + $0x28] ss:$16 sps:$4 sm:$0xff]  }
 0x700   :  { %9812 = vmatprep.subr.bf16.mxu1 %v14478_v63  ;;  %v15138_v63 = vld [vmem:[#allocation16 + $0x4c] ss:$16 sps:$4 sm:$0xff]  }
 0x701   :  { %9485 = vmatpush1.bf16.msra.mxu0 %v14475_v30  ;;  %v15142_v30 = vld [vmem:[#allocation16 + $0x68] ss:$16 sps:$4 sm:$0xff]  }
 0x702   :  { %9486 = vmatprep.subr.bf16.mxu0 %v14484_v0  ;;  %v15150_v0 = vld [vmem:[#allocation16 + $0x8c] ss:$16 sps:$4 sm:$0xff]  }
 0x703   :  { %9813 = vmatpush1.bf16.msra.mxu1 %v14477_v56  ;;  %v15147_v56 = vld [vmem:[#allocation16 + $0x84] ss:$16 sps:$4 sm:$0xff]  }
 0x704   :  { %9814 = vmatprep.subr.bf16.mxu1 %v14486_v33  ;;  %v15145_v33 = vld [vmem:[#allocation16 + $0x80] ss:$16 sps:$4 sm:$0xff]  }
 0x705   :  { %9487 = vmatpush1.bf16.msra.mxu0 %v14483_v59  ;;  %v15154_v59 = vld [vmem:[#allocation16 + $0xa8] ss:$16 sps:$4 sm:$0xff]  }
 0x706   :  { %9488 = vmatprep.subr.bf16.mxu0 %v14492_v12  ;;  %v15162_v12 = vld [vmem:[#allocation16 + $0xcc] ss:$16 sps:$4 sm:$0xff]  }
 0x707   :  { %9815 = vmatpush1.bf16.msra.mxu1 %v14485_v24  ;;  %v15159_v24 = vld [vmem:[#allocation16 + $0xc4] ss:$16 sps:$4 sm:$0xff]  }
 0x708   :  { %9816 = vmatprep.subr.bf16.mxu1 %v14494_v37  ;;  %v15157_v37 = vld [vmem:[#allocation16 + $0xc0] ss:$16 sps:$4 sm:$0xff]  }
 0x709   :  { %9489 = vmatpush1.bf16.msra.mxu0 %v14491_v43  ;;  %v15166_v43 = vld [vmem:[#allocation16 + $0xe8] ss:$16 sps:$4 sm:$0xff]  }
 0x70a   :  { %9490 = vmatprep.subr.bf16.mxu0 %v14500_v36  ;;  %v15174_v36 = vld [vmem:[#allocation16 + $0x10c] ss:$16 sps:$4 sm:$0xff]  }
 0x70b   :  { %9817 = vmatpush1.bf16.msra.mxu1 %v14493_v2  ;;  %v15171_v2 = vld [vmem:[#allocation16 + $0x104] ss:$16 sps:$4 sm:$0xff]  }
 0x70c   :  { %9818 = vmatprep.subr.bf16.mxu1 %v14502_v40  ;;  %v15169_v40 = vld [vmem:[#allocation16 + $0x100] ss:$16 sps:$4 sm:$0xff]  }
 0x70d   :  { %9491 = vmatpush1.bf16.msra.mxu0 %v14499_v22  ;;  %v15178_v22 = vld [vmem:[#allocation16 + $0x128] ss:$16 sps:$4 sm:$0xff]  }
 0x70e   :  { %9492 = vmatprep.subr.bf16.mxu0 %v14508_v39  ;;  %v15186_v39 = vld [vmem:[#allocation16 + $0x14c] ss:$16 sps:$4 sm:$0xff]  }
 0x70f   :  { %9819 = vmatpush1.bf16.msra.mxu1 %v14501_v27  ;;  %v15183_v27 = vld [vmem:[#allocation16 + $0x144] ss:$16 sps:$4 sm:$0xff]  }
 0x710   :  { %9820 = vmatprep.subr.bf16.mxu1 %v14510_v3  ;;  %v15181_v3 = vld [vmem:[#allocation16 + $0x140] ss:$16 sps:$4 sm:$0xff]  }
 0x711   :  { %9493 = vmatpush1.bf16.msra.mxu0 %v14507_v17  ;;  %v15184_v17 = vld [vmem:[#allocation16 + $0x148] ss:$16 sps:$4 sm:$0xff]  }
 0x712   :  { %11791 = vmatprep.subr.bf16.mxu0 %v15123_v42  ;;  %v15187_v42 = vld [vmem:[#allocation16 + $0x160] ss:$16 sps:$4 sm:$0xff]  }
 0x713   :  { %9821 = vmatpush1.bf16.msra.mxu1 %v14509_v38  ;;  %v15189_v38 = vld [vmem:[#allocation16 + $0x164] ss:$16 sps:$4 sm:$0xff]  }
 0x714   :  { %9495 = vmatmul.mubr.bf16.vlgmr.msra.gmra.mrb[16].mxu0 %v17269_v58  ;;  %11955 = vmatprep.subr.bf16.mxu1 %v15126_v34  ;;  %v15195_v34 = vld [vmem:[#allocation16 + $0x184] ss:$16 sps:$4 sm:$0xff]  }
 0x715   :  { %11792 = vmatpush1.bf16.msra.mxu0 %v15121_v9  ;;  %v15192_v9 = vld [vmem:[#allocation16 + $0x16c] ss:$16 sps:$4 sm:$0xff]  }
 0x716   :  { %9823 = vmatmul.mubr.bf16.vlgmr.msra.gmra.mrb[24].mxu1 %v17269_v58  ;;  %11793 = vmatprep.subr.bf16.mxu0 %v15129_v49  ;;  %v15136_v58 = vld [vmem:[#allocation16 + $0x48] ss:$16 sps:$4 sm:$0xff]   ;;  %v15198_v49 = vld [vmem:[#allocation16 + $0x18c] ss:$16 sps:$4 sm:$0xff]  }
 0x717   :  { %11956 = vmatpush1.bf16.msra.mxu1 %v15124_v29  ;;  %v15190_v29 = vld [vmem:[#allocation16 + $0x168] ss:$16 sps:$4 sm:$0xff]  }
 0x718   :  { %11957 = vmatprep.subr.bf16.mxu1 %v15132_v20  ;;  %v15193_v20 = vld [vmem:[#allocation16 + $0x180] ss:$16 sps:$4 sm:$0xff]  }
 0x719   :  { %11794 = vmatpush1.bf16.msra.mxu0 %v15127_v32  ;;  %v15196_v32 = vld [vmem:[#allocation16 + $0x188] ss:$16 sps:$4 sm:$0xff]  }
 0x71a   :  { %11795 = vmatprep.subr.bf16.mxu0 %v15135_v6  ;;  %v15204_v6 = vld [vmem:[#allocation16 + $0x1ac] ss:$16 sps:$4 sm:$0xff]  }
 0x71b   :  { %11958 = vmatpush1.bf16.msra.mxu1 %v15130_v15  ;;  %v15201_v15 = vld [vmem:[#allocation16 + $0x1a4] ss:$16 sps:$4 sm:$0xff]  }
 0x71c   :  { %11959 = vmatprep.subr.bf16.mxu1 %v15138_v63  ;;  %v15199_v63 = vld [vmem:[#allocation16 + $0x1a0] ss:$16 sps:$4 sm:$0xff]  }
 0x71d   :  { %11796 = vmatpush1.bf16.msra.mxu0 %v15133_v5  ;;  %v15202_v5 = vld [vmem:[#allocation16 + $0x1a8] ss:$16 sps:$4 sm:$0xff]  }
 0x71e   :  { %11797 = vmatprep.subr.bf16.mxu0 %v15141_v26  ;;  %v15210_v26 = vld [vmem:[#allocation16 + $0x1cc] ss:$16 sps:$4 sm:$0xff]  }
 0x71f   :  { %11960 = vmatpush1.bf16.msra.mxu1 %v15136_v58  ;;  %v15207_v58 = vld [vmem:[#allocation16 + $0x1c4] ss:$16 sps:$4 sm:$0xff]  }
 0x720   :  { %11961 = vmatprep.subr.bf16.mxu1 %v15144_v21  ;;  %v15205_v21 = vld [vmem:[#allocation16 + $0x1c0] ss:$16 sps:$4 sm:$0xff]  }
 0x721   :  { %11798 = vmatpush1.bf16.msra.mxu0 %v15139_v1  ;;  %v15208_v1 = vld [vmem:[#allocation16 + $0x1c8] ss:$16 sps:$4 sm:$0xff]  }
 0x722   :  { %11799 = vmatprep.subr.bf16.mxu0 %v15147_v56  ;;  %v15216_v56 = vld [vmem:[#allocation16 + $0x1ec] ss:$16 sps:$4 sm:$0xff]  }
 0x723   :  { %11962 = vmatpush1.bf16.msra.mxu1 %v15142_v30  ;;  %v15213_v30 = vld [vmem:[#allocation16 + $0x1e4] ss:$16 sps:$4 sm:$0xff]  }
 0x724   :  { %11963 = vmatprep.subr.bf16.mxu1 %v15150_v0  ;;  %v15211_v0 = vld [vmem:[#allocation16 + $0x1e0] ss:$16 sps:$4 sm:$0xff]  }
 0x725   :  { %11800 = vmatpush1.bf16.msra.mxu0 %v15145_v33  ;;  %v15214_v33 = vld [vmem:[#allocation16 + $0x1e8] ss:$16 sps:$4 sm:$0xff]  }
 0x726   :  { %11801 = vmatprep.subr.bf16.mxu0 %v15153_v7  ;;  %v15222_v7 = vld [vmem:[#allocation16 + $0x20c] ss:$16 sps:$4 sm:$0xff]  }
 0x727   :  { %11964 = vmatpush1.bf16.msra.mxu1 %v15148_v50  ;;  %v15219_v50 = vld [vmem:[#allocation16 + $0x204] ss:$16 sps:$4 sm:$0xff]  }
 0x728   :  { %11965 = vmatprep.subr.bf16.mxu1 %v15156_v31  ;;  %v15693_v31 = vld [vmem:[#allocation11] sm:$0xff] }
 0x729   :  { %11802 = vmatpush1.bf16.msra.mxu0 %v15151_v48  ;;  %v3378_v48 = vrot.slane %v15693_v31, %v16731_v8 }
 0x72a   :  { %11803 = vmatprep.subr.bf16.mxu0 %v15159_v24  ;;  %v3382_v24 = vrot.slane %v15693_v31, %v16734_v11 }
 0x72b   :  { %11966 = vmatpush1.bf16.msra.mxu1 %v15154_v59  ;;  %v3386_v59 = vrot.slane %v15693_v31, %v16791_v10 }
 0x72c   :  { %11967 = vmatprep.subr.bf16.mxu1 %v15162_v12  ;;  %v3390_v12 = vrot.slane %v15693_v31, %v16796_v13 }
 0x72d   :  { %11804 = vmatpush1.bf16.msra.mxu0 %v15157_v37 }
 0x72e   :  { %11805 = vmatprep.subr.bf16.mxu0 %v15165_v44 }
 0x72f   :  { %11968 = vmatpush1.bf16.msra.mxu1 %v15160_v25 }
 0x730   :  { %11969 = vmatprep.subr.bf16.mxu1 %v15168_v54 }
 0x731   :  { %11806 = vmatpush1.bf16.msra.mxu0 %v15163_v57 }
 0x732   :  { %11807 = vmatprep.subr.bf16.mxu0 %v15171_v2 }
 0x733   :  { %11970 = vmatpush1.bf16.msra.mxu1 %v15166_v43 }
 0x734   :  { %11971 = vmatprep.subr.bf16.mxu1 %v15174_v36 }
 0x735   :  { %11808 = vmatpush1.bf16.msra.mxu0 %v15169_v40 }
 0x736   :  { %11809 = vmatprep.subr.bf16.mxu0 %v15177_v45 }
 0x737   :  { %11972 = vmatpush1.bf16.msra.mxu1 %v15172_v55 }
 0x738   :  { %11973 = vmatprep.subr.bf16.mxu1 %v15180_v23 }
 0x739   :  { %11810 = vmatpush1.bf16.msra.mxu0 %v15175_v14 }
 0x73a   :  { %11811 = vmatprep.subr.bf16.mxu0 %v15183_v27 }
 0x73b   :  { %11974 = vmatpush1.bf16.msra.mxu1 %v15178_v22 }
 0x73c   :  { %11975 = vmatprep.subr.bf16.mxu1 %v15186_v39 }
 0x73d   :  { %11812 = vmatpush1.bf16.msra.mxu0 %v15181_v3 }
 0x73e   :  { %11813 = vmatprep.subr.bf16.mxu0 %v15189_v38 }
 0x73f   :  { %11976 = vmatpush1.bf16.msra.mxu1 %v15184_v17 }
 0x740   :  { %11977 = vmatprep.subr.bf16.mxu1 %v15192_v9 }
 0x741   :  { %11814 = vmatpush1.bf16.msra.mxu0 %v15187_v42 }
 0x742   :  { %11815 = vmatprep.subr.bf16.mxu0 %v15195_v34 }
 0x743   :  { %11978 = vmatpush1.bf16.msra.mxu1 %v15190_v29 }
 0x744   :  { %11979 = vmatprep.subr.bf16.mxu1 %v15198_v49 }
 0x745   :  { %11816 = vmatpush1.bf16.msra.mxu0 %v15193_v20 }
 0x746   :  { %11817 = vmatprep.subr.bf16.mxu0 %v15201_v15 }
 0x747   :  { %11980 = vmatpush1.bf16.msra.mxu1 %v15196_v32 }
 0x748   :  { %11981 = vmatprep.subr.bf16.mxu1 %v15204_v6 }
 0x749   :  { %11818 = vmatpush1.bf16.msra.mxu0 %v15199_v63 }
 0x74a   :  { %11819 = vmatprep.subr.bf16.mxu0 %v15207_v58 }
 0x74b   :  { %11982 = vmatpush1.bf16.msra.mxu1 %v15202_v5 }
 0x74c   :  { %11983 = vmatprep.subr.bf16.mxu1 %v15210_v26 }
 0x74d   :  { %11820 = vmatpush1.bf16.msra.mxu0 %v15205_v21 }
 0x74e   :  { %11821 = vmatprep.subr.bf16.mxu0 %v15213_v30 }
 0x74f   :  { %11984 = vmatpush1.bf16.msra.mxu1 %v15208_v1 }
 0x750   :  { %11985 = vmatprep.subr.bf16.mxu1 %v15216_v56 }
 0x751   :  { %11822 = vmatpush1.bf16.msra.mxu0 %v15211_v0 }
 0x752   :  { %11832 = vmatprep.subr.bf16.mxu0 %v15219_v50 }
 0x753   :  { %11986 = vmatpush1.bf16.msra.mxu1 %v15214_v33 }
 0x754   :  { %11996 = vmatprep.subr.bf16.mxu1 %v15222_v7 }
 0x7e7   :  { %v9496_v37 = vpop.f32.mrb[16].mxu0 }
 0x7e8   :  { %v17433_v25 = vadd.f32 %v9496_v37, %v3378_v48  ;;  %v9498_v54 = vpop.f32.mrb[17].mxu0 }
 0x7e9   :  { %v9824_v44 = vpop.f32.mrb[24].mxu1  ;;  %v17437_v43 = vadd.f32 %v9498_v54, %v3382_v24  ;;  %v9500_v36 = vpop.f32.mrb[18].mxu0 }
 0x7ea   :  { %v17435_v57 = vadd.f32 %v9824_v44, %v3386_v59  ;;  %v9826_v2 = vpop.f32.mrb[25].mxu1  ;;  %v9855_v40 = vrot.slane %v17433_v25, 4  ;;  %v9891_v55 = vmul.f32 %v17433_v25, %v17433_v25  ;;  %v9501_v14 = vpop.f32.mrb[19].mxu0 }
 0x7eb   :  { %v17442_v45 = vadd.f32 %v9826_v2, %v3390_v12  ;;  %v9828_v23 = vpop.f32.mrb[26].mxu1  ;;  %v9861_v39 = vrot.slane %v17437_v43, 4  ;;  %v9892_v3 = vmul.f32 %v17437_v43, %v17437_v43 }
 0x7ec   :  { %v9867_v22 = vrot.slane %v17435_v57, 4  ;;  %v9893_v27 = vmul.f32 %v17435_v57, %v17435_v57  ;;  %v9829_v17 = vpop.f32.mrb[27].mxu1  ;;  %v9856_v38 = vadd.f32 %v17433_v25, %v9855_v40  ;;  %v9919_v9 = vrot.slane %v9891_v55, 4 }
 0x7ed   :  { %v9873_v42 = vrot.slane %v17442_v45, 4  ;;  %v9894_v29 = vmul.f32 %v17442_v45, %v17442_v45  ;;  %v9862_v20 = vadd.f32 %v17437_v43, %v9861_v39  ;;  %v9925_v32 = vrot.slane %v9892_v3, 4 }
 0x7ee   :  { %v9868_v34 = vadd.f32 %v17435_v57, %v9867_v22  ;;  %v9931_v49 = vrot.slane %v9893_v27, 4  ;;  %v9857_v15 = vrot.slane %v9856_v38, 2  ;;  %v9920_v6 = vadd.f32 %v9919_v9, %v9891_v55 }
 0x7ef   :  { %v9874_v63 = vadd.f32 %v17442_v45, %v9873_v42  ;;  %v9937_v5 = vrot.slane %v9894_v29, 4  ;;  %v9863_v21 = vrot.slane %v9862_v20, 2  ;;  %v9926_v1 = vadd.f32 %v9925_v32, %v9892_v3 }
 0x7f0   :  { %v9869_v58 = vrot.slane %v9868_v34, 2  ;;  %v9932_v26 = vadd.f32 %v9931_v49, %v9893_v27  ;;  %v9858_v30 = vadd.f32 %v9857_v15, %v9856_v38  ;;  %v9921_v56 = vrot.slane %v9920_v6, 2 }
 0x7f1   :  { %v9875_v0 = vrot.slane %v9874_v63, 2  ;;  %v9938_v33 = vadd.f32 %v9937_v5, %v9894_v29  ;;  %v9864_v31 = vadd.f32 %v9863_v21, %v9862_v20  ;;  %v9927_v48 = vrot.slane %v9926_v1, 2 }
 0x7f2   :  { %v9870_v50 = vadd.f32 %v9869_v58, %v9868_v34  ;;  %v9933_v7 = vrot.slane %v9932_v26, 2  ;;  %v9859_v59 = vrot.slane %v9858_v30, 1  ;;  %v9922_v24 = vadd.f32 %v9921_v56, %v9920_v6 }
 0x7f3   :  { %v9876_v12 = vadd.f32 %v9875_v0, %v9874_v63  ;;  %v9939_v37 = vrot.slane %v9938_v33, 2  ;;  %v9865_v2 = vrot.slane %v9864_v31, 1  ;;  %v9928_v36 = vadd.f32 %v9927_v48, %v9926_v1 }
 0x7f4   :  { %v9871_v44 = vrot.slane %v9870_v50, 1  ;;  %v9934_v54 = vadd.f32 %v9933_v7, %v9932_v26  ;;  %v9860_v40 = vadd.f32 %v9859_v59, %v9858_v30  ;;  %v9923_v55 = vrot.slane %v9922_v24, 1 }
 0x7f5   :  { %v9877_v23 = vrot.slane %v9876_v12, 1  ;;  %v9940_v14 = vadd.f32 %v9939_v37, %v9938_v33  ;;  %v9866_v39 = vadd.f32 %v9865_v2, %v9864_v31  ;;  %v9929_v3 = vrot.slane %v9928_v36, 1 }
 0x7f6   :  { %v9872_v22 = vadd.f32 %v9871_v44, %v9870_v50  ;;  %v9935_v27 = vrot.slane %v9934_v54, 1  ;;  %v9883_v17 = vmul.f32 0.125, %v9860_v40  ;;  %v9924_v38 = vadd.f32 %v9923_v55, %v9922_v24 }
 0x7f7   :  { %v9878_v9 = vadd.f32 %v9877_v23, %v9876_v12  ;;  %v9941_v42 = vrot.slane %v9940_v14, 1  ;;  %v9884_v49 = vmul.f32 0.125, %v9866_v39  ;;  %v9930_v20 = vadd.f32 %v9929_v3, %v9928_v36 }
 0x7f8   :  { %v9885_v29 = vmul.f32 0.125, %v9872_v22  ;;  %v9936_v34 = vadd.f32 %v9935_v27, %v9934_v54  ;;  %v9947_v32 = vmul.f32 0.125, %v9924_v38  ;;  %v9955_v15 = vmul.f32 %v9883_v17, %v9883_v17  ;;  %v9975_v38 = vld [vmem:[#allocation13] sm:$0xff] }
 0x7f9   :  { %v9886_v6 = vmul.f32 0.125, %v9878_v9  ;;  %v9942_v63 = vadd.f32 %v9941_v42, %v9940_v14  ;;  %v9948_v26 = vmul.f32 0.125, %v9930_v20  ;;  %v9956_v21 = vmul.f32 %v9884_v49, %v9884_v49 }
 0x7fa   :  { %v9949_v5 = vmul.f32 0.125, %v9936_v34  ;;  %v9957_v58 = vmul.f32 %v9885_v29, %v9885_v29  ;;  %v9963_v1 = vsub.f32 %v9947_v32, %v9955_v15  ;;  %v10040_v3 = vrot.slane %v10032_v41, %v16811_v46 }
 0x7fb   :  { %v9950_v30 = vmul.f32 0.125, %v9942_v63  ;;  %v9958_v56 = vmul.f32 %v9886_v6, %v9886_v6  ;;  %v9964_v33 = vsub.f32 %v9948_v26, %v9956_v21 }
 0x7fc   :  { %v9965_v0 = vsub.f32 %v9949_v5, %v9957_v58  ;;  %v9971_v50 = vmax.f32 %v9963_v1, 0.0 }
 0x7fd   :  { %v9966_v7 = vsub.f32 %v9950_v30, %v9958_v56  ;;  %v9972_v48 = vmax.f32 %v9964_v33, 0.0 }
 0x7fe   :  { %v9973_v31 = vmax.f32 %v9965_v0, 0.0  ;;  %v9980_v59 = vadd.f32 1e-05, %v9971_v50 }
 0x7ff   :  { %v9974_v24 = vmax.f32 %v9966_v7, 0.0  ;;  %v9981_v37 = vadd.f32 1e-05, %v9972_v48 }
 0x800   :  { %v9982_v12 = vadd.f32 1e-05, %v9973_v31  ;;  %15669 = vrsqrt.f32 %v9980_v59 }
 0x801   :  { %v9983_v44 = vadd.f32 1e-05, %v9974_v24 }
 0x802   :  { %15671 = vrsqrt.f32 %v9982_v12 }
 0x803   :  { %15673 = vrsqrt.f32 %v9981_v37  ;;  %v10051_v37 = vld [vmem:[#allocation14] sm:$0xff] }
 0x804   :  { %15675 = vrsqrt.f32 %v9983_v44 }
 0x80a   :  { %v15670_v54 = vpop.eup %15669 }
 0x80c   :  { %v15672_v2 = vpop.eup %15671 }
 0x80d   :  { %v15674_v36 = vpop.eup %15673 }
 0x80e   :  { %v15676_v40 = vpop.eup %15675  ;;  %v10002_v55 = vcombine.low %v15670_v54, %v15674_v36 }
 0x80f   :  { %v10003_v23 = vcombine.low %v15672_v2, %v15676_v40 }
 0x810   :  { %v10024_v14 = vrot.slane %v10002_v55, %v16811_v46 }
 0x811   :  { %v10031_v22 = vrot.slane %v10003_v23, %v16811_v46 }
 0x813   :  { %v10033_v27 = vcombine.low %v10024_v14, %v10031_v22 }
 0x815   :  { %v10047_v39 = vrot.slane %v10033_v27, %v16811_v46 }
 0x817   :  { %v10048_v9 = vcombine.low %v10040_v3, %v10047_v39 }
 0x819   :  { %v10050_v42 = vmul.f32 %v10048_v9, %v9975_v38 }
 0x81b   :  { %v10056_v34 = vrot.slane %v10050_v42, %v16683_v47  ;;  %v10060_v20 = vrot.slane %v10050_v42, %v16688_v52  ;;  %v10064_v32 = vrot.slane %v10050_v42, %v16739_v16  ;;  %v10068_v15 = vrot.slane %v10050_v42, %v16742_v18 }
 0x81c   :  { %v10072_v63 = vrot.slane %v10050_v42, %v16731_v8  ;;  %v10076_v5 = vrot.slane %v10050_v42, %v16734_v11  ;;  %v10080_v58 = vrot.slane %v10050_v42, %v16791_v10  ;;  %v10084_v62 = vrot.slane %v10050_v42, %v16796_v13 }
 0x81d   :  { %v10093_v4 = vmul.f32 %v10056_v34, %v17383_v19  ;;  %v10094_v41 = vmul.f32 %v10060_v20, %v17399_v61  ;;  %v10095_v26 = vmul.f32 %v10064_v32, %v17385_v60  ;;  %v10096_v21 = vmul.f32 %v10068_v15, %v17387_v51 }
 0x81e   :  { %v10097_v1 = vmul.f32 %v10072_v63, %v9883_v17  ;;  %v10098_v30 = vmul.f32 %v10076_v5, %v9884_v49  ;;  %v10099_v56 = vmul.f32 %v10080_v58, %v9885_v29  ;;  %v10100_v0 = vmul.f32 %v10084_v62, %v9886_v6 }
 0x81f   :  { %v10109_v33 = vcombine.low %v10093_v4, %v10094_v41  ;;  %v10110_v50 = vcombine.low %v10095_v26, %v10096_v21  ;;  %v10161_v7 = vmul.f32 %v17343_v28, %v10060_v20  ;;  %v10160_v31 = vmul.f32 %v17333_v53, %v10056_v34  ;;  %v15226_v4 = vld [vmem:[#allocation16 + $0x228] ss:$16 sps:$4 sm:$0xff]   ;;  %v15231_v41 = vld [vmem:[#allocation16 + $0x244] ss:$16 sps:$4 sm:$0xff]   ;;  %v15234_v26 = vld [vmem:[#allocation16 + $0x24c] ss:$16 sps:$4 sm:$0xff]  }
 0x820   :  { %v10111_v48 = vcombine.low %v10097_v1, %v10098_v30  ;;  %v10112_v59 = vcombine.low %v10099_v56, %v10100_v0  ;;  %v10163_v19 = vmul.f32 %v17352_v35, %v10068_v15  ;;  %v10165_v51 = vmul.f32 %v17437_v43, %v10076_v5  ;;  %v17744_v43 = vld [vmem:[#allocation56_spill] sm:$0xff]  ;;  %v15220_v15 = vld [vmem:[#allocation16 + $0x208] ss:$16 sps:$4 sm:$0xff]   ;;  %v15237_v30 = vld [vmem:[#allocation16 + $0x264] ss:$16 sps:$4 sm:$0xff]  }
 0x821   :  { %v10119_v61 = vrot.slane %v10109_v33, %v16811_v46  ;;  %v10126_v60 = vrot.slane %v10110_v50, %v16811_v46  ;;  %v10164_v17 = vmul.f32 %v17433_v25, %v10072_v63  ;;  %v10167_v28 = vmul.f32 %v17442_v45, %v10084_v62  ;;  %v15225_v63 = vld [vmem:[#allocation16 + $0x224] ss:$16 sps:$4 sm:$0xff]   ;;  %v15228_v5 = vld [vmem:[#allocation16 + $0x22c] ss:$16 sps:$4 sm:$0xff]   ;;  %v15223_v62 = vld [vmem:[#allocation16 + $0x220] ss:$16 sps:$4 sm:$0xff]  }
 0x822   :  { %v10133_v29 = vrot.slane %v10111_v48, %v16811_v46  ;;  %v10140_v49 = vrot.slane %v10112_v59, %v16811_v46  ;;  %v10166_v53 = vmul.f32 %v17435_v57, %v10080_v58  ;;  %v10162_v2 = vmul.f32 %v17744_v43, %v10064_v32  ;;  %v15229_v21 = vld [vmem:[#allocation16 + $0x240] ss:$16 sps:$4 sm:$0xff]   ;;  %v15232_v1 = vld [vmem:[#allocation16 + $0x248] ss:$16 sps:$4 sm:$0xff]   ;;  %v15240_v56 = vld [vmem:[#allocation16 + $0x26c] ss:$16 sps:$4 sm:$0xff]  }
 0x823   :  { %v10141_v6 = vcombine.low %v10119_v61, %v10126_v60  ;;  %v15235_v0 = vld [vmem:[#allocation16 + $0x260] ss:$16 sps:$4 sm:$0xff]   ;;  %v15238_v33 = vld [vmem:[#allocation16 + $0x268] ss:$16 sps:$4 sm:$0xff]   ;;  %v15243_v50 = vld [vmem:[#allocation16 + $0x284] ss:$16 sps:$4 sm:$0xff]  }
 0x824   :  { %v10142_v24 = vcombine.low %v10133_v29, %v10140_v49  ;;  %v15244_v48 = vld [vmem:[#allocation16 + $0x288] ss:$16 sps:$4 sm:$0xff]   ;;  %v15249_v59 = vld [vmem:[#allocation16 + $0x2a4] ss:$16 sps:$4 sm:$0xff]   ;;  %v15247_v61 = vld [vmem:[#allocation16 + $0x2a0] ss:$16 sps:$4 sm:$0xff]  }
 0x825   :  { %v10149_v35 = vrot.slane %v10141_v6, %v16811_v46  ;;  %v15250_v60 = vld [vmem:[#allocation16 + $0x2a8] ss:$16 sps:$4 sm:$0xff]   ;;  %v15253_v29 = vld [vmem:[#allocation16 + $0x2c0] ss:$16 sps:$4 sm:$0xff]   ;;  %v15276_v43 = vld [vmem:[#allocation16 + $0x32c] ss:$16 sps:$4 sm:$0xff]  }
 0x826   :  { %v10156_v12 = vrot.slane %v10142_v24, %v16811_v46  ;;  %v15256_v49 = vld [vmem:[#allocation16 + $0x2c8] ss:$16 sps:$4 sm:$0xff]   ;;  %v15259_v6 = vld [vmem:[#allocation16 + $0x2e0] ss:$16 sps:$4 sm:$0xff]  }
 0x827   :  { %v15262_v24 = vld [vmem:[#allocation16 + $0x2e8] ss:$16 sps:$4 sm:$0xff]  }
 0x828   :  { %v10157_v44 = vcombine.low %v10149_v35, %v10156_v12  ;;  %v15267_v35 = vld [vmem:[#allocation16 + $0x304] ss:$16 sps:$4 sm:$0xff]   ;;  %v15270_v12 = vld [vmem:[#allocation16 + $0x30c] ss:$16 sps:$4 sm:$0xff]  }
 0x82a   :  { %v10159_v54 = vsub.f32 %v10051_v37, %v10157_v44  ;;  %v15265_v37 = vld [vmem:[#allocation16 + $0x300] ss:$16 sps:$4 sm:$0xff]   ;;  %v15268_v44 = vld [vmem:[#allocation16 + $0x308] ss:$16 sps:$4 sm:$0xff]  }
 0x82c   :  { %v10176_v25 = vrot.slane %v10159_v54, %v16688_v52  ;;  %v10172_v36 = vrot.slane %v10159_v54, %v16683_v47  ;;  %v10184_v40 = vrot.slane %v10159_v54, %v16742_v18  ;;  %v10180_v45 = vrot.slane %v10159_v54, %v16739_v16 }
 0x82d   :  { %v10192_v57 = vrot.slane %v10159_v54, %v16734_v11  ;;  %v10188_v55 = vrot.slane %v10159_v54, %v16731_v8  ;;  %v10200_v23 = vrot.slane %v10159_v54, %v16796_v13  ;;  %v10196_v14 = vrot.slane %v10159_v54, %v16791_v10  ;;  %v15217_v13 = vld [vmem:[#allocation16 + $0x200] ss:$16 sps:$4 sm:$0xff]   ;;  %v15273_v54 = vld [vmem:[#allocation16 + $0x324] ss:$16 sps:$4 sm:$0xff]  }
 0x82e   :  { %v10210_v22 = vadd.f32 %v10176_v25, %v10161_v7  ;;  %v10209_v27 = vadd.f32 %v10172_v36, %v10160_v31  ;;  %v10212_v39 = vadd.f32 %v10184_v40, %v10163_v19  ;;  %v17498_v3 = vadd.f32 %v10180_v45, %v10162_v2  ;;  %v15246_v7 = vld [vmem:[#allocation16 + $0x28c] ss:$16 sps:$4 sm:$0xff]   ;;  %v15241_v31 = vld [vmem:[#allocation16 + $0x280] ss:$16 sps:$4 sm:$0xff]   ;;  %v15274_v25 = vld [vmem:[#allocation16 + $0x328] ss:$16 sps:$4 sm:$0xff]  }
 0x82f   :  { %v17500_v38 = vadd.f32 %v10192_v57, %v10165_v51  ;;  %v17502_v9 = vadd.f32 %v10188_v55, %v10164_v17  ;;  %v17504_v42 = vadd.f32 %v10200_v23, %v10167_v28  ;;  %v17506_v34 = vadd.f32 %v10196_v14, %v10166_v53  ;;  %v15252_v19 = vld [vmem:[#allocation16 + $0x2ac] ss:$16 sps:$4 sm:$0xff]   ;;  %v15255_v51 = vld [vmem:[#allocation16 + $0x2c4] ss:$16 sps:$4 sm:$0xff]   ;;  %v15271_v2 = vld [vmem:[#allocation16 + $0x320] ss:$16 sps:$4 sm:$0xff]  }
 0x830   :  { %v10218_v11 = vmax.f32 %v10210_v22, 0.0  ;;  %v10217_v20 = vmax.f32 %v10209_v27, 0.0  ;;  %v10220_v8 = vmax.f32 %v10212_v39, 0.0  ;;  %v15258_v17 = vld [vmem:[#allocation16 + $0x2cc] ss:$16 sps:$4 sm:$0xff]  }
 0x831   :  { %v15261_v28 = vld [vmem:[#allocation16 + $0x2e4] ss:$16 sps:$4 sm:$0xff]   ;;  %v15264_v53 = vld [vmem:[#allocation16 + $0x2ec] ss:$16 sps:$4 sm:$0xff]   ;;  %v15277_v45 = vld [vmem:[#allocation16 + $0x340] ss:$16 sps:$4 sm:$0xff]  }
 0x832   :  { %v10226_v32 = vpack.c.bf16 %v10218_v11, %v10218_v11  ;;  %v10225_v10 = vpack.c.bf16 %v10217_v20, %v10217_v20  ;;  %v10228_v58 = vpack.c.bf16 %v10220_v8, %v10220_v8  ;;  %v15279_v36 = vld [vmem:[#allocation16 + $0x344] ss:$16 sps:$4 sm:$0xff]   ;;  %v15282_v40 = vld [vmem:[#allocation16 + $0x34c] ss:$16 sps:$4 sm:$0xff]   ;;  %v15280_v57 = vld [vmem:[#allocation16 + $0x348] ss:$16 sps:$4 sm:$0xff]  }
 0x833   :  { %v15285_v55 = vld [vmem:[#allocation16 + $0x364] ss:$16 sps:$4 sm:$0xff]   ;;  %v15288_v23 = vld [vmem:[#allocation16 + $0x36c] ss:$16 sps:$4 sm:$0xff]   ;;  %v15283_v14 = vld [vmem:[#allocation16 + $0x360] ss:$16 sps:$4 sm:$0xff]  }
 0x834   :  { %11823 = vmatprep.mubr.bf16.mxu0 %v10226_v32  ;;  %11987 = vmatprep.mubr.bf16.mxu1 %v10226_v32  ;;  %v15286_v22 = vld [vmem:[#allocation16 + $0x368] ss:$16 sps:$4 sm:$0xff]   ;;  %v15291_v27 = vld [vmem:[#allocation16 + $0x384] ss:$16 sps:$4 sm:$0xff]   ;;  %v15294_v39 = vld [vmem:[#allocation16 + $0x38c] ss:$16 sps:$4 sm:$0xff]  }
 0x835   :  { %11824 = vmatmul.mubr.bf16.vlgmr.msra.gmra.mrb[20].mxu0 %v10225_v10  ;;  %11988 = vmatmul.mubr.bf16.vlgmr.msra.gmra.mrb[28].mxu1 %v10225_v10  ;;  %v15289_v11 = vld [vmem:[#allocation16 + $0x380] ss:$16 sps:$4 sm:$0xff]   ;;  %v15292_v20 = vld [vmem:[#allocation16 + $0x388] ss:$16 sps:$4 sm:$0xff]   ;;  %v15297_v8 = vld [vmem:[#allocation16 + $0x3a4] ss:$16 sps:$4 sm:$0xff]  }
 0x836   :  { %11833 = vmatpush1.bf16.msra.mxu0 %v15217_v13  ;;  %11997 = vmatpush1.bf16.msra.mxu1 %v15220_v15  ;;  %v15300_v32 = vld [vmem:[#allocation16 + $0x3ac] ss:$16 sps:$4 sm:$0xff]   ;;  %v15295_v13 = vld [vmem:[#allocation16 + $0x3a0] ss:$16 sps:$4 sm:$0xff]   ;;  %v15298_v15 = vld [vmem:[#allocation16 + $0x3a8] ss:$16 sps:$4 sm:$0xff]  }
 0x837   :  { %11864 = vmatprep.mubr.bf16.mxu0 %v10228_v58  ;;  %12028 = vmatprep.mubr.bf16.mxu1 %v10228_v58  ;;  %v15303_v10 = vld [vmem:[#allocation16 + $0x3c4] ss:$16 sps:$4 sm:$0xff]   ;;  %v15304_v58 = vld [vmem:[#allocation16 + $0x3c8] ss:$16 sps:$4 sm:$0xff]  }
 0x838   :  { %11834 = vmatprep.subr.bf16.mxu0 %v15225_v63  ;;  %11998 = vmatprep.subr.bf16.mxu1 %v15228_v5  ;;  %v15306_v63 = vld [vmem:[#allocation16 + $0x3cc] ss:$16 sps:$4 sm:$0xff]   ;;  %v15301_v5 = vld [vmem:[#allocation16 + $0x3c0] ss:$16 sps:$4 sm:$0xff]  }
 0x83a   :  { %11835 = vmatpush1.bf16.msra.mxu0 %v15223_v62  ;;  %11999 = vmatpush1.bf16.msra.mxu1 %v15226_v4  ;;  %v15309_v62 = vld [vmem:[#allocation16 + $0x3e4] ss:$16 sps:$4 sm:$0xff]   ;;  %v15312_v4 = vld [vmem:[#allocation16 + $0x3ec] ss:$16 sps:$4 sm:$0xff]  }
 0x83b   :  { %11836 = vmatprep.subr.bf16.mxu0 %v15231_v41  ;;  %12000 = vmatprep.subr.bf16.mxu1 %v15234_v26  ;;  %v15307_v41 = vld [vmem:[#allocation16 + $0x3e0] ss:$16 sps:$4 sm:$0xff]   ;;  %v15310_v26 = vld [vmem:[#allocation16 + $0x3e8] ss:$16 sps:$4 sm:$0xff]  }
 0x83e   :  { %11837 = vmatpush1.bf16.msra.mxu0 %v15229_v21  ;;  %12001 = vmatpush1.bf16.msra.mxu1 %v15232_v1  ;;  %v10219_v21 = vmax.f32 %v17498_v3, 0.0  ;;  %v15315_v1 = vld [vmem:[#allocation16 + $0x404] ss:$16 sps:$4 sm:$0xff]   ;;  %v15322_v3 = vld [vmem:[#allocation16 + $0x428] ss:$16 sps:$4 sm:$0xff]  }
 0x83f   :  { %11838 = vmatprep.subr.bf16.mxu0 %v15237_v30  ;;  %12002 = vmatprep.subr.bf16.mxu1 %v15240_v56  ;;  %v15318_v30 = vld [vmem:[#allocation16 + $0x40c] ss:$16 sps:$4 sm:$0xff]   ;;  %v10222_v56 = vmax.f32 %v17500_v38, 0.0 }
 0x840   :  { %v15330_v38 = vld [vmem:[#allocation16 + $0x44c] ss:$16 sps:$4 sm:$0xff]  }
 0x842   :  { %11839 = vmatpush1.bf16.msra.mxu0 %v15235_v0  ;;  %12003 = vmatpush1.bf16.msra.mxu1 %v15238_v33  ;;  %v15313_v0 = vld [vmem:[#allocation16 + $0x400] ss:$16 sps:$4 sm:$0xff]   ;;  %v10227_v33 = vpack.c.bf16 %v10219_v21, %v10219_v21  ;;  %v15393_v21 = vld [vmem:[#allocation16 + $0x5a4] ss:$16 sps:$4 sm:$0xff]  }
 0x843   :  { %11840 = vmatprep.subr.bf16.mxu0 %v15243_v50  ;;  %12004 = vmatprep.subr.bf16.mxu1 %v15246_v7  ;;  %v15316_v50 = vld [vmem:[#allocation16 + $0x408] ss:$16 sps:$4 sm:$0xff]   ;;  %v10230_v7 = vpack.c.bf16 %v10222_v56, %v10222_v56 }
 0x844   :  { %v15394_v56 = vld [vmem:[#allocation16 + $0x5a8] ss:$16 sps:$4 sm:$0xff]  }
 0x846   :  { %11841 = vmatpush1.bf16.msra.mxu0 %v15241_v31  ;;  %12005 = vmatpush1.bf16.msra.mxu1 %v15244_v48  ;;  %v15321_v31 = vld [vmem:[#allocation16 + $0x424] ss:$16 sps:$4 sm:$0xff]   ;;  %v15324_v48 = vld [vmem:[#allocation16 + $0x42c] ss:$16 sps:$4 sm:$0xff]  }
 0x847   :  { %11842 = vmatprep.subr.bf16.mxu0 %v15249_v59  ;;  %12006 = vmatprep.subr.bf16.mxu1 %v15252_v19  ;;  %v15319_v59 = vld [vmem:[#allocation16 + $0x420] ss:$16 sps:$4 sm:$0xff]   ;;  %v15327_v19 = vld [vmem:[#allocation16 + $0x444] ss:$16 sps:$4 sm:$0xff]  }
 0x84a   :  { %11843 = vmatpush1.bf16.msra.mxu0 %v15247_v61  ;;  %12007 = vmatpush1.bf16.msra.mxu1 %v15250_v60  ;;  %v15325_v61 = vld [vmem:[#allocation16 + $0x440] ss:$16 sps:$4 sm:$0xff]   ;;  %v15328_v60 = vld [vmem:[#allocation16 + $0x448] ss:$16 sps:$4 sm:$0xff]  }
 0x84b   :  { %11844 = vmatprep.subr.bf16.mxu0 %v15255_v51  ;;  %12008 = vmatprep.subr.bf16.mxu1 %v15258_v17  ;;  %v15333_v51 = vld [vmem:[#allocation16 + $0x464] ss:$16 sps:$4 sm:$0xff]   ;;  %v15336_v17 = vld [vmem:[#allocation16 + $0x46c] ss:$16 sps:$4 sm:$0xff]  }
 0x84e   :  { %11845 = vmatpush1.bf16.msra.mxu0 %v15253_v29  ;;  %12009 = vmatpush1.bf16.msra.mxu1 %v15256_v49  ;;  %v15331_v29 = vld [vmem:[#allocation16 + $0x460] ss:$16 sps:$4 sm:$0xff]   ;;  %v15334_v49 = vld [vmem:[#allocation16 + $0x468] ss:$16 sps:$4 sm:$0xff]  }
 0x84f   :  { %11846 = vmatprep.subr.bf16.mxu0 %v15261_v28  ;;  %12010 = vmatprep.subr.bf16.mxu1 %v15264_v53  ;;  %v15339_v28 = vld [vmem:[#allocation16 + $0x484] ss:$16 sps:$4 sm:$0xff]   ;;  %v15342_v53 = vld [vmem:[#allocation16 + $0x48c] ss:$16 sps:$4 sm:$0xff]  }
 0x852   :  { %11847 = vmatpush1.bf16.msra.mxu0 %v15259_v6  ;;  %12011 = vmatpush1.bf16.msra.mxu1 %v15262_v24  ;;  %v15337_v6 = vld [vmem:[#allocation16 + $0x480] ss:$16 sps:$4 sm:$0xff]   ;;  %v15340_v24 = vld [vmem:[#allocation16 + $0x488] ss:$16 sps:$4 sm:$0xff]  }
 0x853   :  { %11848 = vmatprep.subr.bf16.mxu0 %v15267_v35  ;;  %12012 = vmatprep.subr.bf16.mxu1 %v15270_v12  ;;  %v15345_v35 = vld [vmem:[#allocation16 + $0x4a4] ss:$16 sps:$4 sm:$0xff]   ;;  %v15348_v12 = vld [vmem:[#allocation16 + $0x4ac] ss:$16 sps:$4 sm:$0xff]  }
 0x856   :  { %11849 = vmatpush1.bf16.msra.mxu0 %v15265_v37  ;;  %12013 = vmatpush1.bf16.msra.mxu1 %v15268_v44  ;;  %v15343_v37 = vld [vmem:[#allocation16 + $0x4a0] ss:$16 sps:$4 sm:$0xff]   ;;  %v15346_v44 = vld [vmem:[#allocation16 + $0x4a8] ss:$16 sps:$4 sm:$0xff]  }
 0x857   :  { %11850 = vmatprep.subr.bf16.mxu0 %v15273_v54  ;;  %12014 = vmatprep.subr.bf16.mxu1 %v15276_v43  ;;  %v15351_v54 = vld [vmem:[#allocation16 + $0x4c4] ss:$16 sps:$4 sm:$0xff]   ;;  %v15354_v43 = vld [vmem:[#allocation16 + $0x4cc] ss:$16 sps:$4 sm:$0xff]  }
 0x85a   :  { %11851 = vmatpush1.bf16.msra.mxu0 %v15271_v2  ;;  %12015 = vmatpush1.bf16.msra.mxu1 %v15274_v25  ;;  %v15349_v2 = vld [vmem:[#allocation16 + $0x4c0] ss:$16 sps:$4 sm:$0xff]   ;;  %v15352_v25 = vld [vmem:[#allocation16 + $0x4c8] ss:$16 sps:$4 sm:$0xff]  }
 0x85b   :  { %11852 = vmatprep.subr.bf16.mxu0 %v15279_v36  ;;  %12016 = vmatprep.subr.bf16.mxu1 %v15282_v40  ;;  %v15357_v36 = vld [vmem:[#allocation16 + $0x4e4] ss:$16 sps:$4 sm:$0xff]   ;;  %v15360_v40 = vld [vmem:[#allocation16 + $0x4ec] ss:$16 sps:$4 sm:$0xff]  }
 0x85e   :  { %11853 = vmatpush1.bf16.msra.mxu0 %v15277_v45  ;;  %12017 = vmatpush1.bf16.msra.mxu1 %v15280_v57  ;;  %v15355_v45 = vld [vmem:[#allocation16 + $0x4e0] ss:$16 sps:$4 sm:$0xff]   ;;  %v15358_v57 = vld [vmem:[#allocation16 + $0x4e8] ss:$16 sps:$4 sm:$0xff]  }
 0x85f   :  { %11854 = vmatprep.subr.bf16.mxu0 %v15285_v55  ;;  %12018 = vmatprep.subr.bf16.mxu1 %v15288_v23  ;;  %v15363_v55 = vld [vmem:[#allocation16 + $0x504] ss:$16 sps:$4 sm:$0xff]   ;;  %v15366_v23 = vld [vmem:[#allocation16 + $0x50c] ss:$16 sps:$4 sm:$0xff]  }
 0x862   :  { %11855 = vmatpush1.bf16.msra.mxu0 %v15283_v14  ;;  %12019 = vmatpush1.bf16.msra.mxu1 %v15286_v22  ;;  %v15361_v14 = vld [vmem:[#allocation16 + $0x500] ss:$16 sps:$4 sm:$0xff]   ;;  %v15364_v22 = vld [vmem:[#allocation16 + $0x508] ss:$16 sps:$4 sm:$0xff]  }
 0x863   :  { %11856 = vmatprep.subr.bf16.mxu0 %v15291_v27  ;;  %12020 = vmatprep.subr.bf16.mxu1 %v15294_v39  ;;  %v15369_v27 = vld [vmem:[#allocation16 + $0x524] ss:$16 sps:$4 sm:$0xff]   ;;  %v15372_v39 = vld [vmem:[#allocation16 + $0x52c] ss:$16 sps:$4 sm:$0xff]  }
 0x866   :  { %11857 = vmatpush1.bf16.msra.mxu0 %v15289_v11  ;;  %12021 = vmatpush1.bf16.msra.mxu1 %v15292_v20  ;;  %v15367_v11 = vld [vmem:[#allocation16 + $0x520] ss:$16 sps:$4 sm:$0xff]   ;;  %v15370_v20 = vld [vmem:[#allocation16 + $0x528] ss:$16 sps:$4 sm:$0xff]  }
 0x867   :  { %11858 = vmatprep.subr.bf16.mxu0 %v15297_v8  ;;  %12022 = vmatprep.subr.bf16.mxu1 %v15300_v32  ;;  %v15375_v8 = vld [vmem:[#allocation16 + $0x544] ss:$16 sps:$4 sm:$0xff]   ;;  %v15378_v32 = vld [vmem:[#allocation16 + $0x54c] ss:$16 sps:$4 sm:$0xff]  }
 0x86a   :  { %11859 = vmatpush1.bf16.msra.mxu0 %v15295_v13  ;;  %12023 = vmatpush1.bf16.msra.mxu1 %v15298_v15  ;;  %v15373_v13 = vld [vmem:[#allocation16 + $0x540] ss:$16 sps:$4 sm:$0xff]   ;;  %v15376_v15 = vld [vmem:[#allocation16 + $0x548] ss:$16 sps:$4 sm:$0xff]  }
 0x86b   :  { %11860 = vmatprep.subr.bf16.mxu0 %v15303_v10  ;;  %12024 = vmatprep.subr.bf16.mxu1 %v15306_v63  ;;  %v15381_v10 = vld [vmem:[#allocation16 + $0x564] ss:$16 sps:$4 sm:$0xff]   ;;  %v15384_v63 = vld [vmem:[#allocation16 + $0x56c] ss:$16 sps:$4 sm:$0xff]  }
 0x86e   :  { %11861 = vmatpush1.bf16.msra.mxu0 %v15301_v5  ;;  %12025 = vmatpush1.bf16.msra.mxu1 %v15304_v58  ;;  %v15379_v5 = vld [vmem:[#allocation16 + $0x560] ss:$16 sps:$4 sm:$0xff]   ;;  %v15382_v58 = vld [vmem:[#allocation16 + $0x568] ss:$16 sps:$4 sm:$0xff]  }
 0x86f   :  { %11862 = vmatprep.subr.bf16.mxu0 %v15309_v62  ;;  %12026 = vmatprep.subr.bf16.mxu1 %v15312_v4  ;;  %v15387_v62 = vld [vmem:[#allocation16 + $0x584] ss:$16 sps:$4 sm:$0xff]   ;;  %v15390_v4 = vld [vmem:[#allocation16 + $0x58c] ss:$16 sps:$4 sm:$0xff]  }
 0x872   :  { %11863 = vmatpush1.bf16.msra.mxu0 %v15307_v41  ;;  %12027 = vmatpush1.bf16.msra.mxu1 %v15310_v26  ;;  %v15385_v41 = vld [vmem:[#allocation16 + $0x580] ss:$16 sps:$4 sm:$0xff]   ;;  %v15388_v26 = vld [vmem:[#allocation16 + $0x588] ss:$16 sps:$4 sm:$0xff]  }
 0x873   :  { %11873 = vmatprep.subr.bf16.mxu0 %v15315_v1  ;;  %12037 = vmatprep.subr.bf16.mxu1 %v15318_v30  ;;  %v15396_v1 = vld [vmem:[#allocation16 + $0x5ac] ss:$16 sps:$4 sm:$0xff]   ;;  %v15391_v30 = vld [vmem:[#allocation16 + $0x5a0] ss:$16 sps:$4 sm:$0xff]  }
 0x875   :  { %11865 = vmatmul.mubr.bf16.vlgmr.msra.gmra.mrb[20].mxu0 %v10227_v33  ;;  %12029 = vmatmul.mubr.bf16.vlgmr.msra.gmra.mrb[28].mxu1 %v10227_v33  ;;  %v15402_v33 = vld [vmem:[#allocation16 + $0x5cc] ss:$16 sps:$4 sm:$0xff]  }
 0x876   :  { %11874 = vmatpush1.bf16.msra.mxu0 %v15313_v0  ;;  %11905 = vmatprep.mubr.bf16.mxu0 %v10230_v7  ;;  %v15399_v0 = vld [vmem:[#allocation16 + $0x5c4] ss:$16 sps:$4 sm:$0xff]  }
 0x877   :  { %12038 = vmatpush1.bf16.msra.mxu1 %v15316_v50  ;;  %12069 = vmatprep.mubr.bf16.mxu1 %v10230_v7  ;;  %v15397_v50 = vld [vmem:[#allocation16 + $0x5c0] ss:$16 sps:$4 sm:$0xff]   ;;  %v15400_v7 = vld [vmem:[#allocation16 + $0x5c8] ss:$16 sps:$4 sm:$0xff]  }
 0x878   :  { %11875 = vmatprep.subr.bf16.mxu0 %v15321_v31  ;;  %12039 = vmatprep.subr.bf16.mxu1 %v15324_v48  ;;  %v15405_v31 = vld [vmem:[#allocation16 + $0x5e4] ss:$16 sps:$4 sm:$0xff]   ;;  %v15408_v48 = vld [vmem:[#allocation16 + $0x5ec] ss:$16 sps:$4 sm:$0xff]  }
 0x87a   :  { %11876 = vmatpush1.bf16.msra.mxu0 %v15319_v59  ;;  %v15403_v59 = vld [vmem:[#allocation16 + $0x5e0] ss:$16 sps:$4 sm:$0xff]  }
 0x87b   :  { %12040 = vmatpush1.bf16.msra.mxu1 %v15322_v3  ;;  %11877 = vmatprep.subr.bf16.mxu0 %v15327_v19  ;;  %v15406_v3 = vld [vmem:[#allocation16 + $0x5e8] ss:$16 sps:$4 sm:$0xff]   ;;  %v10221_v19 = vmax.f32 %v17502_v9, 0.0 }
 0x87c   :  { %12041 = vmatprep.subr.bf16.mxu1 %v15330_v38  ;;  %v15411_v38 = vld [vmem:[#allocation16 + $0x604] ss:$16 sps:$4 sm:$0xff]   ;;  %v15418_v9 = vld [vmem:[#allocation16 + $0x628] ss:$16 sps:$4 sm:$0xff]  }
 0x87e   :  { %11878 = vmatpush1.bf16.msra.mxu0 %v15325_v61  ;;  %v15414_v61 = vld [vmem:[#allocation16 + $0x60c] ss:$16 sps:$4 sm:$0xff]  }
 0x87f   :  { %12042 = vmatpush1.bf16.msra.mxu1 %v15328_v60  ;;  %11879 = vmatprep.subr.bf16.mxu0 %v15333_v51  ;;  %v10224_v60 = vmax.f32 %v17504_v42, 0.0  ;;  %v15409_v51 = vld [vmem:[#allocation16 + $0x600] ss:$16 sps:$4 sm:$0xff]   ;;  %v15426_v42 = vld [vmem:[#allocation16 + $0x64c] ss:$16 sps:$4 sm:$0xff]  }
 0x880   :  { %12043 = vmatprep.subr.bf16.mxu1 %v15336_v17  ;;  %v10229_v17 = vpack.c.bf16 %v10221_v19, %v10221_v19  ;;  %v15487_v19 = vld [vmem:[#allocation16 + $0x7a0] ss:$16 sps:$4 sm:$0xff]  }
 0x882   :  { %11880 = vmatpush1.bf16.msra.mxu0 %v15331_v29  ;;  %v15412_v29 = vld [vmem:[#allocation16 + $0x608] ss:$16 sps:$4 sm:$0xff]  }
 0x883   :  { %12044 = vmatpush1.bf16.msra.mxu1 %v15334_v49  ;;  %11881 = vmatprep.subr.bf16.mxu0 %v15339_v28  ;;  %v15417_v49 = vld [vmem:[#allocation16 + $0x624] ss:$16 sps:$4 sm:$0xff]   ;;  %v10232_v28 = vpack.c.bf16 %v10224_v60, %v10224_v60  ;;  %v15498_v60 = vld [vmem:[#allocation16 + $0x7cc] ss:$16 sps:$4 sm:$0xff]  }
 0x884   :  { %12045 = vmatprep.subr.bf16.mxu1 %v15342_v53  ;;  %v15420_v53 = vld [vmem:[#allocation16 + $0x62c] ss:$16 sps:$4 sm:$0xff]  }
 0x886   :  { %11882 = vmatpush1.bf16.msra.mxu0 %v15337_v6  ;;  %v15415_v6 = vld [vmem:[#allocation16 + $0x620] ss:$16 sps:$4 sm:$0xff]  }
 0x887   :  { %12046 = vmatpush1.bf16.msra.mxu1 %v15340_v24  ;;  %11883 = vmatprep.subr.bf16.mxu0 %v15345_v35  ;;  %v15423_v24 = vld [vmem:[#allocation16 + $0x644] ss:$16 sps:$4 sm:$0xff]   ;;  %v15421_v35 = vld [vmem:[#allocation16 + $0x640] ss:$16 sps:$4 sm:$0xff]  }
 0x888   :  { %12047 = vmatprep.subr.bf16.mxu1 %v15348_v12  ;;  %v15424_v12 = vld [vmem:[#allocation16 + $0x648] ss:$16 sps:$4 sm:$0xff]  }
 0x88a   :  { %11884 = vmatpush1.bf16.msra.mxu0 %v15343_v37  ;;  %v15429_v37 = vld [vmem:[#allocation16 + $0x664] ss:$16 sps:$4 sm:$0xff]  }
 0x88b   :  { %12048 = vmatpush1.bf16.msra.mxu1 %v15346_v44  ;;  %11885 = vmatprep.subr.bf16.mxu0 %v15351_v54  ;;  %v15432_v44 = vld [vmem:[#allocation16 + $0x66c] ss:$16 sps:$4 sm:$0xff]   ;;  %v15427_v54 = vld [vmem:[#allocation16 + $0x660] ss:$16 sps:$4 sm:$0xff]  }
 0x88c   :  { %12049 = vmatprep.subr.bf16.mxu1 %v15354_v43  ;;  %v15430_v43 = vld [vmem:[#allocation16 + $0x668] ss:$16 sps:$4 sm:$0xff]  }
 0x88e   :  { %11886 = vmatpush1.bf16.msra.mxu0 %v15349_v2  ;;  %v15435_v2 = vld [vmem:[#allocation16 + $0x684] ss:$16 sps:$4 sm:$0xff]  }
 0x88f   :  { %12050 = vmatpush1.bf16.msra.mxu1 %v15352_v25  ;;  %11887 = vmatprep.subr.bf16.mxu0 %v15357_v36  ;;  %v15438_v25 = vld [vmem:[#allocation16 + $0x68c] ss:$16 sps:$4 sm:$0xff]   ;;  %v15433_v36 = vld [vmem:[#allocation16 + $0x680] ss:$16 sps:$4 sm:$0xff]  }
 0x890   :  { %12051 = vmatprep.subr.bf16.mxu1 %v15360_v40  ;;  %v15436_v40 = vld [vmem:[#allocation16 + $0x688] ss:$16 sps:$4 sm:$0xff]  }
 0x892   :  { %11888 = vmatpush1.bf16.msra.mxu0 %v15355_v45  ;;  %v15441_v45 = vld [vmem:[#allocation16 + $0x6a4] ss:$16 sps:$4 sm:$0xff]  }
 0x893   :  { %12052 = vmatpush1.bf16.msra.mxu1 %v15358_v57  ;;  %11889 = vmatprep.subr.bf16.mxu0 %v15363_v55  ;;  %v15444_v57 = vld [vmem:[#allocation16 + $0x6ac] ss:$16 sps:$4 sm:$0xff]   ;;  %v15439_v55 = vld [vmem:[#allocation16 + $0x6a0] ss:$16 sps:$4 sm:$0xff]  }
 0x894   :  { %12053 = vmatprep.subr.bf16.mxu1 %v15366_v23  ;;  %v15442_v23 = vld [vmem:[#allocation16 + $0x6a8] ss:$16 sps:$4 sm:$0xff]  }
 0x896   :  { %11890 = vmatpush1.bf16.msra.mxu0 %v15361_v14  ;;  %v15447_v14 = vld [vmem:[#allocation16 + $0x6c4] ss:$16 sps:$4 sm:$0xff]  }
 0x897   :  { %12054 = vmatpush1.bf16.msra.mxu1 %v15364_v22  ;;  %11891 = vmatprep.subr.bf16.mxu0 %v15369_v27  ;;  %v15450_v22 = vld [vmem:[#allocation16 + $0x6cc] ss:$16 sps:$4 sm:$0xff]   ;;  %v15445_v27 = vld [vmem:[#allocation16 + $0x6c0] ss:$16 sps:$4 sm:$0xff]  }
 0x898   :  { %12055 = vmatprep.subr.bf16.mxu1 %v15372_v39  ;;  %v15448_v39 = vld [vmem:[#allocation16 + $0x6c8] ss:$16 sps:$4 sm:$0xff]  }
 0x89a   :  { %11892 = vmatpush1.bf16.msra.mxu0 %v15367_v11  ;;  %v15453_v11 = vld [vmem:[#allocation16 + $0x6e4] ss:$16 sps:$4 sm:$0xff]  }
 0x89b   :  { %12056 = vmatpush1.bf16.msra.mxu1 %v15370_v20  ;;  %11893 = vmatprep.subr.bf16.mxu0 %v15375_v8  ;;  %v15456_v20 = vld [vmem:[#allocation16 + $0x6ec] ss:$16 sps:$4 sm:$0xff]   ;;  %v15451_v8 = vld [vmem:[#allocation16 + $0x6e0] ss:$16 sps:$4 sm:$0xff]  }
 0x89c   :  { %12057 = vmatprep.subr.bf16.mxu1 %v15378_v32  ;;  %v15454_v32 = vld [vmem:[#allocation16 + $0x6e8] ss:$16 sps:$4 sm:$0xff]  }
 0x89e   :  { %11894 = vmatpush1.bf16.msra.mxu0 %v15373_v13  ;;  %v15459_v13 = vld [vmem:[#allocation16 + $0x704] ss:$16 sps:$4 sm:$0xff]  }
 0x89f   :  { %12058 = vmatpush1.bf16.msra.mxu1 %v15376_v15  ;;  %11895 = vmatprep.subr.bf16.mxu0 %v15381_v10  ;;  %v15462_v15 = vld [vmem:[#allocation16 + $0x70c] ss:$16 sps:$4 sm:$0xff]   ;;  %v15457_v10 = vld [vmem:[#allocation16 + $0x700] ss:$16 sps:$4 sm:$0xff]  }
 0x8a0   :  { %12059 = vmatprep.subr.bf16.mxu1 %v15384_v63  ;;  %v15460_v63 = vld [vmem:[#allocation16 + $0x708] ss:$16 sps:$4 sm:$0xff]  }
 0x8a2   :  { %11896 = vmatpush1.bf16.msra.mxu0 %v15379_v5  ;;  %v15465_v5 = vld [vmem:[#allocation16 + $0x724] ss:$16 sps:$4 sm:$0xff]  }
 0x8a3   :  { %12060 = vmatpush1.bf16.msra.mxu1 %v15382_v58  ;;  %11897 = vmatprep.subr.bf16.mxu0 %v15387_v62  ;;  %v15468_v58 = vld [vmem:[#allocation16 + $0x72c] ss:$16 sps:$4 sm:$0xff]   ;;  %v15463_v62 = vld [vmem:[#allocation16 + $0x720] ss:$16 sps:$4 sm:$0xff]  }
 0x8a4   :  { %12061 = vmatprep.subr.bf16.mxu1 %v15390_v4  ;;  %v15466_v4 = vld [vmem:[#allocation16 + $0x728] ss:$16 sps:$4 sm:$0xff]  }
 0x8a6   :  { %11898 = vmatpush1.bf16.msra.mxu0 %v15385_v41  ;;  %v15471_v41 = vld [vmem:[#allocation16 + $0x744] ss:$16 sps:$4 sm:$0xff]  }
 0x8a7   :  { %12062 = vmatpush1.bf16.msra.mxu1 %v15388_v26  ;;  %11899 = vmatprep.subr.bf16.mxu0 %v15393_v21  ;;  %v15474_v26 = vld [vmem:[#allocation16 + $0x74c] ss:$16 sps:$4 sm:$0xff]   ;;  %v15469_v21 = vld [vmem:[#allocation16 + $0x740] ss:$16 sps:$4 sm:$0xff]  }
 0x8a8   :  { %12063 = vmatprep.subr.bf16.mxu1 %v15396_v1  ;;  %v15472_v1 = vld [vmem:[#allocation16 + $0x748] ss:$16 sps:$4 sm:$0xff]  }
 0x8aa   :  { %11900 = vmatpush1.bf16.msra.mxu0 %v15391_v30  ;;  %v15477_v30 = vld [vmem:[#allocation16 + $0x764] ss:$16 sps:$4 sm:$0xff]  }
 0x8ab   :  { %12064 = vmatpush1.bf16.msra.mxu1 %v15394_v56  ;;  %11901 = vmatprep.subr.bf16.mxu0 %v15399_v0  ;;  %v15480_v56 = vld [vmem:[#allocation16 + $0x76c] ss:$16 sps:$4 sm:$0xff]   ;;  %v15475_v0 = vld [vmem:[#allocation16 + $0x760] ss:$16 sps:$4 sm:$0xff]  }
 0x8ac   :  { %12065 = vmatprep.subr.bf16.mxu1 %v15402_v33  ;;  %v15478_v33 = vld [vmem:[#allocation16 + $0x768] ss:$16 sps:$4 sm:$0xff]  }
 0x8ae   :  { %11902 = vmatpush1.bf16.msra.mxu0 %v15397_v50  ;;  %v15483_v50 = vld [vmem:[#allocation16 + $0x784] ss:$16 sps:$4 sm:$0xff]  }
 0x8af   :  { %12066 = vmatpush1.bf16.msra.mxu1 %v15400_v7  ;;  %11903 = vmatprep.subr.bf16.mxu0 %v15405_v31  ;;  %v15486_v7 = vld [vmem:[#allocation16 + $0x78c] ss:$16 sps:$4 sm:$0xff]   ;;  %v15481_v31 = vld [vmem:[#allocation16 + $0x780] ss:$16 sps:$4 sm:$0xff]  }
 0x8b0   :  { %12067 = vmatprep.subr.bf16.mxu1 %v15408_v48  ;;  %v15484_v48 = vld [vmem:[#allocation16 + $0x788] ss:$16 sps:$4 sm:$0xff]  }
 0x8b2   :  { %11904 = vmatpush1.bf16.msra.mxu0 %v15403_v59  ;;  %v15489_v59 = vld [vmem:[#allocation16 + $0x7a4] ss:$16 sps:$4 sm:$0xff]  }
 0x8b3   :  { %12068 = vmatpush1.bf16.msra.mxu1 %v15406_v3  ;;  %11914 = vmatprep.subr.bf16.mxu0 %v15411_v38  ;;  %v15492_v3 = vld [vmem:[#allocation16 + $0x7ac] ss:$16 sps:$4 sm:$0xff]   ;;  %v15490_v38 = vld [vmem:[#allocation16 + $0x7a8] ss:$16 sps:$4 sm:$0xff]  }
 0x8b4   :  { %12078 = vmatprep.subr.bf16.mxu1 %v15414_v61  ;;  %v15495_v61 = vld [vmem:[#allocation16 + $0x7c4] ss:$16 sps:$4 sm:$0xff]  }
 0x8b5   :  { %11906 = vmatmul.mubr.bf16.vlgmr.msra.gmra.mrb[20].mxu0 %v10229_v17 }
 0x8b6   :  { %12070 = vmatmul.mubr.bf16.vlgmr.msra.gmra.mrb[28].mxu1 %v10229_v17  ;;  %11915 = vmatpush1.bf16.msra.mxu0 %v15409_v51  ;;  %v15493_v51 = vld [vmem:[#allocation16 + $0x7c0] ss:$16 sps:$4 sm:$0xff]   ;;  %v15496_v17 = vld [vmem:[#allocation16 + $0x7c8] ss:$16 sps:$4 sm:$0xff]  }
 0x8b7   :  { %11946 = vmatprep.mubr.bf16.mxu0 %v10232_v28  ;;  %12079 = vmatpush1.bf16.msra.mxu1 %v15412_v29  ;;  %v15501_v29 = vld [vmem:[#allocation16 + $0x7e4] ss:$16 sps:$4 sm:$0xff]  }
 0x8b8   :  { %12110 = vmatprep.mubr.bf16.mxu1 %v10232_v28  ;;  %11916 = vmatprep.subr.bf16.mxu0 %v15417_v49  ;;  %v15504_v49 = vld [vmem:[#allocation16 + $0x7ec] ss:$16 sps:$4 sm:$0xff]   ;;  %v15499_v28 = vld [vmem:[#allocation16 + $0x7e0] ss:$16 sps:$4 sm:$0xff]  }
 0x8b9   :  { %12080 = vmatprep.subr.bf16.mxu1 %v15420_v53  ;;  %v15502_v53 = vld [vmem:[#allocation16 + $0x7e8] ss:$16 sps:$4 sm:$0xff]  }
 0x8ba   :  { %11917 = vmatpush1.bf16.msra.mxu0 %v15415_v6  ;;  %v10223_v6 = vmax.f32 %v17506_v34, 0.0  ;;  %v15514_v34 = vld [vmem:[#allocation22 + $0x30] ss:$8 sps:$4 sm:$0xff]  }
 0x8bb   :  { %12081 = vmatpush1.bf16.msra.mxu1 %v15418_v9  ;;  %11918 = vmatprep.subr.bf16.mxu0 %v15423_v24  ;;  %v15505_v24 = vld [vmem:[#allocation22] ss:$8 sps:$4 sm:$0xff]  }
 0x8bc   :  { %12082 = vmatprep.subr.bf16.mxu1 %v15426_v42  ;;  %v10231_v9 = vpack.c.bf16 %v10223_v6, %v10223_v6  ;;  %v15507_v42 = vld [vmem:[#allocation22 + $0x4] ss:$8 sps:$4 sm:$0xff]  }
 0x8be   :  { %11919 = vmatpush1.bf16.msra.mxu0 %v15421_v35  ;;  %v15510_v35 = vld [vmem:[#allocation22 + $0x14] ss:$8 sps:$4 sm:$0xff]  }
 0x8bf   :  { %12083 = vmatpush1.bf16.msra.mxu1 %v15424_v12  ;;  %11920 = vmatprep.subr.bf16.mxu0 %v15429_v37  ;;  %v15508_v12 = vld [vmem:[#allocation22 + $0x10] ss:$8 sps:$4 sm:$0xff]   ;;  %v15513_v37 = vld [vmem:[#allocation22 + $0x24] ss:$8 sps:$4 sm:$0xff]  }
 0x8c0   :  { %12084 = vmatprep.subr.bf16.mxu1 %v15432_v44  ;;  %v15511_v44 = vld [vmem:[#allocation22 + $0x20] ss:$8 sps:$4 sm:$0xff]  }
 0x8c2   :  { %11921 = vmatpush1.bf16.msra.mxu0 %v15427_v54  ;;  %v15516_v54 = vld [vmem:[#allocation22 + $0x34] ss:$8 sps:$4 sm:$0xff]  }
 0x8c3   :  { %12085 = vmatpush1.bf16.msra.mxu1 %v15430_v43  ;;  %11922 = vmatprep.subr.bf16.mxu0 %v15435_v2  ;;  %v15519_v43 = vld [vmem:[#allocation22 + $0x44] ss:$8 sps:$4 sm:$0xff]   ;;  %v15517_v2 = vld [vmem:[#allocation22 + $0x40] ss:$8 sps:$4 sm:$0xff]  }
 0x8c4   :  { %12086 = vmatprep.subr.bf16.mxu1 %v15438_v25  ;;  %v15522_v25 = vld [vmem:[#allocation22 + $0x54] ss:$8 sps:$4 sm:$0xff]  }
 0x8c6   :  { %11923 = vmatpush1.bf16.msra.mxu0 %v15433_v36  ;;  %v15520_v36 = vld [vmem:[#allocation22 + $0x50] ss:$8 sps:$4 sm:$0xff]  }
 0x8c7   :  { %12087 = vmatpush1.bf16.msra.mxu1 %v15436_v40  ;;  %11924 = vmatprep.subr.bf16.mxu0 %v15441_v45  ;;  %v15525_v40 = vld [vmem:[#allocation22 + $0x64] ss:$8 sps:$4 sm:$0xff]   ;;  %v15523_v45 = vld [vmem:[#allocation22 + $0x60] ss:$8 sps:$4 sm:$0xff]  }
 0x8c8   :  { %12088 = vmatprep.subr.bf16.mxu1 %v15444_v57  ;;  %v15528_v57 = vld [vmem:[#allocation22 + $0x74] ss:$8 sps:$4 sm:$0xff]  }
 0x8ca   :  { %11925 = vmatpush1.bf16.msra.mxu0 %v15439_v55  ;;  %v15526_v55 = vld [vmem:[#allocation22 + $0x70] ss:$8 sps:$4 sm:$0xff]  }
 0x8cb   :  { %12089 = vmatpush1.bf16.msra.mxu1 %v15442_v23  ;;  %11926 = vmatprep.subr.bf16.mxu0 %v15447_v14  ;;  %v15531_v23 = vld [vmem:[#allocation22 + $0x84] ss:$8 sps:$4 sm:$0xff]   ;;  %v15529_v14 = vld [vmem:[#allocation22 + $0x80] ss:$8 sps:$4 sm:$0xff]  }
 0x8cc   :  { %12090 = vmatprep.subr.bf16.mxu1 %v15450_v22  ;;  %v15534_v22 = vld [vmem:[#allocation22 + $0x94] ss:$8 sps:$4 sm:$0xff]  }
 0x8ce   :  { %11927 = vmatpush1.bf16.msra.mxu0 %v15445_v27  ;;  %v15532_v27 = vld [vmem:[#allocation22 + $0x90] ss:$8 sps:$4 sm:$0xff]  }
 0x8cf   :  { %12091 = vmatpush1.bf16.msra.mxu1 %v15448_v39  ;;  %11928 = vmatprep.subr.bf16.mxu0 %v15453_v11  ;;  %v15537_v39 = vld [vmem:[#allocation22 + $0xa4] ss:$8 sps:$4 sm:$0xff]   ;;  %v15535_v11 = vld [vmem:[#allocation22 + $0xa0] ss:$8 sps:$4 sm:$0xff]  }
 0x8d0   :  { %12092 = vmatprep.subr.bf16.mxu1 %v15456_v20  ;;  %v15540_v20 = vld [vmem:[#allocation22 + $0xb4] ss:$8 sps:$4 sm:$0xff]  }
 0x8d2   :  { %11929 = vmatpush1.bf16.msra.mxu0 %v15451_v8  ;;  %v15538_v8 = vld [vmem:[#allocation22 + $0xb0] ss:$8 sps:$4 sm:$0xff]  }
 0x8d3   :  { %12093 = vmatpush1.bf16.msra.mxu1 %v15454_v32  ;;  %11930 = vmatprep.subr.bf16.mxu0 %v15459_v13  ;;  %v15543_v32 = vld [vmem:[#allocation22 + $0xc4] ss:$8 sps:$4 sm:$0xff]   ;;  %v15541_v13 = vld [vmem:[#allocation22 + $0xc0] ss:$8 sps:$4 sm:$0xff]  }
 0x8d4   :  { %12094 = vmatprep.subr.bf16.mxu1 %v15462_v15  ;;  %v15546_v15 = vld [vmem:[#allocation22 + $0xd4] ss:$8 sps:$4 sm:$0xff]  }
 0x8d6   :  { %11931 = vmatpush1.bf16.msra.mxu0 %v15457_v10  ;;  %v15544_v10 = vld [vmem:[#allocation22 + $0xd0] ss:$8 sps:$4 sm:$0xff]  }
 0x8d7   :  { %12095 = vmatpush1.bf16.msra.mxu1 %v15460_v63  ;;  %11932 = vmatprep.subr.bf16.mxu0 %v15465_v5  ;;  %v15549_v63 = vld [vmem:[#allocation22 + $0xe4] ss:$8 sps:$4 sm:$0xff]   ;;  %v15547_v5 = vld [vmem:[#allocation22 + $0xe0] ss:$8 sps:$4 sm:$0xff]  }
 0x8d8   :  { %12096 = vmatprep.subr.bf16.mxu1 %v15468_v58  ;;  %v15552_v58 = vld [vmem:[#allocation22 + $0xf4] ss:$8 sps:$4 sm:$0xff]  }
 0x8da   :  { %11933 = vmatpush1.bf16.msra.mxu0 %v15463_v62  ;;  %v15550_v62 = vld [vmem:[#allocation22 + $0xf0] ss:$8 sps:$4 sm:$0xff]  }
 0x8db   :  { %12097 = vmatpush1.bf16.msra.mxu1 %v15466_v4  ;;  %11934 = vmatprep.subr.bf16.mxu0 %v15471_v41  ;;  %v15555_v4 = vld [vmem:[#allocation22 + $0x104] ss:$8 sps:$4 sm:$0xff]   ;;  %v10489_v41 = vld [vmem:[#allocation17] sm:$0xf] }
 0x8dc   :  { %12098 = vmatprep.subr.bf16.mxu1 %v15474_v26  ;;  %v10494_v26 = vrot.slane %v10489_v41, %v16683_v47 }
 0x8de   :  { %11935 = vmatpush1.bf16.msra.mxu0 %v15469_v21  ;;  %v10502_v21 = vrot.slane %v10489_v41, %v16739_v16 }
 0x8df   :  { %12099 = vmatpush1.bf16.msra.mxu1 %v15472_v1  ;;  %11936 = vmatprep.subr.bf16.mxu0 %v15477_v30  ;;  %v10498_v1 = vrot.slane %v10489_v41, %v16688_v52  ;;  %v10506_v30 = vrot.slane %v10489_v41, %v16742_v18 }
 0x8e0   :  { %12100 = vmatprep.subr.bf16.mxu1 %v15480_v56 }
 0x8e2   :  { %11937 = vmatpush1.bf16.msra.mxu0 %v15475_v0 }
 0x8e3   :  { %12101 = vmatpush1.bf16.msra.mxu1 %v15478_v33  ;;  %11938 = vmatprep.subr.bf16.mxu0 %v15483_v50 }
 0x8e4   :  { %12102 = vmatprep.subr.bf16.mxu1 %v15486_v7 }
 0x8e6   :  { %11939 = vmatpush1.bf16.msra.mxu0 %v15481_v31 }
 0x8e7   :  { %12103 = vmatpush1.bf16.msra.mxu1 %v15484_v48  ;;  %11940 = vmatprep.subr.bf16.mxu0 %v15489_v59 }
 0x8e8   :  { %12104 = vmatprep.subr.bf16.mxu1 %v15492_v3 }
 0x8ea   :  { %11941 = vmatpush1.bf16.msra.mxu0 %v15487_v19 }
 0x8eb   :  { %12105 = vmatpush1.bf16.msra.mxu1 %v15490_v38  ;;  %11942 = vmatprep.subr.bf16.mxu0 %v15495_v61 }
 0x8ec   :  { %12106 = vmatprep.subr.bf16.mxu1 %v15498_v60 }
 0x8ee   :  { %11943 = vmatpush1.bf16.msra.mxu0 %v15493_v51 }
 0x8ef   :  { %12107 = vmatpush1.bf16.msra.mxu1 %v15496_v17  ;;  %11944 = vmatprep.subr.bf16.mxu0 %v15501_v29 }
 0x8f0   :  { %12108 = vmatprep.subr.bf16.mxu1 %v15504_v49 }
 0x8f2   :  { %11945 = vmatpush1.bf16.msra.mxu0 %v15499_v28 }
 0x8f3   :  { %12109 = vmatpush1.bf16.msra.mxu1 %v15502_v53  ;;  %12719 = vmatprep.subr.bf16.mxu0 %v15507_v42 }
 0x8f5   :  { %11947 = vmatmul.mubr.bf16.vlgmr.msra.gmra.mrb[20].mxu0 %v10231_v9 }
 0x8f6   :  { %12111 = vmatmul.mubr.bf16.vlgmr.msra.gmra.mrb[28].mxu1 %v10231_v9  ;;  %12720 = vmatpush1.bf16.msra.mxu0 %v15505_v24 }
 0x8f7   :  { %12721 = vmatprep.subr.bf16.mxu0 %v15510_v35 }
 0x8fa   :  { %12722 = vmatpush1.bf16.msra.mxu0 %v15508_v12 }
 0x8fb   :  { %12723 = vmatprep.subr.bf16.mxu0 %v15513_v37 }
 0x8fe   :  { %12724 = vmatpush1.bf16.msra.mxu0 %v15511_v44 }
 0x8ff   :  { %12725 = vmatprep.subr.bf16.mxu0 %v15516_v54 }
 0x902   :  { %12726 = vmatpush1.bf16.msra.mxu0 %v15514_v34 }
 0x903   :  { %12727 = vmatprep.subr.bf16.mxu0 %v15519_v43 }
 0x906   :  { %12728 = vmatpush1.bf16.msra.mxu0 %v15517_v2 }
 0x907   :  { %12729 = vmatprep.subr.bf16.mxu0 %v15522_v25 }
 0x90a   :  { %12730 = vmatpush1.bf16.msra.mxu0 %v15520_v36 }
 0x90b   :  { %12731 = vmatprep.subr.bf16.mxu0 %v15525_v40 }
 0x90e   :  { %12732 = vmatpush1.bf16.msra.mxu0 %v15523_v45 }
 0x90f   :  { %12733 = vmatprep.subr.bf16.mxu0 %v15528_v57 }
 0x912   :  { %12734 = vmatpush1.bf16.msra.mxu0 %v15526_v55 }
 0x913   :  { %12735 = vmatprep.subr.bf16.mxu0 %v15531_v23 }
 0x916   :  { %12736 = vmatpush1.bf16.msra.mxu0 %v15529_v14 }
 0x917   :  { %12737 = vmatprep.subr.bf16.mxu0 %v15534_v22 }
 0x91a   :  { %12738 = vmatpush1.bf16.msra.mxu0 %v15532_v27 }
 0x91b   :  { %12739 = vmatprep.subr.bf16.mxu0 %v15537_v39 }
 0x91e   :  { %12740 = vmatpush1.bf16.msra.mxu0 %v15535_v11 }
 0x91f   :  { %12741 = vmatprep.subr.bf16.mxu0 %v15540_v20 }
 0x922   :  { %12742 = vmatpush1.bf16.msra.mxu0 %v15538_v8 }
 0x923   :  { %12743 = vmatprep.subr.bf16.mxu0 %v15543_v32 }
 0x926   :  { %12744 = vmatpush1.bf16.msra.mxu0 %v15541_v13 }
 0x927   :  { %12745 = vmatprep.subr.bf16.mxu0 %v15546_v15 }
 0x92a   :  { %12746 = vmatpush1.bf16.msra.mxu0 %v15544_v10 }
 0x92b   :  { %12747 = vmatprep.subr.bf16.mxu0 %v15549_v63 }
 0x92e   :  { %12748 = vmatpush1.bf16.msra.mxu0 %v15547_v5 }
 0x92f   :  { %12749 = vmatprep.subr.bf16.mxu0 %v15552_v58 }
 0x932   :  { %12750 = vmatpush1.bf16.msra.mxu0 %v15550_v62 }
 0x933   :  { %12760 = vmatprep.subr.bf16.mxu0 %v15555_v4 }
 0x9c8   :  { %v11948_v56 = vpop.f32.mrb[20].mxu0 }
 0x9c9   :  { %v17517_v0 = vadd.f32 %v11948_v56, %v10494_v26  ;;  %v12112_v33 = vpop.f32.mrb[28].mxu1  ;;  %v11950_v50 = vpop.f32.mrb[21].mxu0 }
 0x9ca   :  { %v17519_v7 = vadd.f32 %v12112_v33, %v10502_v21  ;;  %v17521_v31 = vadd.f32 %v11950_v50, %v10498_v1  ;;  %v12114_v48 = vpop.f32.mrb[29].mxu1  ;;  %v11952_v59 = vpop.f32.mrb[22].mxu0 }
 0x9cb   :  { %v12119_v3 = vrot.slane %v17517_v0, 4  ;;  %v12147_v19 = vmul.f32 %v17517_v0, %v17517_v0  ;;  %v17526_v38 = vadd.f32 %v12114_v48, %v10506_v30  ;;  %v12116_v61 = vpop.f32.mrb[30].mxu1  ;;  %v11953_v60 = vpop.f32.mrb[23].mxu0 }
 0x9cc   :  { %v12131_v51 = vrot.slane %v17519_v7, 4  ;;  %v12149_v17 = vmul.f32 %v17519_v7, %v17519_v7  ;;  %v12125_v29 = vrot.slane %v17521_v31, 4  ;;  %v12148_v49 = vmul.f32 %v17521_v31, %v17521_v31  ;;  %v12117_v28 = vpop.f32.mrb[31].mxu1 }
 0x9cd   :  { %v12120_v53 = vadd.f32 %v17517_v0, %v12119_v3  ;;  %v12151_v6 = vrot.slane %v12147_v19, 4  ;;  %v12137_v9 = vrot.slane %v17526_v38, 4  ;;  %v12150_v24 = vmul.f32 %v17526_v38, %v17526_v38 }
 0x9ce   :  { %v12132_v42 = vadd.f32 %v17519_v7, %v12131_v51  ;;  %v12163_v35 = vrot.slane %v12149_v17, 4  ;;  %v12126_v12 = vadd.f32 %v17521_v31, %v12125_v29  ;;  %v12157_v37 = vrot.slane %v12148_v49, 4 }
 0x9cf   :  { %v12121_v44 = vrot.slane %v12120_v53, 2  ;;  %v12152_v54 = vadd.f32 %v12151_v6, %v12147_v19  ;;  %v12138_v34 = vadd.f32 %v17526_v38, %v12137_v9  ;;  %v12169_v43 = vrot.slane %v12150_v24, 4 }
 0x9d0   :  { %v12133_v2 = vrot.slane %v12132_v42, 2  ;;  %v12164_v25 = vadd.f32 %v12163_v35, %v12149_v17  ;;  %v12127_v36 = vrot.slane %v12126_v12, 2  ;;  %v12158_v40 = vadd.f32 %v12157_v37, %v12148_v49 }
 0x9d1   :  { %v12122_v45 = vadd.f32 %v12121_v44, %v12120_v53  ;;  %v12153_v57 = vrot.slane %v12152_v54, 2  ;;  %v12139_v55 = vrot.slane %v12138_v34, 2  ;;  %v12170_v23 = vadd.f32 %v12169_v43, %v12150_v24 }
 0x9d2   :  { %v12134_v14 = vadd.f32 %v12133_v2, %v12132_v42  ;;  %v12165_v22 = vrot.slane %v12164_v25, 2  ;;  %v12128_v27 = vadd.f32 %v12127_v36, %v12126_v12  ;;  %v12159_v39 = vrot.slane %v12158_v40, 2 }
 0x9d3   :  { %v12123_v11 = vrot.slane %v12122_v45, 1  ;;  %v12154_v20 = vadd.f32 %v12153_v57, %v12152_v54  ;;  %v12140_v8 = vadd.f32 %v12139_v55, %v12138_v34  ;;  %v12171_v32 = vrot.slane %v12170_v23, 2 }
 0x9d4   :  { %v12135_v13 = vrot.slane %v12134_v14, 1  ;;  %v12166_v15 = vadd.f32 %v12165_v22, %v12164_v25  ;;  %v12129_v10 = vrot.slane %v12128_v27, 1  ;;  %v12160_v63 = vadd.f32 %v12159_v39, %v12158_v40 }
 0x9d5   :  { %v12124_v5 = vadd.f32 %v12123_v11, %v12122_v45  ;;  %v12155_v58 = vrot.slane %v12154_v20, 1  ;;  %v12141_v62 = vrot.slane %v12140_v8, 1  ;;  %v12172_v4 = vadd.f32 %v12171_v32, %v12170_v23  ;;  %v12191_v11 = vld [vmem:[#allocation19] sm:$0xf] }
 0x9d6   :  { %v12136_v41 = vadd.f32 %v12135_v13, %v12134_v14  ;;  %v12167_v26 = vrot.slane %v12166_v15, 1  ;;  %v12130_v21 = vadd.f32 %v12129_v10, %v12128_v27  ;;  %v12161_v1 = vrot.slane %v12160_v63, 1 }
 0x9d7   :  { %v12143_v30 = vmul.f32 0.125, %v12124_v5  ;;  %v12156_v56 = vadd.f32 %v12155_v58, %v12154_v20  ;;  %v12142_v33 = vadd.f32 %v12141_v62, %v12140_v8  ;;  %v12173_v50 = vrot.slane %v12172_v4, 1 }
 0x9d8   :  { %v12145_v48 = vmul.f32 0.125, %v12136_v41  ;;  %v12168_v59 = vadd.f32 %v12167_v26, %v12166_v15  ;;  %v12162_v3 = vadd.f32 %v12161_v1, %v12160_v63  ;;  %v12144_v19 = vmul.f32 0.125, %v12130_v21 }
 0x9d9   :  { %v12175_v61 = vmul.f32 0.125, %v12156_v56  ;;  %v12179_v60 = vmul.f32 %v12143_v30, %v12143_v30  ;;  %v12146_v51 = vmul.f32 0.125, %v12142_v33  ;;  %v12174_v17 = vadd.f32 %v12173_v50, %v12172_v4 }
 0x9da   :  { %v12177_v29 = vmul.f32 0.125, %v12168_v59  ;;  %v12181_v49 = vmul.f32 %v12145_v48, %v12145_v48  ;;  %v12176_v28 = vmul.f32 0.125, %v12162_v3  ;;  %v12180_v53 = vmul.f32 %v12144_v19, %v12144_v19  ;;  %v12230_v3 = vld [vmem:[#allocation20] sm:$0xf] }
 0x9db   :  { %v12183_v6 = vsub.f32 %v12175_v61, %v12179_v60  ;;  %v12178_v9 = vmul.f32 0.125, %v12174_v17  ;;  %v12182_v24 = vmul.f32 %v12146_v51, %v12146_v51 }
 0x9dc   :  { %v12185_v42 = vsub.f32 %v12177_v29, %v12181_v49  ;;  %v12184_v35 = vsub.f32 %v12176_v28, %v12180_v53  ;;  %v15553_v53 = vld [vmem:[#allocation22 + $0x100] ss:$8 sps:$4 sm:$0xff]  }
 0x9dd   :  { %v12187_v12 = vmax.f32 %v12183_v6, 0.0  ;;  %v12186_v37 = vsub.f32 %v12178_v9, %v12182_v24  ;;  %v15558_v9 = vld [vmem:[#allocation22 + $0x114] ss:$8 sps:$4 sm:$0xff]  }
 0x9de   :  { %v12189_v44 = vmax.f32 %v12185_v42, 0.0  ;;  %v12188_v54 = vmax.f32 %v12184_v35, 0.0  ;;  %v15559_v42 = vld [vmem:[#allocation22 + $0x120] ss:$8 sps:$4 sm:$0xff]   ;;  %v15564_v35 = vld [vmem:[#allocation22 + $0x134] ss:$8 sps:$4 sm:$0xff]  }
 0x9df   :  { %v12192_v34 = vadd.f32 1e-05, %v12187_v12  ;;  %v12190_v43 = vmax.f32 %v12186_v37, 0.0  ;;  %v15562_v12 = vld [vmem:[#allocation22 + $0x130] ss:$8 sps:$4 sm:$0xff]  }
 0x9e0   :  { %v12194_v2 = vadd.f32 1e-05, %v12189_v44  ;;  %v12193_v25 = vadd.f32 1e-05, %v12188_v54  ;;  %v15567_v37 = vld [vmem:[#allocation22 + $0x144] ss:$8 sps:$4 sm:$0xff]  }
 0x9e1   :  { %15677 = vrsqrt.f32 %v12192_v34  ;;  %v12195_v36 = vadd.f32 1e-05, %v12190_v43  ;;  %v15565_v44 = vld [vmem:[#allocation22 + $0x140] ss:$8 sps:$4 sm:$0xff]   ;;  %v15570_v54 = vld [vmem:[#allocation22 + $0x154] ss:$8 sps:$4 sm:$0xff]  }
 0x9e2   :  { %15679 = vrsqrt.f32 %v12194_v2  ;;  %v15568_v34 = vld [vmem:[#allocation22 + $0x150] ss:$8 sps:$4 sm:$0xff]   ;;  %v15573_v43 = vld [vmem:[#allocation22 + $0x164] ss:$8 sps:$4 sm:$0xff]   ;;  %v15571_v2 = vld [vmem:[#allocation22 + $0x160] ss:$8 sps:$4 sm:$0xff]  }
 0x9e3   :  { %15681 = vrsqrt.f32 %v12195_v36  ;;  %v15574_v36 = vld [vmem:[#allocation22 + $0x170] ss:$8 sps:$4 sm:$0xff]  }
 0x9e4   :  { %15683 = vrsqrt.f32 %v12193_v25  ;;  %v15576_v25 = vld [vmem:[#allocation22 + $0x174] ss:$8 sps:$4 sm:$0xff]  }
 0x9eb   :  { %v15678_v40 = vpop.eup %15677 }
 0x9ec   :  { %v15680_v45 = vpop.eup %15679 }
 0x9ed   :  { %v15682_v57 = vpop.eup %15681 }
 0x9ee   :  { %v15684_v55 = vpop.eup %15683  ;;  %v12205_v23 = vcombine.low %v15680_v45, %v15682_v57  ;;  %v15577_v45 = vld [vmem:[#allocation22 + $0x180] ss:$8 sps:$4 sm:$0xff]   ;;  %v15582_v57 = vld [vmem:[#allocation22 + $0x194] ss:$8 sps:$4 sm:$0xff]  }
 0x9ef   :  { %v12204_v14 = vcombine.low %v15678_v40, %v15684_v55  ;;  %v15579_v40 = vld [vmem:[#allocation22 + $0x184] ss:$8 sps:$4 sm:$0xff]   ;;  %v15580_v55 = vld [vmem:[#allocation22 + $0x190] ss:$8 sps:$4 sm:$0xff]  }
 0x9f0   :  { %v12219_v22 = vrot.slane %v12205_v23, %v16811_v46  ;;  %v15585_v23 = vld [vmem:[#allocation22 + $0x1a4] ss:$8 sps:$4 sm:$0xff]  }
 0x9f1   :  { %v12212_v27 = vrot.slane %v12204_v14, %v16811_v46  ;;  %v15583_v14 = vld [vmem:[#allocation22 + $0x1a0] ss:$8 sps:$4 sm:$0xff]  }
 0x9f3   :  { %v12220_v39 = vcombine.low %v12212_v27, %v12219_v22  ;;  %v15588_v22 = vld [vmem:[#allocation22 + $0x1b4] ss:$8 sps:$4 sm:$0xff]   ;;  %v15586_v27 = vld [vmem:[#allocation22 + $0x1b0] ss:$8 sps:$4 sm:$0xff]  }
 0x9f5   :  { %v12227_v20 = vrot.slane %v12220_v39, %v16811_v46  ;;  %v15591_v39 = vld [vmem:[#allocation22 + $0x1c4] ss:$8 sps:$4 sm:$0xff]  }
 0x9f7   :  { %v12229_v8 = vmul.f32 %v12227_v20, %v12191_v11  ;;  %v15589_v11 = vld [vmem:[#allocation22 + $0x1c0] ss:$8 sps:$4 sm:$0xff]   ;;  %v15594_v20 = vld [vmem:[#allocation22 + $0x1d4] ss:$8 sps:$4 sm:$0xff]  }
 0x9f9   :  { %v12235_v32 = vrot.slane %v12229_v8, %v16683_v47  ;;  %v12239_v13 = vrot.slane %v12229_v8, %v16688_v52  ;;  %v12243_v15 = vrot.slane %v12229_v8, %v16739_v16  ;;  %v12247_v10 = vrot.slane %v12229_v8, %v16742_v18  ;;  %v15592_v8 = vld [vmem:[#allocation22 + $0x1d0] ss:$8 sps:$4 sm:$0xff]  }
 0x9fb   :  { %v12252_v63 = vmul.f32 %v12235_v32, %v12143_v30  ;;  %v12253_v5 = vmul.f32 %v12239_v13, %v12144_v19  ;;  %v12254_v58 = vmul.f32 %v12243_v15, %v12145_v48  ;;  %v12255_v62 = vmul.f32 %v12247_v10, %v12146_v51 }
 0x9fc   :  { %v12287_v4 = vmul.f32 %v17521_v31, %v12239_v13  ;;  %v12286_v41 = vmul.f32 %v17517_v0, %v12235_v32  ;;  %v12289_v26 = vmul.f32 %v17526_v38, %v12247_v10  ;;  %v12288_v21 = vmul.f32 %v17519_v7, %v12243_v15  ;;  %v15597_v32 = vld [vmem:[#allocation22 + $0x1e4] ss:$8 sps:$4 sm:$0xff]   ;;  %v15595_v13 = vld [vmem:[#allocation22 + $0x1e0] ss:$8 sps:$4 sm:$0xff]   ;;  %v15600_v15 = vld [vmem:[#allocation22 + $0x1f4] ss:$8 sps:$4 sm:$0xff]  }
 0x9fd   :  { %v12260_v1 = vcombine.low %v12252_v63, %v12253_v5  ;;  %v12261_v56 = vcombine.low %v12254_v58, %v12255_v62  ;;  %v15598_v10 = vld [vmem:[#allocation22 + $0x1f0] ss:$8 sps:$4 sm:$0xff]   ;;  %v15601_v58 = vld [vmem:[#allocation28 + $0x40] sm:$0xff]  }
 0x9fe   :  { %v15602_v62 = vld [vmem:[#allocation28] sm:$0xff]   ;;  %14863 = vmatprep.subr.bf16.mxu1 %v15601_v58 }
 0x9ff   :  { %v12268_v33 = vrot.slane %v12260_v1, %v16811_v46  ;;  %v12275_v50 = vrot.slane %v12261_v56, %v16811_v46  ;;  %14864 = vmatpush3.bf16.msra.mxu1 %v15602_v62  ;;  %v15607_v1 = vld [vmem:[#allocation28 + $0x58] sm:$0xff]  }
 0xa00   :  { %v15608_v56 = vld [vmem:[#allocation28 + $0x18] sm:$0xff]  }
 0xa01   :  { %v12276_v59 = vcombine.low %v12268_v33, %v12275_v50  ;;  %v15609_v33 = vld [vmem:[#allocation28 + $0x60] sm:$0xff]  }
 0xa02   :  { %v15610_v50 = vld [vmem:[#allocation28 + $0x20] sm:$0xff]  }
 0xa03   :  { %v12283_v30 = vrot.slane %v12276_v59, %v16811_v46  ;;  %v15611_v59 = vld [vmem:[#allocation28 + $0x68] sm:$0xff]  }
 0xa05   :  { %v12285_v48 = vsub.f32 %v12230_v3, %v12283_v30  ;;  %v15612_v3 = vld [vmem:[#allocation28 + $0x28] sm:$0xff]   ;;  %v15613_v30 = vld [vmem:[#allocation28 + $0x70] sm:$0xff]  }
 0xa07   :  { %v12298_v19 = vrot.slane %v12285_v48, %v16688_v52  ;;  %v12294_v31 = vrot.slane %v12285_v48, %v16683_v47  ;;  %v12306_v0 = vrot.slane %v12285_v48, %v16742_v18  ;;  %v12302_v38 = vrot.slane %v12285_v48, %v16739_v16  ;;  %v15556_v18 = vld [vmem:[#allocation22 + $0x110] ss:$8 sps:$4 sm:$0xff]   ;;  %v15561_v16 = vld [vmem:[#allocation22 + $0x124] ss:$8 sps:$4 sm:$0xff]  }
 0xa08   :  { %v15614_v48 = vld [vmem:[#allocation28 + $0x30] sm:$0xff]  }
 0xa09   :  { %v12312_v7 = vadd.f32 %v12298_v19, %v12287_v4  ;;  %v12311_v61 = vadd.f32 %v12294_v31, %v12286_v41  ;;  %v12314_v60 = vadd.f32 %v12306_v0, %v12289_v26  ;;  %v17559_v51 = vadd.f32 %v12302_v38, %v12288_v21  ;;  %v15603_v4 = vld [vmem:[#allocation28 + $0x48] sm:$0xff]   ;;  %v15605_v26 = vld [vmem:[#allocation28 + $0x50] sm:$0xff]   ;;  %v15615_v19 = vld [vmem:[#allocation28 + $0x78] sm:$0xff]  }
 0xa0a   :  { %v15604_v41 = vld [vmem:[#allocation28 + $0x8] sm:$0xff]   ;;  %14865 = vmatprep.subr.bf16.mxu1 %v15603_v4  ;;  %v15606_v21 = vld [vmem:[#allocation28 + $0x10] sm:$0xff]   ;;  %v15616_v31 = vld [vmem:[#allocation28 + $0x38] sm:$0xff]  }
 0xa0b   :  { %v12316_v17 = vmax.f32 %v12312_v7, 0.0  ;;  %v12315_v29 = vmax.f32 %v12311_v61, 0.0  ;;  %v12318_v49 = vmax.f32 %v12314_v60, 0.0  ;;  %v12317_v63 = vmax.f32 %v17559_v51, 0.0  ;;  %14866 = vmatpush3.bf16.msra.mxu1 %v15604_v41  ;;  %v12387_v0 = vld [vmem:[#allocation23] sm:$0x3] }
 0xa0c   :  { %14867 = vmatprep.subr.bf16.mxu1 %v15605_v26  ;;  %v12392_v38 = vrot.slane %v12387_v0, %v16683_v47  ;;  %v12396_v7 = vrot.slane %v12387_v0, %v16688_v52 }
 0xa0d   :  { %v12320_v28 = vpack.c.bf16 %v12316_v17, %v12316_v17  ;;  %v12319_v6 = vpack.c.bf16 %v12315_v29, %v12315_v29  ;;  %v12322_v24 = vpack.c.bf16 %v12318_v49, %v12318_v49  ;;  %v12321_v5 = vpack.c.bf16 %v12317_v63, %v12317_v63 }
 0xa0f   :  { %12751 = vmatprep.mubr.bf16.mxu0 %v12320_v28  ;;  %14868 = vmatpush3.bf16.msra.mxu1 %v15606_v21 }
 0xa10   :  { %12752 = vmatmul.mubr.bf16.vlgmr.msra.gmra.mrb[24].mxu0 %v12319_v6  ;;  %14869 = vmatprep.subr.bf16.mxu1 %v15607_v1  ;;  %v12837_v1 = vld [vmem:[#allocation25] sm:$0x3] }
 0xa11   :  { %12761 = vmatpush1.bf16.msra.mxu0 %v15553_v53  ;;  %12792 = vmatprep.mubr.bf16.mxu0 %v12322_v24 }
 0xa12   :  { %12762 = vmatprep.subr.bf16.mxu0 %v15558_v9 }
 0xa13   :  { %14870 = vmatpush3.bf16.msra.mxu1 %v15608_v56 }
 0xa14   :  { %14871 = vmatprep.subr.bf16.mxu1 %v15609_v33 }
 0xa15   :  { %12763 = vmatpush1.bf16.msra.mxu0 %v15556_v18 }
 0xa16   :  { %12764 = vmatprep.subr.bf16.mxu0 %v15561_v16 }
 0xa17   :  { %14872 = vmatpush3.bf16.msra.mxu1 %v15610_v50 }
 0xa18   :  { %14873 = vmatprep.subr.bf16.mxu1 %v15611_v59 }
 0xa19   :  { %12765 = vmatpush1.bf16.msra.mxu0 %v15559_v42 }
 0xa1a   :  { %12766 = vmatprep.subr.bf16.mxu0 %v15564_v35 }
 0xa1b   :  { %14874 = vmatpush3.bf16.msra.mxu1 %v15612_v3 }
 0xa1c   :  { %14875 = vmatprep.subr.bf16.mxu1 %v15613_v30 }
 0xa1d   :  { %12767 = vmatpush1.bf16.msra.mxu0 %v15562_v12 }
 0xa1e   :  { %12768 = vmatprep.subr.bf16.mxu0 %v15567_v37 }
 0xa1f   :  { %14876 = vmatpush3.bf16.msra.mxu1 %v15614_v48 }
 0xa20   :  { %14877 = vmatprep.subr.bf16.mxu1 %v15615_v19 }
 0xa21   :  { %12769 = vmatpush1.bf16.msra.mxu0 %v15565_v44 }
 0xa22   :  { %12770 = vmatprep.subr.bf16.mxu0 %v15570_v54 }
 0xa23   :  { %14878 = vmatpush3.bf16.msra.mxu1 %v15616_v31 }
 0xa25   :  { %12771 = vmatpush1.bf16.msra.mxu0 %v15568_v34 }
 0xa26   :  { %12772 = vmatprep.subr.bf16.mxu0 %v15573_v43 }
 0xa29   :  { %12773 = vmatpush1.bf16.msra.mxu0 %v15571_v2 }
 0xa2a   :  { %12774 = vmatprep.subr.bf16.mxu0 %v15576_v25 }
 0xa2d   :  { %12775 = vmatpush1.bf16.msra.mxu0 %v15574_v36 }
 0xa2e   :  { %12776 = vmatprep.subr.bf16.mxu0 %v15579_v40 }
 0xa31   :  { %12777 = vmatpush1.bf16.msra.mxu0 %v15577_v45 }
 0xa32   :  { %12778 = vmatprep.subr.bf16.mxu0 %v15582_v57 }
 0xa35   :  { %12779 = vmatpush1.bf16.msra.mxu0 %v15580_v55 }
 0xa36   :  { %12780 = vmatprep.subr.bf16.mxu0 %v15585_v23 }
 0xa39   :  { %12781 = vmatpush1.bf16.msra.mxu0 %v15583_v14 }
 0xa3a   :  { %12782 = vmatprep.subr.bf16.mxu0 %v15588_v22 }
 0xa3d   :  { %12783 = vmatpush1.bf16.msra.mxu0 %v15586_v27 }
 0xa3e   :  { %12784 = vmatprep.subr.bf16.mxu0 %v15591_v39 }
 0xa41   :  { %12785 = vmatpush1.bf16.msra.mxu0 %v15589_v11 }
 0xa42   :  { %12786 = vmatprep.subr.bf16.mxu0 %v15594_v20 }
 0xa45   :  { %12787 = vmatpush1.bf16.msra.mxu0 %v15592_v8 }
 0xa46   :  { %12788 = vmatprep.subr.bf16.mxu0 %v15597_v32 }
 0xa49   :  { %12789 = vmatpush1.bf16.msra.mxu0 %v15595_v13 }
 0xa4a   :  { %12790 = vmatprep.subr.bf16.mxu0 %v15600_v15 }
 0xa4d   :  { %12791 = vmatpush1.bf16.msra.mxu0 %v15598_v10 }
 0xa50   :  { %12793 = vmatmul.mubr.bf16.vlgmr.msra.gmra.mrb[24].mxu0 %v12321_v5 }
 0xb23   :  { %v12794_v61 = vpop.f32.mrb[24].mxu0 }
 0xb24   :  { %v14943_v60 = vadd.f32 %v12794_v61, %v12392_v38  ;;  %v12796_v51 = vpop.f32.mrb[25].mxu0  ;;  %v12861_v38 = vld [vmem:[#allocation26] sm:$0x3] }
 0xb25   :  { %v14944_v17 = vadd.f32 %v12796_v51, %v12396_v7  ;;  %v12798_v29 = vpop.f32.mrb[26].mxu0 }
 0xb26   :  { %v12801_v49 = vrot.slane %v14943_v60, 4  ;;  %v12815_v28 = vmul.f32 %v14943_v60, %v14943_v60  ;;  %v12799_v53 = vpop.f32.mrb[27].mxu0 }
 0xb27   :  { %v12807_v6 = vrot.slane %v14944_v17, 4  ;;  %v12816_v9 = vmul.f32 %v14944_v17, %v14944_v17 }
 0xb28   :  { %v12802_v24 = vadd.f32 %v14943_v60, %v12801_v49  ;;  %v12817_v18 = vrot.slane %v12815_v28, 4 }
 0xb29   :  { %v12808_v16 = vadd.f32 %v14944_v17, %v12807_v6  ;;  %v12823_v42 = vrot.slane %v12816_v9, 4 }
 0xb2a   :  { %v12803_v35 = vrot.slane %v12802_v24, 2  ;;  %v12818_v12 = vadd.f32 %v12817_v18, %v12815_v28  ;;  %v15620_v18 = vld [vmem:[%s17659_s21 + $0x18] sm:$0xff]  }
 0xb2b   :  { %v12809_v37 = vrot.slane %v12808_v16, 2  ;;  %v12824_v44 = vadd.f32 %v12823_v42, %v12816_v9  ;;  %v14831_v42 = vld [vmem:[#allocation29] ss:$0 sm:$0xff] }
 0xb2c   :  { %v12804_v54 = vadd.f32 %v12803_v35, %v12802_v24  ;;  %v12819_v34 = vrot.slane %v12818_v12, 2 }
 0xb2d   :  { %v12810_v43 = vadd.f32 %v12809_v37, %v12808_v16  ;;  %v12825_v2 = vrot.slane %v12824_v44, 2 }
 0xb2e   :  { %v12805_v25 = vrot.slane %v12804_v54, 1  ;;  %v12820_v36 = vadd.f32 %v12819_v34, %v12818_v12 }
 0xb2f   :  { %v12811_v40 = vrot.slane %v12810_v43, 1  ;;  %v12826_v45 = vadd.f32 %v12825_v2, %v12824_v44 }
 0xb30   :  { %v12806_v57 = vadd.f32 %v12805_v25, %v12804_v54  ;;  %v12821_v55 = vrot.slane %v12820_v36, 1 }
 0xb31   :  { %v12812_v23 = vadd.f32 %v12811_v40, %v12810_v43  ;;  %v12827_v14 = vrot.slane %v12826_v45, 1 }
 0xb32   :  { %v12813_v22 = vmul.f32 0.125, %v12806_v57  ;;  %v12822_v27 = vadd.f32 %v12821_v55, %v12820_v36 }
 0xb33   :  { %v12828_v39 = vadd.f32 %v12827_v14, %v12826_v45  ;;  %v12814_v11 = vmul.f32 0.125, %v12812_v23 }
 0xb34   :  { %v12829_v20 = vmul.f32 0.125, %v12822_v27  ;;  %v12831_v8 = vmul.f32 %v12813_v22, %v12813_v22 }
 0xb35   :  { %v12830_v32 = vmul.f32 0.125, %v12828_v39  ;;  %v12832_v13 = vmul.f32 %v12814_v11, %v12814_v11 }
 0xb36   :  { %v12833_v15 = vsub.f32 %v12829_v20, %v12831_v8 }
 0xb37   :  { %v12834_v10 = vsub.f32 %v12830_v32, %v12832_v13 }
 0xb38   :  { %v12835_v63 = vmax.f32 %v12833_v15, 0.0  ;;  %v13106_v15 = vld [vmem:[#allocation31] sm:$0x1] }
 0xb39   :  { %v12836_v5 = vmax.f32 %v12834_v10, 0.0 }
 0xb3a   :  { %v12838_v58 = vadd.f32 1e-05, %v12835_v63 }
 0xb3b   :  { %v12839_v62 = vadd.f32 1e-05, %v12836_v5  ;;  %v13110_v5 = vld [vmem:[#allocation32] sm:$0x1] }
 0xb3c   :  { %15685 = vrsqrt.f32 %v12838_v58 }
 0xb3d   :  { %15687 = vrsqrt.f32 %v12839_v62 }
 0xb46   :  { %v15686_v4 = vpop.eup %15685 }
 0xb47   :  { %v15688_v41 = vpop.eup %15687 }
 0xb48   :  { %v12844_v26 = vcombine.low %v15686_v4, %v15688_v41 }
 0xb4a   :  { %v12851_v21 = vrot.slane %v12844_v26, %v16811_v46 }
 0xb4c   :  { %v12858_v56 = vrot.slane %v12851_v21, %v16811_v46 }
 0xb4e   :  { %v12860_v33 = vmul.f32 %v12858_v56, %v12837_v1 }
 0xb50   :  { %v12866_v50 = vrot.slane %v12860_v33, %v16683_v47  ;;  %v12870_v59 = vrot.slane %v12860_v33, %v16688_v52  ;;  %v15621_v33 = vld [vmem:[%s17659_s21 + $0x20] sm:$0xff]  }
 0xb52   :  { %v12873_v3 = vmul.f32 %v12866_v50, %v12813_v22  ;;  %v12874_v30 = vmul.f32 %v12870_v59, %v12814_v11  ;;  %v12895_v48 = vmul.f32 %v14944_v17, %v12870_v59  ;;  %v12894_v19 = vmul.f32 %v14943_v60, %v12866_v50  ;;  %v15617_v60 = vld [vmem:[%s17659_s21] sm:$0xff]   ;;  %v15622_v50 = vld [vmem:[%s17659_s21 + $0x28] sm:$0xff]   ;;  %v15624_v59 = vld [vmem:[%s17659_s21 + $0x38] sm:$0xff]  }
 0xb53   :  { %v16259_v17 = vmov 0.0  }
 0xb54   :  { %v12877_v31 = vcombine.low %v12873_v3, %v12874_v30  ;;  %14899 = vmatprep.subr.bf16.mxu1 %v16259_v17 }
 0xb56   :  { %v12884_v0 = vrot.slane %v12877_v31, %v16811_v46  ;;  %v15625_v31 = vld [vmem:[%s17661_s23] sm:$0xff]  }
 0xb58   :  { %v12891_v7 = vrot.slane %v12884_v0, %v16811_v46  ;;  %v15619_v46 = vld [vmem:[%s17659_s21 + $0x10] sm:$0xff]  }
 0xb5a   :  { %v12893_v61 = vsub.f32 %v12861_v38, %v12891_v7  ;;  %v15626_v38 = vld [vmem:[%s17661_s23 + $0x8] sm:$0xff]   ;;  %v15627_v7 = vld [vmem:[%s17661_s23 + $0x10] sm:$0xff]  }
 0xb5c   :  { %v12904_v51 = vrot.slane %v12893_v61, %v16688_v52  ;;  %v12900_v29 = vrot.slane %v12893_v61, %v16683_v47  ;;  %v15618_v52 = vld [vmem:[%s17659_s21 + $0x8] sm:$0xff]   ;;  %v15628_v61 = vld [vmem:[%s17661_s23 + $0x18] sm:$0xff]   ;;  %s16178_s23 = scalar_lea.vmem %s13340_s8, 128 }
 0xb5d   :  { %p16179_p8 = scmp.ne.s32.totalorder %s13340_s8, %s16178_s23  ;;  %p16184_p10 = scmp.lt.s32.totalorder %s16178_s23, %s16178_s23 }
 0xb5e   :  { %v12908_v49 = vadd.f32 %v12904_v51, %v12895_v48  ;;  %v12907_v28 = vadd.f32 %v12900_v29, %v12894_v19  ;;  %v14848_v51 = vld [vmem:[#allocation34] ss:$0 sm:$0xff] }
 0xb5f   :  { %p16185_p11 = por %p16184_p10, %p16183_p9 }
 0xb60   :  { %v12910_v53 = vmax.f32 %v12908_v49, 0.0  ;;  %v12909_v6 = vmax.f32 %v12907_v28, 0.0 }
 0xb61   :  { %p16186_p12 = pnand %p16185_p11, %p16179_p8 }
 0xb62   :  { %v12912_v9 = vpack.c.bf16 %v12910_v53, %v12910_v53  ;;  %v12911_v24 = vpack.c.bf16 %v12909_v6, %v12909_v6 }
 0xb64   :  { %13080 = vmatprep.mubr.bf16.mxu1 %v12912_v9 }
 0xb65   :  { %13081 = vmatmul.mubr.bf16.vlgmr.msra.gmra.mrb[32].mxu1 %v12911_v24 }
 0xb66   :  { %14900 = vmatpush3.bf16.msra.mxu1 %v15617_v60  ;;  %14915 = vmatprep.mubr.msk.bf16.mxu1 %vm16260_vm0, %v16259_v17  ;;  %v14857_v60 = vld [vmem:[#allocation35] ss:$0 sm:$0xff] }
 0xb67   :  { %14901 = vmatprep.subr.bf16.mxu1 %v16259_v17 }
 0xb6a   :  { %14902 = vmatpush3.bf16.msra.mxu1 %v15618_v52 }
 0xb6b   :  { %14903 = vmatprep.subr.bf16.mxu1 %v16259_v17 }
 0xb6e   :  { %14904 = vmatpush3.bf16.msra.mxu1 %v15619_v46 }
 0xb6f   :  { %14905 = vmatprep.subr.bf16.mxu1 %v16259_v17 }
 0xb72   :  { %14906 = vmatpush3.bf16.msra.mxu1 %v15620_v18 }
 0xb73   :  { %14907 = vmatprep.subr.bf16.mxu1 %v16259_v17 }
 0xb76   :  { %14908 = vmatpush3.bf16.msra.mxu1 %v15621_v33 }
 0xb77   :  { %14909 = vmatprep.subr.bf16.mxu1 %v16259_v17 }
 0xb7a   :  { %14910 = vmatpush3.bf16.msra.mxu1 %v15622_v50 }
 0xb7b   :  { %14911 = vmatprep.subr.bf16.mxu1 %v16259_v17 }
 0xc38   :  { %v14879_v16 = vpop.f32.mrb[32].mxu1 }
 0xc39   :  { %v14880_v35 = vpop.f32.mrb[33].mxu1 }
 0xc3a   :  { %v14881_v12 = vadd.f32 %v14880_v35, %v14879_v16  ;;  %v14882_v37 = vpop.f32.mrb[34].mxu1 }
 0xc3b   :  { %v14883_v44 = vpop.f32.mrb[35].mxu1 }
 0xc3c   :  { %v13083_v54 = vadd.f32 %v14881_v12, %v14831_v42 }
 0xc3e   :  { %v13088_v34 = vrot.slane %v13083_v54, 4  ;;  %v13095_v43 = vmul.f32 %v13083_v54, %v13083_v54 }
 0xc40   :  { %v13089_v2 = vadd.f32 %v13088_v34, %v13083_v54  ;;  %v13096_v25 = vrot.slane %v13095_v43, 4 }
 0xc42   :  { %v13090_v36 = vrot.slane %v13089_v2, 2  ;;  %v13097_v40 = vadd.f32 %v13096_v25, %v13095_v43 }
 0xc44   :  { %v13091_v45 = vadd.f32 %v13090_v36, %v13089_v2  ;;  %v13098_v57 = vrot.slane %v13097_v40, 2 }
 0xc46   :  { %v13099_v55 = vadd.f32 %v13098_v57, %v13097_v40  ;;  %v13092_v23 = vrot.slane %v13091_v45, 1 }
 0xc48   :  { %v13100_v14 = vrot.slane %v13099_v55, 1  ;;  %v13093_v22 = vadd.f32 %v13092_v23, %v13091_v45 }
 0xc4a   :  { %v13101_v27 = vadd.f32 %v13100_v14, %v13099_v55  ;;  %v13094_v39 = vmul.f32 0.125, %v13093_v22 }
 0xc4c   :  { %v13102_v11 = vmul.f32 0.125, %v13101_v27  ;;  %v13103_v20 = vmul.f32 %v13094_v39, %v13094_v39 }
 0xc4e   :  { %v13104_v8 = vsub.f32 %v13102_v11, %v13103_v20 }
 0xc50   :  { %v13105_v32 = vmax.f32 %v13104_v8, 0.0 }
 0xc52   :  { %v13107_v13 = vadd.f32 1e-05, %v13105_v32 }
 0xc54   :  { %15689 = vrsqrt.f32 %v13107_v13 }
 0xc5e   :  { %v15690_v10 = vpop.eup %15689 }
 0xc5f   :  { %v13109_v63 = vmul.f32 %v15690_v10, %v13106_v15 }
 0xc61   :  { %v13111_v58 = vmul.f32 %v13109_v63, %v13094_v39  ;;  %v13117_v62 = vrot.slane %v13109_v63, %v16683_v47 }
 0xc63   :  { %v13112_v4 = vsub.f32 %v13110_v5, %v13111_v58  ;;  %v13119_v41 = vmul.f32 %v13117_v62, %v13083_v54 }
 0xc65   :  { %v13124_v26 = vrot.slane %v13112_v4, %v16683_v47  ;;  %v15623_v47 = vld [vmem:[%s17659_s21 + $0x30] sm:$0xff]  }
 0xc66   :  { %14912 = vmatpush3.bf16.msra.mxu1 %v15623_v47 }
 0xc67   :  { %v13126_v21 = vadd.f32 %v13124_v26, %v13119_v41  ;;  %14913 = vmatprep.subr.bf16.mxu1 %v16259_v17 }
 0xc69   :  { %v13127_v1 = vmax.f32 %v13126_v21, 0.0 }
 0xc6a   :  { %14914 = vmatpush3.bf16.msra.mxu1 %v15624_v59 }
 0xc6b   :  { %v13128_v56 = vmul.f32 %v13127_v1, %v13127_v1  ;;  %14919 = vmatprep.subr.bf16.mxu1 %v16259_v17 }
 0xc6d   :  { %13129 = vadd.xlane.f32.xlu0 %v13128_v56 }
 0xcfa   :  { %v13130_v3 = vpop.xlane.xlu0 %13129 }
 0xcfb   :  { %v13131_v30 = vmax.f32 %v13130_v3, 1e-24 }
 0xcfd   :  { %15691 = vrsqrt.f32 %v13131_v30 }
 0xd07   :  { %v15692_v48 = vpop.eup %15691 }
 0xd08   :  { %v13133_v19 = vmul.f32 %v15692_v48, %v13127_v1 }
 0xd0a   :  { %v13134_v0 = vpack.c.bf16 %v13133_v19, %v13133_v19 }
 0xd0c   :  { %14916 = vmatmul.mubr.bf16.vlgmr.msra.gmra.mrb[36].mxu1 %v13134_v0 }
 0xd0d   :  { %14920 = vmatpush3.bf16.msra.mxu1 %v15625_v31  ;;  %14927 = vmatprep.mubr.msk.bf16.mxu1 %vm16260_vm0, %v16259_v17 }
 0xd0e   :  { %14921 = vmatprep.subr.bf16.mxu1 %v16259_v17 }
 0xd11   :  { %14922 = vmatpush3.bf16.msra.mxu1 %v15626_v38 }
 0xd12   :  { %14923 = vmatprep.subr.bf16.mxu1 %v16259_v17 }
 0xd15   :  { %14924 = vmatpush3.bf16.msra.mxu1 %v15627_v7 }
 0xd16   :  { %14925 = vmatprep.subr.bf16.mxu1 %v16259_v17 }
 0xd19   :  { %14926 = vmatpush3.bf16.msra.mxu1 %v15628_v61 }
 0xddf   :  { %v13240_v29 = vpop.f32.mrb[36].mxu1 }
 0xde0   :  { %v13241_v49 = vadd.f32 %v14848_v51, %v13240_v29  ;;  %v14917_v28 = vpop.f32.mrb[37].mxu1 }
 0xde1   :  { %v13243_v53 = vpop.f32.mrb[38].mxu1 }
 0xde2   :  { %v13246_v6 = vmax.f32 %v13241_v49, 0.0  ;;  %v14918_v9 = vpop.f32.mrb[39].mxu1 }
 0xde4   :  { %v13247_v24 = vpack.c.bf16 %v13246_v6, %v13246_v6 }
 0xde6   :  { %14928 = vmatmul.mubr.msk.bf16.vlgmr.msra.gmra.mrb[40].mxu1 %vm13287_vm1, %v13247_v24 }
 0xeb9   :  { %v13325_v52 = vpop.f32.mrb[40].mxu1 }
 0xeba   :  { %v13326_v46 = vadd.f32 %v14857_v60, %v13325_v52  ;;  %v14929_v18 = vpop.f32.mrb[41].mxu1 }
 0xebb   :  { %v13328_v17 = vpop.f32.mrb[42].mxu1 }
 0xebc   :  { %v14930_v16 = vpop.f32.mrb[43].mxu1  ;;  %13332 = vst.msk [vmem:[#allocation37] sm:$0xff] %vm13331_vm2, %v13326_v46 }
 0xebd   :  { %16189 = shalt.err (!%p16186_p12)
}
 0xebe   :  { %s17745_s17 = sld [smem:[#allocation74_spill]] }
 0xec4   :  { %s16190_s7 = scalar_lea.hbm %s17745_s17, 128 }
 0xec5   :  { %p16191_p13 = scmp.ne.s32.totalorder %s17745_s17, %s16190_s7  ;;  %p16194_p0 = scmp.lt.u32.totalorder %s16190_s7, %s17745_s17 }
 0xec7   :  { %p16196_p1 = pnand %p16194_p0, %p16191_p13 }
 0xec9   :  { %16199 = shalt.err (!%p16196_p1)
}
 0xeca   :  { %13342 = dma.vmem_to_hbm [thread:$0]  %s13340_s8, 128, %s17745_s17, [#allocation4]  }
 0xecb   :  { %16224 = dma.done.wait [#allocation4], 128  }
 0xecc   :  { %16225 = vsyncadd [#allocation4], 4294967168 }
 0xecd   :  { %13346 = vsyncpa [#allocation3], 1 }
 0xece   :  { %13347 = vsyncpa [#allocation6], 1 }
 0xecf   :  { %13348 = vsyncpa [#allocation9], 1 }
 0xed0   :  { %13349 = vsyncpa [#allocation12], 1 }
 0xed1   :  { %13350 = vsyncpa [#allocation15], 1 }
 0xed2   :  { %13351 = vsyncpa [#allocation18], 1 }
 0xed3   :  { %13352 = vsyncpa [#allocation21], 1 }
 0xed4   :  { %13353 = vsyncpa [#allocation24], 1 }
 0xed5   :  { %13354 = vsyncpa [#allocation27], 1 }
 0xed6   :  { %13355 = vsyncpa [#allocation30], 1 }
 0xed7   :  { %13356 = vsyncpa [#allocation33], 1 }
 0xed8   :  { %13357 = vsyncpa [#allocation36], 1 }
 0xed9   :  { %13358 = vsyncpa [#allocation4], 1 }

</bundles_post_ra>
